<compile_context>
chip_gen: v7x
topology: tpu7x:2x2x1
jax: 0.10.0
libtpu: 0.0.40
codegen_flags: <defaults>
</compile_context>

<pallas_src>
import jax
import jax.numpy as jnp
from jax.experimental import pallas as pl
from jax.experimental.pallas import tpu as pltpu

LATENT_DIM = 100          # args.latent_dim (standard GAN default)
H1, H2, H3, H4 = 128, 256, 512, 1024
OUT_DIM = 784
BN_EPS = 1e-5
LRELU_SLOPE = 0.2


def _leaky_relu(x):
    # max(x, 0.2*x) == LeakyReLU(0.2) for 0 < slope < 1; one vmul + vmax.
    return jnp.maximum(x, LRELU_SLOPE * x)


def _mm(x, w):
    # bf16 MXU path with f32 accumulation; activations / BN / bias math stay f32.
    return jnp.dot(x.astype(jnp.bfloat16), w, preferred_element_type=jnp.float32)


def _bn_train_fma(x, gamma, beta):
    # nn.BatchNorm1d training mode (batch mean, biased batch var), folded into a
    # single per-feature scale/shift so per-element work is one FMA.
    # Two-pass variance kept for numerical safety (E[x^2]-m^2 is less stable).
    mean = jnp.mean(x, axis=0, keepdims=True)
    d = x - mean
    var = jnp.mean(d * d, axis=0, keepdims=True)
    scale = gamma * jax.lax.rsqrt(var + BN_EPS)
    shift = beta - mean * scale
    return x * scale + shift


def generator_kernel(z_ref,
                     w1_ref, b1_ref,
                     w2_ref, g2_ref, be2_ref,
                     w3_ref, g3_ref, be3_ref,
                     w4_hbm, g4_ref, be4_ref,
                     w5_hbm, b5_ref,
                     out_ref,
                     w4_vmem, w5_vmem, dma_sems):
    # Kick off the big-weight DMAs first so they overlap layers 1-3.
    cp4 = pltpu.make_async_copy(w4_hbm, w4_vmem, dma_sems.at[0])
    cp5 = pltpu.make_async_copy(w5_hbm, w5_vmem, dma_sems.at[1])
    cp4.start()
    cp5.start()

    # Linear(latent, 128) + LeakyReLU  (K=100 unaligned; Mosaic masks the pad).
    h = _leaky_relu(_mm(z_ref[...], w1_ref[...]) + b1_ref[...])

    # Linear(128, 256) [bias cancels under batch-stat BN] + BN + LeakyReLU
    h = _leaky_relu(_bn_train_fma(_mm(h, w2_ref[...]), g2_ref[...], be2_ref[...]))

    # Linear(256, 512) [bias cancels under BN] + BN + LeakyReLU
    h = _leaky_relu(_bn_train_fma(_mm(h, w3_ref[...]), g3_ref[...], be3_ref[...]))

    # Linear(512, 1024) [bias cancels under BN] + BN + LeakyReLU
    cp4.wait()
    h = _leaky_relu(_bn_train_fma(_mm(h, w4_vmem[...]), g4_ref[...], be4_ref[...]))

    # Linear(1024, 784) + Tanh  (written unpadded; only the last 16 lanes are a
    # masked vst — cheaper than a padded write + read + sliced re-write in HBM).
    cp5.wait()
    out_ref[...] = jnp.tanh(_mm(h, w5_vmem[...]) + b5_ref[...])


def prepare_kernel_params(p):
    """Cast weights to bf16 and drop the redundant pre-BN biases b2/b3/b4
    (a per-feature bias right before training-mode BatchNorm cancels exactly
    when the batch mean is subtracted)."""
    # TODO(synk): deployment option — int8 weights (v5e/v6e native MXU path) or
    # fp8-e4m3 (v7x, no int MXU) with per-output-channel scales folded into the
    # BN scale (layers 2-4) and b5 (layer 5) would halve the dominant weight
    # DMA again; needs an accuracy-validation pass, so not enabled by default.
    return (p["w1"].astype(jnp.bfloat16), p["b1"],
            p["w2"].astype(jnp.bfloat16), p["g2"], p["be2"],
            p["w3"].astype(jnp.bfloat16), p["g3"], p["be3"],
            p["w4"].astype(jnp.bfloat16), p["g4"], p["be4"],
            p["w5"].astype(jnp.bfloat16), p["b5"])


def generator_forward(z, kernel_params):
    """Whole Generator MLP in one Pallas kernel (weights + batch resident in VMEM)."""
    B = z.shape[0]
    vmem = pl.BlockSpec(memory_space=pltpu.MemorySpace.VMEM)
    hbm = pl.BlockSpec(memory_space=pl.ANY)
    in_specs = [vmem,                  # z (B, 100), passed unpadded
                vmem, vmem,            # w1, b1
                vmem, vmem, vmem,      # w2, g2, be2
                vmem, vmem, vmem,      # w3, g3, be3
                hbm,  vmem, vmem,      # w4 (HBM, manual DMA), g4, be4
                hbm,  vmem]            # w5 (HBM, manual DMA), b5
    # TODO(synk): on v7x, split the output-feature axis of w2..w5 across a
    # grid=(2,) "parallel" axis (exact under per-feature BN) to use both
    # TensorCores; needs a cross-core activation exchange (CMEM) between layers.
    # TODO(synk): in a full training step, start the w4/w5 copies from a prior
    # tiny pallas_call (P10 cross-call prefetch) so the weight fetch hides
    # behind discriminator/optimizer work instead of only behind layers 1-3.
    return pl.pallas_call(
        generator_kernel,
        out_shape=jax.ShapeDtypeStruct((B, OUT_DIM), jnp.float32),
        in_specs=in_specs,
        out_specs=vmem,
        scratch_shapes=[
            pltpu.VMEM((H3, H4), jnp.bfloat16),       # w4 staging buffer
            pltpu.VMEM((H4, OUT_DIM), jnp.bfloat16),  # w5 staging buffer
            pltpu.SemaphoreType.DMA((2,)),
        ],
        # ~2.9 MB of bf16 weights (~2.6 MB of it as scratch) + small activations;
        # generous but well under every generation's physical VMEM.
        compiler_params=pltpu.CompilerParams(vmem_limit_bytes=32 << 20),
    )(z, *kernel_params)


def init_params(key):
    """Deterministic synthetic parameters matching the PyTorch module's shapes.

    Linear weights stored [in, out] (pre-transposed from PyTorch's [out, in]);
    biases and BN gamma/beta are [1, features].
    """
    dims = [(LATENT_DIM, H1), (H1, H2), (H2, H3), (H3, H4), (H4, OUT_DIM)]
    keys = jax.random.split(key, 2 * len(dims) + 6)
    p = {}
    for i, (din, dout) in enumerate(dims):
        p[f"w{i + 1}"] = jax.random.normal(keys[2 * i], (din, dout), jnp.float32) * 0.05
        p[f"b{i + 1}"] = jax.random.normal(keys[2 * i + 1], (1, dout), jnp.float32) * 0.05
    for j, (name, d) in enumerate((("2", H2), ("3", H3), ("4", H4))):
        p[f"g{name}"] = 1.0 + 0.1 * jax.random.normal(keys[10 + 2 * j], (1, d), jnp.float32)
        p[f"be{name}"] = 0.1 * jax.random.normal(keys[11 + 2 * j], (1, d), jnp.float32)
    return p


def generator_ref(z, p):
    """Pure-JAX reference (same bf16 weights, full module incl. pre-BN biases)."""
    def mm(x, w):
        return jnp.dot(x.astype(jnp.bfloat16), w.astype(jnp.bfloat16),
                       preferred_element_type=jnp.float32)

    def bn(x, g, b):
        m = jnp.mean(x, axis=0, keepdims=True)
        d = x - m
        v = jnp.mean(d * d, axis=0, keepdims=True)
        return d * jax.lax.rsqrt(v + BN_EPS) * g + b

    def lrelu(x):
        return jnp.where(x >= 0, x, LRELU_SLOPE * x)

    h = lrelu(mm(z, p["w1"]) + p["b1"])
    h = lrelu(bn(mm(h, p["w2"]) + p["b2"], p["g2"], p["be2"]))
    h = lrelu(bn(mm(h, p["w3"]) + p["b3"], p["g3"], p["be3"]))
    h = lrelu(bn(mm(h, p["w4"]) + p["b4"], p["g4"], p["be4"]))
    return jnp.tanh(mm(h, p["w5"]) + p["b5"])


if __name__ == "__main__":
    key = jax.random.PRNGKey(0)
    k_z, k_p = jax.random.split(key)

    B = 8
    z = jax.random.normal(k_z, (B, LATENT_DIM), jnp.float32)
    params = init_params(k_p)
    kparams = prepare_kernel_params(params)

    fwd = jax.jit(generator_forward)
    img = jax.block_until_ready(fwd(z, kparams))

    ref = generator_ref(z, params)
    assert img.shape == (B, OUT_DIM)
    max_err = float(jnp.max(jnp.abs(img - ref)))
    assert jnp.allclose(img, ref, atol=2e-3, rtol=2e-3), f"max abs err {max_err}"

    print("KERNEL_OK")
</pallas_src>

<mosaic_0001>
module attributes {stable_mosaic.version = 11 : i64} {
  func.func @generator_kernel(%arg0: memref<8x100xf32, #tpu.memory_space<vmem>>, %arg1: memref<100x128xbf16, #tpu.memory_space<vmem>>, %arg2: memref<1x128xf32, #tpu.memory_space<vmem>>, %arg3: memref<128x256xbf16, #tpu.memory_space<vmem>>, %arg4: memref<1x256xf32, #tpu.memory_space<vmem>>, %arg5: memref<1x256xf32, #tpu.memory_space<vmem>>, %arg6: memref<256x512xbf16, #tpu.memory_space<vmem>>, %arg7: memref<1x512xf32, #tpu.memory_space<vmem>>, %arg8: memref<1x512xf32, #tpu.memory_space<vmem>>, %arg9: memref<512x1024xbf16, #tpu.memory_space<any>>, %arg10: memref<1x1024xf32, #tpu.memory_space<vmem>>, %arg11: memref<1x1024xf32, #tpu.memory_space<vmem>>, %arg12: memref<1024x784xbf16, #tpu.memory_space<any>>, %arg13: memref<1x784xf32, #tpu.memory_space<vmem>>, %arg14: memref<8x784xf32, #tpu.memory_space<vmem>>, %arg15: memref<512x1024xbf16, #tpu.memory_space<vmem>>, %arg16: memref<1024x784xbf16, #tpu.memory_space<vmem>>, %arg17: memref<2x!tpu.dma_semaphore, #tpu.memory_space<semaphore_mem>>) attributes {dimension_semantics = [], scalar_prefetch = 0 : i64, scratch_operands = 3 : i64, tpu.core_type = #tpu.core_type<tc>} {
    %c0_i32 = arith.constant 0 : i32
    %0 = tpu.memref_slice %arg17[%c0_i32] : memref<2x!tpu.dma_semaphore, #tpu.memory_space<semaphore_mem>> -> memref<1x!tpu.dma_semaphore, #tpu.memory_space<semaphore_mem>>
    %1 = tpu.memref_squeeze %0 : memref<1x!tpu.dma_semaphore, #tpu.memory_space<semaphore_mem>> -> memref<!tpu.dma_semaphore, #tpu.memory_space<semaphore_mem>>
    tpu.enqueue_dma source(%arg9 : memref<512x1024xbf16, #tpu.memory_space<any>>) target(%arg15 : memref<512x1024xbf16, #tpu.memory_space<vmem>>) target_semaphore(%1 : memref<!tpu.dma_semaphore, #tpu.memory_space<semaphore_mem>>)
    %c1_i32 = arith.constant 1 : i32
    %2 = tpu.memref_slice %arg17[%c1_i32] : memref<2x!tpu.dma_semaphore, #tpu.memory_space<semaphore_mem>> -> memref<1x!tpu.dma_semaphore, #tpu.memory_space<semaphore_mem>>
    %3 = tpu.memref_squeeze %2 : memref<1x!tpu.dma_semaphore, #tpu.memory_space<semaphore_mem>> -> memref<!tpu.dma_semaphore, #tpu.memory_space<semaphore_mem>>
    tpu.enqueue_dma source(%arg12 : memref<1024x784xbf16, #tpu.memory_space<any>>) target(%arg16 : memref<1024x784xbf16, #tpu.memory_space<vmem>>) target_semaphore(%3 : memref<!tpu.dma_semaphore, #tpu.memory_space<semaphore_mem>>)
    %c0 = arith.constant 0 : index
    %c0_0 = arith.constant 0 : index
    %4 = vector.load %arg0[%c0, %c0_0] : memref<8x100xf32, #tpu.memory_space<vmem>>, vector<8x100xf32>
    %c0_1 = arith.constant 0 : index
    %c0_2 = arith.constant 0 : index
    %5 = vector.load %arg1[%c0_1, %c0_2] : memref<100x128xbf16, #tpu.memory_space<vmem>>, vector<100x128xbf16>
    %6 = arith.truncf %4 : vector<8x100xf32> to vector<8x100xbf16>
    %cst = arith.constant dense<0.000000e+00> : vector<8x128xf32>
    %7 = tpu.matmul %6, %5, %cst {dimension_numbers = #tpu.dot_dimension_numbers<[1], [0], [0], [1], [0, 0, 1, 1], [], []>} : vector<8x100xbf16>, vector<100x128xbf16>, vector<8x128xf32> -> vector<8x128xf32>
    %c0_3 = arith.constant 0 : index
    %c0_4 = arith.constant 0 : index
    %8 = vector.load %arg2[%c0_3, %c0_4] : memref<1x128xf32, #tpu.memory_space<vmem>>, vector<1x128xf32>
    %9 = vector.broadcast %8 : vector<1x128xf32> to vector<8x128xf32>
    %10 = arith.addf %7, %9 : vector<8x128xf32>
    %cst_5 = arith.constant 2.000000e-01 : f32
    %11 = vector.broadcast %cst_5 : f32 to vector<8x128xf32>
    %12 = arith.mulf %11, %10 : vector<8x128xf32>
    %13 = arith.maximumf %10, %12 : vector<8x128xf32>
    %c0_6 = arith.constant 0 : index
    %c0_7 = arith.constant 0 : index
    %14 = vector.load %arg3[%c0_6, %c0_7] : memref<128x256xbf16, #tpu.memory_space<vmem>>, vector<128x256xbf16>
    %15 = arith.truncf %13 : vector<8x128xf32> to vector<8x128xbf16>
    %cst_8 = arith.constant dense<0.000000e+00> : vector<8x256xf32>
    %16 = tpu.matmul %15, %14, %cst_8 {dimension_numbers = #tpu.dot_dimension_numbers<[1], [0], [0], [1], [0, 0, 1, 1], [], []>} : vector<8x128xbf16>, vector<128x256xbf16>, vector<8x256xf32> -> vector<8x256xf32>
    %c0_9 = arith.constant 0 : index
    %c0_10 = arith.constant 0 : index
    %17 = vector.load %arg4[%c0_9, %c0_10] : memref<1x256xf32, #tpu.memory_space<vmem>>, vector<1x256xf32>
    %c0_11 = arith.constant 0 : index
    %c0_12 = arith.constant 0 : index
    %18 = vector.load %arg5[%c0_11, %c0_12] : memref<1x256xf32, #tpu.memory_space<vmem>>, vector<1x256xf32>
    %cst_13 = arith.constant dense<0.000000e+00> : vector<256xf32>
    %19 = vector.multi_reduction <add>, %16, %cst_13 [0] : vector<8x256xf32> to vector<256xf32>
    %20 = vector.shape_cast %19 : vector<256xf32> to vector<1x256xf32>
    %cst_14 = arith.constant 8.000000e+00 : f32
    %21 = vector.broadcast %cst_14 : f32 to vector<1x256xf32>
    %22 = arith.divf %20, %21 : vector<1x256xf32>
    %23 = vector.broadcast %22 : vector<1x256xf32> to vector<8x256xf32>
    %24 = arith.subf %16, %23 : vector<8x256xf32>
    %25 = arith.mulf %24, %24 : vector<8x256xf32>
    %cst_15 = arith.constant dense<0.000000e+00> : vector<256xf32>
    %26 = vector.multi_reduction <add>, %25, %cst_15 [0] : vector<8x256xf32> to vector<256xf32>
    %27 = vector.shape_cast %26 : vector<256xf32> to vector<1x256xf32>
    %cst_16 = arith.constant 8.000000e+00 : f32
    %28 = vector.broadcast %cst_16 : f32 to vector<1x256xf32>
    %29 = arith.divf %27, %28 : vector<1x256xf32>
    %cst_17 = arith.constant 9.99999974E-6 : f32
    %30 = vector.broadcast %cst_17 : f32 to vector<1x256xf32>
    %31 = arith.addf %29, %30 : vector<1x256xf32>
    %32 = math.rsqrt %31 : vector<1x256xf32>
    %33 = arith.mulf %17, %32 : vector<1x256xf32>
    %34 = arith.mulf %22, %33 : vector<1x256xf32>
    %35 = arith.subf %18, %34 : vector<1x256xf32>
    %36 = vector.broadcast %33 : vector<1x256xf32> to vector<8x256xf32>
    %37 = arith.mulf %16, %36 : vector<8x256xf32>
    %38 = vector.broadcast %35 : vector<1x256xf32> to vector<8x256xf32>
    %39 = arith.addf %37, %38 : vector<8x256xf32>
    %cst_18 = arith.constant 2.000000e-01 : f32
    %40 = vector.broadcast %cst_18 : f32 to vector<8x256xf32>
    %41 = arith.mulf %40, %39 : vector<8x256xf32>
    %42 = arith.maximumf %39, %41 : vector<8x256xf32>
    %c0_19 = arith.constant 0 : index
    %c0_20 = arith.constant 0 : index
    %43 = vector.load %arg6[%c0_19, %c0_20] : memref<256x512xbf16, #tpu.memory_space<vmem>>, vector<256x512xbf16>
    %44 = arith.truncf %42 : vector<8x256xf32> to vector<8x256xbf16>
    %cst_21 = arith.constant dense<0.000000e+00> : vector<8x512xf32>
    %45 = tpu.matmul %44, %43, %cst_21 {dimension_numbers = #tpu.dot_dimension_numbers<[1], [0], [0], [1], [0, 0, 1, 1], [], []>} : vector<8x256xbf16>, vector<256x512xbf16>, vector<8x512xf32> -> vector<8x512xf32>
    %c0_22 = arith.constant 0 : index
    %c0_23 = arith.constant 0 : index
    %46 = vector.load %arg7[%c0_22, %c0_23] : memref<1x512xf32, #tpu.memory_space<vmem>>, vector<1x512xf32>
    %c0_24 = arith.constant 0 : index
    %c0_25 = arith.constant 0 : index
    %47 = vector.load %arg8[%c0_24, %c0_25] : memref<1x512xf32, #tpu.memory_space<vmem>>, vector<1x512xf32>
    %cst_26 = arith.constant dense<0.000000e+00> : vector<512xf32>
    %48 = vector.multi_reduction <add>, %45, %cst_26 [0] : vector<8x512xf32> to vector<512xf32>
    %49 = vector.shape_cast %48 : vector<512xf32> to vector<1x512xf32>
    %cst_27 = arith.constant 8.000000e+00 : f32
    %50 = vector.broadcast %cst_27 : f32 to vector<1x512xf32>
    %51 = arith.divf %49, %50 : vector<1x512xf32>
    %52 = vector.broadcast %51 : vector<1x512xf32> to vector<8x512xf32>
    %53 = arith.subf %45, %52 : vector<8x512xf32>
    %54 = arith.mulf %53, %53 : vector<8x512xf32>
    %cst_28 = arith.constant dense<0.000000e+00> : vector<512xf32>
    %55 = vector.multi_reduction <add>, %54, %cst_28 [0] : vector<8x512xf32> to vector<512xf32>
    %56 = vector.shape_cast %55 : vector<512xf32> to vector<1x512xf32>
    %cst_29 = arith.constant 8.000000e+00 : f32
    %57 = vector.broadcast %cst_29 : f32 to vector<1x512xf32>
    %58 = arith.divf %56, %57 : vector<1x512xf32>
    %cst_30 = arith.constant 9.99999974E-6 : f32
    %59 = vector.broadcast %cst_30 : f32 to vector<1x512xf32>
    %60 = arith.addf %58, %59 : vector<1x512xf32>
    %61 = math.rsqrt %60 : vector<1x512xf32>
    %62 = arith.mulf %46, %61 : vector<1x512xf32>
    %63 = arith.mulf %51, %62 : vector<1x512xf32>
    %64 = arith.subf %47, %63 : vector<1x512xf32>
    %65 = vector.broadcast %62 : vector<1x512xf32> to vector<8x512xf32>
    %66 = arith.mulf %45, %65 : vector<8x512xf32>
    %67 = vector.broadcast %64 : vector<1x512xf32> to vector<8x512xf32>
    %68 = arith.addf %66, %67 : vector<8x512xf32>
    %cst_31 = arith.constant 2.000000e-01 : f32
    %69 = vector.broadcast %cst_31 : f32 to vector<8x512xf32>
    %70 = arith.mulf %69, %68 : vector<8x512xf32>
    %71 = arith.maximumf %68, %70 : vector<8x512xf32>
    %c0_i32_32 = arith.constant 0 : i32
    %72 = tpu.memref_slice %arg17[%c0_i32_32] : memref<2x!tpu.dma_semaphore, #tpu.memory_space<semaphore_mem>> -> memref<1x!tpu.dma_semaphore, #tpu.memory_space<semaphore_mem>>
    %73 = tpu.memref_squeeze %72 : memref<1x!tpu.dma_semaphore, #tpu.memory_space<semaphore_mem>> -> memref<!tpu.dma_semaphore, #tpu.memory_space<semaphore_mem>>
    tpu.wait_dma2 semaphore(%73 : memref<!tpu.dma_semaphore, #tpu.memory_space<semaphore_mem>>) src(%arg9 : memref<512x1024xbf16, #tpu.memory_space<any>>) dst(%arg15 : memref<512x1024xbf16, #tpu.memory_space<vmem>>)
    %c0_33 = arith.constant 0 : index
    %c0_34 = arith.constant 0 : index
    %74 = vector.load %arg15[%c0_33, %c0_34] : memref<512x1024xbf16, #tpu.memory_space<vmem>>, vector<512x1024xbf16>
    %75 = arith.truncf %71 : vector<8x512xf32> to vector<8x512xbf16>
    %cst_35 = arith.constant dense<0.000000e+00> : vector<8x1024xf32>
    %76 = tpu.matmul %75, %74, %cst_35 {dimension_numbers = #tpu.dot_dimension_numbers<[1], [0], [0], [1], [0, 0, 1, 1], [], []>} : vector<8x512xbf16>, vector<512x1024xbf16>, vector<8x1024xf32> -> vector<8x1024xf32>
    %c0_36 = arith.constant 0 : index
    %c0_37 = arith.constant 0 : index
    %77 = vector.load %arg10[%c0_36, %c0_37] : memref<1x1024xf32, #tpu.memory_space<vmem>>, vector<1x1024xf32>
    %c0_38 = arith.constant 0 : index
    %c0_39 = arith.constant 0 : index
    %78 = vector.load %arg11[%c0_38, %c0_39] : memref<1x1024xf32, #tpu.memory_space<vmem>>, vector<1x1024xf32>
    %cst_40 = arith.constant dense<0.000000e+00> : vector<1024xf32>
    %79 = vector.multi_reduction <add>, %76, %cst_40 [0] : vector<8x1024xf32> to vector<1024xf32>
    %80 = vector.shape_cast %79 : vector<1024xf32> to vector<1x1024xf32>
    %cst_41 = arith.constant 8.000000e+00 : f32
    %81 = vector.broadcast %cst_41 : f32 to vector<1x1024xf32>
    %82 = arith.divf %80, %81 : vector<1x1024xf32>
    %83 = vector.broadcast %82 : vector<1x1024xf32> to vector<8x1024xf32>
    %84 = arith.subf %76, %83 : vector<8x1024xf32>
    %85 = arith.mulf %84, %84 : vector<8x1024xf32>
    %cst_42 = arith.constant dense<0.000000e+00> : vector<1024xf32>
    %86 = vector.multi_reduction <add>, %85, %cst_42 [0] : vector<8x1024xf32> to vector<1024xf32>
    %87 = vector.shape_cast %86 : vector<1024xf32> to vector<1x1024xf32>
    %cst_43 = arith.constant 8.000000e+00 : f32
    %88 = vector.broadcast %cst_43 : f32 to vector<1x1024xf32>
    %89 = arith.divf %87, %88 : vector<1x1024xf32>
    %cst_44 = arith.constant 9.99999974E-6 : f32
    %90 = vector.broadcast %cst_44 : f32 to vector<1x1024xf32>
    %91 = arith.addf %89, %90 : vector<1x1024xf32>
    %92 = math.rsqrt %91 : vector<1x1024xf32>
    %93 = arith.mulf %77, %92 : vector<1x1024xf32>
    %94 = arith.mulf %82, %93 : vector<1x1024xf32>
    %95 = arith.subf %78, %94 : vector<1x1024xf32>
    %96 = vector.broadcast %93 : vector<1x1024xf32> to vector<8x1024xf32>
    %97 = arith.mulf %76, %96 : vector<8x1024xf32>
    %98 = vector.broadcast %95 : vector<1x1024xf32> to vector<8x1024xf32>
    %99 = arith.addf %97, %98 : vector<8x1024xf32>
    %cst_45 = arith.constant 2.000000e-01 : f32
    %100 = vector.broadcast %cst_45 : f32 to vector<8x1024xf32>
    %101 = arith.mulf %100, %99 : vector<8x1024xf32>
    %102 = arith.maximumf %99, %101 : vector<8x1024xf32>
    %c1_i32_46 = arith.constant 1 : i32
    %103 = tpu.memref_slice %arg17[%c1_i32_46] : memref<2x!tpu.dma_semaphore, #tpu.memory_space<semaphore_mem>> -> memref<1x!tpu.dma_semaphore, #tpu.memory_space<semaphore_mem>>
    %104 = tpu.memref_squeeze %103 : memref<1x!tpu.dma_semaphore, #tpu.memory_space<semaphore_mem>> -> memref<!tpu.dma_semaphore, #tpu.memory_space<semaphore_mem>>
    tpu.wait_dma2 semaphore(%104 : memref<!tpu.dma_semaphore, #tpu.memory_space<semaphore_mem>>) src(%arg12 : memref<1024x784xbf16, #tpu.memory_space<any>>) dst(%arg16 : memref<1024x784xbf16, #tpu.memory_space<vmem>>)
    %c0_47 = arith.constant 0 : index
    %c0_48 = arith.constant 0 : index
    %105 = vector.load %arg16[%c0_47, %c0_48] : memref<1024x784xbf16, #tpu.memory_space<vmem>>, vector<1024x784xbf16>
    %106 = arith.truncf %102 : vector<8x1024xf32> to vector<8x1024xbf16>
    %cst_49 = arith.constant dense<0.000000e+00> : vector<8x784xf32>
    %107 = tpu.matmul %106, %105, %cst_49 {dimension_numbers = #tpu.dot_dimension_numbers<[1], [0], [0], [1], [0, 0, 1, 1], [], []>} : vector<8x1024xbf16>, vector<1024x784xbf16>, vector<8x784xf32> -> vector<8x784xf32>
    %c0_50 = arith.constant 0 : index
    %c0_51 = arith.constant 0 : index
    %108 = vector.load %arg13[%c0_50, %c0_51] : memref<1x784xf32, #tpu.memory_space<vmem>>, vector<1x784xf32>
    %109 = vector.broadcast %108 : vector<1x784xf32> to vector<8x784xf32>
    %110 = arith.addf %107, %109 : vector<8x784xf32>
    %111 = math.tanh %110 : vector<8x784xf32>
    %c0_52 = arith.constant 0 : index
    %c0_53 = arith.constant 0 : index
    %112 = vector.load %arg14[%c0_52, %c0_53] : memref<8x784xf32, #tpu.memory_space<vmem>>, vector<8x784xf32>
    tpu.vector_store %arg14[%c0_52, %c0_53], %111 {strides = array<i32>} : memref<8x784xf32, #tpu.memory_space<vmem>>, vector<8x784xf32>,
    return
  }
}

</mosaic_0001>

<bundles_post_ra>
// kernel: generator_forward.1
= control target key start
LH: loop header
LB: loop body
LE: loop exit
PB: predicated region body
PF: predicated region fallthrough
CT: control target
= control target key end

     0   :  { %19 = vsyncpa [#allocation6], 0  ;;  %s19866_s0 = inlined_call_operand.vmem [shape: f32[8,100], index: 0, kind: input, shape index: {}]   ;;  %s19867_s1 = inlined_call_operand.vmem [shape: bf16[100,128], index: 1, kind: input, shape index: {}]   ;;  %s19868_s2 = inlined_call_operand.vmem [shape: f32[1,128], index: 2, kind: input, shape index: {}]   ;;  %s19869_s3 = inlined_call_operand.vmem [shape: bf16[128,256], index: 3, kind: input, shape index: {}]   ;;  %s19870_s4 = inlined_call_operand.vmem [shape: f32[1,256], index: 4, kind: input, shape index: {}]   ;;  %s19871_s5 = inlined_call_operand.vmem [shape: f32[1,256], index: 5, kind: input, shape index: {}]   ;;  %s19872_s6 = inlined_call_operand.vmem [shape: bf16[256,512], index: 6, kind: input, shape index: {}]   ;;  %s19873_s7 = inlined_call_operand.vmem [shape: f32[1,512], index: 7, kind: input, shape index: {}]   ;;  %s19874_s8 = inlined_call_operand.vmem [shape: f32[1,512], index: 8, kind: input, shape index: {}]   ;;  %s19875_s9 = inlined_call_operand.vmem [shape: bf16[512,1024], index: 9, kind: input, shape index: {}]   ;;  %s19876_s10 = inlined_call_operand.vmem [shape: f32[1,1024], index: 10, kind: input, shape index: {}]   ;;  %s19877_s11 = inlined_call_operand.vmem [shape: f32[1,1024], index: 11, kind: input, shape index: {}]   ;;  %s19878_s12 = inlined_call_operand.vmem [shape: bf16[1024,784], index: 12, kind: input, shape index: {}]   ;;  %s19879_s13 = inlined_call_operand.vmem [shape: f32[1,784], index: 13, kind: input, shape index: {}]   ;;  %s19880_s14 = inlined_call_operand.hbm [shape: f32[8,784], index: 14, kind: output, shape index: {}]  }
   0x1   :  { %v62_v0 = vld [vmem:[%s19875_s9] sm:$0xf]  ;;  %v66_v2 = vld [vmem:[%s19875_s9 + $0x4] sm:$0xf]  ;;  %v70_v4 = vld [vmem:[%s19875_s9 + $0x8] sm:$0xf] }
   0x2   :  { %v64_v1 = vld [vmem:[%s19875_s9 + $0x20] sm:$0xf]  ;;  %63 = vst [vmem:[#allocation2] sm:$0xf] %v62_v0  ;;  %v68_v3 = vld [vmem:[%s19875_s9 + $0x24] sm:$0xf] }
   0x3   :  { %65 = vst [vmem:[#allocation2 + $0x4] sm:$0xf] %v64_v1  ;;  %67 = vst [vmem:[#allocation2 + $0x8] sm:$0xf] %v66_v2  ;;  %v72_v5 = vld [vmem:[%s19875_s9 + $0x28] sm:$0xf] }
   0x4   :  { %69 = vst [vmem:[#allocation2 + $0xc] sm:$0xf] %v68_v3  ;;  %71 = vst [vmem:[#allocation2 + $0x10] sm:$0xf] %v70_v4  ;;  %v74_v6 = vld [vmem:[%s19875_s9 + $0xc] sm:$0xf] }
   0x5   :  { %v76_v7 = vld [vmem:[%s19875_s9 + $0x2c] sm:$0xf]  ;;  %73 = vst [vmem:[#allocation2 + $0x14] sm:$0xf] %v72_v5  ;;  %75 = vst [vmem:[#allocation2 + $0x18] sm:$0xf] %v74_v6 }
   0x6   :  { %77 = vst [vmem:[#allocation2 + $0x1c] sm:$0xf] %v76_v7  ;;  %v78_v8 = vld [vmem:[%s19875_s9 + $0x10] sm:$0xf]  ;;  %v82_v10 = vld [vmem:[%s19875_s9 + $0x14] sm:$0xf] }
   0x7   :  { %v80_v9 = vld [vmem:[%s19875_s9 + $0x30] sm:$0xf]  ;;  %79 = vst [vmem:[#allocation2 + $0x20] sm:$0xf] %v78_v8  ;;  %83 = vst [vmem:[#allocation2 + $0x28] sm:$0xf] %v82_v10 }
   0x8   :  { %81 = vst [vmem:[#allocation2 + $0x24] sm:$0xf] %v80_v9  ;;  %v84_v11 = vld [vmem:[%s19875_s9 + $0x34] sm:$0xf]  ;;  %v86_v12 = vld [vmem:[%s19875_s9 + $0x18] sm:$0xf] }
   0x9   :  { %v88_v13 = vld [vmem:[%s19875_s9 + $0x38] sm:$0xf]  ;;  %85 = vst [vmem:[#allocation2 + $0x2c] sm:$0xf] %v84_v11  ;;  %87 = vst [vmem:[#allocation2 + $0x30] sm:$0xf] %v86_v12 }
   0xa   :  { %89 = vst [vmem:[#allocation2 + $0x34] sm:$0xf] %v88_v13  ;;  %v90_v14 = vld [vmem:[%s19875_s9 + $0x1c] sm:$0xf]  ;;  %v96_v16 = vld [vmem:[%s19875_s9 + $0x60] sm:$0xf] }
   0xb   :  { %v92_v15 = vld [vmem:[%s19875_s9 + $0x3c] sm:$0xff]   ;;  %91 = vst [vmem:[#allocation2 + $0x38] sm:$0xf] %v90_v14  ;;  %97 = vst [vmem:[#allocation2 + $0x44] sm:$0xf] %v96_v16 }
   0xc   :  { %93 = vst [vmem:[#allocation2 + $0x3c] sm:$0xff] %v92_v15   ;;  %v98_v17 = vld [vmem:[%s19875_s9 + $0x44] sm:$0xf]  ;;  %v102_v19 = vld [vmem:[%s19875_s9 + $0x48] sm:$0xf]  ;;  %v124_v30 = vld [vmem:[%s19875_s9 + $0x7c] sm:$0xff]  }
   0xd   :  { %v100_v18 = vld [vmem:[%s19875_s9 + $0x64] sm:$0xf]  ;;  %99 = vst [vmem:[#allocation2 + $0x48] sm:$0xf] %v98_v17  ;;  %103 = vst [vmem:[#allocation2 + $0x50] sm:$0xf] %v102_v19 }
   0xe   :  { %101 = vst [vmem:[#allocation2 + $0x4c] sm:$0xf] %v100_v18  ;;  %v104_v20 = vld [vmem:[%s19875_s9 + $0x68] sm:$0xf]  ;;  %v106_v21 = vld [vmem:[%s19875_s9 + $0x4c] sm:$0xf] }
   0xf   :  { %v108_v22 = vld [vmem:[%s19875_s9 + $0x6c] sm:$0xf]  ;;  %105 = vst [vmem:[#allocation2 + $0x54] sm:$0xf] %v104_v20  ;;  %107 = vst [vmem:[#allocation2 + $0x58] sm:$0xf] %v106_v21 }
  0x10   :  { %109 = vst [vmem:[#allocation2 + $0x5c] sm:$0xf] %v108_v22  ;;  %v110_v23 = vld [vmem:[%s19875_s9 + $0x50] sm:$0xf]  ;;  %v114_v25 = vld [vmem:[%s19875_s9 + $0x54] sm:$0xf] }
  0x11   :  { %v112_v24 = vld [vmem:[%s19875_s9 + $0x70] sm:$0xf]  ;;  %111 = vst [vmem:[#allocation2 + $0x60] sm:$0xf] %v110_v23  ;;  %115 = vst [vmem:[#allocation2 + $0x68] sm:$0xf] %v114_v25 }
  0x12   :  { %113 = vst [vmem:[#allocation2 + $0x64] sm:$0xf] %v112_v24  ;;  %v116_v26 = vld [vmem:[%s19875_s9 + $0x74] sm:$0xf]  ;;  %v118_v27 = vld [vmem:[%s19875_s9 + $0x58] sm:$0xf] }
  0x13   :  { %v120_v28 = vld [vmem:[%s19875_s9 + $0x78] sm:$0xf]  ;;  %117 = vst [vmem:[#allocation2 + $0x6c] sm:$0xf] %v116_v26  ;;  %119 = vst [vmem:[#allocation2 + $0x70] sm:$0xf] %v118_v27 }
  0x14   :  { %121 = vst [vmem:[#allocation2 + $0x74] sm:$0xf] %v120_v28  ;;  %v122_v29 = vld [vmem:[%s19875_s9 + $0x5c] sm:$0xf]  ;;  %v128_v31 = vld [vmem:[%s19875_s9 + $0xa0] sm:$0xf] }
  0x15   :  { %123 = vst [vmem:[#allocation2 + $0x78] sm:$0xf] %v122_v29  ;;  %125 = vst [vmem:[#allocation2 + $0x7c] sm:$0xff] %v124_v30   ;;  %v130_v32 = vld [vmem:[%s19875_s9 + $0x84] sm:$0xf]  ;;  %v156_v45 = vld [vmem:[%s19875_s9 + $0xbc] sm:$0xff]  }
  0x16   :  { %129 = vst [vmem:[#allocation2 + $0x84] sm:$0xf] %v128_v31  ;;  %v132_v33 = vld [vmem:[%s19875_s9 + $0xa4] sm:$0xf]  ;;  %v134_v34 = vld [vmem:[%s19875_s9 + $0x88] sm:$0xf] }
  0x17   :  { %131 = vst [vmem:[#allocation2 + $0x88] sm:$0xf] %v130_v32  ;;  %133 = vst [vmem:[#allocation2 + $0x8c] sm:$0xf] %v132_v33  ;;  %v136_v35 = vld [vmem:[%s19875_s9 + $0xa8] sm:$0xf] }
  0x18   :  { %135 = vst [vmem:[#allocation2 + $0x90] sm:$0xf] %v134_v34  ;;  %v138_v36 = vld [vmem:[%s19875_s9 + $0x8c] sm:$0xf]  ;;  %137 = vst [vmem:[#allocation2 + $0x94] sm:$0xf] %v136_v35 }
  0x19   :  { %v140_v37 = vld [vmem:[%s19875_s9 + $0xac] sm:$0xf]  ;;  %139 = vst [vmem:[#allocation2 + $0x98] sm:$0xf] %v138_v36  ;;  %v142_v38 = vld [vmem:[%s19875_s9 + $0x90] sm:$0xf] }
  0x1a   :  { %141 = vst [vmem:[#allocation2 + $0x9c] sm:$0xf] %v140_v37  ;;  %v144_v39 = vld [vmem:[%s19875_s9 + $0xb0] sm:$0xf]  ;;  %v146_v40 = vld [vmem:[%s19875_s9 + $0x94] sm:$0xf] }
  0x1b   :  { %143 = vst [vmem:[#allocation2 + $0xa0] sm:$0xf] %v142_v38  ;;  %145 = vst [vmem:[#allocation2 + $0xa4] sm:$0xf] %v144_v39  ;;  %v148_v41 = vld [vmem:[%s19875_s9 + $0xb4] sm:$0xf] }
  0x1c   :  { %147 = vst [vmem:[#allocation2 + $0xa8] sm:$0xf] %v146_v40  ;;  %v150_v42 = vld [vmem:[%s19875_s9 + $0x98] sm:$0xf]  ;;  %149 = vst [vmem:[#allocation2 + $0xac] sm:$0xf] %v148_v41 }
  0x1d   :  { %v152_v43 = vld [vmem:[%s19875_s9 + $0xb8] sm:$0xf]  ;;  %151 = vst [vmem:[#allocation2 + $0xb0] sm:$0xf] %v150_v42  ;;  %v154_v44 = vld [vmem:[%s19875_s9 + $0x9c] sm:$0xf] }
  0x1e   :  { %153 = vst [vmem:[#allocation2 + $0xb4] sm:$0xf] %v152_v43  ;;  %v160_v46 = vld [vmem:[%s19875_s9 + $0xe0] sm:$0xf]  ;;  %155 = vst [vmem:[#allocation2 + $0xb8] sm:$0xf] %v154_v44 }
  0x1f   :  { %157 = vst [vmem:[#allocation2 + $0xbc] sm:$0xff] %v156_v45   ;;  %161 = vst [vmem:[#allocation2 + $0xc4] sm:$0xf] %v160_v46  ;;  %v162_v47 = vld [vmem:[%s19875_s9 + $0xc4] sm:$0xf]  ;;  %v188_v60 = vld [vmem:[%s19875_s9 + $0xfc] sm:$0xff]  }
  0x20   :  { %v164_v48 = vld [vmem:[%s19875_s9 + $0xe4] sm:$0xf]  ;;  %v166_v49 = vld [vmem:[%s19875_s9 + $0xc8] sm:$0xf]  ;;  %163 = vst [vmem:[#allocation2 + $0xc8] sm:$0xf] %v162_v47 }
  0x21   :  { %165 = vst [vmem:[#allocation2 + $0xcc] sm:$0xf] %v164_v48  ;;  %167 = vst [vmem:[#allocation2 + $0xd0] sm:$0xf] %v166_v49  ;;  %v168_v50 = vld [vmem:[%s19875_s9 + $0xe8] sm:$0xf] }
  0x22   :  { %v170_v51 = vld [vmem:[%s19875_s9 + $0xcc] sm:$0xf]  ;;  %169 = vst [vmem:[#allocation2 + $0xd4] sm:$0xf] %v168_v50  ;;  %v174_v53 = vld [vmem:[%s19875_s9 + $0xd0] sm:$0xf] }
  0x23   :  { %v172_v52 = vld [vmem:[%s19875_s9 + $0xec] sm:$0xf]  ;;  %171 = vst [vmem:[#allocation2 + $0xd8] sm:$0xf] %v170_v51  ;;  %v176_v54 = vld [vmem:[%s19875_s9 + $0xf0] sm:$0xf] }
  0x24   :  { %173 = vst [vmem:[#allocation2 + $0xdc] sm:$0xf] %v172_v52  ;;  %v178_v55 = vld [vmem:[%s19875_s9 + $0xd4] sm:$0xf]  ;;  %175 = vst [vmem:[#allocation2 + $0xe0] sm:$0xf] %v174_v53 }
  0x25   :  { %177 = vst [vmem:[#allocation2 + $0xe4] sm:$0xf] %v176_v54  ;;  %179 = vst [vmem:[#allocation2 + $0xe8] sm:$0xf] %v178_v55  ;;  %v180_v56 = vld [vmem:[%s19875_s9 + $0xf4] sm:$0xf] }
  0x26   :  { %v182_v57 = vld [vmem:[%s19875_s9 + $0xd8] sm:$0xf]  ;;  %181 = vst [vmem:[#allocation2 + $0xec] sm:$0xf] %v180_v56  ;;  %v186_v59 = vld [vmem:[%s19875_s9 + $0xdc] sm:$0xf] }
  0x27   :  { %v184_v58 = vld [vmem:[%s19875_s9 + $0xf8] sm:$0xf]  ;;  %183 = vst [vmem:[#allocation2 + $0xf0] sm:$0xf] %v182_v57  ;;  %v192_v61 = vld [vmem:[%s19875_s9 + $0x120] sm:$0xf] }
  0x28   :  { %185 = vst [vmem:[#allocation2 + $0xf4] sm:$0xf] %v184_v58  ;;  %187 = vst [vmem:[#allocation2 + $0xf8] sm:$0xf] %v186_v59  ;;  %v194_v62 = vld [vmem:[%s19875_s9 + $0x104] sm:$0xf] }
  0x29   :  { %189 = vst [vmem:[#allocation2 + $0xfc] sm:$0xff] %v188_v60   ;;  %193 = vst [vmem:[#allocation2 + $0x104] sm:$0xf] %v192_v61  ;;  %v196_v63 = vld [vmem:[%s19875_s9 + $0x124] sm:$0xf]  ;;  %v220_v11 = vld [vmem:[%s19875_s9 + $0x13c] sm:$0xff]  }
  0x2a   :  { %v198_v0 = vld [vmem:[%s19875_s9 + $0x108] sm:$0xf]  ;;  %195 = vst [vmem:[#allocation2 + $0x108] sm:$0xf] %v194_v62  ;;  %197 = vst [vmem:[#allocation2 + $0x10c] sm:$0xf] %v196_v63 }
  0x2b   :  { %199 = vst [vmem:[#allocation2 + $0x110] sm:$0xf] %v198_v0  ;;  %v200_v1 = vld [vmem:[%s19875_s9 + $0x128] sm:$0xf]  ;;  %v202_v2 = vld [vmem:[%s19875_s9 + $0x10c] sm:$0xf] }
  0x2c   :  { %v204_v3 = vld [vmem:[%s19875_s9 + $0x12c] sm:$0xf]  ;;  %201 = vst [vmem:[#allocation2 + $0x114] sm:$0xf] %v200_v1  ;;  %203 = vst [vmem:[#allocation2 + $0x118] sm:$0xf] %v202_v2 }
  0x2d   :  { %205 = vst [vmem:[#allocation2 + $0x11c] sm:$0xf] %v204_v3  ;;  %v206_v4 = vld [vmem:[%s19875_s9 + $0x110] sm:$0xf]  ;;  %v210_v6 = vld [vmem:[%s19875_s9 + $0x114] sm:$0xf] }
  0x2e   :  { %v208_v5 = vld [vmem:[%s19875_s9 + $0x130] sm:$0xf]  ;;  %207 = vst [vmem:[#allocation2 + $0x120] sm:$0xf] %v206_v4  ;;  %211 = vst [vmem:[#allocation2 + $0x128] sm:$0xf] %v210_v6 }
  0x2f   :  { %209 = vst [vmem:[#allocation2 + $0x124] sm:$0xf] %v208_v5  ;;  %v212_v7 = vld [vmem:[%s19875_s9 + $0x134] sm:$0xf]  ;;  %v214_v8 = vld [vmem:[%s19875_s9 + $0x118] sm:$0xf] }
  0x30   :  { %v216_v9 = vld [vmem:[%s19875_s9 + $0x138] sm:$0xf]  ;;  %213 = vst [vmem:[#allocation2 + $0x12c] sm:$0xf] %v212_v7  ;;  %215 = vst [vmem:[#allocation2 + $0x130] sm:$0xf] %v214_v8 }
  0x31   :  { %217 = vst [vmem:[#allocation2 + $0x134] sm:$0xf] %v216_v9  ;;  %v218_v10 = vld [vmem:[%s19875_s9 + $0x11c] sm:$0xf]  ;;  %v224_v12 = vld [vmem:[%s19875_s9 + $0x160] sm:$0xf] }
  0x32   :  { %219 = vst [vmem:[#allocation2 + $0x138] sm:$0xf] %v218_v10  ;;  %221 = vst [vmem:[#allocation2 + $0x13c] sm:$0xff] %v220_v11   ;;  %v226_v13 = vld [vmem:[%s19875_s9 + $0x144] sm:$0xf]  ;;  %v252_v26 = vld [vmem:[%s19875_s9 + $0x17c] sm:$0xff]  }
  0x33   :  { %225 = vst [vmem:[#allocation2 + $0x144] sm:$0xf] %v224_v12  ;;  %v228_v14 = vld [vmem:[%s19875_s9 + $0x164] sm:$0xf]  ;;  %v230_v15 = vld [vmem:[%s19875_s9 + $0x148] sm:$0xf] }
  0x34   :  { %227 = vst [vmem:[#allocation2 + $0x148] sm:$0xf] %v226_v13  ;;  %229 = vst [vmem:[#allocation2 + $0x14c] sm:$0xf] %v228_v14  ;;  %v232_v16 = vld [vmem:[%s19875_s9 + $0x168] sm:$0xf] }
  0x35   :  { %231 = vst [vmem:[#allocation2 + $0x150] sm:$0xf] %v230_v15  ;;  %v234_v17 = vld [vmem:[%s19875_s9 + $0x14c] sm:$0xf]  ;;  %233 = vst [vmem:[#allocation2 + $0x154] sm:$0xf] %v232_v16 }
  0x36   :  { %v236_v18 = vld [vmem:[%s19875_s9 + $0x16c] sm:$0xf]  ;;  %235 = vst [vmem:[#allocation2 + $0x158] sm:$0xf] %v234_v17  ;;  %v238_v19 = vld [vmem:[%s19875_s9 + $0x150] sm:$0xf] }
  0x37   :  { %237 = vst [vmem:[#allocation2 + $0x15c] sm:$0xf] %v236_v18  ;;  %v240_v20 = vld [vmem:[%s19875_s9 + $0x170] sm:$0xf]  ;;  %v242_v21 = vld [vmem:[%s19875_s9 + $0x154] sm:$0xf] }
  0x38   :  { %239 = vst [vmem:[#allocation2 + $0x160] sm:$0xf] %v238_v19  ;;  %241 = vst [vmem:[#allocation2 + $0x164] sm:$0xf] %v240_v20  ;;  %v244_v22 = vld [vmem:[%s19875_s9 + $0x174] sm:$0xf] }
  0x39   :  { %243 = vst [vmem:[#allocation2 + $0x168] sm:$0xf] %v242_v21  ;;  %v246_v23 = vld [vmem:[%s19875_s9 + $0x158] sm:$0xf]  ;;  %245 = vst [vmem:[#allocation2 + $0x16c] sm:$0xf] %v244_v22 }
  0x3a   :  { %v248_v24 = vld [vmem:[%s19875_s9 + $0x178] sm:$0xf]  ;;  %247 = vst [vmem:[#allocation2 + $0x170] sm:$0xf] %v246_v23  ;;  %v250_v25 = vld [vmem:[%s19875_s9 + $0x15c] sm:$0xf] }
  0x3b   :  { %249 = vst [vmem:[#allocation2 + $0x174] sm:$0xf] %v248_v24  ;;  %v256_v27 = vld [vmem:[%s19875_s9 + $0x1a0] sm:$0xf]  ;;  %251 = vst [vmem:[#allocation2 + $0x178] sm:$0xf] %v250_v25 }
  0x3c   :  { %253 = vst [vmem:[#allocation2 + $0x17c] sm:$0xff] %v252_v26   ;;  %257 = vst [vmem:[#allocation2 + $0x184] sm:$0xf] %v256_v27  ;;  %v258_v28 = vld [vmem:[%s19875_s9 + $0x184] sm:$0xf]  ;;  %v284_v41 = vld [vmem:[%s19875_s9 + $0x1bc] sm:$0xff]  }
  0x3d   :  { %v260_v29 = vld [vmem:[%s19875_s9 + $0x1a4] sm:$0xf]  ;;  %v262_v30 = vld [vmem:[%s19875_s9 + $0x188] sm:$0xf]  ;;  %259 = vst [vmem:[#allocation2 + $0x188] sm:$0xf] %v258_v28 }
  0x3e   :  { %261 = vst [vmem:[#allocation2 + $0x18c] sm:$0xf] %v260_v29  ;;  %263 = vst [vmem:[#allocation2 + $0x190] sm:$0xf] %v262_v30  ;;  %v264_v31 = vld [vmem:[%s19875_s9 + $0x1a8] sm:$0xf] }
  0x3f   :  { %v266_v32 = vld [vmem:[%s19875_s9 + $0x18c] sm:$0xf]  ;;  %265 = vst [vmem:[#allocation2 + $0x194] sm:$0xf] %v264_v31  ;;  %v270_v34 = vld [vmem:[%s19875_s9 + $0x190] sm:$0xf] }
  0x40   :  { %v268_v33 = vld [vmem:[%s19875_s9 + $0x1ac] sm:$0xf]  ;;  %267 = vst [vmem:[#allocation2 + $0x198] sm:$0xf] %v266_v32  ;;  %v272_v35 = vld [vmem:[%s19875_s9 + $0x1b0] sm:$0xf] }
  0x41   :  { %269 = vst [vmem:[#allocation2 + $0x19c] sm:$0xf] %v268_v33  ;;  %v274_v36 = vld [vmem:[%s19875_s9 + $0x194] sm:$0xf]  ;;  %271 = vst [vmem:[#allocation2 + $0x1a0] sm:$0xf] %v270_v34 }
  0x42   :  { %273 = vst [vmem:[#allocation2 + $0x1a4] sm:$0xf] %v272_v35  ;;  %275 = vst [vmem:[#allocation2 + $0x1a8] sm:$0xf] %v274_v36  ;;  %v276_v37 = vld [vmem:[%s19875_s9 + $0x1b4] sm:$0xf] }
  0x43   :  { %v278_v38 = vld [vmem:[%s19875_s9 + $0x198] sm:$0xf]  ;;  %277 = vst [vmem:[#allocation2 + $0x1ac] sm:$0xf] %v276_v37  ;;  %v282_v40 = vld [vmem:[%s19875_s9 + $0x19c] sm:$0xf] }
  0x44   :  { %v280_v39 = vld [vmem:[%s19875_s9 + $0x1b8] sm:$0xf]  ;;  %279 = vst [vmem:[#allocation2 + $0x1b0] sm:$0xf] %v278_v38  ;;  %v288_v42 = vld [vmem:[%s19875_s9 + $0x1e0] sm:$0xf] }
  0x45   :  { %281 = vst [vmem:[#allocation2 + $0x1b4] sm:$0xf] %v280_v39  ;;  %283 = vst [vmem:[#allocation2 + $0x1b8] sm:$0xf] %v282_v40  ;;  %v290_v43 = vld [vmem:[%s19875_s9 + $0x1c4] sm:$0xf] }
  0x46   :  { %285 = vst [vmem:[#allocation2 + $0x1bc] sm:$0xff] %v284_v41   ;;  %289 = vst [vmem:[#allocation2 + $0x1c4] sm:$0xf] %v288_v42  ;;  %v292_v44 = vld [vmem:[%s19875_s9 + $0x1e4] sm:$0xf]  ;;  %v316_v56 = vld [vmem:[%s19875_s9 + $0x1fc] sm:$0xff]  }
  0x47   :  { %v294_v45 = vld [vmem:[%s19875_s9 + $0x1c8] sm:$0xf]  ;;  %291 = vst [vmem:[#allocation2 + $0x1c8] sm:$0xf] %v290_v43  ;;  %293 = vst [vmem:[#allocation2 + $0x1cc] sm:$0xf] %v292_v44 }
  0x48   :  { %295 = vst [vmem:[#allocation2 + $0x1d0] sm:$0xf] %v294_v45  ;;  %v296_v46 = vld [vmem:[%s19875_s9 + $0x1e8] sm:$0xf]  ;;  %v298_v47 = vld [vmem:[%s19875_s9 + $0x1cc] sm:$0xf] }
  0x49   :  { %v300_v48 = vld [vmem:[%s19875_s9 + $0x1ec] sm:$0xf]  ;;  %297 = vst [vmem:[#allocation2 + $0x1d4] sm:$0xf] %v296_v46  ;;  %299 = vst [vmem:[#allocation2 + $0x1d8] sm:$0xf] %v298_v47 }
  0x4a   :  { %301 = vst [vmem:[#allocation2 + $0x1dc] sm:$0xf] %v300_v48  ;;  %v302_v49 = vld [vmem:[%s19875_s9 + $0x1d0] sm:$0xf]  ;;  %v306_v51 = vld [vmem:[%s19875_s9 + $0x1d4] sm:$0xf] }
  0x4b   :  { %v304_v50 = vld [vmem:[%s19875_s9 + $0x1f0] sm:$0xf]  ;;  %303 = vst [vmem:[#allocation2 + $0x1e0] sm:$0xf] %v302_v49  ;;  %307 = vst [vmem:[#allocation2 + $0x1e8] sm:$0xf] %v306_v51 }
  0x4c   :  { %305 = vst [vmem:[#allocation2 + $0x1e4] sm:$0xf] %v304_v50  ;;  %v308_v52 = vld [vmem:[%s19875_s9 + $0x1f4] sm:$0xf]  ;;  %v310_v53 = vld [vmem:[%s19875_s9 + $0x1d8] sm:$0xf] }
  0x4d   :  { %v312_v54 = vld [vmem:[%s19875_s9 + $0x1f8] sm:$0xf]  ;;  %309 = vst [vmem:[#allocation2 + $0x1ec] sm:$0xf] %v308_v52  ;;  %311 = vst [vmem:[#allocation2 + $0x1f0] sm:$0xf] %v310_v53 }
  0x4e   :  { %313 = vst [vmem:[#allocation2 + $0x1f4] sm:$0xf] %v312_v54  ;;  %v314_v55 = vld [vmem:[%s19875_s9 + $0x1dc] sm:$0xf]  ;;  %v320_v57 = vld [vmem:[%s19875_s9 + $0x220] sm:$0xf] }
  0x4f   :  { %315 = vst [vmem:[#allocation2 + $0x1f8] sm:$0xf] %v314_v55  ;;  %317 = vst [vmem:[#allocation2 + $0x1fc] sm:$0xff] %v316_v56   ;;  %v322_v58 = vld [vmem:[%s19875_s9 + $0x204] sm:$0xf]  ;;  %v348_v7 = vld [vmem:[%s19875_s9 + $0x23c] sm:$0xff]  }
  0x50   :  { %321 = vst [vmem:[#allocation2 + $0x204] sm:$0xf] %v320_v57  ;;  %v324_v59 = vld [vmem:[%s19875_s9 + $0x224] sm:$0xf]  ;;  %v326_v60 = vld [vmem:[%s19875_s9 + $0x208] sm:$0xf] }
  0x51   :  { %323 = vst [vmem:[#allocation2 + $0x208] sm:$0xf] %v322_v58  ;;  %325 = vst [vmem:[#allocation2 + $0x20c] sm:$0xf] %v324_v59  ;;  %v328_v61 = vld [vmem:[%s19875_s9 + $0x228] sm:$0xf] }
  0x52   :  { %327 = vst [vmem:[#allocation2 + $0x210] sm:$0xf] %v326_v60  ;;  %v330_v62 = vld [vmem:[%s19875_s9 + $0x20c] sm:$0xf]  ;;  %329 = vst [vmem:[#allocation2 + $0x214] sm:$0xf] %v328_v61 }
  0x53   :  { %v332_v63 = vld [vmem:[%s19875_s9 + $0x22c] sm:$0xf]  ;;  %331 = vst [vmem:[#allocation2 + $0x218] sm:$0xf] %v330_v62  ;;  %v334_v0 = vld [vmem:[%s19875_s9 + $0x210] sm:$0xf] }
  0x54   :  { %333 = vst [vmem:[#allocation2 + $0x21c] sm:$0xf] %v332_v63  ;;  %v336_v1 = vld [vmem:[%s19875_s9 + $0x230] sm:$0xf]  ;;  %v338_v2 = vld [vmem:[%s19875_s9 + $0x214] sm:$0xf] }
  0x55   :  { %335 = vst [vmem:[#allocation2 + $0x220] sm:$0xf] %v334_v0  ;;  %337 = vst [vmem:[#allocation2 + $0x224] sm:$0xf] %v336_v1  ;;  %v340_v3 = vld [vmem:[%s19875_s9 + $0x234] sm:$0xf] }
  0x56   :  { %339 = vst [vmem:[#allocation2 + $0x228] sm:$0xf] %v338_v2  ;;  %v342_v4 = vld [vmem:[%s19875_s9 + $0x218] sm:$0xf]  ;;  %341 = vst [vmem:[#allocation2 + $0x22c] sm:$0xf] %v340_v3 }
  0x57   :  { %v344_v5 = vld [vmem:[%s19875_s9 + $0x238] sm:$0xf]  ;;  %343 = vst [vmem:[#allocation2 + $0x230] sm:$0xf] %v342_v4  ;;  %v346_v6 = vld [vmem:[%s19875_s9 + $0x21c] sm:$0xf] }
  0x58   :  { %345 = vst [vmem:[#allocation2 + $0x234] sm:$0xf] %v344_v5  ;;  %v352_v8 = vld [vmem:[%s19875_s9 + $0x260] sm:$0xf]  ;;  %347 = vst [vmem:[#allocation2 + $0x238] sm:$0xf] %v346_v6 }
  0x59   :  { %349 = vst [vmem:[#allocation2 + $0x23c] sm:$0xff] %v348_v7   ;;  %353 = vst [vmem:[#allocation2 + $0x244] sm:$0xf] %v352_v8  ;;  %v354_v9 = vld [vmem:[%s19875_s9 + $0x244] sm:$0xf]  ;;  %v380_v22 = vld [vmem:[%s19875_s9 + $0x27c] sm:$0xff]  }
  0x5a   :  { %v356_v10 = vld [vmem:[%s19875_s9 + $0x264] sm:$0xf]  ;;  %v358_v11 = vld [vmem:[%s19875_s9 + $0x248] sm:$0xf]  ;;  %355 = vst [vmem:[#allocation2 + $0x248] sm:$0xf] %v354_v9 }
  0x5b   :  { %357 = vst [vmem:[#allocation2 + $0x24c] sm:$0xf] %v356_v10  ;;  %359 = vst [vmem:[#allocation2 + $0x250] sm:$0xf] %v358_v11  ;;  %v360_v12 = vld [vmem:[%s19875_s9 + $0x268] sm:$0xf] }
  0x5c   :  { %v362_v13 = vld [vmem:[%s19875_s9 + $0x24c] sm:$0xf]  ;;  %361 = vst [vmem:[#allocation2 + $0x254] sm:$0xf] %v360_v12  ;;  %v366_v15 = vld [vmem:[%s19875_s9 + $0x250] sm:$0xf] }
  0x5d   :  { %v364_v14 = vld [vmem:[%s19875_s9 + $0x26c] sm:$0xf]  ;;  %363 = vst [vmem:[#allocation2 + $0x258] sm:$0xf] %v362_v13  ;;  %v368_v16 = vld [vmem:[%s19875_s9 + $0x270] sm:$0xf] }
  0x5e   :  { %365 = vst [vmem:[#allocation2 + $0x25c] sm:$0xf] %v364_v14  ;;  %v370_v17 = vld [vmem:[%s19875_s9 + $0x254] sm:$0xf]  ;;  %367 = vst [vmem:[#allocation2 + $0x260] sm:$0xf] %v366_v15 }
  0x5f   :  { %369 = vst [vmem:[#allocation2 + $0x264] sm:$0xf] %v368_v16  ;;  %371 = vst [vmem:[#allocation2 + $0x268] sm:$0xf] %v370_v17  ;;  %v372_v18 = vld [vmem:[%s19875_s9 + $0x274] sm:$0xf] }
  0x60   :  { %v374_v19 = vld [vmem:[%s19875_s9 + $0x258] sm:$0xf]  ;;  %373 = vst [vmem:[#allocation2 + $0x26c] sm:$0xf] %v372_v18  ;;  %v378_v21 = vld [vmem:[%s19875_s9 + $0x25c] sm:$0xf] }
  0x61   :  { %v376_v20 = vld [vmem:[%s19875_s9 + $0x278] sm:$0xf]  ;;  %375 = vst [vmem:[#allocation2 + $0x270] sm:$0xf] %v374_v19  ;;  %v384_v23 = vld [vmem:[%s19875_s9 + $0x2a0] sm:$0xf] }
  0x62   :  { %377 = vst [vmem:[#allocation2 + $0x274] sm:$0xf] %v376_v20  ;;  %379 = vst [vmem:[#allocation2 + $0x278] sm:$0xf] %v378_v21  ;;  %v386_v24 = vld [vmem:[%s19875_s9 + $0x284] sm:$0xf] }
  0x63   :  { %381 = vst [vmem:[#allocation2 + $0x27c] sm:$0xff] %v380_v22   ;;  %385 = vst [vmem:[#allocation2 + $0x284] sm:$0xf] %v384_v23  ;;  %v388_v25 = vld [vmem:[%s19875_s9 + $0x2a4] sm:$0xf]  ;;  %v412_v37 = vld [vmem:[%s19875_s9 + $0x2bc] sm:$0xff]  }
  0x64   :  { %v390_v26 = vld [vmem:[%s19875_s9 + $0x288] sm:$0xf]  ;;  %387 = vst [vmem:[#allocation2 + $0x288] sm:$0xf] %v386_v24  ;;  %389 = vst [vmem:[#allocation2 + $0x28c] sm:$0xf] %v388_v25 }
  0x65   :  { %391 = vst [vmem:[#allocation2 + $0x290] sm:$0xf] %v390_v26  ;;  %v392_v27 = vld [vmem:[%s19875_s9 + $0x2a8] sm:$0xf]  ;;  %v394_v28 = vld [vmem:[%s19875_s9 + $0x28c] sm:$0xf] }
  0x66   :  { %v396_v29 = vld [vmem:[%s19875_s9 + $0x2ac] sm:$0xf]  ;;  %393 = vst [vmem:[#allocation2 + $0x294] sm:$0xf] %v392_v27  ;;  %395 = vst [vmem:[#allocation2 + $0x298] sm:$0xf] %v394_v28 }
  0x67   :  { %397 = vst [vmem:[#allocation2 + $0x29c] sm:$0xf] %v396_v29  ;;  %v398_v30 = vld [vmem:[%s19875_s9 + $0x290] sm:$0xf]  ;;  %v402_v32 = vld [vmem:[%s19875_s9 + $0x294] sm:$0xf] }
  0x68   :  { %v400_v31 = vld [vmem:[%s19875_s9 + $0x2b0] sm:$0xf]  ;;  %399 = vst [vmem:[#allocation2 + $0x2a0] sm:$0xf] %v398_v30  ;;  %403 = vst [vmem:[#allocation2 + $0x2a8] sm:$0xf] %v402_v32 }
  0x69   :  { %401 = vst [vmem:[#allocation2 + $0x2a4] sm:$0xf] %v400_v31  ;;  %v404_v33 = vld [vmem:[%s19875_s9 + $0x2b4] sm:$0xf]  ;;  %v406_v34 = vld [vmem:[%s19875_s9 + $0x298] sm:$0xf] }
  0x6a   :  { %v408_v35 = vld [vmem:[%s19875_s9 + $0x2b8] sm:$0xf]  ;;  %405 = vst [vmem:[#allocation2 + $0x2ac] sm:$0xf] %v404_v33  ;;  %407 = vst [vmem:[#allocation2 + $0x2b0] sm:$0xf] %v406_v34 }
  0x6b   :  { %409 = vst [vmem:[#allocation2 + $0x2b4] sm:$0xf] %v408_v35  ;;  %v410_v36 = vld [vmem:[%s19875_s9 + $0x29c] sm:$0xf]  ;;  %v416_v38 = vld [vmem:[%s19875_s9 + $0x2e0] sm:$0xf] }
  0x6c   :  { %411 = vst [vmem:[#allocation2 + $0x2b8] sm:$0xf] %v410_v36  ;;  %413 = vst [vmem:[#allocation2 + $0x2bc] sm:$0xff] %v412_v37   ;;  %v418_v39 = vld [vmem:[%s19875_s9 + $0x2c4] sm:$0xf]  ;;  %v444_v52 = vld [vmem:[%s19875_s9 + $0x2fc] sm:$0xff]  }
  0x6d   :  { %417 = vst [vmem:[#allocation2 + $0x2c4] sm:$0xf] %v416_v38  ;;  %v420_v40 = vld [vmem:[%s19875_s9 + $0x2e4] sm:$0xf]  ;;  %v422_v41 = vld [vmem:[%s19875_s9 + $0x2c8] sm:$0xf] }
  0x6e   :  { %419 = vst [vmem:[#allocation2 + $0x2c8] sm:$0xf] %v418_v39  ;;  %421 = vst [vmem:[#allocation2 + $0x2cc] sm:$0xf] %v420_v40  ;;  %v424_v42 = vld [vmem:[%s19875_s9 + $0x2e8] sm:$0xf] }
  0x6f   :  { %423 = vst [vmem:[#allocation2 + $0x2d0] sm:$0xf] %v422_v41  ;;  %v426_v43 = vld [vmem:[%s19875_s9 + $0x2cc] sm:$0xf]  ;;  %425 = vst [vmem:[#allocation2 + $0x2d4] sm:$0xf] %v424_v42 }
  0x70   :  { %v428_v44 = vld [vmem:[%s19875_s9 + $0x2ec] sm:$0xf]  ;;  %427 = vst [vmem:[#allocation2 + $0x2d8] sm:$0xf] %v426_v43  ;;  %v430_v45 = vld [vmem:[%s19875_s9 + $0x2d0] sm:$0xf] }
  0x71   :  { %429 = vst [vmem:[#allocation2 + $0x2dc] sm:$0xf] %v428_v44  ;;  %v432_v46 = vld [vmem:[%s19875_s9 + $0x2f0] sm:$0xf]  ;;  %v434_v47 = vld [vmem:[%s19875_s9 + $0x2d4] sm:$0xf] }
  0x72   :  { %431 = vst [vmem:[#allocation2 + $0x2e0] sm:$0xf] %v430_v45  ;;  %433 = vst [vmem:[#allocation2 + $0x2e4] sm:$0xf] %v432_v46  ;;  %v436_v48 = vld [vmem:[%s19875_s9 + $0x2f4] sm:$0xf] }
  0x73   :  { %435 = vst [vmem:[#allocation2 + $0x2e8] sm:$0xf] %v434_v47  ;;  %v438_v49 = vld [vmem:[%s19875_s9 + $0x2d8] sm:$0xf]  ;;  %437 = vst [vmem:[#allocation2 + $0x2ec] sm:$0xf] %v436_v48 }
  0x74   :  { %v440_v50 = vld [vmem:[%s19875_s9 + $0x2f8] sm:$0xf]  ;;  %439 = vst [vmem:[#allocation2 + $0x2f0] sm:$0xf] %v438_v49  ;;  %v442_v51 = vld [vmem:[%s19875_s9 + $0x2dc] sm:$0xf] }
  0x75   :  { %441 = vst [vmem:[#allocation2 + $0x2f4] sm:$0xf] %v440_v50  ;;  %v448_v53 = vld [vmem:[%s19875_s9 + $0x320] sm:$0xf]  ;;  %443 = vst [vmem:[#allocation2 + $0x2f8] sm:$0xf] %v442_v51 }
  0x76   :  { %445 = vst [vmem:[#allocation2 + $0x2fc] sm:$0xff] %v444_v52   ;;  %449 = vst [vmem:[#allocation2 + $0x304] sm:$0xf] %v448_v53  ;;  %v450_v54 = vld [vmem:[%s19875_s9 + $0x304] sm:$0xf]  ;;  %v476_v3 = vld [vmem:[%s19875_s9 + $0x33c] sm:$0xff]  }
  0x77   :  { %v452_v55 = vld [vmem:[%s19875_s9 + $0x324] sm:$0xf]  ;;  %v454_v56 = vld [vmem:[%s19875_s9 + $0x308] sm:$0xf]  ;;  %451 = vst [vmem:[#allocation2 + $0x308] sm:$0xf] %v450_v54 }
  0x78   :  { %453 = vst [vmem:[#allocation2 + $0x30c] sm:$0xf] %v452_v55  ;;  %455 = vst [vmem:[#allocation2 + $0x310] sm:$0xf] %v454_v56  ;;  %v456_v57 = vld [vmem:[%s19875_s9 + $0x328] sm:$0xf] }
  0x79   :  { %v458_v58 = vld [vmem:[%s19875_s9 + $0x30c] sm:$0xf]  ;;  %457 = vst [vmem:[#allocation2 + $0x314] sm:$0xf] %v456_v57  ;;  %v462_v60 = vld [vmem:[%s19875_s9 + $0x310] sm:$0xf] }
  0x7a   :  { %v460_v59 = vld [vmem:[%s19875_s9 + $0x32c] sm:$0xf]  ;;  %459 = vst [vmem:[#allocation2 + $0x318] sm:$0xf] %v458_v58  ;;  %v464_v61 = vld [vmem:[%s19875_s9 + $0x330] sm:$0xf] }
  0x7b   :  { %461 = vst [vmem:[#allocation2 + $0x31c] sm:$0xf] %v460_v59  ;;  %v466_v62 = vld [vmem:[%s19875_s9 + $0x314] sm:$0xf]  ;;  %463 = vst [vmem:[#allocation2 + $0x320] sm:$0xf] %v462_v60 }
  0x7c   :  { %465 = vst [vmem:[#allocation2 + $0x324] sm:$0xf] %v464_v61  ;;  %467 = vst [vmem:[#allocation2 + $0x328] sm:$0xf] %v466_v62  ;;  %v468_v63 = vld [vmem:[%s19875_s9 + $0x334] sm:$0xf] }
  0x7d   :  { %v470_v0 = vld [vmem:[%s19875_s9 + $0x318] sm:$0xf]  ;;  %469 = vst [vmem:[#allocation2 + $0x32c] sm:$0xf] %v468_v63  ;;  %v474_v2 = vld [vmem:[%s19875_s9 + $0x31c] sm:$0xf] }
  0x7e   :  { %v472_v1 = vld [vmem:[%s19875_s9 + $0x338] sm:$0xf]  ;;  %471 = vst [vmem:[#allocation2 + $0x330] sm:$0xf] %v470_v0  ;;  %v480_v4 = vld [vmem:[%s19875_s9 + $0x360] sm:$0xf] }
  0x7f   :  { %473 = vst [vmem:[#allocation2 + $0x334] sm:$0xf] %v472_v1  ;;  %475 = vst [vmem:[#allocation2 + $0x338] sm:$0xf] %v474_v2  ;;  %v482_v5 = vld [vmem:[%s19875_s9 + $0x344] sm:$0xf] }
  0x80   :  { %477 = vst [vmem:[#allocation2 + $0x33c] sm:$0xff] %v476_v3   ;;  %481 = vst [vmem:[#allocation2 + $0x344] sm:$0xf] %v480_v4  ;;  %v484_v6 = vld [vmem:[%s19875_s9 + $0x364] sm:$0xf]  ;;  %v508_v18 = vld [vmem:[%s19875_s9 + $0x37c] sm:$0xff]  }
  0x81   :  { %v486_v7 = vld [vmem:[%s19875_s9 + $0x348] sm:$0xf]  ;;  %483 = vst [vmem:[#allocation2 + $0x348] sm:$0xf] %v482_v5  ;;  %485 = vst [vmem:[#allocation2 + $0x34c] sm:$0xf] %v484_v6 }
  0x82   :  { %487 = vst [vmem:[#allocation2 + $0x350] sm:$0xf] %v486_v7  ;;  %v488_v8 = vld [vmem:[%s19875_s9 + $0x368] sm:$0xf]  ;;  %v490_v9 = vld [vmem:[%s19875_s9 + $0x34c] sm:$0xf] }
  0x83   :  { %v492_v10 = vld [vmem:[%s19875_s9 + $0x36c] sm:$0xf]  ;;  %489 = vst [vmem:[#allocation2 + $0x354] sm:$0xf] %v488_v8  ;;  %491 = vst [vmem:[#allocation2 + $0x358] sm:$0xf] %v490_v9 }
  0x84   :  { %493 = vst [vmem:[#allocation2 + $0x35c] sm:$0xf] %v492_v10  ;;  %v494_v11 = vld [vmem:[%s19875_s9 + $0x350] sm:$0xf]  ;;  %v498_v13 = vld [vmem:[%s19875_s9 + $0x354] sm:$0xf] }
  0x85   :  { %v496_v12 = vld [vmem:[%s19875_s9 + $0x370] sm:$0xf]  ;;  %495 = vst [vmem:[#allocation2 + $0x360] sm:$0xf] %v494_v11  ;;  %499 = vst [vmem:[#allocation2 + $0x368] sm:$0xf] %v498_v13 }
  0x86   :  { %497 = vst [vmem:[#allocation2 + $0x364] sm:$0xf] %v496_v12  ;;  %v500_v14 = vld [vmem:[%s19875_s9 + $0x374] sm:$0xf]  ;;  %v502_v15 = vld [vmem:[%s19875_s9 + $0x358] sm:$0xf] }
  0x87   :  { %v504_v16 = vld [vmem:[%s19875_s9 + $0x378] sm:$0xf]  ;;  %501 = vst [vmem:[#allocation2 + $0x36c] sm:$0xf] %v500_v14  ;;  %503 = vst [vmem:[#allocation2 + $0x370] sm:$0xf] %v502_v15 }
  0x88   :  { %505 = vst [vmem:[#allocation2 + $0x374] sm:$0xf] %v504_v16  ;;  %v506_v17 = vld [vmem:[%s19875_s9 + $0x35c] sm:$0xf]  ;;  %v512_v19 = vld [vmem:[%s19875_s9 + $0x3a0] sm:$0xf] }
  0x89   :  { %507 = vst [vmem:[#allocation2 + $0x378] sm:$0xf] %v506_v17  ;;  %509 = vst [vmem:[#allocation2 + $0x37c] sm:$0xff] %v508_v18   ;;  %v514_v20 = vld [vmem:[%s19875_s9 + $0x384] sm:$0xf]  ;;  %v540_v33 = vld [vmem:[%s19875_s9 + $0x3bc] sm:$0xff]  }
  0x8a   :  { %513 = vst [vmem:[#allocation2 + $0x384] sm:$0xf] %v512_v19  ;;  %v516_v21 = vld [vmem:[%s19875_s9 + $0x3a4] sm:$0xf]  ;;  %v518_v22 = vld [vmem:[%s19875_s9 + $0x388] sm:$0xf] }
  0x8b   :  { %515 = vst [vmem:[#allocation2 + $0x388] sm:$0xf] %v514_v20  ;;  %517 = vst [vmem:[#allocation2 + $0x38c] sm:$0xf] %v516_v21  ;;  %v520_v23 = vld [vmem:[%s19875_s9 + $0x3a8] sm:$0xf] }
  0x8c   :  { %519 = vst [vmem:[#allocation2 + $0x390] sm:$0xf] %v518_v22  ;;  %v522_v24 = vld [vmem:[%s19875_s9 + $0x38c] sm:$0xf]  ;;  %521 = vst [vmem:[#allocation2 + $0x394] sm:$0xf] %v520_v23 }
  0x8d   :  { %v524_v25 = vld [vmem:[%s19875_s9 + $0x3ac] sm:$0xf]  ;;  %523 = vst [vmem:[#allocation2 + $0x398] sm:$0xf] %v522_v24  ;;  %v526_v26 = vld [vmem:[%s19875_s9 + $0x390] sm:$0xf] }
  0x8e   :  { %525 = vst [vmem:[#allocation2 + $0x39c] sm:$0xf] %v524_v25  ;;  %v528_v27 = vld [vmem:[%s19875_s9 + $0x3b0] sm:$0xf]  ;;  %v530_v28 = vld [vmem:[%s19875_s9 + $0x394] sm:$0xf] }
  0x8f   :  { %527 = vst [vmem:[#allocation2 + $0x3a0] sm:$0xf] %v526_v26  ;;  %529 = vst [vmem:[#allocation2 + $0x3a4] sm:$0xf] %v528_v27  ;;  %v532_v29 = vld [vmem:[%s19875_s9 + $0x3b4] sm:$0xf] }
  0x90   :  { %531 = vst [vmem:[#allocation2 + $0x3a8] sm:$0xf] %v530_v28  ;;  %v534_v30 = vld [vmem:[%s19875_s9 + $0x398] sm:$0xf]  ;;  %533 = vst [vmem:[#allocation2 + $0x3ac] sm:$0xf] %v532_v29 }
  0x91   :  { %v536_v31 = vld [vmem:[%s19875_s9 + $0x3b8] sm:$0xf]  ;;  %535 = vst [vmem:[#allocation2 + $0x3b0] sm:$0xf] %v534_v30  ;;  %v538_v32 = vld [vmem:[%s19875_s9 + $0x39c] sm:$0xf] }
  0x92   :  { %537 = vst [vmem:[#allocation2 + $0x3b4] sm:$0xf] %v536_v31  ;;  %v544_v34 = vld [vmem:[%s19875_s9 + $0x3e0] sm:$0xf]  ;;  %539 = vst [vmem:[#allocation2 + $0x3b8] sm:$0xf] %v538_v32 }
  0x93   :  { %541 = vst [vmem:[#allocation2 + $0x3bc] sm:$0xff] %v540_v33   ;;  %545 = vst [vmem:[#allocation2 + $0x3c4] sm:$0xf] %v544_v34  ;;  %v546_v35 = vld [vmem:[%s19875_s9 + $0x3c4] sm:$0xf]  ;;  %v572_v48 = vld [vmem:[%s19875_s9 + $0x3fc] sm:$0xff]  }
  0x94   :  { %v548_v36 = vld [vmem:[%s19875_s9 + $0x3e4] sm:$0xf]  ;;  %v550_v37 = vld [vmem:[%s19875_s9 + $0x3c8] sm:$0xf]  ;;  %547 = vst [vmem:[#allocation2 + $0x3c8] sm:$0xf] %v546_v35 }
  0x95   :  { %549 = vst [vmem:[#allocation2 + $0x3cc] sm:$0xf] %v548_v36  ;;  %551 = vst [vmem:[#allocation2 + $0x3d0] sm:$0xf] %v550_v37  ;;  %v552_v38 = vld [vmem:[%s19875_s9 + $0x3e8] sm:$0xf] }
  0x96   :  { %v554_v39 = vld [vmem:[%s19875_s9 + $0x3cc] sm:$0xf]  ;;  %553 = vst [vmem:[#allocation2 + $0x3d4] sm:$0xf] %v552_v38  ;;  %v558_v41 = vld [vmem:[%s19875_s9 + $0x3d0] sm:$0xf] }
  0x97   :  { %v556_v40 = vld [vmem:[%s19875_s9 + $0x3ec] sm:$0xf]  ;;  %555 = vst [vmem:[#allocation2 + $0x3d8] sm:$0xf] %v554_v39  ;;  %v560_v42 = vld [vmem:[%s19875_s9 + $0x3f0] sm:$0xf] }
  0x98   :  { %557 = vst [vmem:[#allocation2 + $0x3dc] sm:$0xf] %v556_v40  ;;  %v562_v43 = vld [vmem:[%s19875_s9 + $0x3d4] sm:$0xf]  ;;  %559 = vst [vmem:[#allocation2 + $0x3e0] sm:$0xf] %v558_v41 }
  0x99   :  { %561 = vst [vmem:[#allocation2 + $0x3e4] sm:$0xf] %v560_v42  ;;  %563 = vst [vmem:[#allocation2 + $0x3e8] sm:$0xf] %v562_v43  ;;  %v564_v44 = vld [vmem:[%s19875_s9 + $0x3f4] sm:$0xf] }
  0x9a   :  { %v566_v45 = vld [vmem:[%s19875_s9 + $0x3d8] sm:$0xf]  ;;  %565 = vst [vmem:[#allocation2 + $0x3ec] sm:$0xf] %v564_v44  ;;  %v570_v47 = vld [vmem:[%s19875_s9 + $0x3dc] sm:$0xf] }
  0x9b   :  { %v568_v46 = vld [vmem:[%s19875_s9 + $0x3f8] sm:$0xf]  ;;  %567 = vst [vmem:[#allocation2 + $0x3f0] sm:$0xf] %v566_v45  ;;  %v576_v49 = vld [vmem:[%s19875_s9 + $0x420] sm:$0xf] }
  0x9c   :  { %569 = vst [vmem:[#allocation2 + $0x3f4] sm:$0xf] %v568_v46  ;;  %571 = vst [vmem:[#allocation2 + $0x3f8] sm:$0xf] %v570_v47  ;;  %v578_v50 = vld [vmem:[%s19875_s9 + $0x404] sm:$0xf] }
  0x9d   :  { %573 = vst [vmem:[#allocation2 + $0x3fc] sm:$0xff] %v572_v48   ;;  %577 = vst [vmem:[#allocation2 + $0x404] sm:$0xf] %v576_v49  ;;  %v580_v51 = vld [vmem:[%s19875_s9 + $0x424] sm:$0xf]  ;;  %v604_v63 = vld [vmem:[%s19875_s9 + $0x43c] sm:$0xff]  }
  0x9e   :  { %v582_v52 = vld [vmem:[%s19875_s9 + $0x408] sm:$0xf]  ;;  %579 = vst [vmem:[#allocation2 + $0x408] sm:$0xf] %v578_v50  ;;  %581 = vst [vmem:[#allocation2 + $0x40c] sm:$0xf] %v580_v51 }
  0x9f   :  { %583 = vst [vmem:[#allocation2 + $0x410] sm:$0xf] %v582_v52  ;;  %v584_v53 = vld [vmem:[%s19875_s9 + $0x428] sm:$0xf]  ;;  %v586_v54 = vld [vmem:[%s19875_s9 + $0x40c] sm:$0xf] }
  0xa0   :  { %v588_v55 = vld [vmem:[%s19875_s9 + $0x42c] sm:$0xf]  ;;  %585 = vst [vmem:[#allocation2 + $0x414] sm:$0xf] %v584_v53  ;;  %587 = vst [vmem:[#allocation2 + $0x418] sm:$0xf] %v586_v54 }
  0xa1   :  { %589 = vst [vmem:[#allocation2 + $0x41c] sm:$0xf] %v588_v55  ;;  %v590_v56 = vld [vmem:[%s19875_s9 + $0x410] sm:$0xf]  ;;  %v594_v58 = vld [vmem:[%s19875_s9 + $0x414] sm:$0xf] }
  0xa2   :  { %v592_v57 = vld [vmem:[%s19875_s9 + $0x430] sm:$0xf]  ;;  %591 = vst [vmem:[#allocation2 + $0x420] sm:$0xf] %v590_v56  ;;  %595 = vst [vmem:[#allocation2 + $0x428] sm:$0xf] %v594_v58 }
  0xa3   :  { %593 = vst [vmem:[#allocation2 + $0x424] sm:$0xf] %v592_v57  ;;  %v596_v59 = vld [vmem:[%s19875_s9 + $0x434] sm:$0xf]  ;;  %v598_v60 = vld [vmem:[%s19875_s9 + $0x418] sm:$0xf] }
  0xa4   :  { %v600_v61 = vld [vmem:[%s19875_s9 + $0x438] sm:$0xf]  ;;  %597 = vst [vmem:[#allocation2 + $0x42c] sm:$0xf] %v596_v59  ;;  %599 = vst [vmem:[#allocation2 + $0x430] sm:$0xf] %v598_v60 }
  0xa5   :  { %601 = vst [vmem:[#allocation2 + $0x434] sm:$0xf] %v600_v61  ;;  %v602_v62 = vld [vmem:[%s19875_s9 + $0x41c] sm:$0xf]  ;;  %v608_v0 = vld [vmem:[%s19875_s9 + $0x460] sm:$0xf] }
  0xa6   :  { %603 = vst [vmem:[#allocation2 + $0x438] sm:$0xf] %v602_v62  ;;  %605 = vst [vmem:[#allocation2 + $0x43c] sm:$0xff] %v604_v63   ;;  %v610_v1 = vld [vmem:[%s19875_s9 + $0x444] sm:$0xf]  ;;  %v636_v14 = vld [vmem:[%s19875_s9 + $0x47c] sm:$0xff]  }
  0xa7   :  { %609 = vst [vmem:[#allocation2 + $0x444] sm:$0xf] %v608_v0  ;;  %v612_v2 = vld [vmem:[%s19875_s9 + $0x464] sm:$0xf]  ;;  %v614_v3 = vld [vmem:[%s19875_s9 + $0x448] sm:$0xf] }
  0xa8   :  { %611 = vst [vmem:[#allocation2 + $0x448] sm:$0xf] %v610_v1  ;;  %613 = vst [vmem:[#allocation2 + $0x44c] sm:$0xf] %v612_v2  ;;  %v616_v4 = vld [vmem:[%s19875_s9 + $0x468] sm:$0xf] }
  0xa9   :  { %615 = vst [vmem:[#allocation2 + $0x450] sm:$0xf] %v614_v3  ;;  %v618_v5 = vld [vmem:[%s19875_s9 + $0x44c] sm:$0xf]  ;;  %617 = vst [vmem:[#allocation2 + $0x454] sm:$0xf] %v616_v4 }
  0xaa   :  { %v620_v6 = vld [vmem:[%s19875_s9 + $0x46c] sm:$0xf]  ;;  %619 = vst [vmem:[#allocation2 + $0x458] sm:$0xf] %v618_v5  ;;  %v622_v7 = vld [vmem:[%s19875_s9 + $0x450] sm:$0xf] }
  0xab   :  { %621 = vst [vmem:[#allocation2 + $0x45c] sm:$0xf] %v620_v6  ;;  %v624_v8 = vld [vmem:[%s19875_s9 + $0x470] sm:$0xf]  ;;  %v626_v9 = vld [vmem:[%s19875_s9 + $0x454] sm:$0xf] }
  0xac   :  { %623 = vst [vmem:[#allocation2 + $0x460] sm:$0xf] %v622_v7  ;;  %625 = vst [vmem:[#allocation2 + $0x464] sm:$0xf] %v624_v8  ;;  %v628_v10 = vld [vmem:[%s19875_s9 + $0x474] sm:$0xf] }
  0xad   :  { %627 = vst [vmem:[#allocation2 + $0x468] sm:$0xf] %v626_v9  ;;  %v630_v11 = vld [vmem:[%s19875_s9 + $0x458] sm:$0xf]  ;;  %629 = vst [vmem:[#allocation2 + $0x46c] sm:$0xf] %v628_v10 }
  0xae   :  { %v632_v12 = vld [vmem:[%s19875_s9 + $0x478] sm:$0xf]  ;;  %631 = vst [vmem:[#allocation2 + $0x470] sm:$0xf] %v630_v11  ;;  %v634_v13 = vld [vmem:[%s19875_s9 + $0x45c] sm:$0xf] }
  0xaf   :  { %633 = vst [vmem:[#allocation2 + $0x474] sm:$0xf] %v632_v12  ;;  %v640_v15 = vld [vmem:[%s19875_s9 + $0x4a0] sm:$0xf]  ;;  %635 = vst [vmem:[#allocation2 + $0x478] sm:$0xf] %v634_v13 }
  0xb0   :  { %637 = vst [vmem:[#allocation2 + $0x47c] sm:$0xff] %v636_v14   ;;  %641 = vst [vmem:[#allocation2 + $0x484] sm:$0xf] %v640_v15  ;;  %v642_v16 = vld [vmem:[%s19875_s9 + $0x484] sm:$0xf]  ;;  %v668_v29 = vld [vmem:[%s19875_s9 + $0x4bc] sm:$0xff]  }
  0xb1   :  { %v644_v17 = vld [vmem:[%s19875_s9 + $0x4a4] sm:$0xf]  ;;  %v646_v18 = vld [vmem:[%s19875_s9 + $0x488] sm:$0xf]  ;;  %643 = vst [vmem:[#allocation2 + $0x488] sm:$0xf] %v642_v16 }
  0xb2   :  { %645 = vst [vmem:[#allocation2 + $0x48c] sm:$0xf] %v644_v17  ;;  %647 = vst [vmem:[#allocation2 + $0x490] sm:$0xf] %v646_v18  ;;  %v648_v19 = vld [vmem:[%s19875_s9 + $0x4a8] sm:$0xf] }
  0xb3   :  { %v650_v20 = vld [vmem:[%s19875_s9 + $0x48c] sm:$0xf]  ;;  %649 = vst [vmem:[#allocation2 + $0x494] sm:$0xf] %v648_v19  ;;  %v654_v22 = vld [vmem:[%s19875_s9 + $0x490] sm:$0xf] }
  0xb4   :  { %v652_v21 = vld [vmem:[%s19875_s9 + $0x4ac] sm:$0xf]  ;;  %651 = vst [vmem:[#allocation2 + $0x498] sm:$0xf] %v650_v20  ;;  %v656_v23 = vld [vmem:[%s19875_s9 + $0x4b0] sm:$0xf] }
  0xb5   :  { %653 = vst [vmem:[#allocation2 + $0x49c] sm:$0xf] %v652_v21  ;;  %v658_v24 = vld [vmem:[%s19875_s9 + $0x494] sm:$0xf]  ;;  %655 = vst [vmem:[#allocation2 + $0x4a0] sm:$0xf] %v654_v22 }
  0xb6   :  { %657 = vst [vmem:[#allocation2 + $0x4a4] sm:$0xf] %v656_v23  ;;  %659 = vst [vmem:[#allocation2 + $0x4a8] sm:$0xf] %v658_v24  ;;  %v660_v25 = vld [vmem:[%s19875_s9 + $0x4b4] sm:$0xf] }
  0xb7   :  { %v662_v26 = vld [vmem:[%s19875_s9 + $0x498] sm:$0xf]  ;;  %661 = vst [vmem:[#allocation2 + $0x4ac] sm:$0xf] %v660_v25  ;;  %v666_v28 = vld [vmem:[%s19875_s9 + $0x49c] sm:$0xf] }
  0xb8   :  { %v664_v27 = vld [vmem:[%s19875_s9 + $0x4b8] sm:$0xf]  ;;  %663 = vst [vmem:[#allocation2 + $0x4b0] sm:$0xf] %v662_v26  ;;  %v672_v30 = vld [vmem:[%s19875_s9 + $0x4e0] sm:$0xf] }
  0xb9   :  { %665 = vst [vmem:[#allocation2 + $0x4b4] sm:$0xf] %v664_v27  ;;  %667 = vst [vmem:[#allocation2 + $0x4b8] sm:$0xf] %v666_v28  ;;  %v674_v31 = vld [vmem:[%s19875_s9 + $0x4c4] sm:$0xf] }
  0xba   :  { %669 = vst [vmem:[#allocation2 + $0x4bc] sm:$0xff] %v668_v29   ;;  %673 = vst [vmem:[#allocation2 + $0x4c4] sm:$0xf] %v672_v30  ;;  %v676_v32 = vld [vmem:[%s19875_s9 + $0x4e4] sm:$0xf]  ;;  %v700_v44 = vld [vmem:[%s19875_s9 + $0x4fc] sm:$0xff]  }
  0xbb   :  { %v678_v33 = vld [vmem:[%s19875_s9 + $0x4c8] sm:$0xf]  ;;  %675 = vst [vmem:[#allocation2 + $0x4c8] sm:$0xf] %v674_v31  ;;  %677 = vst [vmem:[#allocation2 + $0x4cc] sm:$0xf] %v676_v32 }
  0xbc   :  { %679 = vst [vmem:[#allocation2 + $0x4d0] sm:$0xf] %v678_v33  ;;  %v680_v34 = vld [vmem:[%s19875_s9 + $0x4e8] sm:$0xf]  ;;  %v682_v35 = vld [vmem:[%s19875_s9 + $0x4cc] sm:$0xf] }
  0xbd   :  { %v684_v36 = vld [vmem:[%s19875_s9 + $0x4ec] sm:$0xf]  ;;  %681 = vst [vmem:[#allocation2 + $0x4d4] sm:$0xf] %v680_v34  ;;  %683 = vst [vmem:[#allocation2 + $0x4d8] sm:$0xf] %v682_v35 }
  0xbe   :  { %685 = vst [vmem:[#allocation2 + $0x4dc] sm:$0xf] %v684_v36  ;;  %v686_v37 = vld [vmem:[%s19875_s9 + $0x4d0] sm:$0xf]  ;;  %v690_v39 = vld [vmem:[%s19875_s9 + $0x4d4] sm:$0xf] }
  0xbf   :  { %v688_v38 = vld [vmem:[%s19875_s9 + $0x4f0] sm:$0xf]  ;;  %687 = vst [vmem:[#allocation2 + $0x4e0] sm:$0xf] %v686_v37  ;;  %691 = vst [vmem:[#allocation2 + $0x4e8] sm:$0xf] %v690_v39 }
  0xc0   :  { %689 = vst [vmem:[#allocation2 + $0x4e4] sm:$0xf] %v688_v38  ;;  %v692_v40 = vld [vmem:[%s19875_s9 + $0x4f4] sm:$0xf]  ;;  %v694_v41 = vld [vmem:[%s19875_s9 + $0x4d8] sm:$0xf] }
  0xc1   :  { %v696_v42 = vld [vmem:[%s19875_s9 + $0x4f8] sm:$0xf]  ;;  %693 = vst [vmem:[#allocation2 + $0x4ec] sm:$0xf] %v692_v40  ;;  %695 = vst [vmem:[#allocation2 + $0x4f0] sm:$0xf] %v694_v41 }
  0xc2   :  { %697 = vst [vmem:[#allocation2 + $0x4f4] sm:$0xf] %v696_v42  ;;  %v698_v43 = vld [vmem:[%s19875_s9 + $0x4dc] sm:$0xf]  ;;  %v704_v45 = vld [vmem:[%s19875_s9 + $0x520] sm:$0xf] }
  0xc3   :  { %699 = vst [vmem:[#allocation2 + $0x4f8] sm:$0xf] %v698_v43  ;;  %701 = vst [vmem:[#allocation2 + $0x4fc] sm:$0xff] %v700_v44   ;;  %v706_v46 = vld [vmem:[%s19875_s9 + $0x504] sm:$0xf]  ;;  %v732_v59 = vld [vmem:[%s19875_s9 + $0x53c] sm:$0xff]  }
  0xc4   :  { %705 = vst [vmem:[#allocation2 + $0x504] sm:$0xf] %v704_v45  ;;  %v708_v47 = vld [vmem:[%s19875_s9 + $0x524] sm:$0xf]  ;;  %v710_v48 = vld [vmem:[%s19875_s9 + $0x508] sm:$0xf] }
  0xc5   :  { %707 = vst [vmem:[#allocation2 + $0x508] sm:$0xf] %v706_v46  ;;  %709 = vst [vmem:[#allocation2 + $0x50c] sm:$0xf] %v708_v47  ;;  %v712_v49 = vld [vmem:[%s19875_s9 + $0x528] sm:$0xf] }
  0xc6   :  { %711 = vst [vmem:[#allocation2 + $0x510] sm:$0xf] %v710_v48  ;;  %v714_v50 = vld [vmem:[%s19875_s9 + $0x50c] sm:$0xf]  ;;  %713 = vst [vmem:[#allocation2 + $0x514] sm:$0xf] %v712_v49 }
  0xc7   :  { %v716_v51 = vld [vmem:[%s19875_s9 + $0x52c] sm:$0xf]  ;;  %715 = vst [vmem:[#allocation2 + $0x518] sm:$0xf] %v714_v50  ;;  %v718_v52 = vld [vmem:[%s19875_s9 + $0x510] sm:$0xf] }
  0xc8   :  { %717 = vst [vmem:[#allocation2 + $0x51c] sm:$0xf] %v716_v51  ;;  %v720_v53 = vld [vmem:[%s19875_s9 + $0x530] sm:$0xf]  ;;  %v722_v54 = vld [vmem:[%s19875_s9 + $0x514] sm:$0xf] }
  0xc9   :  { %719 = vst [vmem:[#allocation2 + $0x520] sm:$0xf] %v718_v52  ;;  %721 = vst [vmem:[#allocation2 + $0x524] sm:$0xf] %v720_v53  ;;  %v724_v55 = vld [vmem:[%s19875_s9 + $0x534] sm:$0xf] }
  0xca   :  { %723 = vst [vmem:[#allocation2 + $0x528] sm:$0xf] %v722_v54  ;;  %v726_v56 = vld [vmem:[%s19875_s9 + $0x518] sm:$0xf]  ;;  %725 = vst [vmem:[#allocation2 + $0x52c] sm:$0xf] %v724_v55 }
  0xcb   :  { %v728_v57 = vld [vmem:[%s19875_s9 + $0x538] sm:$0xf]  ;;  %727 = vst [vmem:[#allocation2 + $0x530] sm:$0xf] %v726_v56  ;;  %v730_v58 = vld [vmem:[%s19875_s9 + $0x51c] sm:$0xf] }
  0xcc   :  { %729 = vst [vmem:[#allocation2 + $0x534] sm:$0xf] %v728_v57  ;;  %v736_v60 = vld [vmem:[%s19875_s9 + $0x560] sm:$0xf]  ;;  %731 = vst [vmem:[#allocation2 + $0x538] sm:$0xf] %v730_v58 }
  0xcd   :  { %733 = vst [vmem:[#allocation2 + $0x53c] sm:$0xff] %v732_v59   ;;  %737 = vst [vmem:[#allocation2 + $0x544] sm:$0xf] %v736_v60  ;;  %v738_v61 = vld [vmem:[%s19875_s9 + $0x544] sm:$0xf]  ;;  %v764_v10 = vld [vmem:[%s19875_s9 + $0x57c] sm:$0xff]  }
  0xce   :  { %v740_v62 = vld [vmem:[%s19875_s9 + $0x564] sm:$0xf]  ;;  %v742_v63 = vld [vmem:[%s19875_s9 + $0x548] sm:$0xf]  ;;  %739 = vst [vmem:[#allocation2 + $0x548] sm:$0xf] %v738_v61 }
  0xcf   :  { %741 = vst [vmem:[#allocation2 + $0x54c] sm:$0xf] %v740_v62  ;;  %743 = vst [vmem:[#allocation2 + $0x550] sm:$0xf] %v742_v63  ;;  %v744_v0 = vld [vmem:[%s19875_s9 + $0x568] sm:$0xf] }
  0xd0   :  { %v746_v1 = vld [vmem:[%s19875_s9 + $0x54c] sm:$0xf]  ;;  %745 = vst [vmem:[#allocation2 + $0x554] sm:$0xf] %v744_v0  ;;  %v750_v3 = vld [vmem:[%s19875_s9 + $0x550] sm:$0xf] }
  0xd1   :  { %v748_v2 = vld [vmem:[%s19875_s9 + $0x56c] sm:$0xf]  ;;  %747 = vst [vmem:[#allocation2 + $0x558] sm:$0xf] %v746_v1  ;;  %v752_v4 = vld [vmem:[%s19875_s9 + $0x570] sm:$0xf] }
  0xd2   :  { %749 = vst [vmem:[#allocation2 + $0x55c] sm:$0xf] %v748_v2  ;;  %v754_v5 = vld [vmem:[%s19875_s9 + $0x554] sm:$0xf]  ;;  %751 = vst [vmem:[#allocation2 + $0x560] sm:$0xf] %v750_v3 }
  0xd3   :  { %753 = vst [vmem:[#allocation2 + $0x564] sm:$0xf] %v752_v4  ;;  %755 = vst [vmem:[#allocation2 + $0x568] sm:$0xf] %v754_v5  ;;  %v756_v6 = vld [vmem:[%s19875_s9 + $0x574] sm:$0xf] }
  0xd4   :  { %v758_v7 = vld [vmem:[%s19875_s9 + $0x558] sm:$0xf]  ;;  %757 = vst [vmem:[#allocation2 + $0x56c] sm:$0xf] %v756_v6  ;;  %v762_v9 = vld [vmem:[%s19875_s9 + $0x55c] sm:$0xf] }
  0xd5   :  { %v760_v8 = vld [vmem:[%s19875_s9 + $0x578] sm:$0xf]  ;;  %759 = vst [vmem:[#allocation2 + $0x570] sm:$0xf] %v758_v7  ;;  %v768_v11 = vld [vmem:[%s19875_s9 + $0x5a0] sm:$0xf] }
  0xd6   :  { %761 = vst [vmem:[#allocation2 + $0x574] sm:$0xf] %v760_v8  ;;  %763 = vst [vmem:[#allocation2 + $0x578] sm:$0xf] %v762_v9  ;;  %v770_v12 = vld [vmem:[%s19875_s9 + $0x584] sm:$0xf] }
  0xd7   :  { %765 = vst [vmem:[#allocation2 + $0x57c] sm:$0xff] %v764_v10   ;;  %769 = vst [vmem:[#allocation2 + $0x584] sm:$0xf] %v768_v11  ;;  %v772_v13 = vld [vmem:[%s19875_s9 + $0x5a4] sm:$0xf]  ;;  %v796_v25 = vld [vmem:[%s19875_s9 + $0x5bc] sm:$0xff]  }
  0xd8   :  { %v774_v14 = vld [vmem:[%s19875_s9 + $0x588] sm:$0xf]  ;;  %771 = vst [vmem:[#allocation2 + $0x588] sm:$0xf] %v770_v12  ;;  %773 = vst [vmem:[#allocation2 + $0x58c] sm:$0xf] %v772_v13 }
  0xd9   :  { %775 = vst [vmem:[#allocation2 + $0x590] sm:$0xf] %v774_v14  ;;  %v776_v15 = vld [vmem:[%s19875_s9 + $0x5a8] sm:$0xf]  ;;  %v778_v16 = vld [vmem:[%s19875_s9 + $0x58c] sm:$0xf] }
  0xda   :  { %v780_v17 = vld [vmem:[%s19875_s9 + $0x5ac] sm:$0xf]  ;;  %777 = vst [vmem:[#allocation2 + $0x594] sm:$0xf] %v776_v15  ;;  %779 = vst [vmem:[#allocation2 + $0x598] sm:$0xf] %v778_v16 }
  0xdb   :  { %781 = vst [vmem:[#allocation2 + $0x59c] sm:$0xf] %v780_v17  ;;  %v782_v18 = vld [vmem:[%s19875_s9 + $0x590] sm:$0xf]  ;;  %v786_v20 = vld [vmem:[%s19875_s9 + $0x594] sm:$0xf] }
  0xdc   :  { %v784_v19 = vld [vmem:[%s19875_s9 + $0x5b0] sm:$0xf]  ;;  %783 = vst [vmem:[#allocation2 + $0x5a0] sm:$0xf] %v782_v18  ;;  %787 = vst [vmem:[#allocation2 + $0x5a8] sm:$0xf] %v786_v20 }
  0xdd   :  { %785 = vst [vmem:[#allocation2 + $0x5a4] sm:$0xf] %v784_v19  ;;  %v788_v21 = vld [vmem:[%s19875_s9 + $0x5b4] sm:$0xf]  ;;  %v790_v22 = vld [vmem:[%s19875_s9 + $0x598] sm:$0xf] }
  0xde   :  { %v792_v23 = vld [vmem:[%s19875_s9 + $0x5b8] sm:$0xf]  ;;  %789 = vst [vmem:[#allocation2 + $0x5ac] sm:$0xf] %v788_v21  ;;  %791 = vst [vmem:[#allocation2 + $0x5b0] sm:$0xf] %v790_v22 }
  0xdf   :  { %793 = vst [vmem:[#allocation2 + $0x5b4] sm:$0xf] %v792_v23  ;;  %v794_v24 = vld [vmem:[%s19875_s9 + $0x59c] sm:$0xf]  ;;  %v800_v26 = vld [vmem:[%s19875_s9 + $0x5e0] sm:$0xf] }
  0xe0   :  { %795 = vst [vmem:[#allocation2 + $0x5b8] sm:$0xf] %v794_v24  ;;  %797 = vst [vmem:[#allocation2 + $0x5bc] sm:$0xff] %v796_v25   ;;  %v802_v27 = vld [vmem:[%s19875_s9 + $0x5c4] sm:$0xf]  ;;  %v828_v40 = vld [vmem:[%s19875_s9 + $0x5fc] sm:$0xff]  }
  0xe1   :  { %801 = vst [vmem:[#allocation2 + $0x5c4] sm:$0xf] %v800_v26  ;;  %v804_v28 = vld [vmem:[%s19875_s9 + $0x5e4] sm:$0xf]  ;;  %v806_v29 = vld [vmem:[%s19875_s9 + $0x5c8] sm:$0xf] }
  0xe2   :  { %803 = vst [vmem:[#allocation2 + $0x5c8] sm:$0xf] %v802_v27  ;;  %805 = vst [vmem:[#allocation2 + $0x5cc] sm:$0xf] %v804_v28  ;;  %v808_v30 = vld [vmem:[%s19875_s9 + $0x5e8] sm:$0xf] }
  0xe3   :  { %807 = vst [vmem:[#allocation2 + $0x5d0] sm:$0xf] %v806_v29  ;;  %v810_v31 = vld [vmem:[%s19875_s9 + $0x5cc] sm:$0xf]  ;;  %809 = vst [vmem:[#allocation2 + $0x5d4] sm:$0xf] %v808_v30 }
  0xe4   :  { %v812_v32 = vld [vmem:[%s19875_s9 + $0x5ec] sm:$0xf]  ;;  %811 = vst [vmem:[#allocation2 + $0x5d8] sm:$0xf] %v810_v31  ;;  %v814_v33 = vld [vmem:[%s19875_s9 + $0x5d0] sm:$0xf] }
  0xe5   :  { %813 = vst [vmem:[#allocation2 + $0x5dc] sm:$0xf] %v812_v32  ;;  %v816_v34 = vld [vmem:[%s19875_s9 + $0x5f0] sm:$0xf]  ;;  %v818_v35 = vld [vmem:[%s19875_s9 + $0x5d4] sm:$0xf] }
  0xe6   :  { %815 = vst [vmem:[#allocation2 + $0x5e0] sm:$0xf] %v814_v33  ;;  %817 = vst [vmem:[#allocation2 + $0x5e4] sm:$0xf] %v816_v34  ;;  %v820_v36 = vld [vmem:[%s19875_s9 + $0x5f4] sm:$0xf] }
  0xe7   :  { %819 = vst [vmem:[#allocation2 + $0x5e8] sm:$0xf] %v818_v35  ;;  %v822_v37 = vld [vmem:[%s19875_s9 + $0x5d8] sm:$0xf]  ;;  %821 = vst [vmem:[#allocation2 + $0x5ec] sm:$0xf] %v820_v36 }
  0xe8   :  { %v824_v38 = vld [vmem:[%s19875_s9 + $0x5f8] sm:$0xf]  ;;  %823 = vst [vmem:[#allocation2 + $0x5f0] sm:$0xf] %v822_v37  ;;  %v826_v39 = vld [vmem:[%s19875_s9 + $0x5dc] sm:$0xf] }
  0xe9   :  { %825 = vst [vmem:[#allocation2 + $0x5f4] sm:$0xf] %v824_v38  ;;  %v832_v41 = vld [vmem:[%s19875_s9 + $0x620] sm:$0xf]  ;;  %827 = vst [vmem:[#allocation2 + $0x5f8] sm:$0xf] %v826_v39 }
  0xea   :  { %829 = vst [vmem:[#allocation2 + $0x5fc] sm:$0xff] %v828_v40   ;;  %833 = vst [vmem:[#allocation2 + $0x604] sm:$0xf] %v832_v41  ;;  %v834_v42 = vld [vmem:[%s19875_s9 + $0x604] sm:$0xf]  ;;  %v860_v55 = vld [vmem:[%s19875_s9 + $0x63c] sm:$0xff]  }
  0xeb   :  { %v836_v43 = vld [vmem:[%s19875_s9 + $0x624] sm:$0xf]  ;;  %v838_v44 = vld [vmem:[%s19875_s9 + $0x608] sm:$0xf]  ;;  %835 = vst [vmem:[#allocation2 + $0x608] sm:$0xf] %v834_v42 }
  0xec   :  { %837 = vst [vmem:[#allocation2 + $0x60c] sm:$0xf] %v836_v43  ;;  %839 = vst [vmem:[#allocation2 + $0x610] sm:$0xf] %v838_v44  ;;  %v840_v45 = vld [vmem:[%s19875_s9 + $0x628] sm:$0xf] }
  0xed   :  { %v842_v46 = vld [vmem:[%s19875_s9 + $0x60c] sm:$0xf]  ;;  %841 = vst [vmem:[#allocation2 + $0x614] sm:$0xf] %v840_v45  ;;  %v846_v48 = vld [vmem:[%s19875_s9 + $0x610] sm:$0xf] }
  0xee   :  { %v844_v47 = vld [vmem:[%s19875_s9 + $0x62c] sm:$0xf]  ;;  %843 = vst [vmem:[#allocation2 + $0x618] sm:$0xf] %v842_v46  ;;  %v848_v49 = vld [vmem:[%s19875_s9 + $0x630] sm:$0xf] }
  0xef   :  { %845 = vst [vmem:[#allocation2 + $0x61c] sm:$0xf] %v844_v47  ;;  %v850_v50 = vld [vmem:[%s19875_s9 + $0x614] sm:$0xf]  ;;  %847 = vst [vmem:[#allocation2 + $0x620] sm:$0xf] %v846_v48 }
  0xf0   :  { %849 = vst [vmem:[#allocation2 + $0x624] sm:$0xf] %v848_v49  ;;  %851 = vst [vmem:[#allocation2 + $0x628] sm:$0xf] %v850_v50  ;;  %v852_v51 = vld [vmem:[%s19875_s9 + $0x634] sm:$0xf] }
  0xf1   :  { %v854_v52 = vld [vmem:[%s19875_s9 + $0x618] sm:$0xf]  ;;  %853 = vst [vmem:[#allocation2 + $0x62c] sm:$0xf] %v852_v51  ;;  %v858_v54 = vld [vmem:[%s19875_s9 + $0x61c] sm:$0xf] }
  0xf2   :  { %v856_v53 = vld [vmem:[%s19875_s9 + $0x638] sm:$0xf]  ;;  %855 = vst [vmem:[#allocation2 + $0x630] sm:$0xf] %v854_v52  ;;  %v864_v56 = vld [vmem:[%s19875_s9 + $0x660] sm:$0xf] }
  0xf3   :  { %857 = vst [vmem:[#allocation2 + $0x634] sm:$0xf] %v856_v53  ;;  %859 = vst [vmem:[#allocation2 + $0x638] sm:$0xf] %v858_v54  ;;  %v866_v57 = vld [vmem:[%s19875_s9 + $0x644] sm:$0xf] }
  0xf4   :  { %861 = vst [vmem:[#allocation2 + $0x63c] sm:$0xff] %v860_v55   ;;  %865 = vst [vmem:[#allocation2 + $0x644] sm:$0xf] %v864_v56  ;;  %v868_v58 = vld [vmem:[%s19875_s9 + $0x664] sm:$0xf]  ;;  %v892_v6 = vld [vmem:[%s19875_s9 + $0x67c] sm:$0xff]  }
  0xf5   :  { %v870_v59 = vld [vmem:[%s19875_s9 + $0x648] sm:$0xf]  ;;  %867 = vst [vmem:[#allocation2 + $0x648] sm:$0xf] %v866_v57  ;;  %869 = vst [vmem:[#allocation2 + $0x64c] sm:$0xf] %v868_v58 }
  0xf6   :  { %871 = vst [vmem:[#allocation2 + $0x650] sm:$0xf] %v870_v59  ;;  %v872_v60 = vld [vmem:[%s19875_s9 + $0x668] sm:$0xf]  ;;  %v874_v61 = vld [vmem:[%s19875_s9 + $0x64c] sm:$0xf] }
  0xf7   :  { %v876_v62 = vld [vmem:[%s19875_s9 + $0x66c] sm:$0xf]  ;;  %873 = vst [vmem:[#allocation2 + $0x654] sm:$0xf] %v872_v60  ;;  %875 = vst [vmem:[#allocation2 + $0x658] sm:$0xf] %v874_v61 }
  0xf8   :  { %877 = vst [vmem:[#allocation2 + $0x65c] sm:$0xf] %v876_v62  ;;  %v878_v63 = vld [vmem:[%s19875_s9 + $0x650] sm:$0xf]  ;;  %v882_v1 = vld [vmem:[%s19875_s9 + $0x654] sm:$0xf] }
  0xf9   :  { %v880_v0 = vld [vmem:[%s19875_s9 + $0x670] sm:$0xf]  ;;  %879 = vst [vmem:[#allocation2 + $0x660] sm:$0xf] %v878_v63  ;;  %883 = vst [vmem:[#allocation2 + $0x668] sm:$0xf] %v882_v1 }
  0xfa   :  { %881 = vst [vmem:[#allocation2 + $0x664] sm:$0xf] %v880_v0  ;;  %v884_v2 = vld [vmem:[%s19875_s9 + $0x674] sm:$0xf]  ;;  %v886_v3 = vld [vmem:[%s19875_s9 + $0x658] sm:$0xf] }
  0xfb   :  { %v888_v4 = vld [vmem:[%s19875_s9 + $0x678] sm:$0xf]  ;;  %885 = vst [vmem:[#allocation2 + $0x66c] sm:$0xf] %v884_v2  ;;  %887 = vst [vmem:[#allocation2 + $0x670] sm:$0xf] %v886_v3 }
  0xfc   :  { %889 = vst [vmem:[#allocation2 + $0x674] sm:$0xf] %v888_v4  ;;  %v890_v5 = vld [vmem:[%s19875_s9 + $0x65c] sm:$0xf]  ;;  %v896_v7 = vld [vmem:[%s19875_s9 + $0x6a0] sm:$0xf] }
  0xfd   :  { %891 = vst [vmem:[#allocation2 + $0x678] sm:$0xf] %v890_v5  ;;  %893 = vst [vmem:[#allocation2 + $0x67c] sm:$0xff] %v892_v6   ;;  %v898_v8 = vld [vmem:[%s19875_s9 + $0x684] sm:$0xf]  ;;  %v924_v21 = vld [vmem:[%s19875_s9 + $0x6bc] sm:$0xff]  }
  0xfe   :  { %897 = vst [vmem:[#allocation2 + $0x684] sm:$0xf] %v896_v7  ;;  %v900_v9 = vld [vmem:[%s19875_s9 + $0x6a4] sm:$0xf]  ;;  %v902_v10 = vld [vmem:[%s19875_s9 + $0x688] sm:$0xf] }
  0xff   :  { %899 = vst [vmem:[#allocation2 + $0x688] sm:$0xf] %v898_v8  ;;  %901 = vst [vmem:[#allocation2 + $0x68c] sm:$0xf] %v900_v9  ;;  %v904_v11 = vld [vmem:[%s19875_s9 + $0x6a8] sm:$0xf] }
 0x100   :  { %903 = vst [vmem:[#allocation2 + $0x690] sm:$0xf] %v902_v10  ;;  %v906_v12 = vld [vmem:[%s19875_s9 + $0x68c] sm:$0xf]  ;;  %905 = vst [vmem:[#allocation2 + $0x694] sm:$0xf] %v904_v11 }
 0x101   :  { %v908_v13 = vld [vmem:[%s19875_s9 + $0x6ac] sm:$0xf]  ;;  %907 = vst [vmem:[#allocation2 + $0x698] sm:$0xf] %v906_v12  ;;  %v910_v14 = vld [vmem:[%s19875_s9 + $0x690] sm:$0xf] }
 0x102   :  { %909 = vst [vmem:[#allocation2 + $0x69c] sm:$0xf] %v908_v13  ;;  %v912_v15 = vld [vmem:[%s19875_s9 + $0x6b0] sm:$0xf]  ;;  %v914_v16 = vld [vmem:[%s19875_s9 + $0x694] sm:$0xf] }
 0x103   :  { %911 = vst [vmem:[#allocation2 + $0x6a0] sm:$0xf] %v910_v14  ;;  %913 = vst [vmem:[#allocation2 + $0x6a4] sm:$0xf] %v912_v15  ;;  %v916_v17 = vld [vmem:[%s19875_s9 + $0x6b4] sm:$0xf] }
 0x104   :  { %915 = vst [vmem:[#allocation2 + $0x6a8] sm:$0xf] %v914_v16  ;;  %v918_v18 = vld [vmem:[%s19875_s9 + $0x698] sm:$0xf]  ;;  %917 = vst [vmem:[#allocation2 + $0x6ac] sm:$0xf] %v916_v17 }
 0x105   :  { %v920_v19 = vld [vmem:[%s19875_s9 + $0x6b8] sm:$0xf]  ;;  %919 = vst [vmem:[#allocation2 + $0x6b0] sm:$0xf] %v918_v18  ;;  %v922_v20 = vld [vmem:[%s19875_s9 + $0x69c] sm:$0xf] }
 0x106   :  { %921 = vst [vmem:[#allocation2 + $0x6b4] sm:$0xf] %v920_v19  ;;  %v928_v22 = vld [vmem:[%s19875_s9 + $0x6e0] sm:$0xf]  ;;  %923 = vst [vmem:[#allocation2 + $0x6b8] sm:$0xf] %v922_v20 }
 0x107   :  { %925 = vst [vmem:[#allocation2 + $0x6bc] sm:$0xff] %v924_v21   ;;  %929 = vst [vmem:[#allocation2 + $0x6c4] sm:$0xf] %v928_v22  ;;  %v930_v23 = vld [vmem:[%s19875_s9 + $0x6c4] sm:$0xf]  ;;  %v956_v36 = vld [vmem:[%s19875_s9 + $0x6fc] sm:$0xff]  }
 0x108   :  { %v932_v24 = vld [vmem:[%s19875_s9 + $0x6e4] sm:$0xf]  ;;  %v934_v25 = vld [vmem:[%s19875_s9 + $0x6c8] sm:$0xf]  ;;  %931 = vst [vmem:[#allocation2 + $0x6c8] sm:$0xf] %v930_v23 }
 0x109   :  { %933 = vst [vmem:[#allocation2 + $0x6cc] sm:$0xf] %v932_v24  ;;  %935 = vst [vmem:[#allocation2 + $0x6d0] sm:$0xf] %v934_v25  ;;  %v936_v26 = vld [vmem:[%s19875_s9 + $0x6e8] sm:$0xf] }
 0x10a   :  { %v938_v27 = vld [vmem:[%s19875_s9 + $0x6cc] sm:$0xf]  ;;  %937 = vst [vmem:[#allocation2 + $0x6d4] sm:$0xf] %v936_v26  ;;  %v942_v29 = vld [vmem:[%s19875_s9 + $0x6d0] sm:$0xf] }
 0x10b   :  { %v940_v28 = vld [vmem:[%s19875_s9 + $0x6ec] sm:$0xf]  ;;  %939 = vst [vmem:[#allocation2 + $0x6d8] sm:$0xf] %v938_v27  ;;  %v944_v30 = vld [vmem:[%s19875_s9 + $0x6f0] sm:$0xf] }
 0x10c   :  { %941 = vst [vmem:[#allocation2 + $0x6dc] sm:$0xf] %v940_v28  ;;  %v946_v31 = vld [vmem:[%s19875_s9 + $0x6d4] sm:$0xf]  ;;  %943 = vst [vmem:[#allocation2 + $0x6e0] sm:$0xf] %v942_v29 }
 0x10d   :  { %945 = vst [vmem:[#allocation2 + $0x6e4] sm:$0xf] %v944_v30  ;;  %947 = vst [vmem:[#allocation2 + $0x6e8] sm:$0xf] %v946_v31  ;;  %v948_v32 = vld [vmem:[%s19875_s9 + $0x6f4] sm:$0xf] }
 0x10e   :  { %v950_v33 = vld [vmem:[%s19875_s9 + $0x6d8] sm:$0xf]  ;;  %949 = vst [vmem:[#allocation2 + $0x6ec] sm:$0xf] %v948_v32  ;;  %v954_v35 = vld [vmem:[%s19875_s9 + $0x6dc] sm:$0xf] }
 0x10f   :  { %v952_v34 = vld [vmem:[%s19875_s9 + $0x6f8] sm:$0xf]  ;;  %951 = vst [vmem:[#allocation2 + $0x6f0] sm:$0xf] %v950_v33  ;;  %v960_v37 = vld [vmem:[%s19875_s9 + $0x720] sm:$0xf] }
 0x110   :  { %953 = vst [vmem:[#allocation2 + $0x6f4] sm:$0xf] %v952_v34  ;;  %955 = vst [vmem:[#allocation2 + $0x6f8] sm:$0xf] %v954_v35  ;;  %v962_v38 = vld [vmem:[%s19875_s9 + $0x704] sm:$0xf] }
 0x111   :  { %957 = vst [vmem:[#allocation2 + $0x6fc] sm:$0xff] %v956_v36   ;;  %961 = vst [vmem:[#allocation2 + $0x704] sm:$0xf] %v960_v37  ;;  %v964_v39 = vld [vmem:[%s19875_s9 + $0x724] sm:$0xf]  ;;  %v988_v51 = vld [vmem:[%s19875_s9 + $0x73c] sm:$0xff]  }
 0x112   :  { %v966_v40 = vld [vmem:[%s19875_s9 + $0x708] sm:$0xf]  ;;  %963 = vst [vmem:[#allocation2 + $0x708] sm:$0xf] %v962_v38  ;;  %965 = vst [vmem:[#allocation2 + $0x70c] sm:$0xf] %v964_v39 }
 0x113   :  { %967 = vst [vmem:[#allocation2 + $0x710] sm:$0xf] %v966_v40  ;;  %v968_v41 = vld [vmem:[%s19875_s9 + $0x728] sm:$0xf]  ;;  %v970_v42 = vld [vmem:[%s19875_s9 + $0x70c] sm:$0xf] }
 0x114   :  { %v972_v43 = vld [vmem:[%s19875_s9 + $0x72c] sm:$0xf]  ;;  %969 = vst [vmem:[#allocation2 + $0x714] sm:$0xf] %v968_v41  ;;  %971 = vst [vmem:[#allocation2 + $0x718] sm:$0xf] %v970_v42 }
 0x115   :  { %973 = vst [vmem:[#allocation2 + $0x71c] sm:$0xf] %v972_v43  ;;  %v974_v44 = vld [vmem:[%s19875_s9 + $0x710] sm:$0xf]  ;;  %v978_v46 = vld [vmem:[%s19875_s9 + $0x714] sm:$0xf] }
 0x116   :  { %v976_v45 = vld [vmem:[%s19875_s9 + $0x730] sm:$0xf]  ;;  %975 = vst [vmem:[#allocation2 + $0x720] sm:$0xf] %v974_v44  ;;  %979 = vst [vmem:[#allocation2 + $0x728] sm:$0xf] %v978_v46 }
 0x117   :  { %977 = vst [vmem:[#allocation2 + $0x724] sm:$0xf] %v976_v45  ;;  %v980_v47 = vld [vmem:[%s19875_s9 + $0x734] sm:$0xf]  ;;  %v982_v48 = vld [vmem:[%s19875_s9 + $0x718] sm:$0xf] }
 0x118   :  { %v984_v49 = vld [vmem:[%s19875_s9 + $0x738] sm:$0xf]  ;;  %981 = vst [vmem:[#allocation2 + $0x72c] sm:$0xf] %v980_v47  ;;  %983 = vst [vmem:[#allocation2 + $0x730] sm:$0xf] %v982_v48 }
 0x119   :  { %985 = vst [vmem:[#allocation2 + $0x734] sm:$0xf] %v984_v49  ;;  %v986_v50 = vld [vmem:[%s19875_s9 + $0x71c] sm:$0xf]  ;;  %v992_v52 = vld [vmem:[%s19875_s9 + $0x760] sm:$0xf] }
 0x11a   :  { %987 = vst [vmem:[#allocation2 + $0x738] sm:$0xf] %v986_v50  ;;  %989 = vst [vmem:[#allocation2 + $0x73c] sm:$0xff] %v988_v51   ;;  %v994_v53 = vld [vmem:[%s19875_s9 + $0x744] sm:$0xf]  ;;  %v1020_v2 = vld [vmem:[%s19875_s9 + $0x77c] sm:$0xff]  }
 0x11b   :  { %993 = vst [vmem:[#allocation2 + $0x744] sm:$0xf] %v992_v52  ;;  %v996_v54 = vld [vmem:[%s19875_s9 + $0x764] sm:$0xf]  ;;  %v998_v55 = vld [vmem:[%s19875_s9 + $0x748] sm:$0xf] }
 0x11c   :  { %995 = vst [vmem:[#allocation2 + $0x748] sm:$0xf] %v994_v53  ;;  %997 = vst [vmem:[#allocation2 + $0x74c] sm:$0xf] %v996_v54  ;;  %v1000_v56 = vld [vmem:[%s19875_s9 + $0x768] sm:$0xf] }
 0x11d   :  { %999 = vst [vmem:[#allocation2 + $0x750] sm:$0xf] %v998_v55  ;;  %v1002_v57 = vld [vmem:[%s19875_s9 + $0x74c] sm:$0xf]  ;;  %1001 = vst [vmem:[#allocation2 + $0x754] sm:$0xf] %v1000_v56 }
 0x11e   :  { %v1004_v58 = vld [vmem:[%s19875_s9 + $0x76c] sm:$0xf]  ;;  %1003 = vst [vmem:[#allocation2 + $0x758] sm:$0xf] %v1002_v57  ;;  %v1006_v59 = vld [vmem:[%s19875_s9 + $0x750] sm:$0xf] }
 0x11f   :  { %1005 = vst [vmem:[#allocation2 + $0x75c] sm:$0xf] %v1004_v58  ;;  %v1008_v60 = vld [vmem:[%s19875_s9 + $0x770] sm:$0xf]  ;;  %v1010_v61 = vld [vmem:[%s19875_s9 + $0x754] sm:$0xf] }
 0x120   :  { %1007 = vst [vmem:[#allocation2 + $0x760] sm:$0xf] %v1006_v59  ;;  %1009 = vst [vmem:[#allocation2 + $0x764] sm:$0xf] %v1008_v60  ;;  %v1012_v62 = vld [vmem:[%s19875_s9 + $0x774] sm:$0xf] }
 0x121   :  { %1011 = vst [vmem:[#allocation2 + $0x768] sm:$0xf] %v1010_v61  ;;  %v1014_v63 = vld [vmem:[%s19875_s9 + $0x758] sm:$0xf]  ;;  %1013 = vst [vmem:[#allocation2 + $0x76c] sm:$0xf] %v1012_v62 }
 0x122   :  { %v1016_v0 = vld [vmem:[%s19875_s9 + $0x778] sm:$0xf]  ;;  %1015 = vst [vmem:[#allocation2 + $0x770] sm:$0xf] %v1014_v63  ;;  %v1018_v1 = vld [vmem:[%s19875_s9 + $0x75c] sm:$0xf] }
 0x123   :  { %1017 = vst [vmem:[#allocation2 + $0x774] sm:$0xf] %v1016_v0  ;;  %v1024_v3 = vld [vmem:[%s19875_s9 + $0x7a0] sm:$0xf]  ;;  %1019 = vst [vmem:[#allocation2 + $0x778] sm:$0xf] %v1018_v1 }
 0x124   :  { %1021 = vst [vmem:[#allocation2 + $0x77c] sm:$0xff] %v1020_v2   ;;  %1025 = vst [vmem:[#allocation2 + $0x784] sm:$0xf] %v1024_v3  ;;  %v1026_v4 = vld [vmem:[%s19875_s9 + $0x784] sm:$0xf]  ;;  %v1052_v17 = vld [vmem:[%s19875_s9 + $0x7bc] sm:$0xff]  }
 0x125   :  { %v1028_v5 = vld [vmem:[%s19875_s9 + $0x7a4] sm:$0xf]  ;;  %v1030_v6 = vld [vmem:[%s19875_s9 + $0x788] sm:$0xf]  ;;  %1027 = vst [vmem:[#allocation2 + $0x788] sm:$0xf] %v1026_v4 }
 0x126   :  { %1029 = vst [vmem:[#allocation2 + $0x78c] sm:$0xf] %v1028_v5  ;;  %1031 = vst [vmem:[#allocation2 + $0x790] sm:$0xf] %v1030_v6  ;;  %v1032_v7 = vld [vmem:[%s19875_s9 + $0x7a8] sm:$0xf] }
 0x127   :  { %v1034_v8 = vld [vmem:[%s19875_s9 + $0x78c] sm:$0xf]  ;;  %1033 = vst [vmem:[#allocation2 + $0x794] sm:$0xf] %v1032_v7  ;;  %v1038_v10 = vld [vmem:[%s19875_s9 + $0x790] sm:$0xf] }
 0x128   :  { %v1036_v9 = vld [vmem:[%s19875_s9 + $0x7ac] sm:$0xf]  ;;  %1035 = vst [vmem:[#allocation2 + $0x798] sm:$0xf] %v1034_v8  ;;  %v1040_v11 = vld [vmem:[%s19875_s9 + $0x7b0] sm:$0xf] }
 0x129   :  { %1037 = vst [vmem:[#allocation2 + $0x79c] sm:$0xf] %v1036_v9  ;;  %v1042_v12 = vld [vmem:[%s19875_s9 + $0x794] sm:$0xf]  ;;  %1039 = vst [vmem:[#allocation2 + $0x7a0] sm:$0xf] %v1038_v10 }
 0x12a   :  { %1041 = vst [vmem:[#allocation2 + $0x7a4] sm:$0xf] %v1040_v11  ;;  %1043 = vst [vmem:[#allocation2 + $0x7a8] sm:$0xf] %v1042_v12  ;;  %v1044_v13 = vld [vmem:[%s19875_s9 + $0x7b4] sm:$0xf] }
 0x12b   :  { %v1046_v14 = vld [vmem:[%s19875_s9 + $0x798] sm:$0xf]  ;;  %1045 = vst [vmem:[#allocation2 + $0x7ac] sm:$0xf] %v1044_v13  ;;  %v1050_v16 = vld [vmem:[%s19875_s9 + $0x79c] sm:$0xf] }
 0x12c   :  { %v1048_v15 = vld [vmem:[%s19875_s9 + $0x7b8] sm:$0xf]  ;;  %1047 = vst [vmem:[#allocation2 + $0x7b0] sm:$0xf] %v1046_v14  ;;  %v1056_v18 = vld [vmem:[%s19875_s9 + $0x7e0] sm:$0xf] }
 0x12d   :  { %1049 = vst [vmem:[#allocation2 + $0x7b4] sm:$0xf] %v1048_v15  ;;  %1051 = vst [vmem:[#allocation2 + $0x7b8] sm:$0xf] %v1050_v16  ;;  %v1058_v19 = vld [vmem:[%s19875_s9 + $0x7c4] sm:$0xf] }
 0x12e   :  { %1053 = vst [vmem:[#allocation2 + $0x7bc] sm:$0xff] %v1052_v17   ;;  %1057 = vst [vmem:[#allocation2 + $0x7c4] sm:$0xf] %v1056_v18  ;;  %v1060_v20 = vld [vmem:[%s19875_s9 + $0x7e4] sm:$0xf] }
 0x12f   :  { %v1062_v21 = vld [vmem:[%s19875_s9 + $0x7c8] sm:$0xf]  ;;  %1059 = vst [vmem:[#allocation2 + $0x7c8] sm:$0xf] %v1058_v19  ;;  %1061 = vst [vmem:[#allocation2 + $0x7cc] sm:$0xf] %v1060_v20 }
 0x130   :  { %1063 = vst [vmem:[#allocation2 + $0x7d0] sm:$0xf] %v1062_v21  ;;  %v1064_v22 = vld [vmem:[%s19875_s9 + $0x7e8] sm:$0xf]  ;;  %v1066_v23 = vld [vmem:[%s19875_s9 + $0x7cc] sm:$0xf] }
 0x131   :  { %v1068_v24 = vld [vmem:[%s19875_s9 + $0x7ec] sm:$0xf]  ;;  %1065 = vst [vmem:[#allocation2 + $0x7d4] sm:$0xf] %v1064_v22  ;;  %1067 = vst [vmem:[#allocation2 + $0x7d8] sm:$0xf] %v1066_v23 }
 0x132   :  { %1069 = vst [vmem:[#allocation2 + $0x7dc] sm:$0xf] %v1068_v24  ;;  %v1070_v25 = vld [vmem:[%s19875_s9 + $0x7d0] sm:$0xf]  ;;  %v1074_v27 = vld [vmem:[%s19875_s9 + $0x7d4] sm:$0xf] }
 0x133   :  { %v1072_v26 = vld [vmem:[%s19875_s9 + $0x7f0] sm:$0xf]  ;;  %1071 = vst [vmem:[#allocation2 + $0x7e0] sm:$0xf] %v1070_v25  ;;  %1075 = vst [vmem:[#allocation2 + $0x7e8] sm:$0xf] %v1074_v27 }
 0x134   :  { %1073 = vst [vmem:[#allocation2 + $0x7e4] sm:$0xf] %v1072_v26  ;;  %v1076_v28 = vld [vmem:[%s19875_s9 + $0x7f4] sm:$0xf]  ;;  %v1078_v29 = vld [vmem:[%s19875_s9 + $0x7d8] sm:$0xf] }
 0x135   :  { %v1080_v30 = vld [vmem:[%s19875_s9 + $0x7f8] sm:$0xf]  ;;  %1077 = vst [vmem:[#allocation2 + $0x7ec] sm:$0xf] %v1076_v28  ;;  %1079 = vst [vmem:[#allocation2 + $0x7f0] sm:$0xf] %v1078_v29 }
 0x136   :  { %1081 = vst [vmem:[#allocation2 + $0x7f4] sm:$0xf] %v1080_v30  ;;  %v1082_v31 = vld [vmem:[%s19875_s9 + $0x7dc] sm:$0xf] }
 0x137   :  { %v1084_v32 = vld [vmem:[%s19875_s9 + $0x7fc] sm:$0xf]  ;;  %1083 = vst [vmem:[#allocation2 + $0x7f8] sm:$0xf] %v1082_v31 }
 0x138   :  { %1085 = vst [vmem:[#allocation2 + $0x7fc] sm:$0xf] %v1084_v32 }
 0x139   :  { %4221 = vsyncadd [#allocation4], 32768  ;;  %v4240_v33 = vld [vmem:[%s19878_s12] sm:$0xf]  ;;  %v4242_v34 = vld [vmem:[%s19878_s12 + $0x1c] sm:$0xf] }
 0x13a   :  { %4241 = vst [vmem:[#allocation3] sm:$0xf] %v4240_v33  ;;  %4243 = vst [vmem:[#allocation3 + $0x4] sm:$0xf] %v4242_v34  ;;  %v4244_v35 = vld [vmem:[%s19878_s12 + $0x4] sm:$0xf] }
 0x13b   :  { %v4246_v36 = vld [vmem:[%s19878_s12 + $0x20] sm:$0xf]  ;;  %v4248_v37 = vld [vmem:[%s19878_s12 + $0x8] sm:$0xf]  ;;  %4245 = vst [vmem:[#allocation3 + $0x8] sm:$0xf] %v4244_v35 }
 0x13c   :  { %4247 = vst [vmem:[#allocation3 + $0xc] sm:$0xf] %v4246_v36  ;;  %4249 = vst [vmem:[#allocation3 + $0x10] sm:$0xf] %v4248_v37  ;;  %v4250_v38 = vld [vmem:[%s19878_s12 + $0x24] sm:$0xf] }
 0x13d   :  { %v4252_v39 = vld [vmem:[%s19878_s12 + $0xc] sm:$0xf]  ;;  %v4254_v40 = vld [vmem:[%s19878_s12 + $0x28] sm:$0xf]  ;;  %4251 = vst [vmem:[#allocation3 + $0x14] sm:$0xf] %v4250_v38 }
 0x13e   :  { %4253 = vst [vmem:[#allocation3 + $0x18] sm:$0xf] %v4252_v39  ;;  %4255 = vst [vmem:[#allocation3 + $0x1c] sm:$0xf] %v4254_v40  ;;  %v4256_v41 = vld [vmem:[%s19878_s12 + $0x10] sm:$0xf] }
 0x13f   :  { %v4258_v42 = vld [vmem:[%s19878_s12 + $0x2c] sm:$0xf]  ;;  %v4260_v43 = vld [vmem:[%s19878_s12 + $0x14] sm:$0xf]  ;;  %4257 = vst [vmem:[#allocation3 + $0x20] sm:$0xf] %v4256_v41 }
 0x140   :  { %4259 = vst [vmem:[#allocation3 + $0x24] sm:$0xf] %v4258_v42  ;;  %4261 = vst [vmem:[#allocation3 + $0x28] sm:$0xf] %v4260_v43  ;;  %v4262_v44 = vld [vmem:[%s19878_s12 + $0x30] sm:$0xf] }
 0x141   :  { %v4264_v45 = vld [vmem:[%s19878_s12 + $0x18] sm:$0xf]  ;;  %4263 = vst [vmem:[#allocation3 + $0x2c] sm:$0xf] %v4262_v44  ;;  %v4270_v47 = vld [vmem:[%s19878_s12 + $0x54] sm:$0xf] }
 0x142   :  { %v4266_v46 = vld [vmem:[%s19878_s12 + $0x34] sm:$0xff]   ;;  %4265 = vst [vmem:[#allocation3 + $0x30] sm:$0xf] %v4264_v45  ;;  %v4272_v48 = vld [vmem:[%s19878_s12 + $0x3c] sm:$0xf]  ;;  %v4294_v59 = vld [vmem:[%s19878_s12 + $0x6c] sm:$0xff]  }
 0x143   :  { %4267 = vst [vmem:[#allocation3 + $0x34] sm:$0xff] %v4266_v46   ;;  %v4274_v49 = vld [vmem:[%s19878_s12 + $0x58] sm:$0xf]  ;;  %4271 = vst [vmem:[#allocation3 + $0x3c] sm:$0xf] %v4270_v47  ;;  %v4322_v8 = vld [vmem:[%s19878_s12 + $0xa4] sm:$0xff]  }
 0x144   :  { %4273 = vst [vmem:[#allocation3 + $0x40] sm:$0xf] %v4272_v48  ;;  %4275 = vst [vmem:[#allocation3 + $0x44] sm:$0xf] %v4274_v49  ;;  %v4276_v50 = vld [vmem:[%s19878_s12 + $0x40] sm:$0xf] }
 0x145   :  { %v4278_v51 = vld [vmem:[%s19878_s12 + $0x5c] sm:$0xf]  ;;  %v4280_v52 = vld [vmem:[%s19878_s12 + $0x44] sm:$0xf]  ;;  %4277 = vst [vmem:[#allocation3 + $0x48] sm:$0xf] %v4276_v50 }
 0x146   :  { %4279 = vst [vmem:[#allocation3 + $0x4c] sm:$0xf] %v4278_v51  ;;  %4281 = vst [vmem:[#allocation3 + $0x50] sm:$0xf] %v4280_v52  ;;  %v4282_v53 = vld [vmem:[%s19878_s12 + $0x60] sm:$0xf] }
 0x147   :  { %v4284_v54 = vld [vmem:[%s19878_s12 + $0x48] sm:$0xf]  ;;  %v4286_v55 = vld [vmem:[%s19878_s12 + $0x64] sm:$0xf]  ;;  %4283 = vst [vmem:[#allocation3 + $0x54] sm:$0xf] %v4282_v53 }
 0x148   :  { %4285 = vst [vmem:[#allocation3 + $0x58] sm:$0xf] %v4284_v54  ;;  %4287 = vst [vmem:[#allocation3 + $0x5c] sm:$0xf] %v4286_v55  ;;  %v4288_v56 = vld [vmem:[%s19878_s12 + $0x4c] sm:$0xf] }
 0x149   :  { %v4290_v57 = vld [vmem:[%s19878_s12 + $0x68] sm:$0xf]  ;;  %v4292_v58 = vld [vmem:[%s19878_s12 + $0x50] sm:$0xf]  ;;  %4289 = vst [vmem:[#allocation3 + $0x60] sm:$0xf] %v4288_v56 }
 0x14a   :  { %4291 = vst [vmem:[#allocation3 + $0x64] sm:$0xf] %v4290_v57  ;;  %4293 = vst [vmem:[#allocation3 + $0x68] sm:$0xf] %v4292_v58  ;;  %v4298_v60 = vld [vmem:[%s19878_s12 + $0x8c] sm:$0xf] }
 0x14b   :  { %v4300_v61 = vld [vmem:[%s19878_s12 + $0x74] sm:$0xf]  ;;  %4295 = vst [vmem:[#allocation3 + $0x6c] sm:$0xff] %v4294_v59   ;;  %4299 = vst [vmem:[#allocation3 + $0x74] sm:$0xf] %v4298_v60  ;;  %v4350_v21 = vld [vmem:[%s19878_s12 + $0xdc] sm:$0xff]  }
 0x14c   :  { %4301 = vst [vmem:[#allocation3 + $0x78] sm:$0xf] %v4300_v61  ;;  %v4302_v62 = vld [vmem:[%s19878_s12 + $0x90] sm:$0xf]  ;;  %v4304_v63 = vld [vmem:[%s19878_s12 + $0x78] sm:$0xf] }
 0x14d   :  { %v4306_v0 = vld [vmem:[%s19878_s12 + $0x94] sm:$0xf]  ;;  %4303 = vst [vmem:[#allocation3 + $0x7c] sm:$0xf] %v4302_v62  ;;  %4305 = vst [vmem:[#allocation3 + $0x80] sm:$0xf] %v4304_v63 }
 0x14e   :  { %4307 = vst [vmem:[#allocation3 + $0x84] sm:$0xf] %v4306_v0  ;;  %v4308_v1 = vld [vmem:[%s19878_s12 + $0x7c] sm:$0xf]  ;;  %v4310_v2 = vld [vmem:[%s19878_s12 + $0x98] sm:$0xf] }
 0x14f   :  { %v4312_v3 = vld [vmem:[%s19878_s12 + $0x80] sm:$0xf]  ;;  %4309 = vst [vmem:[#allocation3 + $0x88] sm:$0xf] %v4308_v1  ;;  %4311 = vst [vmem:[#allocation3 + $0x8c] sm:$0xf] %v4310_v2 }
 0x150   :  { %4313 = vst [vmem:[#allocation3 + $0x90] sm:$0xf] %v4312_v3  ;;  %v4314_v4 = vld [vmem:[%s19878_s12 + $0x9c] sm:$0xf]  ;;  %v4316_v5 = vld [vmem:[%s19878_s12 + $0x84] sm:$0xf] }
 0x151   :  { %v4318_v6 = vld [vmem:[%s19878_s12 + $0xa0] sm:$0xf]  ;;  %4315 = vst [vmem:[#allocation3 + $0x94] sm:$0xf] %v4314_v4  ;;  %4317 = vst [vmem:[#allocation3 + $0x98] sm:$0xf] %v4316_v5 }
 0x152   :  { %4319 = vst [vmem:[#allocation3 + $0x9c] sm:$0xf] %v4318_v6  ;;  %v4320_v7 = vld [vmem:[%s19878_s12 + $0x88] sm:$0xf]  ;;  %v4326_v9 = vld [vmem:[%s19878_s12 + $0xc4] sm:$0xf] }
 0x153   :  { %4321 = vst [vmem:[#allocation3 + $0xa0] sm:$0xf] %v4320_v7  ;;  %4323 = vst [vmem:[#allocation3 + $0xa4] sm:$0xff] %v4322_v8   ;;  %v4328_v10 = vld [vmem:[%s19878_s12 + $0xac] sm:$0xf]  ;;  %v4378_v34 = vld [vmem:[%s19878_s12 + $0x114] sm:$0xff]  }
 0x154   :  { %4327 = vst [vmem:[#allocation3 + $0xac] sm:$0xf] %v4326_v9  ;;  %v4330_v11 = vld [vmem:[%s19878_s12 + $0xc8] sm:$0xf]  ;;  %v4332_v12 = vld [vmem:[%s19878_s12 + $0xb0] sm:$0xf] }
 0x155   :  { %4329 = vst [vmem:[#allocation3 + $0xb0] sm:$0xf] %v4328_v10  ;;  %4331 = vst [vmem:[#allocation3 + $0xb4] sm:$0xf] %v4330_v11  ;;  %v4334_v13 = vld [vmem:[%s19878_s12 + $0xcc] sm:$0xf] }
 0x156   :  { %4333 = vst [vmem:[#allocation3 + $0xb8] sm:$0xf] %v4332_v12  ;;  %v4336_v14 = vld [vmem:[%s19878_s12 + $0xb4] sm:$0xf]  ;;  %v4338_v15 = vld [vmem:[%s19878_s12 + $0xd0] sm:$0xf] }
 0x157   :  { %4335 = vst [vmem:[#allocation3 + $0xbc] sm:$0xf] %v4334_v13  ;;  %4337 = vst [vmem:[#allocation3 + $0xc0] sm:$0xf] %v4336_v14  ;;  %v4340_v16 = vld [vmem:[%s19878_s12 + $0xb8] sm:$0xf] }
 0x158   :  { %4339 = vst [vmem:[#allocation3 + $0xc4] sm:$0xf] %v4338_v15  ;;  %v4342_v17 = vld [vmem:[%s19878_s12 + $0xd4] sm:$0xf]  ;;  %v4344_v18 = vld [vmem:[%s19878_s12 + $0xbc] sm:$0xf] }
 0x159   :  { %4341 = vst [vmem:[#allocation3 + $0xc8] sm:$0xf] %v4340_v16  ;;  %4343 = vst [vmem:[#allocation3 + $0xcc] sm:$0xf] %v4342_v17  ;;  %v4346_v19 = vld [vmem:[%s19878_s12 + $0xd8] sm:$0xf] }
 0x15a   :  { %4345 = vst [vmem:[#allocation3 + $0xd0] sm:$0xf] %v4344_v18  ;;  %v4348_v20 = vld [vmem:[%s19878_s12 + $0xc0] sm:$0xf]  ;;  %4347 = vst [vmem:[#allocation3 + $0xd4] sm:$0xf] %v4346_v19 }
 0x15b   :  { %4349 = vst [vmem:[#allocation3 + $0xd8] sm:$0xf] %v4348_v20  ;;  %4351 = vst [vmem:[#allocation3 + $0xdc] sm:$0xff] %v4350_v21   ;;  %v4354_v22 = vld [vmem:[%s19878_s12 + $0xfc] sm:$0xf]  ;;  %v4406_v47 = vld [vmem:[%s19878_s12 + $0x14c] sm:$0xff]  }
 0x15c   :  { %v4356_v23 = vld [vmem:[%s19878_s12 + $0xe4] sm:$0xf]  ;;  %v4358_v24 = vld [vmem:[%s19878_s12 + $0x100] sm:$0xf]  ;;  %4355 = vst [vmem:[#allocation3 + $0xe4] sm:$0xf] %v4354_v22 }
 0x15d   :  { %4357 = vst [vmem:[#allocation3 + $0xe8] sm:$0xf] %v4356_v23  ;;  %4359 = vst [vmem:[#allocation3 + $0xec] sm:$0xf] %v4358_v24  ;;  %v4360_v25 = vld [vmem:[%s19878_s12 + $0xe8] sm:$0xf] }
 0x15e   :  { %v4362_v26 = vld [vmem:[%s19878_s12 + $0x104] sm:$0xf]  ;;  %v4364_v27 = vld [vmem:[%s19878_s12 + $0xec] sm:$0xf]  ;;  %4361 = vst [vmem:[#allocation3 + $0xf0] sm:$0xf] %v4360_v25 }
 0x15f   :  { %4363 = vst [vmem:[#allocation3 + $0xf4] sm:$0xf] %v4362_v26  ;;  %4365 = vst [vmem:[#allocation3 + $0xf8] sm:$0xf] %v4364_v27  ;;  %v4366_v28 = vld [vmem:[%s19878_s12 + $0x108] sm:$0xf] }
 0x160   :  { %v4368_v29 = vld [vmem:[%s19878_s12 + $0xf0] sm:$0xf]  ;;  %v4370_v30 = vld [vmem:[%s19878_s12 + $0x10c] sm:$0xf]  ;;  %4367 = vst [vmem:[#allocation3 + $0xfc] sm:$0xf] %v4366_v28 }
 0x161   :  { %4369 = vst [vmem:[#allocation3 + $0x100] sm:$0xf] %v4368_v29  ;;  %4371 = vst [vmem:[#allocation3 + $0x104] sm:$0xf] %v4370_v30  ;;  %v4372_v31 = vld [vmem:[%s19878_s12 + $0xf4] sm:$0xf] }
 0x162   :  { %v4374_v32 = vld [vmem:[%s19878_s12 + $0x110] sm:$0xf]  ;;  %v4376_v33 = vld [vmem:[%s19878_s12 + $0xf8] sm:$0xf]  ;;  %4373 = vst [vmem:[#allocation3 + $0x108] sm:$0xf] %v4372_v31 }
 0x163   :  { %4375 = vst [vmem:[#allocation3 + $0x10c] sm:$0xf] %v4374_v32  ;;  %4377 = vst [vmem:[#allocation3 + $0x110] sm:$0xf] %v4376_v33  ;;  %v4382_v35 = vld [vmem:[%s19878_s12 + $0x134] sm:$0xf] }
 0x164   :  { %v4384_v36 = vld [vmem:[%s19878_s12 + $0x11c] sm:$0xf]  ;;  %4379 = vst [vmem:[#allocation3 + $0x114] sm:$0xff] %v4378_v34   ;;  %4383 = vst [vmem:[#allocation3 + $0x11c] sm:$0xf] %v4382_v35  ;;  %v4434_v60 = vld [vmem:[%s19878_s12 + $0x184] sm:$0xff]  }
 0x165   :  { %4385 = vst [vmem:[#allocation3 + $0x120] sm:$0xf] %v4384_v36  ;;  %v4386_v37 = vld [vmem:[%s19878_s12 + $0x138] sm:$0xf]  ;;  %v4388_v38 = vld [vmem:[%s19878_s12 + $0x120] sm:$0xf] }
 0x166   :  { %v4390_v39 = vld [vmem:[%s19878_s12 + $0x13c] sm:$0xf]  ;;  %4387 = vst [vmem:[#allocation3 + $0x124] sm:$0xf] %v4386_v37  ;;  %4389 = vst [vmem:[#allocation3 + $0x128] sm:$0xf] %v4388_v38 }
 0x167   :  { %4391 = vst [vmem:[#allocation3 + $0x12c] sm:$0xf] %v4390_v39  ;;  %v4392_v40 = vld [vmem:[%s19878_s12 + $0x124] sm:$0xf]  ;;  %v4394_v41 = vld [vmem:[%s19878_s12 + $0x140] sm:$0xf] }
 0x168   :  { %v4396_v42 = vld [vmem:[%s19878_s12 + $0x128] sm:$0xf]  ;;  %4393 = vst [vmem:[#allocation3 + $0x130] sm:$0xf] %v4392_v40  ;;  %4395 = vst [vmem:[#allocation3 + $0x134] sm:$0xf] %v4394_v41 }
 0x169   :  { %4397 = vst [vmem:[#allocation3 + $0x138] sm:$0xf] %v4396_v42  ;;  %v4398_v43 = vld [vmem:[%s19878_s12 + $0x144] sm:$0xf]  ;;  %v4400_v44 = vld [vmem:[%s19878_s12 + $0x12c] sm:$0xf] }
 0x16a   :  { %v4402_v45 = vld [vmem:[%s19878_s12 + $0x148] sm:$0xf]  ;;  %4399 = vst [vmem:[#allocation3 + $0x13c] sm:$0xf] %v4398_v43  ;;  %4401 = vst [vmem:[#allocation3 + $0x140] sm:$0xf] %v4400_v44 }
 0x16b   :  { %4403 = vst [vmem:[#allocation3 + $0x144] sm:$0xf] %v4402_v45  ;;  %v4404_v46 = vld [vmem:[%s19878_s12 + $0x130] sm:$0xf]  ;;  %v4410_v48 = vld [vmem:[%s19878_s12 + $0x16c] sm:$0xf] }
 0x16c   :  { %4405 = vst [vmem:[#allocation3 + $0x148] sm:$0xf] %v4404_v46  ;;  %4407 = vst [vmem:[#allocation3 + $0x14c] sm:$0xff] %v4406_v47   ;;  %v4412_v49 = vld [vmem:[%s19878_s12 + $0x154] sm:$0xf]  ;;  %v4462_v9 = vld [vmem:[%s19878_s12 + $0x1bc] sm:$0xff]  }
 0x16d   :  { %4411 = vst [vmem:[#allocation3 + $0x154] sm:$0xf] %v4410_v48  ;;  %v4414_v50 = vld [vmem:[%s19878_s12 + $0x170] sm:$0xf]  ;;  %v4416_v51 = vld [vmem:[%s19878_s12 + $0x158] sm:$0xf] }
 0x16e   :  { %4413 = vst [vmem:[#allocation3 + $0x158] sm:$0xf] %v4412_v49  ;;  %4415 = vst [vmem:[#allocation3 + $0x15c] sm:$0xf] %v4414_v50  ;;  %v4418_v52 = vld [vmem:[%s19878_s12 + $0x174] sm:$0xf] }
 0x16f   :  { %4417 = vst [vmem:[#allocation3 + $0x160] sm:$0xf] %v4416_v51  ;;  %v4420_v53 = vld [vmem:[%s19878_s12 + $0x15c] sm:$0xf]  ;;  %v4422_v54 = vld [vmem:[%s19878_s12 + $0x178] sm:$0xf] }
 0x170   :  { %4419 = vst [vmem:[#allocation3 + $0x164] sm:$0xf] %v4418_v52  ;;  %4421 = vst [vmem:[#allocation3 + $0x168] sm:$0xf] %v4420_v53  ;;  %v4424_v55 = vld [vmem:[%s19878_s12 + $0x160] sm:$0xf] }
 0x171   :  { %4423 = vst [vmem:[#allocation3 + $0x16c] sm:$0xf] %v4422_v54  ;;  %v4426_v56 = vld [vmem:[%s19878_s12 + $0x17c] sm:$0xf]  ;;  %v4428_v57 = vld [vmem:[%s19878_s12 + $0x164] sm:$0xf] }
 0x172   :  { %4425 = vst [vmem:[#allocation3 + $0x170] sm:$0xf] %v4424_v55  ;;  %4427 = vst [vmem:[#allocation3 + $0x174] sm:$0xf] %v4426_v56  ;;  %v4430_v58 = vld [vmem:[%s19878_s12 + $0x180] sm:$0xf] }
 0x173   :  { %4429 = vst [vmem:[#allocation3 + $0x178] sm:$0xf] %v4428_v57  ;;  %v4432_v59 = vld [vmem:[%s19878_s12 + $0x168] sm:$0xf]  ;;  %4431 = vst [vmem:[#allocation3 + $0x17c] sm:$0xf] %v4430_v58 }
 0x174   :  { %4433 = vst [vmem:[#allocation3 + $0x180] sm:$0xf] %v4432_v59  ;;  %4435 = vst [vmem:[#allocation3 + $0x184] sm:$0xff] %v4434_v60   ;;  %v4438_v61 = vld [vmem:[%s19878_s12 + $0x1a4] sm:$0xf]  ;;  %v4490_v22 = vld [vmem:[%s19878_s12 + $0x1f4] sm:$0xff]  }
 0x175   :  { %v4440_v62 = vld [vmem:[%s19878_s12 + $0x18c] sm:$0xf]  ;;  %v4442_v63 = vld [vmem:[%s19878_s12 + $0x1a8] sm:$0xf]  ;;  %4439 = vst [vmem:[#allocation3 + $0x18c] sm:$0xf] %v4438_v61 }
 0x176   :  { %4441 = vst [vmem:[#allocation3 + $0x190] sm:$0xf] %v4440_v62  ;;  %4443 = vst [vmem:[#allocation3 + $0x194] sm:$0xf] %v4442_v63  ;;  %v4444_v0 = vld [vmem:[%s19878_s12 + $0x190] sm:$0xf] }
 0x177   :  { %v4446_v1 = vld [vmem:[%s19878_s12 + $0x1ac] sm:$0xf]  ;;  %v4448_v2 = vld [vmem:[%s19878_s12 + $0x194] sm:$0xf]  ;;  %4445 = vst [vmem:[#allocation3 + $0x198] sm:$0xf] %v4444_v0 }
 0x178   :  { %4447 = vst [vmem:[#allocation3 + $0x19c] sm:$0xf] %v4446_v1  ;;  %4449 = vst [vmem:[#allocation3 + $0x1a0] sm:$0xf] %v4448_v2  ;;  %v4450_v3 = vld [vmem:[%s19878_s12 + $0x1b0] sm:$0xf] }
 0x179   :  { %v4452_v4 = vld [vmem:[%s19878_s12 + $0x198] sm:$0xf]  ;;  %v4454_v5 = vld [vmem:[%s19878_s12 + $0x1b4] sm:$0xf]  ;;  %4451 = vst [vmem:[#allocation3 + $0x1a4] sm:$0xf] %v4450_v3 }
 0x17a   :  { %4453 = vst [vmem:[#allocation3 + $0x1a8] sm:$0xf] %v4452_v4  ;;  %4455 = vst [vmem:[#allocation3 + $0x1ac] sm:$0xf] %v4454_v5  ;;  %v4456_v6 = vld [vmem:[%s19878_s12 + $0x19c] sm:$0xf] }
 0x17b   :  { %v4458_v7 = vld [vmem:[%s19878_s12 + $0x1b8] sm:$0xf]  ;;  %v4460_v8 = vld [vmem:[%s19878_s12 + $0x1a0] sm:$0xf]  ;;  %4457 = vst [vmem:[#allocation3 + $0x1b0] sm:$0xf] %v4456_v6 }
 0x17c   :  { %4459 = vst [vmem:[#allocation3 + $0x1b4] sm:$0xf] %v4458_v7  ;;  %4461 = vst [vmem:[#allocation3 + $0x1b8] sm:$0xf] %v4460_v8  ;;  %v4466_v10 = vld [vmem:[%s19878_s12 + $0x1dc] sm:$0xf] }
 0x17d   :  { %v4468_v11 = vld [vmem:[%s19878_s12 + $0x1c4] sm:$0xf]  ;;  %4463 = vst [vmem:[#allocation3 + $0x1bc] sm:$0xff] %v4462_v9   ;;  %4467 = vst [vmem:[#allocation3 + $0x1c4] sm:$0xf] %v4466_v10  ;;  %v4518_v35 = vld [vmem:[%s19878_s12 + $0x22c] sm:$0xff]  }
 0x17e   :  { %4469 = vst [vmem:[#allocation3 + $0x1c8] sm:$0xf] %v4468_v11  ;;  %v4470_v12 = vld [vmem:[%s19878_s12 + $0x1e0] sm:$0xf]  ;;  %v4472_v13 = vld [vmem:[%s19878_s12 + $0x1c8] sm:$0xf] }
 0x17f   :  { %v4474_v14 = vld [vmem:[%s19878_s12 + $0x1e4] sm:$0xf]  ;;  %4471 = vst [vmem:[#allocation3 + $0x1cc] sm:$0xf] %v4470_v12  ;;  %4473 = vst [vmem:[#allocation3 + $0x1d0] sm:$0xf] %v4472_v13 }
 0x180   :  { %4475 = vst [vmem:[#allocation3 + $0x1d4] sm:$0xf] %v4474_v14  ;;  %v4476_v15 = vld [vmem:[%s19878_s12 + $0x1cc] sm:$0xf]  ;;  %v4478_v16 = vld [vmem:[%s19878_s12 + $0x1e8] sm:$0xf] }
 0x181   :  { %v4480_v17 = vld [vmem:[%s19878_s12 + $0x1d0] sm:$0xf]  ;;  %4477 = vst [vmem:[#allocation3 + $0x1d8] sm:$0xf] %v4476_v15  ;;  %4479 = vst [vmem:[#allocation3 + $0x1dc] sm:$0xf] %v4478_v16 }
 0x182   :  { %4481 = vst [vmem:[#allocation3 + $0x1e0] sm:$0xf] %v4480_v17  ;;  %v4482_v18 = vld [vmem:[%s19878_s12 + $0x1ec] sm:$0xf]  ;;  %v4484_v19 = vld [vmem:[%s19878_s12 + $0x1d4] sm:$0xf] }
 0x183   :  { %v4486_v20 = vld [vmem:[%s19878_s12 + $0x1f0] sm:$0xf]  ;;  %4483 = vst [vmem:[#allocation3 + $0x1e4] sm:$0xf] %v4482_v18  ;;  %4485 = vst [vmem:[#allocation3 + $0x1e8] sm:$0xf] %v4484_v19 }
 0x184   :  { %4487 = vst [vmem:[#allocation3 + $0x1ec] sm:$0xf] %v4486_v20  ;;  %v4488_v21 = vld [vmem:[%s19878_s12 + $0x1d8] sm:$0xf]  ;;  %v4494_v23 = vld [vmem:[%s19878_s12 + $0x214] sm:$0xf] }
 0x185   :  { %4489 = vst [vmem:[#allocation3 + $0x1f0] sm:$0xf] %v4488_v21  ;;  %4491 = vst [vmem:[#allocation3 + $0x1f4] sm:$0xff] %v4490_v22   ;;  %v4496_v24 = vld [vmem:[%s19878_s12 + $0x1fc] sm:$0xf]  ;;  %v4546_v48 = vld [vmem:[%s19878_s12 + $0x264] sm:$0xff]  }
 0x186   :  { %4495 = vst [vmem:[#allocation3 + $0x1fc] sm:$0xf] %v4494_v23  ;;  %v4498_v25 = vld [vmem:[%s19878_s12 + $0x218] sm:$0xf]  ;;  %v4500_v26 = vld [vmem:[%s19878_s12 + $0x200] sm:$0xf] }
 0x187   :  { %4497 = vst [vmem:[#allocation3 + $0x200] sm:$0xf] %v4496_v24  ;;  %4499 = vst [vmem:[#allocation3 + $0x204] sm:$0xf] %v4498_v25  ;;  %v4502_v27 = vld [vmem:[%s19878_s12 + $0x21c] sm:$0xf] }
 0x188   :  { %4501 = vst [vmem:[#allocation3 + $0x208] sm:$0xf] %v4500_v26  ;;  %v4504_v28 = vld [vmem:[%s19878_s12 + $0x204] sm:$0xf]  ;;  %v4506_v29 = vld [vmem:[%s19878_s12 + $0x220] sm:$0xf] }
 0x189   :  { %4503 = vst [vmem:[#allocation3 + $0x20c] sm:$0xf] %v4502_v27  ;;  %4505 = vst [vmem:[#allocation3 + $0x210] sm:$0xf] %v4504_v28  ;;  %v4508_v30 = vld [vmem:[%s19878_s12 + $0x208] sm:$0xf] }
 0x18a   :  { %4507 = vst [vmem:[#allocation3 + $0x214] sm:$0xf] %v4506_v29  ;;  %v4510_v31 = vld [vmem:[%s19878_s12 + $0x224] sm:$0xf]  ;;  %v4512_v32 = vld [vmem:[%s19878_s12 + $0x20c] sm:$0xf] }
 0x18b   :  { %4509 = vst [vmem:[#allocation3 + $0x218] sm:$0xf] %v4508_v30  ;;  %4511 = vst [vmem:[#allocation3 + $0x21c] sm:$0xf] %v4510_v31  ;;  %v4514_v33 = vld [vmem:[%s19878_s12 + $0x228] sm:$0xf] }
 0x18c   :  { %4513 = vst [vmem:[#allocation3 + $0x220] sm:$0xf] %v4512_v32  ;;  %v4516_v34 = vld [vmem:[%s19878_s12 + $0x210] sm:$0xf]  ;;  %4515 = vst [vmem:[#allocation3 + $0x224] sm:$0xf] %v4514_v33 }
 0x18d   :  { %4517 = vst [vmem:[#allocation3 + $0x228] sm:$0xf] %v4516_v34  ;;  %4519 = vst [vmem:[#allocation3 + $0x22c] sm:$0xff] %v4518_v35   ;;  %v4522_v36 = vld [vmem:[%s19878_s12 + $0x24c] sm:$0xf]  ;;  %v4574_v61 = vld [vmem:[%s19878_s12 + $0x29c] sm:$0xff]  }
 0x18e   :  { %v4524_v37 = vld [vmem:[%s19878_s12 + $0x234] sm:$0xf]  ;;  %v4526_v38 = vld [vmem:[%s19878_s12 + $0x250] sm:$0xf]  ;;  %4523 = vst [vmem:[#allocation3 + $0x234] sm:$0xf] %v4522_v36 }
 0x18f   :  { %4525 = vst [vmem:[#allocation3 + $0x238] sm:$0xf] %v4524_v37  ;;  %4527 = vst [vmem:[#allocation3 + $0x23c] sm:$0xf] %v4526_v38  ;;  %v4528_v39 = vld [vmem:[%s19878_s12 + $0x238] sm:$0xf] }
 0x190   :  { %v4530_v40 = vld [vmem:[%s19878_s12 + $0x254] sm:$0xf]  ;;  %v4532_v41 = vld [vmem:[%s19878_s12 + $0x23c] sm:$0xf]  ;;  %4529 = vst [vmem:[#allocation3 + $0x240] sm:$0xf] %v4528_v39 }
 0x191   :  { %4531 = vst [vmem:[#allocation3 + $0x244] sm:$0xf] %v4530_v40  ;;  %4533 = vst [vmem:[#allocation3 + $0x248] sm:$0xf] %v4532_v41  ;;  %v4534_v42 = vld [vmem:[%s19878_s12 + $0x258] sm:$0xf] }
 0x192   :  { %v4536_v43 = vld [vmem:[%s19878_s12 + $0x240] sm:$0xf]  ;;  %v4538_v44 = vld [vmem:[%s19878_s12 + $0x25c] sm:$0xf]  ;;  %4535 = vst [vmem:[#allocation3 + $0x24c] sm:$0xf] %v4534_v42 }
 0x193   :  { %4537 = vst [vmem:[#allocation3 + $0x250] sm:$0xf] %v4536_v43  ;;  %4539 = vst [vmem:[#allocation3 + $0x254] sm:$0xf] %v4538_v44  ;;  %v4540_v45 = vld [vmem:[%s19878_s12 + $0x244] sm:$0xf] }
 0x194   :  { %v4542_v46 = vld [vmem:[%s19878_s12 + $0x260] sm:$0xf]  ;;  %v4544_v47 = vld [vmem:[%s19878_s12 + $0x248] sm:$0xf]  ;;  %4541 = vst [vmem:[#allocation3 + $0x258] sm:$0xf] %v4540_v45 }
 0x195   :  { %4543 = vst [vmem:[#allocation3 + $0x25c] sm:$0xf] %v4542_v46  ;;  %4545 = vst [vmem:[#allocation3 + $0x260] sm:$0xf] %v4544_v47  ;;  %v4550_v49 = vld [vmem:[%s19878_s12 + $0x284] sm:$0xf] }
 0x196   :  { %v4552_v50 = vld [vmem:[%s19878_s12 + $0x26c] sm:$0xf]  ;;  %4547 = vst [vmem:[#allocation3 + $0x264] sm:$0xff] %v4546_v48   ;;  %4551 = vst [vmem:[#allocation3 + $0x26c] sm:$0xf] %v4550_v49  ;;  %v4602_v10 = vld [vmem:[%s19878_s12 + $0x2d4] sm:$0xff]  }
 0x197   :  { %4553 = vst [vmem:[#allocation3 + $0x270] sm:$0xf] %v4552_v50  ;;  %v4554_v51 = vld [vmem:[%s19878_s12 + $0x288] sm:$0xf]  ;;  %v4556_v52 = vld [vmem:[%s19878_s12 + $0x270] sm:$0xf] }
 0x198   :  { %v4558_v53 = vld [vmem:[%s19878_s12 + $0x28c] sm:$0xf]  ;;  %4555 = vst [vmem:[#allocation3 + $0x274] sm:$0xf] %v4554_v51  ;;  %4557 = vst [vmem:[#allocation3 + $0x278] sm:$0xf] %v4556_v52 }
 0x199   :  { %4559 = vst [vmem:[#allocation3 + $0x27c] sm:$0xf] %v4558_v53  ;;  %v4560_v54 = vld [vmem:[%s19878_s12 + $0x274] sm:$0xf]  ;;  %v4562_v55 = vld [vmem:[%s19878_s12 + $0x290] sm:$0xf] }
 0x19a   :  { %v4564_v56 = vld [vmem:[%s19878_s12 + $0x278] sm:$0xf]  ;;  %4561 = vst [vmem:[#allocation3 + $0x280] sm:$0xf] %v4560_v54  ;;  %4563 = vst [vmem:[#allocation3 + $0x284] sm:$0xf] %v4562_v55 }
 0x19b   :  { %4565 = vst [vmem:[#allocation3 + $0x288] sm:$0xf] %v4564_v56  ;;  %v4566_v57 = vld [vmem:[%s19878_s12 + $0x294] sm:$0xf]  ;;  %v4568_v58 = vld [vmem:[%s19878_s12 + $0x27c] sm:$0xf] }
 0x19c   :  { %v4570_v59 = vld [vmem:[%s19878_s12 + $0x298] sm:$0xf]  ;;  %4567 = vst [vmem:[#allocation3 + $0x28c] sm:$0xf] %v4566_v57  ;;  %4569 = vst [vmem:[#allocation3 + $0x290] sm:$0xf] %v4568_v58 }
 0x19d   :  { %4571 = vst [vmem:[#allocation3 + $0x294] sm:$0xf] %v4570_v59  ;;  %v4572_v60 = vld [vmem:[%s19878_s12 + $0x280] sm:$0xf]  ;;  %v4578_v62 = vld [vmem:[%s19878_s12 + $0x2bc] sm:$0xf] }
 0x19e   :  { %4573 = vst [vmem:[#allocation3 + $0x298] sm:$0xf] %v4572_v60  ;;  %4575 = vst [vmem:[#allocation3 + $0x29c] sm:$0xff] %v4574_v61   ;;  %v4580_v63 = vld [vmem:[%s19878_s12 + $0x2a4] sm:$0xf]  ;;  %v4630_v23 = vld [vmem:[%s19878_s12 + $0x30c] sm:$0xff]  }
 0x19f   :  { %4579 = vst [vmem:[#allocation3 + $0x2a4] sm:$0xf] %v4578_v62  ;;  %v4582_v0 = vld [vmem:[%s19878_s12 + $0x2c0] sm:$0xf]  ;;  %v4584_v1 = vld [vmem:[%s19878_s12 + $0x2a8] sm:$0xf] }
 0x1a0   :  { %4581 = vst [vmem:[#allocation3 + $0x2a8] sm:$0xf] %v4580_v63  ;;  %4583 = vst [vmem:[#allocation3 + $0x2ac] sm:$0xf] %v4582_v0  ;;  %v4586_v2 = vld [vmem:[%s19878_s12 + $0x2c4] sm:$0xf] }
 0x1a1   :  { %4585 = vst [vmem:[#allocation3 + $0x2b0] sm:$0xf] %v4584_v1  ;;  %v4588_v3 = vld [vmem:[%s19878_s12 + $0x2ac] sm:$0xf]  ;;  %v4590_v4 = vld [vmem:[%s19878_s12 + $0x2c8] sm:$0xf] }
 0x1a2   :  { %4587 = vst [vmem:[#allocation3 + $0x2b4] sm:$0xf] %v4586_v2  ;;  %4589 = vst [vmem:[#allocation3 + $0x2b8] sm:$0xf] %v4588_v3  ;;  %v4592_v5 = vld [vmem:[%s19878_s12 + $0x2b0] sm:$0xf] }
 0x1a3   :  { %4591 = vst [vmem:[#allocation3 + $0x2bc] sm:$0xf] %v4590_v4  ;;  %v4594_v6 = vld [vmem:[%s19878_s12 + $0x2cc] sm:$0xf]  ;;  %v4596_v7 = vld [vmem:[%s19878_s12 + $0x2b4] sm:$0xf] }
 0x1a4   :  { %4593 = vst [vmem:[#allocation3 + $0x2c0] sm:$0xf] %v4592_v5  ;;  %4595 = vst [vmem:[#allocation3 + $0x2c4] sm:$0xf] %v4594_v6  ;;  %v4598_v8 = vld [vmem:[%s19878_s12 + $0x2d0] sm:$0xf] }
 0x1a5   :  { %4597 = vst [vmem:[#allocation3 + $0x2c8] sm:$0xf] %v4596_v7  ;;  %v4600_v9 = vld [vmem:[%s19878_s12 + $0x2b8] sm:$0xf]  ;;  %4599 = vst [vmem:[#allocation3 + $0x2cc] sm:$0xf] %v4598_v8 }
 0x1a6   :  { %4601 = vst [vmem:[#allocation3 + $0x2d0] sm:$0xf] %v4600_v9  ;;  %4603 = vst [vmem:[#allocation3 + $0x2d4] sm:$0xff] %v4602_v10   ;;  %v4606_v11 = vld [vmem:[%s19878_s12 + $0x2f4] sm:$0xf]  ;;  %v4658_v36 = vld [vmem:[%s19878_s12 + $0x344] sm:$0xff]  }
 0x1a7   :  { %v4608_v12 = vld [vmem:[%s19878_s12 + $0x2dc] sm:$0xf]  ;;  %v4610_v13 = vld [vmem:[%s19878_s12 + $0x2f8] sm:$0xf]  ;;  %4607 = vst [vmem:[#allocation3 + $0x2dc] sm:$0xf] %v4606_v11 }
 0x1a8   :  { %4609 = vst [vmem:[#allocation3 + $0x2e0] sm:$0xf] %v4608_v12  ;;  %4611 = vst [vmem:[#allocation3 + $0x2e4] sm:$0xf] %v4610_v13  ;;  %v4612_v14 = vld [vmem:[%s19878_s12 + $0x2e0] sm:$0xf] }
 0x1a9   :  { %v4614_v15 = vld [vmem:[%s19878_s12 + $0x2fc] sm:$0xf]  ;;  %v4616_v16 = vld [vmem:[%s19878_s12 + $0x2e4] sm:$0xf]  ;;  %4613 = vst [vmem:[#allocation3 + $0x2e8] sm:$0xf] %v4612_v14 }
 0x1aa   :  { %4615 = vst [vmem:[#allocation3 + $0x2ec] sm:$0xf] %v4614_v15  ;;  %4617 = vst [vmem:[#allocation3 + $0x2f0] sm:$0xf] %v4616_v16  ;;  %v4618_v17 = vld [vmem:[%s19878_s12 + $0x300] sm:$0xf] }
 0x1ab   :  { %v4620_v18 = vld [vmem:[%s19878_s12 + $0x2e8] sm:$0xf]  ;;  %v4622_v19 = vld [vmem:[%s19878_s12 + $0x304] sm:$0xf]  ;;  %4619 = vst [vmem:[#allocation3 + $0x2f4] sm:$0xf] %v4618_v17 }
 0x1ac   :  { %4621 = vst [vmem:[#allocation3 + $0x2f8] sm:$0xf] %v4620_v18  ;;  %4623 = vst [vmem:[#allocation3 + $0x2fc] sm:$0xf] %v4622_v19  ;;  %v4624_v20 = vld [vmem:[%s19878_s12 + $0x2ec] sm:$0xf] }
 0x1ad   :  { %v4626_v21 = vld [vmem:[%s19878_s12 + $0x308] sm:$0xf]  ;;  %v4628_v22 = vld [vmem:[%s19878_s12 + $0x2f0] sm:$0xf]  ;;  %4625 = vst [vmem:[#allocation3 + $0x300] sm:$0xf] %v4624_v20 }
 0x1ae   :  { %4627 = vst [vmem:[#allocation3 + $0x304] sm:$0xf] %v4626_v21  ;;  %4629 = vst [vmem:[#allocation3 + $0x308] sm:$0xf] %v4628_v22  ;;  %v4634_v24 = vld [vmem:[%s19878_s12 + $0x32c] sm:$0xf] }
 0x1af   :  { %v4636_v25 = vld [vmem:[%s19878_s12 + $0x314] sm:$0xf]  ;;  %4631 = vst [vmem:[#allocation3 + $0x30c] sm:$0xff] %v4630_v23   ;;  %4635 = vst [vmem:[#allocation3 + $0x314] sm:$0xf] %v4634_v24  ;;  %v4686_v49 = vld [vmem:[%s19878_s12 + $0x37c] sm:$0xff]  }
 0x1b0   :  { %4637 = vst [vmem:[#allocation3 + $0x318] sm:$0xf] %v4636_v25  ;;  %v4638_v26 = vld [vmem:[%s19878_s12 + $0x330] sm:$0xf]  ;;  %v4640_v27 = vld [vmem:[%s19878_s12 + $0x318] sm:$0xf] }
 0x1b1   :  { %v4642_v28 = vld [vmem:[%s19878_s12 + $0x334] sm:$0xf]  ;;  %4639 = vst [vmem:[#allocation3 + $0x31c] sm:$0xf] %v4638_v26  ;;  %4641 = vst [vmem:[#allocation3 + $0x320] sm:$0xf] %v4640_v27 }
 0x1b2   :  { %4643 = vst [vmem:[#allocation3 + $0x324] sm:$0xf] %v4642_v28  ;;  %v4644_v29 = vld [vmem:[%s19878_s12 + $0x31c] sm:$0xf]  ;;  %v4646_v30 = vld [vmem:[%s19878_s12 + $0x338] sm:$0xf] }
 0x1b3   :  { %v4648_v31 = vld [vmem:[%s19878_s12 + $0x320] sm:$0xf]  ;;  %4645 = vst [vmem:[#allocation3 + $0x328] sm:$0xf] %v4644_v29  ;;  %4647 = vst [vmem:[#allocation3 + $0x32c] sm:$0xf] %v4646_v30 }
 0x1b4   :  { %4649 = vst [vmem:[#allocation3 + $0x330] sm:$0xf] %v4648_v31  ;;  %v4650_v32 = vld [vmem:[%s19878_s12 + $0x33c] sm:$0xf]  ;;  %v4652_v33 = vld [vmem:[%s19878_s12 + $0x324] sm:$0xf] }
 0x1b5   :  { %v4654_v34 = vld [vmem:[%s19878_s12 + $0x340] sm:$0xf]  ;;  %4651 = vst [vmem:[#allocation3 + $0x334] sm:$0xf] %v4650_v32  ;;  %4653 = vst [vmem:[#allocation3 + $0x338] sm:$0xf] %v4652_v33 }
 0x1b6   :  { %4655 = vst [vmem:[#allocation3 + $0x33c] sm:$0xf] %v4654_v34  ;;  %v4656_v35 = vld [vmem:[%s19878_s12 + $0x328] sm:$0xf]  ;;  %v4662_v37 = vld [vmem:[%s19878_s12 + $0x364] sm:$0xf] }
 0x1b7   :  { %4657 = vst [vmem:[#allocation3 + $0x340] sm:$0xf] %v4656_v35  ;;  %4659 = vst [vmem:[#allocation3 + $0x344] sm:$0xff] %v4658_v36   ;;  %v4664_v38 = vld [vmem:[%s19878_s12 + $0x34c] sm:$0xf]  ;;  %v4714_v62 = vld [vmem:[%s19878_s12 + $0x3b4] sm:$0xff]  }
 0x1b8   :  { %4663 = vst [vmem:[#allocation3 + $0x34c] sm:$0xf] %v4662_v37  ;;  %v4666_v39 = vld [vmem:[%s19878_s12 + $0x368] sm:$0xf]  ;;  %v4668_v40 = vld [vmem:[%s19878_s12 + $0x350] sm:$0xf] }
 0x1b9   :  { %4665 = vst [vmem:[#allocation3 + $0x350] sm:$0xf] %v4664_v38  ;;  %4667 = vst [vmem:[#allocation3 + $0x354] sm:$0xf] %v4666_v39  ;;  %v4670_v41 = vld [vmem:[%s19878_s12 + $0x36c] sm:$0xf] }
 0x1ba   :  { %4669 = vst [vmem:[#allocation3 + $0x358] sm:$0xf] %v4668_v40  ;;  %v4672_v42 = vld [vmem:[%s19878_s12 + $0x354] sm:$0xf]  ;;  %v4674_v43 = vld [vmem:[%s19878_s12 + $0x370] sm:$0xf] }
 0x1bb   :  { %4671 = vst [vmem:[#allocation3 + $0x35c] sm:$0xf] %v4670_v41  ;;  %4673 = vst [vmem:[#allocation3 + $0x360] sm:$0xf] %v4672_v42  ;;  %v4676_v44 = vld [vmem:[%s19878_s12 + $0x358] sm:$0xf] }
 0x1bc   :  { %4675 = vst [vmem:[#allocation3 + $0x364] sm:$0xf] %v4674_v43  ;;  %v4678_v45 = vld [vmem:[%s19878_s12 + $0x374] sm:$0xf]  ;;  %v4680_v46 = vld [vmem:[%s19878_s12 + $0x35c] sm:$0xf] }
 0x1bd   :  { %4677 = vst [vmem:[#allocation3 + $0x368] sm:$0xf] %v4676_v44  ;;  %4679 = vst [vmem:[#allocation3 + $0x36c] sm:$0xf] %v4678_v45  ;;  %v4682_v47 = vld [vmem:[%s19878_s12 + $0x378] sm:$0xf] }
 0x1be   :  { %4681 = vst [vmem:[#allocation3 + $0x370] sm:$0xf] %v4680_v46  ;;  %v4684_v48 = vld [vmem:[%s19878_s12 + $0x360] sm:$0xf]  ;;  %4683 = vst [vmem:[#allocation3 + $0x374] sm:$0xf] %v4682_v47 }
 0x1bf   :  { %4685 = vst [vmem:[#allocation3 + $0x378] sm:$0xf] %v4684_v48  ;;  %4687 = vst [vmem:[#allocation3 + $0x37c] sm:$0xff] %v4686_v49   ;;  %v4690_v50 = vld [vmem:[%s19878_s12 + $0x39c] sm:$0xf]  ;;  %v4742_v11 = vld [vmem:[%s19878_s12 + $0x3ec] sm:$0xff]  }
 0x1c0   :  { %v4692_v51 = vld [vmem:[%s19878_s12 + $0x384] sm:$0xf]  ;;  %v4694_v52 = vld [vmem:[%s19878_s12 + $0x3a0] sm:$0xf]  ;;  %4691 = vst [vmem:[#allocation3 + $0x384] sm:$0xf] %v4690_v50 }
 0x1c1   :  { %4693 = vst [vmem:[#allocation3 + $0x388] sm:$0xf] %v4692_v51  ;;  %4695 = vst [vmem:[#allocation3 + $0x38c] sm:$0xf] %v4694_v52  ;;  %v4696_v53 = vld [vmem:[%s19878_s12 + $0x388] sm:$0xf] }
 0x1c2   :  { %v4698_v54 = vld [vmem:[%s19878_s12 + $0x3a4] sm:$0xf]  ;;  %v4700_v55 = vld [vmem:[%s19878_s12 + $0x38c] sm:$0xf]  ;;  %4697 = vst [vmem:[#allocation3 + $0x390] sm:$0xf] %v4696_v53 }
 0x1c3   :  { %4699 = vst [vmem:[#allocation3 + $0x394] sm:$0xf] %v4698_v54  ;;  %4701 = vst [vmem:[#allocation3 + $0x398] sm:$0xf] %v4700_v55  ;;  %v4702_v56 = vld [vmem:[%s19878_s12 + $0x3a8] sm:$0xf] }
 0x1c4   :  { %v4704_v57 = vld [vmem:[%s19878_s12 + $0x390] sm:$0xf]  ;;  %v4706_v58 = vld [vmem:[%s19878_s12 + $0x3ac] sm:$0xf]  ;;  %4703 = vst [vmem:[#allocation3 + $0x39c] sm:$0xf] %v4702_v56 }
 0x1c5   :  { %4705 = vst [vmem:[#allocation3 + $0x3a0] sm:$0xf] %v4704_v57  ;;  %4707 = vst [vmem:[#allocation3 + $0x3a4] sm:$0xf] %v4706_v58  ;;  %v4708_v59 = vld [vmem:[%s19878_s12 + $0x394] sm:$0xf] }
 0x1c6   :  { %v4710_v60 = vld [vmem:[%s19878_s12 + $0x3b0] sm:$0xf]  ;;  %v4712_v61 = vld [vmem:[%s19878_s12 + $0x398] sm:$0xf]  ;;  %4709 = vst [vmem:[#allocation3 + $0x3a8] sm:$0xf] %v4708_v59 }
 0x1c7   :  { %4711 = vst [vmem:[#allocation3 + $0x3ac] sm:$0xf] %v4710_v60  ;;  %4713 = vst [vmem:[#allocation3 + $0x3b0] sm:$0xf] %v4712_v61  ;;  %v4718_v63 = vld [vmem:[%s19878_s12 + $0x3d4] sm:$0xf] }
 0x1c8   :  { %v4720_v0 = vld [vmem:[%s19878_s12 + $0x3bc] sm:$0xf]  ;;  %4715 = vst [vmem:[#allocation3 + $0x3b4] sm:$0xff] %v4714_v62   ;;  %4719 = vst [vmem:[#allocation3 + $0x3bc] sm:$0xf] %v4718_v63  ;;  %v4770_v24 = vld [vmem:[%s19878_s12 + $0x424] sm:$0xff]  }
 0x1c9   :  { %4721 = vst [vmem:[#allocation3 + $0x3c0] sm:$0xf] %v4720_v0  ;;  %v4722_v1 = vld [vmem:[%s19878_s12 + $0x3d8] sm:$0xf]  ;;  %v4724_v2 = vld [vmem:[%s19878_s12 + $0x3c0] sm:$0xf] }
 0x1ca   :  { %v4726_v3 = vld [vmem:[%s19878_s12 + $0x3dc] sm:$0xf]  ;;  %4723 = vst [vmem:[#allocation3 + $0x3c4] sm:$0xf] %v4722_v1  ;;  %4725 = vst [vmem:[#allocation3 + $0x3c8] sm:$0xf] %v4724_v2 }
 0x1cb   :  { %4727 = vst [vmem:[#allocation3 + $0x3cc] sm:$0xf] %v4726_v3  ;;  %v4728_v4 = vld [vmem:[%s19878_s12 + $0x3c4] sm:$0xf]  ;;  %v4730_v5 = vld [vmem:[%s19878_s12 + $0x3e0] sm:$0xf] }
 0x1cc   :  { %v4732_v6 = vld [vmem:[%s19878_s12 + $0x3c8] sm:$0xf]  ;;  %4729 = vst [vmem:[#allocation3 + $0x3d0] sm:$0xf] %v4728_v4  ;;  %4731 = vst [vmem:[#allocation3 + $0x3d4] sm:$0xf] %v4730_v5 }
 0x1cd   :  { %4733 = vst [vmem:[#allocation3 + $0x3d8] sm:$0xf] %v4732_v6  ;;  %v4734_v7 = vld [vmem:[%s19878_s12 + $0x3e4] sm:$0xf]  ;;  %v4736_v8 = vld [vmem:[%s19878_s12 + $0x3cc] sm:$0xf] }
 0x1ce   :  { %v4738_v9 = vld [vmem:[%s19878_s12 + $0x3e8] sm:$0xf]  ;;  %4735 = vst [vmem:[#allocation3 + $0x3dc] sm:$0xf] %v4734_v7  ;;  %4737 = vst [vmem:[#allocation3 + $0x3e0] sm:$0xf] %v4736_v8 }
 0x1cf   :  { %4739 = vst [vmem:[#allocation3 + $0x3e4] sm:$0xf] %v4738_v9  ;;  %v4740_v10 = vld [vmem:[%s19878_s12 + $0x3d0] sm:$0xf]  ;;  %v4746_v12 = vld [vmem:[%s19878_s12 + $0x40c] sm:$0xf] }
 0x1d0   :  { %4741 = vst [vmem:[#allocation3 + $0x3e8] sm:$0xf] %v4740_v10  ;;  %4743 = vst [vmem:[#allocation3 + $0x3ec] sm:$0xff] %v4742_v11   ;;  %v4748_v13 = vld [vmem:[%s19878_s12 + $0x3f4] sm:$0xf]  ;;  %v4798_v37 = vld [vmem:[%s19878_s12 + $0x45c] sm:$0xff]  }
 0x1d1   :  { %4747 = vst [vmem:[#allocation3 + $0x3f4] sm:$0xf] %v4746_v12  ;;  %v4750_v14 = vld [vmem:[%s19878_s12 + $0x410] sm:$0xf]  ;;  %v4752_v15 = vld [vmem:[%s19878_s12 + $0x3f8] sm:$0xf] }
 0x1d2   :  { %4749 = vst [vmem:[#allocation3 + $0x3f8] sm:$0xf] %v4748_v13  ;;  %4751 = vst [vmem:[#allocation3 + $0x3fc] sm:$0xf] %v4750_v14  ;;  %v4754_v16 = vld [vmem:[%s19878_s12 + $0x414] sm:$0xf] }
 0x1d3   :  { %4753 = vst [vmem:[#allocation3 + $0x400] sm:$0xf] %v4752_v15  ;;  %v4756_v17 = vld [vmem:[%s19878_s12 + $0x3fc] sm:$0xf]  ;;  %v4758_v18 = vld [vmem:[%s19878_s12 + $0x418] sm:$0xf] }
 0x1d4   :  { %4755 = vst [vmem:[#allocation3 + $0x404] sm:$0xf] %v4754_v16  ;;  %4757 = vst [vmem:[#allocation3 + $0x408] sm:$0xf] %v4756_v17  ;;  %v4760_v19 = vld [vmem:[%s19878_s12 + $0x400] sm:$0xf] }
 0x1d5   :  { %4759 = vst [vmem:[#allocation3 + $0x40c] sm:$0xf] %v4758_v18  ;;  %v4762_v20 = vld [vmem:[%s19878_s12 + $0x41c] sm:$0xf]  ;;  %v4764_v21 = vld [vmem:[%s19878_s12 + $0x404] sm:$0xf] }
 0x1d6   :  { %4761 = vst [vmem:[#allocation3 + $0x410] sm:$0xf] %v4760_v19  ;;  %4763 = vst [vmem:[#allocation3 + $0x414] sm:$0xf] %v4762_v20  ;;  %v4766_v22 = vld [vmem:[%s19878_s12 + $0x420] sm:$0xf] }
 0x1d7   :  { %4765 = vst [vmem:[#allocation3 + $0x418] sm:$0xf] %v4764_v21  ;;  %v4768_v23 = vld [vmem:[%s19878_s12 + $0x408] sm:$0xf]  ;;  %4767 = vst [vmem:[#allocation3 + $0x41c] sm:$0xf] %v4766_v22 }
 0x1d8   :  { %4769 = vst [vmem:[#allocation3 + $0x420] sm:$0xf] %v4768_v23  ;;  %4771 = vst [vmem:[#allocation3 + $0x424] sm:$0xff] %v4770_v24   ;;  %v4774_v25 = vld [vmem:[%s19878_s12 + $0x444] sm:$0xf]  ;;  %v4826_v50 = vld [vmem:[%s19878_s12 + $0x494] sm:$0xff]  }
 0x1d9   :  { %v4776_v26 = vld [vmem:[%s19878_s12 + $0x42c] sm:$0xf]  ;;  %v4778_v27 = vld [vmem:[%s19878_s12 + $0x448] sm:$0xf]  ;;  %4775 = vst [vmem:[#allocation3 + $0x42c] sm:$0xf] %v4774_v25 }
 0x1da   :  { %4777 = vst [vmem:[#allocation3 + $0x430] sm:$0xf] %v4776_v26  ;;  %4779 = vst [vmem:[#allocation3 + $0x434] sm:$0xf] %v4778_v27  ;;  %v4780_v28 = vld [vmem:[%s19878_s12 + $0x430] sm:$0xf] }
 0x1db   :  { %v4782_v29 = vld [vmem:[%s19878_s12 + $0x44c] sm:$0xf]  ;;  %v4784_v30 = vld [vmem:[%s19878_s12 + $0x434] sm:$0xf]  ;;  %4781 = vst [vmem:[#allocation3 + $0x438] sm:$0xf] %v4780_v28 }
 0x1dc   :  { %4783 = vst [vmem:[#allocation3 + $0x43c] sm:$0xf] %v4782_v29  ;;  %4785 = vst [vmem:[#allocation3 + $0x440] sm:$0xf] %v4784_v30  ;;  %v4786_v31 = vld [vmem:[%s19878_s12 + $0x450] sm:$0xf] }
 0x1dd   :  { %v4788_v32 = vld [vmem:[%s19878_s12 + $0x438] sm:$0xf]  ;;  %v4790_v33 = vld [vmem:[%s19878_s12 + $0x454] sm:$0xf]  ;;  %4787 = vst [vmem:[#allocation3 + $0x444] sm:$0xf] %v4786_v31 }
 0x1de   :  { %4789 = vst [vmem:[#allocation3 + $0x448] sm:$0xf] %v4788_v32  ;;  %4791 = vst [vmem:[#allocation3 + $0x44c] sm:$0xf] %v4790_v33  ;;  %v4792_v34 = vld [vmem:[%s19878_s12 + $0x43c] sm:$0xf] }
 0x1df   :  { %v4794_v35 = vld [vmem:[%s19878_s12 + $0x458] sm:$0xf]  ;;  %v4796_v36 = vld [vmem:[%s19878_s12 + $0x440] sm:$0xf]  ;;  %4793 = vst [vmem:[#allocation3 + $0x450] sm:$0xf] %v4792_v34 }
 0x1e0   :  { %4795 = vst [vmem:[#allocation3 + $0x454] sm:$0xf] %v4794_v35  ;;  %4797 = vst [vmem:[#allocation3 + $0x458] sm:$0xf] %v4796_v36  ;;  %v4802_v38 = vld [vmem:[%s19878_s12 + $0x47c] sm:$0xf] }
 0x1e1   :  { %v4804_v39 = vld [vmem:[%s19878_s12 + $0x464] sm:$0xf]  ;;  %4799 = vst [vmem:[#allocation3 + $0x45c] sm:$0xff] %v4798_v37   ;;  %4803 = vst [vmem:[#allocation3 + $0x464] sm:$0xf] %v4802_v38  ;;  %v4854_v63 = vld [vmem:[%s19878_s12 + $0x4cc] sm:$0xff]  }
 0x1e2   :  { %4805 = vst [vmem:[#allocation3 + $0x468] sm:$0xf] %v4804_v39  ;;  %v4806_v40 = vld [vmem:[%s19878_s12 + $0x480] sm:$0xf]  ;;  %v4808_v41 = vld [vmem:[%s19878_s12 + $0x468] sm:$0xf] }
 0x1e3   :  { %v4810_v42 = vld [vmem:[%s19878_s12 + $0x484] sm:$0xf]  ;;  %4807 = vst [vmem:[#allocation3 + $0x46c] sm:$0xf] %v4806_v40  ;;  %4809 = vst [vmem:[#allocation3 + $0x470] sm:$0xf] %v4808_v41 }
 0x1e4   :  { %4811 = vst [vmem:[#allocation3 + $0x474] sm:$0xf] %v4810_v42  ;;  %v4812_v43 = vld [vmem:[%s19878_s12 + $0x46c] sm:$0xf]  ;;  %v4814_v44 = vld [vmem:[%s19878_s12 + $0x488] sm:$0xf] }
 0x1e5   :  { %v4816_v45 = vld [vmem:[%s19878_s12 + $0x470] sm:$0xf]  ;;  %4813 = vst [vmem:[#allocation3 + $0x478] sm:$0xf] %v4812_v43  ;;  %4815 = vst [vmem:[#allocation3 + $0x47c] sm:$0xf] %v4814_v44 }
 0x1e6   :  { %4817 = vst [vmem:[#allocation3 + $0x480] sm:$0xf] %v4816_v45  ;;  %v4818_v46 = vld [vmem:[%s19878_s12 + $0x48c] sm:$0xf]  ;;  %v4820_v47 = vld [vmem:[%s19878_s12 + $0x474] sm:$0xf] }
 0x1e7   :  { %v4822_v48 = vld [vmem:[%s19878_s12 + $0x490] sm:$0xf]  ;;  %4819 = vst [vmem:[#allocation3 + $0x484] sm:$0xf] %v4818_v46  ;;  %4821 = vst [vmem:[#allocation3 + $0x488] sm:$0xf] %v4820_v47 }
 0x1e8   :  { %4823 = vst [vmem:[#allocation3 + $0x48c] sm:$0xf] %v4822_v48  ;;  %v4824_v49 = vld [vmem:[%s19878_s12 + $0x478] sm:$0xf]  ;;  %v4830_v51 = vld [vmem:[%s19878_s12 + $0x4b4] sm:$0xf] }
 0x1e9   :  { %4825 = vst [vmem:[#allocation3 + $0x490] sm:$0xf] %v4824_v49  ;;  %4827 = vst [vmem:[#allocation3 + $0x494] sm:$0xff] %v4826_v50   ;;  %v4832_v52 = vld [vmem:[%s19878_s12 + $0x49c] sm:$0xf]  ;;  %v4882_v12 = vld [vmem:[%s19878_s12 + $0x504] sm:$0xff]  }
 0x1ea   :  { %4831 = vst [vmem:[#allocation3 + $0x49c] sm:$0xf] %v4830_v51  ;;  %v4834_v53 = vld [vmem:[%s19878_s12 + $0x4b8] sm:$0xf]  ;;  %v4836_v54 = vld [vmem:[%s19878_s12 + $0x4a0] sm:$0xf] }
 0x1eb   :  { %4833 = vst [vmem:[#allocation3 + $0x4a0] sm:$0xf] %v4832_v52  ;;  %4835 = vst [vmem:[#allocation3 + $0x4a4] sm:$0xf] %v4834_v53  ;;  %v4838_v55 = vld [vmem:[%s19878_s12 + $0x4bc] sm:$0xf] }
 0x1ec   :  { %4837 = vst [vmem:[#allocation3 + $0x4a8] sm:$0xf] %v4836_v54  ;;  %v4840_v56 = vld [vmem:[%s19878_s12 + $0x4a4] sm:$0xf]  ;;  %v4842_v57 = vld [vmem:[%s19878_s12 + $0x4c0] sm:$0xf] }
 0x1ed   :  { %4839 = vst [vmem:[#allocation3 + $0x4ac] sm:$0xf] %v4838_v55  ;;  %4841 = vst [vmem:[#allocation3 + $0x4b0] sm:$0xf] %v4840_v56  ;;  %v4844_v58 = vld [vmem:[%s19878_s12 + $0x4a8] sm:$0xf] }
 0x1ee   :  { %4843 = vst [vmem:[#allocation3 + $0x4b4] sm:$0xf] %v4842_v57  ;;  %v4846_v59 = vld [vmem:[%s19878_s12 + $0x4c4] sm:$0xf]  ;;  %v4848_v60 = vld [vmem:[%s19878_s12 + $0x4ac] sm:$0xf] }
 0x1ef   :  { %4845 = vst [vmem:[#allocation3 + $0x4b8] sm:$0xf] %v4844_v58  ;;  %4847 = vst [vmem:[#allocation3 + $0x4bc] sm:$0xf] %v4846_v59  ;;  %v4850_v61 = vld [vmem:[%s19878_s12 + $0x4c8] sm:$0xf] }
 0x1f0   :  { %4849 = vst [vmem:[#allocation3 + $0x4c0] sm:$0xf] %v4848_v60  ;;  %v4852_v62 = vld [vmem:[%s19878_s12 + $0x4b0] sm:$0xf]  ;;  %4851 = vst [vmem:[#allocation3 + $0x4c4] sm:$0xf] %v4850_v61 }
 0x1f1   :  { %4853 = vst [vmem:[#allocation3 + $0x4c8] sm:$0xf] %v4852_v62  ;;  %4855 = vst [vmem:[#allocation3 + $0x4cc] sm:$0xff] %v4854_v63   ;;  %v4858_v0 = vld [vmem:[%s19878_s12 + $0x4ec] sm:$0xf]  ;;  %v4910_v25 = vld [vmem:[%s19878_s12 + $0x53c] sm:$0xff]  }
 0x1f2   :  { %v4860_v1 = vld [vmem:[%s19878_s12 + $0x4d4] sm:$0xf]  ;;  %v4862_v2 = vld [vmem:[%s19878_s12 + $0x4f0] sm:$0xf]  ;;  %4859 = vst [vmem:[#allocation3 + $0x4d4] sm:$0xf] %v4858_v0 }
 0x1f3   :  { %4861 = vst [vmem:[#allocation3 + $0x4d8] sm:$0xf] %v4860_v1  ;;  %4863 = vst [vmem:[#allocation3 + $0x4dc] sm:$0xf] %v4862_v2  ;;  %v4864_v3 = vld [vmem:[%s19878_s12 + $0x4d8] sm:$0xf] }
 0x1f4   :  { %v4866_v4 = vld [vmem:[%s19878_s12 + $0x4f4] sm:$0xf]  ;;  %v4868_v5 = vld [vmem:[%s19878_s12 + $0x4dc] sm:$0xf]  ;;  %4865 = vst [vmem:[#allocation3 + $0x4e0] sm:$0xf] %v4864_v3 }
 0x1f5   :  { %4867 = vst [vmem:[#allocation3 + $0x4e4] sm:$0xf] %v4866_v4  ;;  %4869 = vst [vmem:[#allocation3 + $0x4e8] sm:$0xf] %v4868_v5  ;;  %v4870_v6 = vld [vmem:[%s19878_s12 + $0x4f8] sm:$0xf] }
 0x1f6   :  { %v4872_v7 = vld [vmem:[%s19878_s12 + $0x4e0] sm:$0xf]  ;;  %v4874_v8 = vld [vmem:[%s19878_s12 + $0x4fc] sm:$0xf]  ;;  %4871 = vst [vmem:[#allocation3 + $0x4ec] sm:$0xf] %v4870_v6 }
 0x1f7   :  { %4873 = vst [vmem:[#allocation3 + $0x4f0] sm:$0xf] %v4872_v7  ;;  %4875 = vst [vmem:[#allocation3 + $0x4f4] sm:$0xf] %v4874_v8  ;;  %v4876_v9 = vld [vmem:[%s19878_s12 + $0x4e4] sm:$0xf] }
 0x1f8   :  { %v4878_v10 = vld [vmem:[%s19878_s12 + $0x500] sm:$0xf]  ;;  %v4880_v11 = vld [vmem:[%s19878_s12 + $0x4e8] sm:$0xf]  ;;  %4877 = vst [vmem:[#allocation3 + $0x4f8] sm:$0xf] %v4876_v9 }
 0x1f9   :  { %4879 = vst [vmem:[#allocation3 + $0x4fc] sm:$0xf] %v4878_v10  ;;  %4881 = vst [vmem:[#allocation3 + $0x500] sm:$0xf] %v4880_v11  ;;  %v4886_v13 = vld [vmem:[%s19878_s12 + $0x524] sm:$0xf] }
 0x1fa   :  { %v4888_v14 = vld [vmem:[%s19878_s12 + $0x50c] sm:$0xf]  ;;  %4883 = vst [vmem:[#allocation3 + $0x504] sm:$0xff] %v4882_v12   ;;  %4887 = vst [vmem:[#allocation3 + $0x50c] sm:$0xf] %v4886_v13  ;;  %v4938_v38 = vld [vmem:[%s19878_s12 + $0x574] sm:$0xff]  }
 0x1fb   :  { %4889 = vst [vmem:[#allocation3 + $0x510] sm:$0xf] %v4888_v14  ;;  %v4890_v15 = vld [vmem:[%s19878_s12 + $0x528] sm:$0xf]  ;;  %v4892_v16 = vld [vmem:[%s19878_s12 + $0x510] sm:$0xf] }
 0x1fc   :  { %v4894_v17 = vld [vmem:[%s19878_s12 + $0x52c] sm:$0xf]  ;;  %4891 = vst [vmem:[#allocation3 + $0x514] sm:$0xf] %v4890_v15  ;;  %4893 = vst [vmem:[#allocation3 + $0x518] sm:$0xf] %v4892_v16 }
 0x1fd   :  { %4895 = vst [vmem:[#allocation3 + $0x51c] sm:$0xf] %v4894_v17  ;;  %v4896_v18 = vld [vmem:[%s19878_s12 + $0x514] sm:$0xf]  ;;  %v4898_v19 = vld [vmem:[%s19878_s12 + $0x530] sm:$0xf] }
 0x1fe   :  { %v4900_v20 = vld [vmem:[%s19878_s12 + $0x518] sm:$0xf]  ;;  %4897 = vst [vmem:[#allocation3 + $0x520] sm:$0xf] %v4896_v18  ;;  %4899 = vst [vmem:[#allocation3 + $0x524] sm:$0xf] %v4898_v19 }
 0x1ff   :  { %4901 = vst [vmem:[#allocation3 + $0x528] sm:$0xf] %v4900_v20  ;;  %v4902_v21 = vld [vmem:[%s19878_s12 + $0x534] sm:$0xf]  ;;  %v4904_v22 = vld [vmem:[%s19878_s12 + $0x51c] sm:$0xf] }
 0x200   :  { %v4906_v23 = vld [vmem:[%s19878_s12 + $0x538] sm:$0xf]  ;;  %4903 = vst [vmem:[#allocation3 + $0x52c] sm:$0xf] %v4902_v21  ;;  %4905 = vst [vmem:[#allocation3 + $0x530] sm:$0xf] %v4904_v22 }
 0x201   :  { %4907 = vst [vmem:[#allocation3 + $0x534] sm:$0xf] %v4906_v23  ;;  %v4908_v24 = vld [vmem:[%s19878_s12 + $0x520] sm:$0xf]  ;;  %v4914_v26 = vld [vmem:[%s19878_s12 + $0x55c] sm:$0xf] }
 0x202   :  { %4909 = vst [vmem:[#allocation3 + $0x538] sm:$0xf] %v4908_v24  ;;  %4911 = vst [vmem:[#allocation3 + $0x53c] sm:$0xff] %v4910_v25   ;;  %v4916_v27 = vld [vmem:[%s19878_s12 + $0x544] sm:$0xf]  ;;  %v4966_v51 = vld [vmem:[%s19878_s12 + $0x5ac] sm:$0xff]  }
 0x203   :  { %4915 = vst [vmem:[#allocation3 + $0x544] sm:$0xf] %v4914_v26  ;;  %v4918_v28 = vld [vmem:[%s19878_s12 + $0x560] sm:$0xf]  ;;  %v4920_v29 = vld [vmem:[%s19878_s12 + $0x548] sm:$0xf] }
 0x204   :  { %4917 = vst [vmem:[#allocation3 + $0x548] sm:$0xf] %v4916_v27  ;;  %4919 = vst [vmem:[#allocation3 + $0x54c] sm:$0xf] %v4918_v28  ;;  %v4922_v30 = vld [vmem:[%s19878_s12 + $0x564] sm:$0xf] }
 0x205   :  { %4921 = vst [vmem:[#allocation3 + $0x550] sm:$0xf] %v4920_v29  ;;  %v4924_v31 = vld [vmem:[%s19878_s12 + $0x54c] sm:$0xf]  ;;  %v4926_v32 = vld [vmem:[%s19878_s12 + $0x568] sm:$0xf] }
 0x206   :  { %4923 = vst [vmem:[#allocation3 + $0x554] sm:$0xf] %v4922_v30  ;;  %4925 = vst [vmem:[#allocation3 + $0x558] sm:$0xf] %v4924_v31  ;;  %v4928_v33 = vld [vmem:[%s19878_s12 + $0x550] sm:$0xf] }
 0x207   :  { %4927 = vst [vmem:[#allocation3 + $0x55c] sm:$0xf] %v4926_v32  ;;  %v4930_v34 = vld [vmem:[%s19878_s12 + $0x56c] sm:$0xf]  ;;  %v4932_v35 = vld [vmem:[%s19878_s12 + $0x554] sm:$0xf] }
 0x208   :  { %4929 = vst [vmem:[#allocation3 + $0x560] sm:$0xf] %v4928_v33  ;;  %4931 = vst [vmem:[#allocation3 + $0x564] sm:$0xf] %v4930_v34  ;;  %v4934_v36 = vld [vmem:[%s19878_s12 + $0x570] sm:$0xf] }
 0x209   :  { %4933 = vst [vmem:[#allocation3 + $0x568] sm:$0xf] %v4932_v35  ;;  %v4936_v37 = vld [vmem:[%s19878_s12 + $0x558] sm:$0xf]  ;;  %4935 = vst [vmem:[#allocation3 + $0x56c] sm:$0xf] %v4934_v36 }
 0x20a   :  { %4937 = vst [vmem:[#allocation3 + $0x570] sm:$0xf] %v4936_v37  ;;  %4939 = vst [vmem:[#allocation3 + $0x574] sm:$0xff] %v4938_v38   ;;  %v4942_v39 = vld [vmem:[%s19878_s12 + $0x594] sm:$0xf]  ;;  %v4994_v0 = vld [vmem:[%s19878_s12 + $0x5e4] sm:$0xff]  }
 0x20b   :  { %v4944_v40 = vld [vmem:[%s19878_s12 + $0x57c] sm:$0xf]  ;;  %v4946_v41 = vld [vmem:[%s19878_s12 + $0x598] sm:$0xf]  ;;  %4943 = vst [vmem:[#allocation3 + $0x57c] sm:$0xf] %v4942_v39 }
 0x20c   :  { %4945 = vst [vmem:[#allocation3 + $0x580] sm:$0xf] %v4944_v40  ;;  %4947 = vst [vmem:[#allocation3 + $0x584] sm:$0xf] %v4946_v41  ;;  %v4948_v42 = vld [vmem:[%s19878_s12 + $0x580] sm:$0xf] }
 0x20d   :  { %v4950_v43 = vld [vmem:[%s19878_s12 + $0x59c] sm:$0xf]  ;;  %v4952_v44 = vld [vmem:[%s19878_s12 + $0x584] sm:$0xf]  ;;  %4949 = vst [vmem:[#allocation3 + $0x588] sm:$0xf] %v4948_v42 }
 0x20e   :  { %4951 = vst [vmem:[#allocation3 + $0x58c] sm:$0xf] %v4950_v43  ;;  %4953 = vst [vmem:[#allocation3 + $0x590] sm:$0xf] %v4952_v44  ;;  %v4954_v45 = vld [vmem:[%s19878_s12 + $0x5a0] sm:$0xf] }
 0x20f   :  { %v4956_v46 = vld [vmem:[%s19878_s12 + $0x588] sm:$0xf]  ;;  %v4958_v47 = vld [vmem:[%s19878_s12 + $0x5a4] sm:$0xf]  ;;  %4955 = vst [vmem:[#allocation3 + $0x594] sm:$0xf] %v4954_v45 }
 0x210   :  { %4957 = vst [vmem:[#allocation3 + $0x598] sm:$0xf] %v4956_v46  ;;  %4959 = vst [vmem:[#allocation3 + $0x59c] sm:$0xf] %v4958_v47  ;;  %v4960_v48 = vld [vmem:[%s19878_s12 + $0x58c] sm:$0xf] }
 0x211   :  { %v4962_v49 = vld [vmem:[%s19878_s12 + $0x5a8] sm:$0xf]  ;;  %v4964_v50 = vld [vmem:[%s19878_s12 + $0x590] sm:$0xf]  ;;  %4961 = vst [vmem:[#allocation3 + $0x5a0] sm:$0xf] %v4960_v48 }
 0x212   :  { %4963 = vst [vmem:[#allocation3 + $0x5a4] sm:$0xf] %v4962_v49  ;;  %4965 = vst [vmem:[#allocation3 + $0x5a8] sm:$0xf] %v4964_v50  ;;  %v4970_v52 = vld [vmem:[%s19878_s12 + $0x5cc] sm:$0xf] }
 0x213   :  { %v4972_v53 = vld [vmem:[%s19878_s12 + $0x5b4] sm:$0xf]  ;;  %4967 = vst [vmem:[#allocation3 + $0x5ac] sm:$0xff] %v4966_v51   ;;  %4971 = vst [vmem:[#allocation3 + $0x5b4] sm:$0xf] %v4970_v52  ;;  %v5022_v13 = vld [vmem:[%s19878_s12 + $0x61c] sm:$0xff]  }
 0x214   :  { %4973 = vst [vmem:[#allocation3 + $0x5b8] sm:$0xf] %v4972_v53  ;;  %v4974_v54 = vld [vmem:[%s19878_s12 + $0x5d0] sm:$0xf]  ;;  %v4976_v55 = vld [vmem:[%s19878_s12 + $0x5b8] sm:$0xf] }
 0x215   :  { %v4978_v56 = vld [vmem:[%s19878_s12 + $0x5d4] sm:$0xf]  ;;  %4975 = vst [vmem:[#allocation3 + $0x5bc] sm:$0xf] %v4974_v54  ;;  %4977 = vst [vmem:[#allocation3 + $0x5c0] sm:$0xf] %v4976_v55 }
 0x216   :  { %4979 = vst [vmem:[#allocation3 + $0x5c4] sm:$0xf] %v4978_v56  ;;  %v4980_v57 = vld [vmem:[%s19878_s12 + $0x5bc] sm:$0xf]  ;;  %v4982_v58 = vld [vmem:[%s19878_s12 + $0x5d8] sm:$0xf] }
 0x217   :  { %v4984_v59 = vld [vmem:[%s19878_s12 + $0x5c0] sm:$0xf]  ;;  %4981 = vst [vmem:[#allocation3 + $0x5c8] sm:$0xf] %v4980_v57  ;;  %4983 = vst [vmem:[#allocation3 + $0x5cc] sm:$0xf] %v4982_v58 }
 0x218   :  { %4985 = vst [vmem:[#allocation3 + $0x5d0] sm:$0xf] %v4984_v59  ;;  %v4986_v60 = vld [vmem:[%s19878_s12 + $0x5dc] sm:$0xf]  ;;  %v4988_v61 = vld [vmem:[%s19878_s12 + $0x5c4] sm:$0xf] }
 0x219   :  { %v4990_v62 = vld [vmem:[%s19878_s12 + $0x5e0] sm:$0xf]  ;;  %4987 = vst [vmem:[#allocation3 + $0x5d4] sm:$0xf] %v4986_v60  ;;  %4989 = vst [vmem:[#allocation3 + $0x5d8] sm:$0xf] %v4988_v61 }
 0x21a   :  { %4991 = vst [vmem:[#allocation3 + $0x5dc] sm:$0xf] %v4990_v62  ;;  %v4992_v63 = vld [vmem:[%s19878_s12 + $0x5c8] sm:$0xf]  ;;  %v4998_v1 = vld [vmem:[%s19878_s12 + $0x604] sm:$0xf] }
 0x21b   :  { %4993 = vst [vmem:[#allocation3 + $0x5e0] sm:$0xf] %v4992_v63  ;;  %4995 = vst [vmem:[#allocation3 + $0x5e4] sm:$0xff] %v4994_v0   ;;  %v5000_v2 = vld [vmem:[%s19878_s12 + $0x5ec] sm:$0xf]  ;;  %v5050_v26 = vld [vmem:[%s19878_s12 + $0x654] sm:$0xff]  }
 0x21c   :  { %4999 = vst [vmem:[#allocation3 + $0x5ec] sm:$0xf] %v4998_v1  ;;  %v5002_v3 = vld [vmem:[%s19878_s12 + $0x608] sm:$0xf]  ;;  %v5004_v4 = vld [vmem:[%s19878_s12 + $0x5f0] sm:$0xf] }
 0x21d   :  { %5001 = vst [vmem:[#allocation3 + $0x5f0] sm:$0xf] %v5000_v2  ;;  %5003 = vst [vmem:[#allocation3 + $0x5f4] sm:$0xf] %v5002_v3  ;;  %v5006_v5 = vld [vmem:[%s19878_s12 + $0x60c] sm:$0xf] }
 0x21e   :  { %5005 = vst [vmem:[#allocation3 + $0x5f8] sm:$0xf] %v5004_v4  ;;  %v5008_v6 = vld [vmem:[%s19878_s12 + $0x5f4] sm:$0xf]  ;;  %v5010_v7 = vld [vmem:[%s19878_s12 + $0x610] sm:$0xf] }
 0x21f   :  { %5007 = vst [vmem:[#allocation3 + $0x5fc] sm:$0xf] %v5006_v5  ;;  %5009 = vst [vmem:[#allocation3 + $0x600] sm:$0xf] %v5008_v6  ;;  %v5012_v8 = vld [vmem:[%s19878_s12 + $0x5f8] sm:$0xf] }
 0x220   :  { %5011 = vst [vmem:[#allocation3 + $0x604] sm:$0xf] %v5010_v7  ;;  %v5014_v9 = vld [vmem:[%s19878_s12 + $0x614] sm:$0xf]  ;;  %v5016_v10 = vld [vmem:[%s19878_s12 + $0x5fc] sm:$0xf] }
 0x221   :  { %5013 = vst [vmem:[#allocation3 + $0x608] sm:$0xf] %v5012_v8  ;;  %5015 = vst [vmem:[#allocation3 + $0x60c] sm:$0xf] %v5014_v9  ;;  %v5018_v11 = vld [vmem:[%s19878_s12 + $0x618] sm:$0xf] }
 0x222   :  { %5017 = vst [vmem:[#allocation3 + $0x610] sm:$0xf] %v5016_v10  ;;  %v5020_v12 = vld [vmem:[%s19878_s12 + $0x600] sm:$0xf]  ;;  %5019 = vst [vmem:[#allocation3 + $0x614] sm:$0xf] %v5018_v11 }
 0x223   :  { %5021 = vst [vmem:[#allocation3 + $0x618] sm:$0xf] %v5020_v12  ;;  %5023 = vst [vmem:[#allocation3 + $0x61c] sm:$0xff] %v5022_v13   ;;  %v5026_v14 = vld [vmem:[%s19878_s12 + $0x63c] sm:$0xf]  ;;  %v5078_v39 = vld [vmem:[%s19878_s12 + $0x68c] sm:$0xff]  }
 0x224   :  { %v5028_v15 = vld [vmem:[%s19878_s12 + $0x624] sm:$0xf]  ;;  %v5030_v16 = vld [vmem:[%s19878_s12 + $0x640] sm:$0xf]  ;;  %5027 = vst [vmem:[#allocation3 + $0x624] sm:$0xf] %v5026_v14 }
 0x225   :  { %5029 = vst [vmem:[#allocation3 + $0x628] sm:$0xf] %v5028_v15  ;;  %5031 = vst [vmem:[#allocation3 + $0x62c] sm:$0xf] %v5030_v16  ;;  %v5032_v17 = vld [vmem:[%s19878_s12 + $0x628] sm:$0xf] }
 0x226   :  { %v5034_v18 = vld [vmem:[%s19878_s12 + $0x644] sm:$0xf]  ;;  %v5036_v19 = vld [vmem:[%s19878_s12 + $0x62c] sm:$0xf]  ;;  %5033 = vst [vmem:[#allocation3 + $0x630] sm:$0xf] %v5032_v17 }
 0x227   :  { %5035 = vst [vmem:[#allocation3 + $0x634] sm:$0xf] %v5034_v18  ;;  %5037 = vst [vmem:[#allocation3 + $0x638] sm:$0xf] %v5036_v19  ;;  %v5038_v20 = vld [vmem:[%s19878_s12 + $0x648] sm:$0xf] }
 0x228   :  { %v5040_v21 = vld [vmem:[%s19878_s12 + $0x630] sm:$0xf]  ;;  %v5042_v22 = vld [vmem:[%s19878_s12 + $0x64c] sm:$0xf]  ;;  %5039 = vst [vmem:[#allocation3 + $0x63c] sm:$0xf] %v5038_v20 }
 0x229   :  { %5041 = vst [vmem:[#allocation3 + $0x640] sm:$0xf] %v5040_v21  ;;  %5043 = vst [vmem:[#allocation3 + $0x644] sm:$0xf] %v5042_v22  ;;  %v5044_v23 = vld [vmem:[%s19878_s12 + $0x634] sm:$0xf] }
 0x22a   :  { %v5046_v24 = vld [vmem:[%s19878_s12 + $0x650] sm:$0xf]  ;;  %v5048_v25 = vld [vmem:[%s19878_s12 + $0x638] sm:$0xf]  ;;  %5045 = vst [vmem:[#allocation3 + $0x648] sm:$0xf] %v5044_v23 }
 0x22b   :  { %5047 = vst [vmem:[#allocation3 + $0x64c] sm:$0xf] %v5046_v24  ;;  %5049 = vst [vmem:[#allocation3 + $0x650] sm:$0xf] %v5048_v25  ;;  %v5054_v27 = vld [vmem:[%s19878_s12 + $0x674] sm:$0xf] }
 0x22c   :  { %v5056_v28 = vld [vmem:[%s19878_s12 + $0x65c] sm:$0xf]  ;;  %5051 = vst [vmem:[#allocation3 + $0x654] sm:$0xff] %v5050_v26   ;;  %5055 = vst [vmem:[#allocation3 + $0x65c] sm:$0xf] %v5054_v27  ;;  %v5106_v52 = vld [vmem:[%s19878_s12 + $0x6c4] sm:$0xff]  }
 0x22d   :  { %5057 = vst [vmem:[#allocation3 + $0x660] sm:$0xf] %v5056_v28  ;;  %v5058_v29 = vld [vmem:[%s19878_s12 + $0x678] sm:$0xf]  ;;  %v5060_v30 = vld [vmem:[%s19878_s12 + $0x660] sm:$0xf] }
 0x22e   :  { %v5062_v31 = vld [vmem:[%s19878_s12 + $0x67c] sm:$0xf]  ;;  %5059 = vst [vmem:[#allocation3 + $0x664] sm:$0xf] %v5058_v29  ;;  %5061 = vst [vmem:[#allocation3 + $0x668] sm:$0xf] %v5060_v30 }
 0x22f   :  { %5063 = vst [vmem:[#allocation3 + $0x66c] sm:$0xf] %v5062_v31  ;;  %v5064_v32 = vld [vmem:[%s19878_s12 + $0x664] sm:$0xf]  ;;  %v5066_v33 = vld [vmem:[%s19878_s12 + $0x680] sm:$0xf] }
 0x230   :  { %v5068_v34 = vld [vmem:[%s19878_s12 + $0x668] sm:$0xf]  ;;  %5065 = vst [vmem:[#allocation3 + $0x670] sm:$0xf] %v5064_v32  ;;  %5067 = vst [vmem:[#allocation3 + $0x674] sm:$0xf] %v5066_v33 }
 0x231   :  { %5069 = vst [vmem:[#allocation3 + $0x678] sm:$0xf] %v5068_v34  ;;  %v5070_v35 = vld [vmem:[%s19878_s12 + $0x684] sm:$0xf]  ;;  %v5072_v36 = vld [vmem:[%s19878_s12 + $0x66c] sm:$0xf] }
 0x232   :  { %v5074_v37 = vld [vmem:[%s19878_s12 + $0x688] sm:$0xf]  ;;  %5071 = vst [vmem:[#allocation3 + $0x67c] sm:$0xf] %v5070_v35  ;;  %5073 = vst [vmem:[#allocation3 + $0x680] sm:$0xf] %v5072_v36 }
 0x233   :  { %5075 = vst [vmem:[#allocation3 + $0x684] sm:$0xf] %v5074_v37  ;;  %v5076_v38 = vld [vmem:[%s19878_s12 + $0x670] sm:$0xf]  ;;  %v5082_v40 = vld [vmem:[%s19878_s12 + $0x6ac] sm:$0xf] }
 0x234   :  { %5077 = vst [vmem:[#allocation3 + $0x688] sm:$0xf] %v5076_v38  ;;  %5079 = vst [vmem:[#allocation3 + $0x68c] sm:$0xff] %v5078_v39   ;;  %v5084_v41 = vld [vmem:[%s19878_s12 + $0x694] sm:$0xf]  ;;  %v5134_v1 = vld [vmem:[%s19878_s12 + $0x6fc] sm:$0xff]  }
 0x235   :  { %5083 = vst [vmem:[#allocation3 + $0x694] sm:$0xf] %v5082_v40  ;;  %v5086_v42 = vld [vmem:[%s19878_s12 + $0x6b0] sm:$0xf]  ;;  %v5088_v43 = vld [vmem:[%s19878_s12 + $0x698] sm:$0xf] }
 0x236   :  { %5085 = vst [vmem:[#allocation3 + $0x698] sm:$0xf] %v5084_v41  ;;  %5087 = vst [vmem:[#allocation3 + $0x69c] sm:$0xf] %v5086_v42  ;;  %v5090_v44 = vld [vmem:[%s19878_s12 + $0x6b4] sm:$0xf] }
 0x237   :  { %5089 = vst [vmem:[#allocation3 + $0x6a0] sm:$0xf] %v5088_v43  ;;  %v5092_v45 = vld [vmem:[%s19878_s12 + $0x69c] sm:$0xf]  ;;  %v5094_v46 = vld [vmem:[%s19878_s12 + $0x6b8] sm:$0xf] }
 0x238   :  { %5091 = vst [vmem:[#allocation3 + $0x6a4] sm:$0xf] %v5090_v44  ;;  %5093 = vst [vmem:[#allocation3 + $0x6a8] sm:$0xf] %v5092_v45  ;;  %v5096_v47 = vld [vmem:[%s19878_s12 + $0x6a0] sm:$0xf] }
 0x239   :  { %5095 = vst [vmem:[#allocation3 + $0x6ac] sm:$0xf] %v5094_v46  ;;  %v5098_v48 = vld [vmem:[%s19878_s12 + $0x6bc] sm:$0xf]  ;;  %v5100_v49 = vld [vmem:[%s19878_s12 + $0x6a4] sm:$0xf] }
 0x23a   :  { %5097 = vst [vmem:[#allocation3 + $0x6b0] sm:$0xf] %v5096_v47  ;;  %5099 = vst [vmem:[#allocation3 + $0x6b4] sm:$0xf] %v5098_v48  ;;  %v5102_v50 = vld [vmem:[%s19878_s12 + $0x6c0] sm:$0xf] }
 0x23b   :  { %5101 = vst [vmem:[#allocation3 + $0x6b8] sm:$0xf] %v5100_v49  ;;  %v5104_v51 = vld [vmem:[%s19878_s12 + $0x6a8] sm:$0xf]  ;;  %5103 = vst [vmem:[#allocation3 + $0x6bc] sm:$0xf] %v5102_v50 }
 0x23c   :  { %5105 = vst [vmem:[#allocation3 + $0x6c0] sm:$0xf] %v5104_v51  ;;  %5107 = vst [vmem:[#allocation3 + $0x6c4] sm:$0xff] %v5106_v52   ;;  %v5110_v53 = vld [vmem:[%s19878_s12 + $0x6e4] sm:$0xf]  ;;  %v5162_v14 = vld [vmem:[%s19878_s12 + $0x734] sm:$0xff]  }
 0x23d   :  { %v5112_v54 = vld [vmem:[%s19878_s12 + $0x6cc] sm:$0xf]  ;;  %v5114_v55 = vld [vmem:[%s19878_s12 + $0x6e8] sm:$0xf]  ;;  %5111 = vst [vmem:[#allocation3 + $0x6cc] sm:$0xf] %v5110_v53 }
 0x23e   :  { %5113 = vst [vmem:[#allocation3 + $0x6d0] sm:$0xf] %v5112_v54  ;;  %5115 = vst [vmem:[#allocation3 + $0x6d4] sm:$0xf] %v5114_v55  ;;  %v5116_v56 = vld [vmem:[%s19878_s12 + $0x6d0] sm:$0xf] }
 0x23f   :  { %v5118_v57 = vld [vmem:[%s19878_s12 + $0x6ec] sm:$0xf]  ;;  %v5120_v58 = vld [vmem:[%s19878_s12 + $0x6d4] sm:$0xf]  ;;  %5117 = vst [vmem:[#allocation3 + $0x6d8] sm:$0xf] %v5116_v56 }
 0x240   :  { %5119 = vst [vmem:[#allocation3 + $0x6dc] sm:$0xf] %v5118_v57  ;;  %5121 = vst [vmem:[#allocation3 + $0x6e0] sm:$0xf] %v5120_v58  ;;  %v5122_v59 = vld [vmem:[%s19878_s12 + $0x6f0] sm:$0xf] }
 0x241   :  { %v5124_v60 = vld [vmem:[%s19878_s12 + $0x6d8] sm:$0xf]  ;;  %v5126_v61 = vld [vmem:[%s19878_s12 + $0x6f4] sm:$0xf]  ;;  %5123 = vst [vmem:[#allocation3 + $0x6e4] sm:$0xf] %v5122_v59 }
 0x242   :  { %5125 = vst [vmem:[#allocation3 + $0x6e8] sm:$0xf] %v5124_v60  ;;  %5127 = vst [vmem:[#allocation3 + $0x6ec] sm:$0xf] %v5126_v61  ;;  %v5128_v62 = vld [vmem:[%s19878_s12 + $0x6dc] sm:$0xf] }
 0x243   :  { %v5130_v63 = vld [vmem:[%s19878_s12 + $0x6f8] sm:$0xf]  ;;  %v5132_v0 = vld [vmem:[%s19878_s12 + $0x6e0] sm:$0xf]  ;;  %5129 = vst [vmem:[#allocation3 + $0x6f0] sm:$0xf] %v5128_v62 }
 0x244   :  { %5131 = vst [vmem:[#allocation3 + $0x6f4] sm:$0xf] %v5130_v63  ;;  %5133 = vst [vmem:[#allocation3 + $0x6f8] sm:$0xf] %v5132_v0  ;;  %v5138_v2 = vld [vmem:[%s19878_s12 + $0x71c] sm:$0xf] }
 0x245   :  { %v5140_v3 = vld [vmem:[%s19878_s12 + $0x704] sm:$0xf]  ;;  %5135 = vst [vmem:[#allocation3 + $0x6fc] sm:$0xff] %v5134_v1   ;;  %5139 = vst [vmem:[#allocation3 + $0x704] sm:$0xf] %v5138_v2  ;;  %v5190_v27 = vld [vmem:[%s19878_s12 + $0x76c] sm:$0xff]  }
 0x246   :  { %5141 = vst [vmem:[#allocation3 + $0x708] sm:$0xf] %v5140_v3  ;;  %v5142_v4 = vld [vmem:[%s19878_s12 + $0x720] sm:$0xf]  ;;  %v5144_v5 = vld [vmem:[%s19878_s12 + $0x708] sm:$0xf] }
 0x247   :  { %v5146_v6 = vld [vmem:[%s19878_s12 + $0x724] sm:$0xf]  ;;  %5143 = vst [vmem:[#allocation3 + $0x70c] sm:$0xf] %v5142_v4  ;;  %5145 = vst [vmem:[#allocation3 + $0x710] sm:$0xf] %v5144_v5 }
 0x248   :  { %5147 = vst [vmem:[#allocation3 + $0x714] sm:$0xf] %v5146_v6  ;;  %v5148_v7 = vld [vmem:[%s19878_s12 + $0x70c] sm:$0xf]  ;;  %v5150_v8 = vld [vmem:[%s19878_s12 + $0x728] sm:$0xf] }
 0x249   :  { %v5152_v9 = vld [vmem:[%s19878_s12 + $0x710] sm:$0xf]  ;;  %5149 = vst [vmem:[#allocation3 + $0x718] sm:$0xf] %v5148_v7  ;;  %5151 = vst [vmem:[#allocation3 + $0x71c] sm:$0xf] %v5150_v8 }
 0x24a   :  { %5153 = vst [vmem:[#allocation3 + $0x720] sm:$0xf] %v5152_v9  ;;  %v5154_v10 = vld [vmem:[%s19878_s12 + $0x72c] sm:$0xf]  ;;  %v5156_v11 = vld [vmem:[%s19878_s12 + $0x714] sm:$0xf] }
 0x24b   :  { %v5158_v12 = vld [vmem:[%s19878_s12 + $0x730] sm:$0xf]  ;;  %5155 = vst [vmem:[#allocation3 + $0x724] sm:$0xf] %v5154_v10  ;;  %5157 = vst [vmem:[#allocation3 + $0x728] sm:$0xf] %v5156_v11 }
 0x24c   :  { %5159 = vst [vmem:[#allocation3 + $0x72c] sm:$0xf] %v5158_v12  ;;  %v5160_v13 = vld [vmem:[%s19878_s12 + $0x718] sm:$0xf]  ;;  %v5166_v15 = vld [vmem:[%s19878_s12 + $0x754] sm:$0xf] }
 0x24d   :  { %5161 = vst [vmem:[#allocation3 + $0x730] sm:$0xf] %v5160_v13  ;;  %5163 = vst [vmem:[#allocation3 + $0x734] sm:$0xff] %v5162_v14   ;;  %v5168_v16 = vld [vmem:[%s19878_s12 + $0x73c] sm:$0xf]  ;;  %v5218_v40 = vld [vmem:[%s19878_s12 + $0x7a4] sm:$0xff]  }
 0x24e   :  { %5167 = vst [vmem:[#allocation3 + $0x73c] sm:$0xf] %v5166_v15  ;;  %v5170_v17 = vld [vmem:[%s19878_s12 + $0x758] sm:$0xf]  ;;  %v5172_v18 = vld [vmem:[%s19878_s12 + $0x740] sm:$0xf] }
 0x24f   :  { %5169 = vst [vmem:[#allocation3 + $0x740] sm:$0xf] %v5168_v16  ;;  %5171 = vst [vmem:[#allocation3 + $0x744] sm:$0xf] %v5170_v17  ;;  %v5174_v19 = vld [vmem:[%s19878_s12 + $0x75c] sm:$0xf] }
 0x250   :  { %5173 = vst [vmem:[#allocation3 + $0x748] sm:$0xf] %v5172_v18  ;;  %v5176_v20 = vld [vmem:[%s19878_s12 + $0x744] sm:$0xf]  ;;  %v5178_v21 = vld [vmem:[%s19878_s12 + $0x760] sm:$0xf] }
 0x251   :  { %5175 = vst [vmem:[#allocation3 + $0x74c] sm:$0xf] %v5174_v19  ;;  %5177 = vst [vmem:[#allocation3 + $0x750] sm:$0xf] %v5176_v20  ;;  %v5180_v22 = vld [vmem:[%s19878_s12 + $0x748] sm:$0xf] }
 0x252   :  { %5179 = vst [vmem:[#allocation3 + $0x754] sm:$0xf] %v5178_v21  ;;  %v5182_v23 = vld [vmem:[%s19878_s12 + $0x764] sm:$0xf]  ;;  %v5184_v24 = vld [vmem:[%s19878_s12 + $0x74c] sm:$0xf] }
 0x253   :  { %5181 = vst [vmem:[#allocation3 + $0x758] sm:$0xf] %v5180_v22  ;;  %5183 = vst [vmem:[#allocation3 + $0x75c] sm:$0xf] %v5182_v23  ;;  %v5186_v25 = vld [vmem:[%s19878_s12 + $0x768] sm:$0xf] }
 0x254   :  { %5185 = vst [vmem:[#allocation3 + $0x760] sm:$0xf] %v5184_v24  ;;  %v5188_v26 = vld [vmem:[%s19878_s12 + $0x750] sm:$0xf]  ;;  %5187 = vst [vmem:[#allocation3 + $0x764] sm:$0xf] %v5186_v25 }
 0x255   :  { %5189 = vst [vmem:[#allocation3 + $0x768] sm:$0xf] %v5188_v26  ;;  %5191 = vst [vmem:[#allocation3 + $0x76c] sm:$0xff] %v5190_v27   ;;  %v5194_v28 = vld [vmem:[%s19878_s12 + $0x78c] sm:$0xf]  ;;  %v5246_v53 = vld [vmem:[%s19878_s12 + $0x7dc] sm:$0xff]  }
 0x256   :  { %v5196_v29 = vld [vmem:[%s19878_s12 + $0x774] sm:$0xf]  ;;  %v5198_v30 = vld [vmem:[%s19878_s12 + $0x790] sm:$0xf]  ;;  %5195 = vst [vmem:[#allocation3 + $0x774] sm:$0xf] %v5194_v28 }
 0x257   :  { %5197 = vst [vmem:[#allocation3 + $0x778] sm:$0xf] %v5196_v29  ;;  %5199 = vst [vmem:[#allocation3 + $0x77c] sm:$0xf] %v5198_v30  ;;  %v5200_v31 = vld [vmem:[%s19878_s12 + $0x778] sm:$0xf] }
 0x258   :  { %v5202_v32 = vld [vmem:[%s19878_s12 + $0x794] sm:$0xf]  ;;  %v5204_v33 = vld [vmem:[%s19878_s12 + $0x77c] sm:$0xf]  ;;  %5201 = vst [vmem:[#allocation3 + $0x780] sm:$0xf] %v5200_v31 }
 0x259   :  { %5203 = vst [vmem:[#allocation3 + $0x784] sm:$0xf] %v5202_v32  ;;  %5205 = vst [vmem:[#allocation3 + $0x788] sm:$0xf] %v5204_v33  ;;  %v5206_v34 = vld [vmem:[%s19878_s12 + $0x798] sm:$0xf] }
 0x25a   :  { %v5208_v35 = vld [vmem:[%s19878_s12 + $0x780] sm:$0xf]  ;;  %v5210_v36 = vld [vmem:[%s19878_s12 + $0x79c] sm:$0xf]  ;;  %5207 = vst [vmem:[#allocation3 + $0x78c] sm:$0xf] %v5206_v34 }
 0x25b   :  { %5209 = vst [vmem:[#allocation3 + $0x790] sm:$0xf] %v5208_v35  ;;  %5211 = vst [vmem:[#allocation3 + $0x794] sm:$0xf] %v5210_v36  ;;  %v5212_v37 = vld [vmem:[%s19878_s12 + $0x784] sm:$0xf] }
 0x25c   :  { %v5214_v38 = vld [vmem:[%s19878_s12 + $0x7a0] sm:$0xf]  ;;  %v5216_v39 = vld [vmem:[%s19878_s12 + $0x788] sm:$0xf]  ;;  %5213 = vst [vmem:[#allocation3 + $0x798] sm:$0xf] %v5212_v37 }
 0x25d   :  { %5215 = vst [vmem:[#allocation3 + $0x79c] sm:$0xf] %v5214_v38  ;;  %5217 = vst [vmem:[#allocation3 + $0x7a0] sm:$0xf] %v5216_v39  ;;  %v5222_v41 = vld [vmem:[%s19878_s12 + $0x7c4] sm:$0xf] }
 0x25e   :  { %v5224_v42 = vld [vmem:[%s19878_s12 + $0x7ac] sm:$0xf]  ;;  %5219 = vst [vmem:[#allocation3 + $0x7a4] sm:$0xff] %v5218_v40   ;;  %5223 = vst [vmem:[#allocation3 + $0x7ac] sm:$0xf] %v5222_v41  ;;  %v5274_v2 = vld [vmem:[%s19878_s12 + $0x814] sm:$0xff]  }
 0x25f   :  { %5225 = vst [vmem:[#allocation3 + $0x7b0] sm:$0xf] %v5224_v42  ;;  %v5226_v43 = vld [vmem:[%s19878_s12 + $0x7c8] sm:$0xf]  ;;  %v5228_v44 = vld [vmem:[%s19878_s12 + $0x7b0] sm:$0xf] }
 0x260   :  { %v5230_v45 = vld [vmem:[%s19878_s12 + $0x7cc] sm:$0xf]  ;;  %5227 = vst [vmem:[#allocation3 + $0x7b4] sm:$0xf] %v5226_v43  ;;  %5229 = vst [vmem:[#allocation3 + $0x7b8] sm:$0xf] %v5228_v44 }
 0x261   :  { %5231 = vst [vmem:[#allocation3 + $0x7bc] sm:$0xf] %v5230_v45  ;;  %v5232_v46 = vld [vmem:[%s19878_s12 + $0x7b4] sm:$0xf]  ;;  %v5234_v47 = vld [vmem:[%s19878_s12 + $0x7d0] sm:$0xf] }
 0x262   :  { %v5236_v48 = vld [vmem:[%s19878_s12 + $0x7b8] sm:$0xf]  ;;  %5233 = vst [vmem:[#allocation3 + $0x7c0] sm:$0xf] %v5232_v46  ;;  %5235 = vst [vmem:[#allocation3 + $0x7c4] sm:$0xf] %v5234_v47 }
 0x263   :  { %5237 = vst [vmem:[#allocation3 + $0x7c8] sm:$0xf] %v5236_v48  ;;  %v5238_v49 = vld [vmem:[%s19878_s12 + $0x7d4] sm:$0xf]  ;;  %v5240_v50 = vld [vmem:[%s19878_s12 + $0x7bc] sm:$0xf] }
 0x264   :  { %v5242_v51 = vld [vmem:[%s19878_s12 + $0x7d8] sm:$0xf]  ;;  %5239 = vst [vmem:[#allocation3 + $0x7cc] sm:$0xf] %v5238_v49  ;;  %5241 = vst [vmem:[#allocation3 + $0x7d0] sm:$0xf] %v5240_v50 }
 0x265   :  { %5243 = vst [vmem:[#allocation3 + $0x7d4] sm:$0xf] %v5242_v51  ;;  %v5244_v52 = vld [vmem:[%s19878_s12 + $0x7c0] sm:$0xf]  ;;  %v5250_v54 = vld [vmem:[%s19878_s12 + $0x7fc] sm:$0xf] }
 0x266   :  { %5245 = vst [vmem:[#allocation3 + $0x7d8] sm:$0xf] %v5244_v52  ;;  %5247 = vst [vmem:[#allocation3 + $0x7dc] sm:$0xff] %v5246_v53   ;;  %v5252_v55 = vld [vmem:[%s19878_s12 + $0x7e4] sm:$0xf]  ;;  %v5302_v15 = vld [vmem:[%s19878_s12 + $0x84c] sm:$0xff]  }
 0x267   :  { %5251 = vst [vmem:[#allocation3 + $0x7e4] sm:$0xf] %v5250_v54  ;;  %v5254_v56 = vld [vmem:[%s19878_s12 + $0x800] sm:$0xf]  ;;  %v5256_v57 = vld [vmem:[%s19878_s12 + $0x7e8] sm:$0xf] }
 0x268   :  { %5253 = vst [vmem:[#allocation3 + $0x7e8] sm:$0xf] %v5252_v55  ;;  %5255 = vst [vmem:[#allocation3 + $0x7ec] sm:$0xf] %v5254_v56  ;;  %v5258_v58 = vld [vmem:[%s19878_s12 + $0x804] sm:$0xf] }
 0x269   :  { %5257 = vst [vmem:[#allocation3 + $0x7f0] sm:$0xf] %v5256_v57  ;;  %v5260_v59 = vld [vmem:[%s19878_s12 + $0x7ec] sm:$0xf]  ;;  %v5262_v60 = vld [vmem:[%s19878_s12 + $0x808] sm:$0xf] }
 0x26a   :  { %5259 = vst [vmem:[#allocation3 + $0x7f4] sm:$0xf] %v5258_v58  ;;  %5261 = vst [vmem:[#allocation3 + $0x7f8] sm:$0xf] %v5260_v59  ;;  %v5264_v61 = vld [vmem:[%s19878_s12 + $0x7f0] sm:$0xf] }
 0x26b   :  { %5263 = vst [vmem:[#allocation3 + $0x7fc] sm:$0xf] %v5262_v60  ;;  %v5266_v62 = vld [vmem:[%s19878_s12 + $0x80c] sm:$0xf]  ;;  %v5268_v63 = vld [vmem:[%s19878_s12 + $0x7f4] sm:$0xf] }
 0x26c   :  { %5265 = vst [vmem:[#allocation3 + $0x800] sm:$0xf] %v5264_v61  ;;  %5267 = vst [vmem:[#allocation3 + $0x804] sm:$0xf] %v5266_v62  ;;  %v5270_v0 = vld [vmem:[%s19878_s12 + $0x810] sm:$0xf] }
 0x26d   :  { %5269 = vst [vmem:[#allocation3 + $0x808] sm:$0xf] %v5268_v63  ;;  %v5272_v1 = vld [vmem:[%s19878_s12 + $0x7f8] sm:$0xf]  ;;  %5271 = vst [vmem:[#allocation3 + $0x80c] sm:$0xf] %v5270_v0 }
 0x26e   :  { %5273 = vst [vmem:[#allocation3 + $0x810] sm:$0xf] %v5272_v1  ;;  %5275 = vst [vmem:[#allocation3 + $0x814] sm:$0xff] %v5274_v2   ;;  %v5278_v3 = vld [vmem:[%s19878_s12 + $0x834] sm:$0xf]  ;;  %v5330_v28 = vld [vmem:[%s19878_s12 + $0x884] sm:$0xff]  }
 0x26f   :  { %v5280_v4 = vld [vmem:[%s19878_s12 + $0x81c] sm:$0xf]  ;;  %v5282_v5 = vld [vmem:[%s19878_s12 + $0x838] sm:$0xf]  ;;  %5279 = vst [vmem:[#allocation3 + $0x81c] sm:$0xf] %v5278_v3 }
 0x270   :  { %5281 = vst [vmem:[#allocation3 + $0x820] sm:$0xf] %v5280_v4  ;;  %5283 = vst [vmem:[#allocation3 + $0x824] sm:$0xf] %v5282_v5  ;;  %v5284_v6 = vld [vmem:[%s19878_s12 + $0x820] sm:$0xf] }
 0x271   :  { %v5286_v7 = vld [vmem:[%s19878_s12 + $0x83c] sm:$0xf]  ;;  %v5288_v8 = vld [vmem:[%s19878_s12 + $0x824] sm:$0xf]  ;;  %5285 = vst [vmem:[#allocation3 + $0x828] sm:$0xf] %v5284_v6 }
 0x272   :  { %5287 = vst [vmem:[#allocation3 + $0x82c] sm:$0xf] %v5286_v7  ;;  %5289 = vst [vmem:[#allocation3 + $0x830] sm:$0xf] %v5288_v8  ;;  %v5290_v9 = vld [vmem:[%s19878_s12 + $0x840] sm:$0xf] }
 0x273   :  { %v5292_v10 = vld [vmem:[%s19878_s12 + $0x828] sm:$0xf]  ;;  %v5294_v11 = vld [vmem:[%s19878_s12 + $0x844] sm:$0xf]  ;;  %5291 = vst [vmem:[#allocation3 + $0x834] sm:$0xf] %v5290_v9 }
 0x274   :  { %5293 = vst [vmem:[#allocation3 + $0x838] sm:$0xf] %v5292_v10  ;;  %5295 = vst [vmem:[#allocation3 + $0x83c] sm:$0xf] %v5294_v11  ;;  %v5296_v12 = vld [vmem:[%s19878_s12 + $0x82c] sm:$0xf] }
 0x275   :  { %v5298_v13 = vld [vmem:[%s19878_s12 + $0x848] sm:$0xf]  ;;  %v5300_v14 = vld [vmem:[%s19878_s12 + $0x830] sm:$0xf]  ;;  %5297 = vst [vmem:[#allocation3 + $0x840] sm:$0xf] %v5296_v12 }
 0x276   :  { %5299 = vst [vmem:[#allocation3 + $0x844] sm:$0xf] %v5298_v13  ;;  %5301 = vst [vmem:[#allocation3 + $0x848] sm:$0xf] %v5300_v14  ;;  %v5306_v16 = vld [vmem:[%s19878_s12 + $0x86c] sm:$0xf] }
 0x277   :  { %v5308_v17 = vld [vmem:[%s19878_s12 + $0x854] sm:$0xf]  ;;  %5303 = vst [vmem:[#allocation3 + $0x84c] sm:$0xff] %v5302_v15   ;;  %5307 = vst [vmem:[#allocation3 + $0x854] sm:$0xf] %v5306_v16  ;;  %v5358_v41 = vld [vmem:[%s19878_s12 + $0x8bc] sm:$0xff]  }
 0x278   :  { %5309 = vst [vmem:[#allocation3 + $0x858] sm:$0xf] %v5308_v17  ;;  %v5310_v18 = vld [vmem:[%s19878_s12 + $0x870] sm:$0xf]  ;;  %v5312_v19 = vld [vmem:[%s19878_s12 + $0x858] sm:$0xf] }
 0x279   :  { %v5314_v20 = vld [vmem:[%s19878_s12 + $0x874] sm:$0xf]  ;;  %5311 = vst [vmem:[#allocation3 + $0x85c] sm:$0xf] %v5310_v18  ;;  %5313 = vst [vmem:[#allocation3 + $0x860] sm:$0xf] %v5312_v19 }
 0x27a   :  { %5315 = vst [vmem:[#allocation3 + $0x864] sm:$0xf] %v5314_v20  ;;  %v5316_v21 = vld [vmem:[%s19878_s12 + $0x85c] sm:$0xf]  ;;  %v5318_v22 = vld [vmem:[%s19878_s12 + $0x878] sm:$0xf] }
 0x27b   :  { %v5320_v23 = vld [vmem:[%s19878_s12 + $0x860] sm:$0xf]  ;;  %5317 = vst [vmem:[#allocation3 + $0x868] sm:$0xf] %v5316_v21  ;;  %5319 = vst [vmem:[#allocation3 + $0x86c] sm:$0xf] %v5318_v22 }
 0x27c   :  { %5321 = vst [vmem:[#allocation3 + $0x870] sm:$0xf] %v5320_v23  ;;  %v5322_v24 = vld [vmem:[%s19878_s12 + $0x87c] sm:$0xf]  ;;  %v5324_v25 = vld [vmem:[%s19878_s12 + $0x864] sm:$0xf] }
 0x27d   :  { %v5326_v26 = vld [vmem:[%s19878_s12 + $0x880] sm:$0xf]  ;;  %5323 = vst [vmem:[#allocation3 + $0x874] sm:$0xf] %v5322_v24  ;;  %5325 = vst [vmem:[#allocation3 + $0x878] sm:$0xf] %v5324_v25 }
 0x27e   :  { %5327 = vst [vmem:[#allocation3 + $0x87c] sm:$0xf] %v5326_v26  ;;  %v5328_v27 = vld [vmem:[%s19878_s12 + $0x868] sm:$0xf]  ;;  %v5334_v29 = vld [vmem:[%s19878_s12 + $0x8a4] sm:$0xf] }
 0x27f   :  { %5329 = vst [vmem:[#allocation3 + $0x880] sm:$0xf] %v5328_v27  ;;  %5331 = vst [vmem:[#allocation3 + $0x884] sm:$0xff] %v5330_v28   ;;  %v5336_v30 = vld [vmem:[%s19878_s12 + $0x88c] sm:$0xf]  ;;  %v5386_v54 = vld [vmem:[%s19878_s12 + $0x8f4] sm:$0xff]  }
 0x280   :  { %5335 = vst [vmem:[#allocation3 + $0x88c] sm:$0xf] %v5334_v29  ;;  %v5338_v31 = vld [vmem:[%s19878_s12 + $0x8a8] sm:$0xf]  ;;  %v5340_v32 = vld [vmem:[%s19878_s12 + $0x890] sm:$0xf] }
 0x281   :  { %5337 = vst [vmem:[#allocation3 + $0x890] sm:$0xf] %v5336_v30  ;;  %5339 = vst [vmem:[#allocation3 + $0x894] sm:$0xf] %v5338_v31  ;;  %v5342_v33 = vld [vmem:[%s19878_s12 + $0x8ac] sm:$0xf] }
 0x282   :  { %5341 = vst [vmem:[#allocation3 + $0x898] sm:$0xf] %v5340_v32  ;;  %v5344_v34 = vld [vmem:[%s19878_s12 + $0x894] sm:$0xf]  ;;  %v5346_v35 = vld [vmem:[%s19878_s12 + $0x8b0] sm:$0xf] }
 0x283   :  { %5343 = vst [vmem:[#allocation3 + $0x89c] sm:$0xf] %v5342_v33  ;;  %5345 = vst [vmem:[#allocation3 + $0x8a0] sm:$0xf] %v5344_v34  ;;  %v5348_v36 = vld [vmem:[%s19878_s12 + $0x898] sm:$0xf] }
 0x284   :  { %5347 = vst [vmem:[#allocation3 + $0x8a4] sm:$0xf] %v5346_v35  ;;  %v5350_v37 = vld [vmem:[%s19878_s12 + $0x8b4] sm:$0xf]  ;;  %v5352_v38 = vld [vmem:[%s19878_s12 + $0x89c] sm:$0xf] }
 0x285   :  { %5349 = vst [vmem:[#allocation3 + $0x8a8] sm:$0xf] %v5348_v36  ;;  %5351 = vst [vmem:[#allocation3 + $0x8ac] sm:$0xf] %v5350_v37  ;;  %v5354_v39 = vld [vmem:[%s19878_s12 + $0x8b8] sm:$0xf] }
 0x286   :  { %5353 = vst [vmem:[#allocation3 + $0x8b0] sm:$0xf] %v5352_v38  ;;  %v5356_v40 = vld [vmem:[%s19878_s12 + $0x8a0] sm:$0xf]  ;;  %5355 = vst [vmem:[#allocation3 + $0x8b4] sm:$0xf] %v5354_v39 }
 0x287   :  { %5357 = vst [vmem:[#allocation3 + $0x8b8] sm:$0xf] %v5356_v40  ;;  %5359 = vst [vmem:[#allocation3 + $0x8bc] sm:$0xff] %v5358_v41   ;;  %v5362_v42 = vld [vmem:[%s19878_s12 + $0x8dc] sm:$0xf]  ;;  %v5414_v3 = vld [vmem:[%s19878_s12 + $0x92c] sm:$0xff]  }
 0x288   :  { %v5364_v43 = vld [vmem:[%s19878_s12 + $0x8c4] sm:$0xf]  ;;  %v5366_v44 = vld [vmem:[%s19878_s12 + $0x8e0] sm:$0xf]  ;;  %5363 = vst [vmem:[#allocation3 + $0x8c4] sm:$0xf] %v5362_v42 }
 0x289   :  { %5365 = vst [vmem:[#allocation3 + $0x8c8] sm:$0xf] %v5364_v43  ;;  %5367 = vst [vmem:[#allocation3 + $0x8cc] sm:$0xf] %v5366_v44  ;;  %v5368_v45 = vld [vmem:[%s19878_s12 + $0x8c8] sm:$0xf] }
 0x28a   :  { %v5370_v46 = vld [vmem:[%s19878_s12 + $0x8e4] sm:$0xf]  ;;  %v5372_v47 = vld [vmem:[%s19878_s12 + $0x8cc] sm:$0xf]  ;;  %5369 = vst [vmem:[#allocation3 + $0x8d0] sm:$0xf] %v5368_v45 }
 0x28b   :  { %5371 = vst [vmem:[#allocation3 + $0x8d4] sm:$0xf] %v5370_v46  ;;  %5373 = vst [vmem:[#allocation3 + $0x8d8] sm:$0xf] %v5372_v47  ;;  %v5374_v48 = vld [vmem:[%s19878_s12 + $0x8e8] sm:$0xf] }
 0x28c   :  { %v5376_v49 = vld [vmem:[%s19878_s12 + $0x8d0] sm:$0xf]  ;;  %v5378_v50 = vld [vmem:[%s19878_s12 + $0x8ec] sm:$0xf]  ;;  %5375 = vst [vmem:[#allocation3 + $0x8dc] sm:$0xf] %v5374_v48 }
 0x28d   :  { %5377 = vst [vmem:[#allocation3 + $0x8e0] sm:$0xf] %v5376_v49  ;;  %5379 = vst [vmem:[#allocation3 + $0x8e4] sm:$0xf] %v5378_v50  ;;  %v5380_v51 = vld [vmem:[%s19878_s12 + $0x8d4] sm:$0xf] }
 0x28e   :  { %v5382_v52 = vld [vmem:[%s19878_s12 + $0x8f0] sm:$0xf]  ;;  %v5384_v53 = vld [vmem:[%s19878_s12 + $0x8d8] sm:$0xf]  ;;  %5381 = vst [vmem:[#allocation3 + $0x8e8] sm:$0xf] %v5380_v51 }
 0x28f   :  { %5383 = vst [vmem:[#allocation3 + $0x8ec] sm:$0xf] %v5382_v52  ;;  %5385 = vst [vmem:[#allocation3 + $0x8f0] sm:$0xf] %v5384_v53  ;;  %v5390_v55 = vld [vmem:[%s19878_s12 + $0x914] sm:$0xf] }
 0x290   :  { %v5392_v56 = vld [vmem:[%s19878_s12 + $0x8fc] sm:$0xf]  ;;  %5387 = vst [vmem:[#allocation3 + $0x8f4] sm:$0xff] %v5386_v54   ;;  %5391 = vst [vmem:[#allocation3 + $0x8fc] sm:$0xf] %v5390_v55  ;;  %v5442_v16 = vld [vmem:[%s19878_s12 + $0x964] sm:$0xff]  }
 0x291   :  { %5393 = vst [vmem:[#allocation3 + $0x900] sm:$0xf] %v5392_v56  ;;  %v5394_v57 = vld [vmem:[%s19878_s12 + $0x918] sm:$0xf]  ;;  %v5396_v58 = vld [vmem:[%s19878_s12 + $0x900] sm:$0xf] }
 0x292   :  { %v5398_v59 = vld [vmem:[%s19878_s12 + $0x91c] sm:$0xf]  ;;  %5395 = vst [vmem:[#allocation3 + $0x904] sm:$0xf] %v5394_v57  ;;  %5397 = vst [vmem:[#allocation3 + $0x908] sm:$0xf] %v5396_v58 }
 0x293   :  { %5399 = vst [vmem:[#allocation3 + $0x90c] sm:$0xf] %v5398_v59  ;;  %v5400_v60 = vld [vmem:[%s19878_s12 + $0x904] sm:$0xf]  ;;  %v5402_v61 = vld [vmem:[%s19878_s12 + $0x920] sm:$0xf] }
 0x294   :  { %v5404_v62 = vld [vmem:[%s19878_s12 + $0x908] sm:$0xf]  ;;  %5401 = vst [vmem:[#allocation3 + $0x910] sm:$0xf] %v5400_v60  ;;  %5403 = vst [vmem:[#allocation3 + $0x914] sm:$0xf] %v5402_v61 }
 0x295   :  { %5405 = vst [vmem:[#allocation3 + $0x918] sm:$0xf] %v5404_v62  ;;  %v5406_v63 = vld [vmem:[%s19878_s12 + $0x924] sm:$0xf]  ;;  %v5408_v0 = vld [vmem:[%s19878_s12 + $0x90c] sm:$0xf] }
 0x296   :  { %v5410_v1 = vld [vmem:[%s19878_s12 + $0x928] sm:$0xf]  ;;  %5407 = vst [vmem:[#allocation3 + $0x91c] sm:$0xf] %v5406_v63  ;;  %5409 = vst [vmem:[#allocation3 + $0x920] sm:$0xf] %v5408_v0 }
 0x297   :  { %5411 = vst [vmem:[#allocation3 + $0x924] sm:$0xf] %v5410_v1  ;;  %v5412_v2 = vld [vmem:[%s19878_s12 + $0x910] sm:$0xf]  ;;  %v5418_v4 = vld [vmem:[%s19878_s12 + $0x94c] sm:$0xf] }
 0x298   :  { %5413 = vst [vmem:[#allocation3 + $0x928] sm:$0xf] %v5412_v2  ;;  %5415 = vst [vmem:[#allocation3 + $0x92c] sm:$0xff] %v5414_v3   ;;  %v5420_v5 = vld [vmem:[%s19878_s12 + $0x934] sm:$0xf]  ;;  %v5470_v29 = vld [vmem:[%s19878_s12 + $0x99c] sm:$0xff]  }
 0x299   :  { %5419 = vst [vmem:[#allocation3 + $0x934] sm:$0xf] %v5418_v4  ;;  %v5422_v6 = vld [vmem:[%s19878_s12 + $0x950] sm:$0xf]  ;;  %v5424_v7 = vld [vmem:[%s19878_s12 + $0x938] sm:$0xf] }
 0x29a   :  { %5421 = vst [vmem:[#allocation3 + $0x938] sm:$0xf] %v5420_v5  ;;  %5423 = vst [vmem:[#allocation3 + $0x93c] sm:$0xf] %v5422_v6  ;;  %v5426_v8 = vld [vmem:[%s19878_s12 + $0x954] sm:$0xf] }
 0x29b   :  { %5425 = vst [vmem:[#allocation3 + $0x940] sm:$0xf] %v5424_v7  ;;  %v5428_v9 = vld [vmem:[%s19878_s12 + $0x93c] sm:$0xf]  ;;  %v5430_v10 = vld [vmem:[%s19878_s12 + $0x958] sm:$0xf] }
 0x29c   :  { %5427 = vst [vmem:[#allocation3 + $0x944] sm:$0xf] %v5426_v8  ;;  %5429 = vst [vmem:[#allocation3 + $0x948] sm:$0xf] %v5428_v9  ;;  %v5432_v11 = vld [vmem:[%s19878_s12 + $0x940] sm:$0xf] }
 0x29d   :  { %5431 = vst [vmem:[#allocation3 + $0x94c] sm:$0xf] %v5430_v10  ;;  %v5434_v12 = vld [vmem:[%s19878_s12 + $0x95c] sm:$0xf]  ;;  %v5436_v13 = vld [vmem:[%s19878_s12 + $0x944] sm:$0xf] }
 0x29e   :  { %5433 = vst [vmem:[#allocation3 + $0x950] sm:$0xf] %v5432_v11  ;;  %5435 = vst [vmem:[#allocation3 + $0x954] sm:$0xf] %v5434_v12  ;;  %v5438_v14 = vld [vmem:[%s19878_s12 + $0x960] sm:$0xf] }
 0x29f   :  { %5437 = vst [vmem:[#allocation3 + $0x958] sm:$0xf] %v5436_v13  ;;  %v5440_v15 = vld [vmem:[%s19878_s12 + $0x948] sm:$0xf]  ;;  %5439 = vst [vmem:[#allocation3 + $0x95c] sm:$0xf] %v5438_v14 }
 0x2a0   :  { %5441 = vst [vmem:[#allocation3 + $0x960] sm:$0xf] %v5440_v15  ;;  %5443 = vst [vmem:[#allocation3 + $0x964] sm:$0xff] %v5442_v16   ;;  %v5446_v17 = vld [vmem:[%s19878_s12 + $0x984] sm:$0xf]  ;;  %v5498_v42 = vld [vmem:[%s19878_s12 + $0x9d4] sm:$0xff]  }
 0x2a1   :  { %v5448_v18 = vld [vmem:[%s19878_s12 + $0x96c] sm:$0xf]  ;;  %v5450_v19 = vld [vmem:[%s19878_s12 + $0x988] sm:$0xf]  ;;  %5447 = vst [vmem:[#allocation3 + $0x96c] sm:$0xf] %v5446_v17 }
 0x2a2   :  { %5449 = vst [vmem:[#allocation3 + $0x970] sm:$0xf] %v5448_v18  ;;  %5451 = vst [vmem:[#allocation3 + $0x974] sm:$0xf] %v5450_v19  ;;  %v5452_v20 = vld [vmem:[%s19878_s12 + $0x970] sm:$0xf] }
 0x2a3   :  { %v5454_v21 = vld [vmem:[%s19878_s12 + $0x98c] sm:$0xf]  ;;  %v5456_v22 = vld [vmem:[%s19878_s12 + $0x974] sm:$0xf]  ;;  %5453 = vst [vmem:[#allocation3 + $0x978] sm:$0xf] %v5452_v20 }
 0x2a4   :  { %5455 = vst [vmem:[#allocation3 + $0x97c] sm:$0xf] %v5454_v21  ;;  %5457 = vst [vmem:[#allocation3 + $0x980] sm:$0xf] %v5456_v22  ;;  %v5458_v23 = vld [vmem:[%s19878_s12 + $0x990] sm:$0xf] }
 0x2a5   :  { %v5460_v24 = vld [vmem:[%s19878_s12 + $0x978] sm:$0xf]  ;;  %v5462_v25 = vld [vmem:[%s19878_s12 + $0x994] sm:$0xf]  ;;  %5459 = vst [vmem:[#allocation3 + $0x984] sm:$0xf] %v5458_v23 }
 0x2a6   :  { %5461 = vst [vmem:[#allocation3 + $0x988] sm:$0xf] %v5460_v24  ;;  %5463 = vst [vmem:[#allocation3 + $0x98c] sm:$0xf] %v5462_v25  ;;  %v5464_v26 = vld [vmem:[%s19878_s12 + $0x97c] sm:$0xf] }
 0x2a7   :  { %v5466_v27 = vld [vmem:[%s19878_s12 + $0x998] sm:$0xf]  ;;  %v5468_v28 = vld [vmem:[%s19878_s12 + $0x980] sm:$0xf]  ;;  %5465 = vst [vmem:[#allocation3 + $0x990] sm:$0xf] %v5464_v26 }
 0x2a8   :  { %5467 = vst [vmem:[#allocation3 + $0x994] sm:$0xf] %v5466_v27  ;;  %5469 = vst [vmem:[#allocation3 + $0x998] sm:$0xf] %v5468_v28  ;;  %v5474_v30 = vld [vmem:[%s19878_s12 + $0x9bc] sm:$0xf] }
 0x2a9   :  { %v5476_v31 = vld [vmem:[%s19878_s12 + $0x9a4] sm:$0xf]  ;;  %5471 = vst [vmem:[#allocation3 + $0x99c] sm:$0xff] %v5470_v29   ;;  %5475 = vst [vmem:[#allocation3 + $0x9a4] sm:$0xf] %v5474_v30  ;;  %v5526_v55 = vld [vmem:[%s19878_s12 + $0xa0c] sm:$0xff]  }
 0x2aa   :  { %5477 = vst [vmem:[#allocation3 + $0x9a8] sm:$0xf] %v5476_v31  ;;  %v5478_v32 = vld [vmem:[%s19878_s12 + $0x9c0] sm:$0xf]  ;;  %v5480_v33 = vld [vmem:[%s19878_s12 + $0x9a8] sm:$0xf] }
 0x2ab   :  { %v5482_v34 = vld [vmem:[%s19878_s12 + $0x9c4] sm:$0xf]  ;;  %5479 = vst [vmem:[#allocation3 + $0x9ac] sm:$0xf] %v5478_v32  ;;  %5481 = vst [vmem:[#allocation3 + $0x9b0] sm:$0xf] %v5480_v33 }
 0x2ac   :  { %5483 = vst [vmem:[#allocation3 + $0x9b4] sm:$0xf] %v5482_v34  ;;  %v5484_v35 = vld [vmem:[%s19878_s12 + $0x9ac] sm:$0xf]  ;;  %v5486_v36 = vld [vmem:[%s19878_s12 + $0x9c8] sm:$0xf] }
 0x2ad   :  { %v5488_v37 = vld [vmem:[%s19878_s12 + $0x9b0] sm:$0xf]  ;;  %5485 = vst [vmem:[#allocation3 + $0x9b8] sm:$0xf] %v5484_v35  ;;  %5487 = vst [vmem:[#allocation3 + $0x9bc] sm:$0xf] %v5486_v36 }
 0x2ae   :  { %5489 = vst [vmem:[#allocation3 + $0x9c0] sm:$0xf] %v5488_v37  ;;  %v5490_v38 = vld [vmem:[%s19878_s12 + $0x9cc] sm:$0xf]  ;;  %v5492_v39 = vld [vmem:[%s19878_s12 + $0x9b4] sm:$0xf] }
 0x2af   :  { %v5494_v40 = vld [vmem:[%s19878_s12 + $0x9d0] sm:$0xf]  ;;  %5491 = vst [vmem:[#allocation3 + $0x9c4] sm:$0xf] %v5490_v38  ;;  %5493 = vst [vmem:[#allocation3 + $0x9c8] sm:$0xf] %v5492_v39 }
 0x2b0   :  { %5495 = vst [vmem:[#allocation3 + $0x9cc] sm:$0xf] %v5494_v40  ;;  %v5496_v41 = vld [vmem:[%s19878_s12 + $0x9b8] sm:$0xf]  ;;  %v5502_v43 = vld [vmem:[%s19878_s12 + $0x9f4] sm:$0xf] }
 0x2b1   :  { %5497 = vst [vmem:[#allocation3 + $0x9d0] sm:$0xf] %v5496_v41  ;;  %5499 = vst [vmem:[#allocation3 + $0x9d4] sm:$0xff] %v5498_v42   ;;  %v5504_v44 = vld [vmem:[%s19878_s12 + $0x9dc] sm:$0xf]  ;;  %v5554_v4 = vld [vmem:[%s19878_s12 + $0xa44] sm:$0xff]  }
 0x2b2   :  { %5503 = vst [vmem:[#allocation3 + $0x9dc] sm:$0xf] %v5502_v43  ;;  %v5506_v45 = vld [vmem:[%s19878_s12 + $0x9f8] sm:$0xf]  ;;  %v5508_v46 = vld [vmem:[%s19878_s12 + $0x9e0] sm:$0xf] }
 0x2b3   :  { %5505 = vst [vmem:[#allocation3 + $0x9e0] sm:$0xf] %v5504_v44  ;;  %5507 = vst [vmem:[#allocation3 + $0x9e4] sm:$0xf] %v5506_v45  ;;  %v5510_v47 = vld [vmem:[%s19878_s12 + $0x9fc] sm:$0xf] }
 0x2b4   :  { %5509 = vst [vmem:[#allocation3 + $0x9e8] sm:$0xf] %v5508_v46  ;;  %v5512_v48 = vld [vmem:[%s19878_s12 + $0x9e4] sm:$0xf]  ;;  %v5514_v49 = vld [vmem:[%s19878_s12 + $0xa00] sm:$0xf] }
 0x2b5   :  { %5511 = vst [vmem:[#allocation3 + $0x9ec] sm:$0xf] %v5510_v47  ;;  %5513 = vst [vmem:[#allocation3 + $0x9f0] sm:$0xf] %v5512_v48  ;;  %v5516_v50 = vld [vmem:[%s19878_s12 + $0x9e8] sm:$0xf] }
 0x2b6   :  { %5515 = vst [vmem:[#allocation3 + $0x9f4] sm:$0xf] %v5514_v49  ;;  %v5518_v51 = vld [vmem:[%s19878_s12 + $0xa04] sm:$0xf]  ;;  %v5520_v52 = vld [vmem:[%s19878_s12 + $0x9ec] sm:$0xf] }
 0x2b7   :  { %5517 = vst [vmem:[#allocation3 + $0x9f8] sm:$0xf] %v5516_v50  ;;  %5519 = vst [vmem:[#allocation3 + $0x9fc] sm:$0xf] %v5518_v51  ;;  %v5522_v53 = vld [vmem:[%s19878_s12 + $0xa08] sm:$0xf] }
 0x2b8   :  { %5521 = vst [vmem:[#allocation3 + $0xa00] sm:$0xf] %v5520_v52  ;;  %v5524_v54 = vld [vmem:[%s19878_s12 + $0x9f0] sm:$0xf]  ;;  %5523 = vst [vmem:[#allocation3 + $0xa04] sm:$0xf] %v5522_v53 }
 0x2b9   :  { %5525 = vst [vmem:[#allocation3 + $0xa08] sm:$0xf] %v5524_v54  ;;  %5527 = vst [vmem:[#allocation3 + $0xa0c] sm:$0xff] %v5526_v55   ;;  %v5530_v56 = vld [vmem:[%s19878_s12 + $0xa2c] sm:$0xf]  ;;  %v5582_v17 = vld [vmem:[%s19878_s12 + $0xa7c] sm:$0xff]  }
 0x2ba   :  { %v5532_v57 = vld [vmem:[%s19878_s12 + $0xa14] sm:$0xf]  ;;  %v5534_v58 = vld [vmem:[%s19878_s12 + $0xa30] sm:$0xf]  ;;  %5531 = vst [vmem:[#allocation3 + $0xa14] sm:$0xf] %v5530_v56 }
 0x2bb   :  { %5533 = vst [vmem:[#allocation3 + $0xa18] sm:$0xf] %v5532_v57  ;;  %5535 = vst [vmem:[#allocation3 + $0xa1c] sm:$0xf] %v5534_v58  ;;  %v5536_v59 = vld [vmem:[%s19878_s12 + $0xa18] sm:$0xf] }
 0x2bc   :  { %v5538_v60 = vld [vmem:[%s19878_s12 + $0xa34] sm:$0xf]  ;;  %v5540_v61 = vld [vmem:[%s19878_s12 + $0xa1c] sm:$0xf]  ;;  %5537 = vst [vmem:[#allocation3 + $0xa20] sm:$0xf] %v5536_v59 }
 0x2bd   :  { %5539 = vst [vmem:[#allocation3 + $0xa24] sm:$0xf] %v5538_v60  ;;  %5541 = vst [vmem:[#allocation3 + $0xa28] sm:$0xf] %v5540_v61  ;;  %v5542_v62 = vld [vmem:[%s19878_s12 + $0xa38] sm:$0xf] }
 0x2be   :  { %v5544_v63 = vld [vmem:[%s19878_s12 + $0xa20] sm:$0xf]  ;;  %v5546_v0 = vld [vmem:[%s19878_s12 + $0xa3c] sm:$0xf]  ;;  %5543 = vst [vmem:[#allocation3 + $0xa2c] sm:$0xf] %v5542_v62 }
 0x2bf   :  { %5545 = vst [vmem:[#allocation3 + $0xa30] sm:$0xf] %v5544_v63  ;;  %5547 = vst [vmem:[#allocation3 + $0xa34] sm:$0xf] %v5546_v0  ;;  %v5548_v1 = vld [vmem:[%s19878_s12 + $0xa24] sm:$0xf] }
 0x2c0   :  { %v5550_v2 = vld [vmem:[%s19878_s12 + $0xa40] sm:$0xf]  ;;  %v5552_v3 = vld [vmem:[%s19878_s12 + $0xa28] sm:$0xf]  ;;  %5549 = vst [vmem:[#allocation3 + $0xa38] sm:$0xf] %v5548_v1 }
 0x2c1   :  { %5551 = vst [vmem:[#allocation3 + $0xa3c] sm:$0xf] %v5550_v2  ;;  %5553 = vst [vmem:[#allocation3 + $0xa40] sm:$0xf] %v5552_v3  ;;  %v5558_v5 = vld [vmem:[%s19878_s12 + $0xa64] sm:$0xf] }
 0x2c2   :  { %v5560_v6 = vld [vmem:[%s19878_s12 + $0xa4c] sm:$0xf]  ;;  %5555 = vst [vmem:[#allocation3 + $0xa44] sm:$0xff] %v5554_v4   ;;  %5559 = vst [vmem:[#allocation3 + $0xa4c] sm:$0xf] %v5558_v5  ;;  %v5610_v30 = vld [vmem:[%s19878_s12 + $0xab4] sm:$0xff]  }
 0x2c3   :  { %5561 = vst [vmem:[#allocation3 + $0xa50] sm:$0xf] %v5560_v6  ;;  %v5562_v7 = vld [vmem:[%s19878_s12 + $0xa68] sm:$0xf]  ;;  %v5564_v8 = vld [vmem:[%s19878_s12 + $0xa50] sm:$0xf] }
 0x2c4   :  { %v5566_v9 = vld [vmem:[%s19878_s12 + $0xa6c] sm:$0xf]  ;;  %5563 = vst [vmem:[#allocation3 + $0xa54] sm:$0xf] %v5562_v7  ;;  %5565 = vst [vmem:[#allocation3 + $0xa58] sm:$0xf] %v5564_v8 }
 0x2c5   :  { %5567 = vst [vmem:[#allocation3 + $0xa5c] sm:$0xf] %v5566_v9  ;;  %v5568_v10 = vld [vmem:[%s19878_s12 + $0xa54] sm:$0xf]  ;;  %v5570_v11 = vld [vmem:[%s19878_s12 + $0xa70] sm:$0xf] }
 0x2c6   :  { %v5572_v12 = vld [vmem:[%s19878_s12 + $0xa58] sm:$0xf]  ;;  %5569 = vst [vmem:[#allocation3 + $0xa60] sm:$0xf] %v5568_v10  ;;  %5571 = vst [vmem:[#allocation3 + $0xa64] sm:$0xf] %v5570_v11 }
 0x2c7   :  { %5573 = vst [vmem:[#allocation3 + $0xa68] sm:$0xf] %v5572_v12  ;;  %v5574_v13 = vld [vmem:[%s19878_s12 + $0xa74] sm:$0xf]  ;;  %v5576_v14 = vld [vmem:[%s19878_s12 + $0xa5c] sm:$0xf] }
 0x2c8   :  { %v5578_v15 = vld [vmem:[%s19878_s12 + $0xa78] sm:$0xf]  ;;  %5575 = vst [vmem:[#allocation3 + $0xa6c] sm:$0xf] %v5574_v13  ;;  %5577 = vst [vmem:[#allocation3 + $0xa70] sm:$0xf] %v5576_v14 }
 0x2c9   :  { %5579 = vst [vmem:[#allocation3 + $0xa74] sm:$0xf] %v5578_v15  ;;  %v5580_v16 = vld [vmem:[%s19878_s12 + $0xa60] sm:$0xf]  ;;  %v5586_v18 = vld [vmem:[%s19878_s12 + $0xa9c] sm:$0xf] }
 0x2ca   :  { %5581 = vst [vmem:[#allocation3 + $0xa78] sm:$0xf] %v5580_v16  ;;  %5583 = vst [vmem:[#allocation3 + $0xa7c] sm:$0xff] %v5582_v17   ;;  %v5588_v19 = vld [vmem:[%s19878_s12 + $0xa84] sm:$0xf]  ;;  %v5638_v43 = vld [vmem:[%s19878_s12 + $0xaec] sm:$0xff]  }
 0x2cb   :  { %5587 = vst [vmem:[#allocation3 + $0xa84] sm:$0xf] %v5586_v18  ;;  %v5590_v20 = vld [vmem:[%s19878_s12 + $0xaa0] sm:$0xf]  ;;  %v5592_v21 = vld [vmem:[%s19878_s12 + $0xa88] sm:$0xf] }
 0x2cc   :  { %5589 = vst [vmem:[#allocation3 + $0xa88] sm:$0xf] %v5588_v19  ;;  %5591 = vst [vmem:[#allocation3 + $0xa8c] sm:$0xf] %v5590_v20  ;;  %v5594_v22 = vld [vmem:[%s19878_s12 + $0xaa4] sm:$0xf] }
 0x2cd   :  { %5593 = vst [vmem:[#allocation3 + $0xa90] sm:$0xf] %v5592_v21  ;;  %v5596_v23 = vld [vmem:[%s19878_s12 + $0xa8c] sm:$0xf]  ;;  %v5598_v24 = vld [vmem:[%s19878_s12 + $0xaa8] sm:$0xf] }
 0x2ce   :  { %5595 = vst [vmem:[#allocation3 + $0xa94] sm:$0xf] %v5594_v22  ;;  %5597 = vst [vmem:[#allocation3 + $0xa98] sm:$0xf] %v5596_v23  ;;  %v5600_v25 = vld [vmem:[%s19878_s12 + $0xa90] sm:$0xf] }
 0x2cf   :  { %5599 = vst [vmem:[#allocation3 + $0xa9c] sm:$0xf] %v5598_v24  ;;  %v5602_v26 = vld [vmem:[%s19878_s12 + $0xaac] sm:$0xf]  ;;  %v5604_v27 = vld [vmem:[%s19878_s12 + $0xa94] sm:$0xf] }
 0x2d0   :  { %5601 = vst [vmem:[#allocation3 + $0xaa0] sm:$0xf] %v5600_v25  ;;  %5603 = vst [vmem:[#allocation3 + $0xaa4] sm:$0xf] %v5602_v26  ;;  %v5606_v28 = vld [vmem:[%s19878_s12 + $0xab0] sm:$0xf] }
 0x2d1   :  { %5605 = vst [vmem:[#allocation3 + $0xaa8] sm:$0xf] %v5604_v27  ;;  %v5608_v29 = vld [vmem:[%s19878_s12 + $0xa98] sm:$0xf]  ;;  %5607 = vst [vmem:[#allocation3 + $0xaac] sm:$0xf] %v5606_v28 }
 0x2d2   :  { %5609 = vst [vmem:[#allocation3 + $0xab0] sm:$0xf] %v5608_v29  ;;  %5611 = vst [vmem:[#allocation3 + $0xab4] sm:$0xff] %v5610_v30   ;;  %v5614_v31 = vld [vmem:[%s19878_s12 + $0xad4] sm:$0xf]  ;;  %v5666_v56 = vld [vmem:[%s19878_s12 + $0xb24] sm:$0xff]  }
 0x2d3   :  { %v5616_v32 = vld [vmem:[%s19878_s12 + $0xabc] sm:$0xf]  ;;  %v5618_v33 = vld [vmem:[%s19878_s12 + $0xad8] sm:$0xf]  ;;  %5615 = vst [vmem:[#allocation3 + $0xabc] sm:$0xf] %v5614_v31 }
 0x2d4   :  { %5617 = vst [vmem:[#allocation3 + $0xac0] sm:$0xf] %v5616_v32  ;;  %5619 = vst [vmem:[#allocation3 + $0xac4] sm:$0xf] %v5618_v33  ;;  %v5620_v34 = vld [vmem:[%s19878_s12 + $0xac0] sm:$0xf] }
 0x2d5   :  { %v5622_v35 = vld [vmem:[%s19878_s12 + $0xadc] sm:$0xf]  ;;  %v5624_v36 = vld [vmem:[%s19878_s12 + $0xac4] sm:$0xf]  ;;  %5621 = vst [vmem:[#allocation3 + $0xac8] sm:$0xf] %v5620_v34 }
 0x2d6   :  { %5623 = vst [vmem:[#allocation3 + $0xacc] sm:$0xf] %v5622_v35  ;;  %5625 = vst [vmem:[#allocation3 + $0xad0] sm:$0xf] %v5624_v36  ;;  %v5626_v37 = vld [vmem:[%s19878_s12 + $0xae0] sm:$0xf] }
 0x2d7   :  { %v5628_v38 = vld [vmem:[%s19878_s12 + $0xac8] sm:$0xf]  ;;  %v5630_v39 = vld [vmem:[%s19878_s12 + $0xae4] sm:$0xf]  ;;  %5627 = vst [vmem:[#allocation3 + $0xad4] sm:$0xf] %v5626_v37 }
 0x2d8   :  { %5629 = vst [vmem:[#allocation3 + $0xad8] sm:$0xf] %v5628_v38  ;;  %5631 = vst [vmem:[#allocation3 + $0xadc] sm:$0xf] %v5630_v39  ;;  %v5632_v40 = vld [vmem:[%s19878_s12 + $0xacc] sm:$0xf] }
 0x2d9   :  { %v5634_v41 = vld [vmem:[%s19878_s12 + $0xae8] sm:$0xf]  ;;  %v5636_v42 = vld [vmem:[%s19878_s12 + $0xad0] sm:$0xf]  ;;  %5633 = vst [vmem:[#allocation3 + $0xae0] sm:$0xf] %v5632_v40 }
 0x2da   :  { %5635 = vst [vmem:[#allocation3 + $0xae4] sm:$0xf] %v5634_v41  ;;  %5637 = vst [vmem:[#allocation3 + $0xae8] sm:$0xf] %v5636_v42  ;;  %v5642_v44 = vld [vmem:[%s19878_s12 + $0xb0c] sm:$0xf] }
 0x2db   :  { %v5644_v45 = vld [vmem:[%s19878_s12 + $0xaf4] sm:$0xf]  ;;  %5639 = vst [vmem:[#allocation3 + $0xaec] sm:$0xff] %v5638_v43   ;;  %5643 = vst [vmem:[#allocation3 + $0xaf4] sm:$0xf] %v5642_v44  ;;  %v5694_v5 = vld [vmem:[%s19878_s12 + $0xb5c] sm:$0xff]  }
 0x2dc   :  { %5645 = vst [vmem:[#allocation3 + $0xaf8] sm:$0xf] %v5644_v45  ;;  %v5646_v46 = vld [vmem:[%s19878_s12 + $0xb10] sm:$0xf]  ;;  %v5648_v47 = vld [vmem:[%s19878_s12 + $0xaf8] sm:$0xf] }
 0x2dd   :  { %v5650_v48 = vld [vmem:[%s19878_s12 + $0xb14] sm:$0xf]  ;;  %5647 = vst [vmem:[#allocation3 + $0xafc] sm:$0xf] %v5646_v46  ;;  %5649 = vst [vmem:[#allocation3 + $0xb00] sm:$0xf] %v5648_v47 }
 0x2de   :  { %5651 = vst [vmem:[#allocation3 + $0xb04] sm:$0xf] %v5650_v48  ;;  %v5652_v49 = vld [vmem:[%s19878_s12 + $0xafc] sm:$0xf]  ;;  %v5654_v50 = vld [vmem:[%s19878_s12 + $0xb18] sm:$0xf] }
 0x2df   :  { %v5656_v51 = vld [vmem:[%s19878_s12 + $0xb00] sm:$0xf]  ;;  %5653 = vst [vmem:[#allocation3 + $0xb08] sm:$0xf] %v5652_v49  ;;  %5655 = vst [vmem:[#allocation3 + $0xb0c] sm:$0xf] %v5654_v50 }
 0x2e0   :  { %5657 = vst [vmem:[#allocation3 + $0xb10] sm:$0xf] %v5656_v51  ;;  %v5658_v52 = vld [vmem:[%s19878_s12 + $0xb1c] sm:$0xf]  ;;  %v5660_v53 = vld [vmem:[%s19878_s12 + $0xb04] sm:$0xf] }
 0x2e1   :  { %v5662_v54 = vld [vmem:[%s19878_s12 + $0xb20] sm:$0xf]  ;;  %5659 = vst [vmem:[#allocation3 + $0xb14] sm:$0xf] %v5658_v52  ;;  %5661 = vst [vmem:[#allocation3 + $0xb18] sm:$0xf] %v5660_v53 }
 0x2e2   :  { %5663 = vst [vmem:[#allocation3 + $0xb1c] sm:$0xf] %v5662_v54  ;;  %v5664_v55 = vld [vmem:[%s19878_s12 + $0xb08] sm:$0xf]  ;;  %v5670_v57 = vld [vmem:[%s19878_s12 + $0xb44] sm:$0xf] }
 0x2e3   :  { %5665 = vst [vmem:[#allocation3 + $0xb20] sm:$0xf] %v5664_v55  ;;  %5667 = vst [vmem:[#allocation3 + $0xb24] sm:$0xff] %v5666_v56   ;;  %v5672_v58 = vld [vmem:[%s19878_s12 + $0xb2c] sm:$0xf]  ;;  %v5722_v18 = vld [vmem:[%s19878_s12 + $0xb94] sm:$0xff]  }
 0x2e4   :  { %5671 = vst [vmem:[#allocation3 + $0xb2c] sm:$0xf] %v5670_v57  ;;  %v5674_v59 = vld [vmem:[%s19878_s12 + $0xb48] sm:$0xf]  ;;  %v5676_v60 = vld [vmem:[%s19878_s12 + $0xb30] sm:$0xf] }
 0x2e5   :  { %5673 = vst [vmem:[#allocation3 + $0xb30] sm:$0xf] %v5672_v58  ;;  %5675 = vst [vmem:[#allocation3 + $0xb34] sm:$0xf] %v5674_v59  ;;  %v5678_v61 = vld [vmem:[%s19878_s12 + $0xb4c] sm:$0xf] }
 0x2e6   :  { %5677 = vst [vmem:[#allocation3 + $0xb38] sm:$0xf] %v5676_v60  ;;  %v5680_v62 = vld [vmem:[%s19878_s12 + $0xb34] sm:$0xf]  ;;  %v5682_v63 = vld [vmem:[%s19878_s12 + $0xb50] sm:$0xf] }
 0x2e7   :  { %5679 = vst [vmem:[#allocation3 + $0xb3c] sm:$0xf] %v5678_v61  ;;  %5681 = vst [vmem:[#allocation3 + $0xb40] sm:$0xf] %v5680_v62  ;;  %v5684_v0 = vld [vmem:[%s19878_s12 + $0xb38] sm:$0xf] }
 0x2e8   :  { %5683 = vst [vmem:[#allocation3 + $0xb44] sm:$0xf] %v5682_v63  ;;  %v5686_v1 = vld [vmem:[%s19878_s12 + $0xb54] sm:$0xf]  ;;  %v5688_v2 = vld [vmem:[%s19878_s12 + $0xb3c] sm:$0xf] }
 0x2e9   :  { %5685 = vst [vmem:[#allocation3 + $0xb48] sm:$0xf] %v5684_v0  ;;  %5687 = vst [vmem:[#allocation3 + $0xb4c] sm:$0xf] %v5686_v1  ;;  %v5690_v3 = vld [vmem:[%s19878_s12 + $0xb58] sm:$0xf] }
 0x2ea   :  { %5689 = vst [vmem:[#allocation3 + $0xb50] sm:$0xf] %v5688_v2  ;;  %v5692_v4 = vld [vmem:[%s19878_s12 + $0xb40] sm:$0xf]  ;;  %5691 = vst [vmem:[#allocation3 + $0xb54] sm:$0xf] %v5690_v3 }
 0x2eb   :  { %5693 = vst [vmem:[#allocation3 + $0xb58] sm:$0xf] %v5692_v4  ;;  %5695 = vst [vmem:[#allocation3 + $0xb5c] sm:$0xff] %v5694_v5   ;;  %v5698_v6 = vld [vmem:[%s19878_s12 + $0xb7c] sm:$0xf]  ;;  %v5750_v31 = vld [vmem:[%s19878_s12 + $0xbcc] sm:$0xff]  }
 0x2ec   :  { %v5700_v7 = vld [vmem:[%s19878_s12 + $0xb64] sm:$0xf]  ;;  %v5702_v8 = vld [vmem:[%s19878_s12 + $0xb80] sm:$0xf]  ;;  %5699 = vst [vmem:[#allocation3 + $0xb64] sm:$0xf] %v5698_v6 }
 0x2ed   :  { %5701 = vst [vmem:[#allocation3 + $0xb68] sm:$0xf] %v5700_v7  ;;  %5703 = vst [vmem:[#allocation3 + $0xb6c] sm:$0xf] %v5702_v8  ;;  %v5704_v9 = vld [vmem:[%s19878_s12 + $0xb68] sm:$0xf] }
 0x2ee   :  { %v5706_v10 = vld [vmem:[%s19878_s12 + $0xb84] sm:$0xf]  ;;  %v5708_v11 = vld [vmem:[%s19878_s12 + $0xb6c] sm:$0xf]  ;;  %5705 = vst [vmem:[#allocation3 + $0xb70] sm:$0xf] %v5704_v9 }
 0x2ef   :  { %5707 = vst [vmem:[#allocation3 + $0xb74] sm:$0xf] %v5706_v10  ;;  %5709 = vst [vmem:[#allocation3 + $0xb78] sm:$0xf] %v5708_v11  ;;  %v5710_v12 = vld [vmem:[%s19878_s12 + $0xb88] sm:$0xf] }
 0x2f0   :  { %v5712_v13 = vld [vmem:[%s19878_s12 + $0xb70] sm:$0xf]  ;;  %v5714_v14 = vld [vmem:[%s19878_s12 + $0xb8c] sm:$0xf]  ;;  %5711 = vst [vmem:[#allocation3 + $0xb7c] sm:$0xf] %v5710_v12 }
 0x2f1   :  { %5713 = vst [vmem:[#allocation3 + $0xb80] sm:$0xf] %v5712_v13  ;;  %5715 = vst [vmem:[#allocation3 + $0xb84] sm:$0xf] %v5714_v14  ;;  %v5716_v15 = vld [vmem:[%s19878_s12 + $0xb74] sm:$0xf] }
 0x2f2   :  { %v5718_v16 = vld [vmem:[%s19878_s12 + $0xb90] sm:$0xf]  ;;  %v5720_v17 = vld [vmem:[%s19878_s12 + $0xb78] sm:$0xf]  ;;  %5717 = vst [vmem:[#allocation3 + $0xb88] sm:$0xf] %v5716_v15 }
 0x2f3   :  { %5719 = vst [vmem:[#allocation3 + $0xb8c] sm:$0xf] %v5718_v16  ;;  %5721 = vst [vmem:[#allocation3 + $0xb90] sm:$0xf] %v5720_v17  ;;  %v5726_v19 = vld [vmem:[%s19878_s12 + $0xbb4] sm:$0xf] }
 0x2f4   :  { %v5728_v20 = vld [vmem:[%s19878_s12 + $0xb9c] sm:$0xf]  ;;  %5723 = vst [vmem:[#allocation3 + $0xb94] sm:$0xff] %v5722_v18   ;;  %5727 = vst [vmem:[#allocation3 + $0xb9c] sm:$0xf] %v5726_v19  ;;  %v5778_v44 = vld [vmem:[%s19878_s12 + $0xc04] sm:$0xff]  }
 0x2f5   :  { %5729 = vst [vmem:[#allocation3 + $0xba0] sm:$0xf] %v5728_v20  ;;  %v5730_v21 = vld [vmem:[%s19878_s12 + $0xbb8] sm:$0xf]  ;;  %v5732_v22 = vld [vmem:[%s19878_s12 + $0xba0] sm:$0xf] }
 0x2f6   :  { %v5734_v23 = vld [vmem:[%s19878_s12 + $0xbbc] sm:$0xf]  ;;  %5731 = vst [vmem:[#allocation3 + $0xba4] sm:$0xf] %v5730_v21  ;;  %5733 = vst [vmem:[#allocation3 + $0xba8] sm:$0xf] %v5732_v22 }
 0x2f7   :  { %5735 = vst [vmem:[#allocation3 + $0xbac] sm:$0xf] %v5734_v23  ;;  %v5736_v24 = vld [vmem:[%s19878_s12 + $0xba4] sm:$0xf]  ;;  %v5738_v25 = vld [vmem:[%s19878_s12 + $0xbc0] sm:$0xf] }
 0x2f8   :  { %v5740_v26 = vld [vmem:[%s19878_s12 + $0xba8] sm:$0xf]  ;;  %5737 = vst [vmem:[#allocation3 + $0xbb0] sm:$0xf] %v5736_v24  ;;  %5739 = vst [vmem:[#allocation3 + $0xbb4] sm:$0xf] %v5738_v25 }
 0x2f9   :  { %5741 = vst [vmem:[#allocation3 + $0xbb8] sm:$0xf] %v5740_v26  ;;  %v5742_v27 = vld [vmem:[%s19878_s12 + $0xbc4] sm:$0xf]  ;;  %v5744_v28 = vld [vmem:[%s19878_s12 + $0xbac] sm:$0xf] }
 0x2fa   :  { %v5746_v29 = vld [vmem:[%s19878_s12 + $0xbc8] sm:$0xf]  ;;  %5743 = vst [vmem:[#allocation3 + $0xbbc] sm:$0xf] %v5742_v27  ;;  %5745 = vst [vmem:[#allocation3 + $0xbc0] sm:$0xf] %v5744_v28 }
 0x2fb   :  { %5747 = vst [vmem:[#allocation3 + $0xbc4] sm:$0xf] %v5746_v29  ;;  %v5748_v30 = vld [vmem:[%s19878_s12 + $0xbb0] sm:$0xf]  ;;  %v5754_v32 = vld [vmem:[%s19878_s12 + $0xbec] sm:$0xf] }
 0x2fc   :  { %5749 = vst [vmem:[#allocation3 + $0xbc8] sm:$0xf] %v5748_v30  ;;  %5751 = vst [vmem:[#allocation3 + $0xbcc] sm:$0xff] %v5750_v31   ;;  %v5756_v33 = vld [vmem:[%s19878_s12 + $0xbd4] sm:$0xf]  ;;  %v5806_v57 = vld [vmem:[%s19878_s12 + $0xc3c] sm:$0xff]  }
 0x2fd   :  { %5755 = vst [vmem:[#allocation3 + $0xbd4] sm:$0xf] %v5754_v32  ;;  %v5758_v34 = vld [vmem:[%s19878_s12 + $0xbf0] sm:$0xf]  ;;  %v5760_v35 = vld [vmem:[%s19878_s12 + $0xbd8] sm:$0xf] }
 0x2fe   :  { %5757 = vst [vmem:[#allocation3 + $0xbd8] sm:$0xf] %v5756_v33  ;;  %5759 = vst [vmem:[#allocation3 + $0xbdc] sm:$0xf] %v5758_v34  ;;  %v5762_v36 = vld [vmem:[%s19878_s12 + $0xbf4] sm:$0xf] }
 0x2ff   :  { %5761 = vst [vmem:[#allocation3 + $0xbe0] sm:$0xf] %v5760_v35  ;;  %v5764_v37 = vld [vmem:[%s19878_s12 + $0xbdc] sm:$0xf]  ;;  %v5766_v38 = vld [vmem:[%s19878_s12 + $0xbf8] sm:$0xf] }
 0x300   :  { %5763 = vst [vmem:[#allocation3 + $0xbe4] sm:$0xf] %v5762_v36  ;;  %5765 = vst [vmem:[#allocation3 + $0xbe8] sm:$0xf] %v5764_v37  ;;  %v5768_v39 = vld [vmem:[%s19878_s12 + $0xbe0] sm:$0xf] }
 0x301   :  { %5767 = vst [vmem:[#allocation3 + $0xbec] sm:$0xf] %v5766_v38  ;;  %v5770_v40 = vld [vmem:[%s19878_s12 + $0xbfc] sm:$0xf]  ;;  %v5772_v41 = vld [vmem:[%s19878_s12 + $0xbe4] sm:$0xf] }
 0x302   :  { %5769 = vst [vmem:[#allocation3 + $0xbf0] sm:$0xf] %v5768_v39  ;;  %5771 = vst [vmem:[#allocation3 + $0xbf4] sm:$0xf] %v5770_v40  ;;  %v5774_v42 = vld [vmem:[%s19878_s12 + $0xc00] sm:$0xf] }
 0x303   :  { %5773 = vst [vmem:[#allocation3 + $0xbf8] sm:$0xf] %v5772_v41  ;;  %v5776_v43 = vld [vmem:[%s19878_s12 + $0xbe8] sm:$0xf]  ;;  %5775 = vst [vmem:[#allocation3 + $0xbfc] sm:$0xf] %v5774_v42 }
 0x304   :  { %5777 = vst [vmem:[#allocation3 + $0xc00] sm:$0xf] %v5776_v43  ;;  %5779 = vst [vmem:[#allocation3 + $0xc04] sm:$0xff] %v5778_v44   ;;  %v5782_v45 = vld [vmem:[%s19878_s12 + $0xc24] sm:$0xf]  ;;  %v5834_v6 = vld [vmem:[%s19878_s12 + $0xc74] sm:$0xff]  }
 0x305   :  { %v5784_v46 = vld [vmem:[%s19878_s12 + $0xc0c] sm:$0xf]  ;;  %v5786_v47 = vld [vmem:[%s19878_s12 + $0xc28] sm:$0xf]  ;;  %5783 = vst [vmem:[#allocation3 + $0xc0c] sm:$0xf] %v5782_v45 }
 0x306   :  { %5785 = vst [vmem:[#allocation3 + $0xc10] sm:$0xf] %v5784_v46  ;;  %5787 = vst [vmem:[#allocation3 + $0xc14] sm:$0xf] %v5786_v47  ;;  %v5788_v48 = vld [vmem:[%s19878_s12 + $0xc10] sm:$0xf] }
 0x307   :  { %v5790_v49 = vld [vmem:[%s19878_s12 + $0xc2c] sm:$0xf]  ;;  %v5792_v50 = vld [vmem:[%s19878_s12 + $0xc14] sm:$0xf]  ;;  %5789 = vst [vmem:[#allocation3 + $0xc18] sm:$0xf] %v5788_v48 }
 0x308   :  { %5791 = vst [vmem:[#allocation3 + $0xc1c] sm:$0xf] %v5790_v49  ;;  %5793 = vst [vmem:[#allocation3 + $0xc20] sm:$0xf] %v5792_v50  ;;  %v5794_v51 = vld [vmem:[%s19878_s12 + $0xc30] sm:$0xf] }
 0x309   :  { %v5796_v52 = vld [vmem:[%s19878_s12 + $0xc18] sm:$0xf]  ;;  %v5798_v53 = vld [vmem:[%s19878_s12 + $0xc34] sm:$0xf]  ;;  %5795 = vst [vmem:[#allocation3 + $0xc24] sm:$0xf] %v5794_v51 }
 0x30a   :  { %5797 = vst [vmem:[#allocation3 + $0xc28] sm:$0xf] %v5796_v52  ;;  %5799 = vst [vmem:[#allocation3 + $0xc2c] sm:$0xf] %v5798_v53  ;;  %v5800_v54 = vld [vmem:[%s19878_s12 + $0xc1c] sm:$0xf] }
 0x30b   :  { %v5802_v55 = vld [vmem:[%s19878_s12 + $0xc38] sm:$0xf]  ;;  %v5804_v56 = vld [vmem:[%s19878_s12 + $0xc20] sm:$0xf]  ;;  %5801 = vst [vmem:[#allocation3 + $0xc30] sm:$0xf] %v5800_v54 }
 0x30c   :  { %5803 = vst [vmem:[#allocation3 + $0xc34] sm:$0xf] %v5802_v55  ;;  %5805 = vst [vmem:[#allocation3 + $0xc38] sm:$0xf] %v5804_v56  ;;  %v5810_v58 = vld [vmem:[%s19878_s12 + $0xc5c] sm:$0xf] }
 0x30d   :  { %v5812_v59 = vld [vmem:[%s19878_s12 + $0xc44] sm:$0xf]  ;;  %5807 = vst [vmem:[#allocation3 + $0xc3c] sm:$0xff] %v5806_v57   ;;  %5811 = vst [vmem:[#allocation3 + $0xc44] sm:$0xf] %v5810_v58  ;;  %v5862_v19 = vld [vmem:[%s19878_s12 + $0xcac] sm:$0xff]  }
 0x30e   :  { %5813 = vst [vmem:[#allocation3 + $0xc48] sm:$0xf] %v5812_v59  ;;  %v5814_v60 = vld [vmem:[%s19878_s12 + $0xc60] sm:$0xf]  ;;  %v5816_v61 = vld [vmem:[%s19878_s12 + $0xc48] sm:$0xf] }
 0x30f   :  { %v5818_v62 = vld [vmem:[%s19878_s12 + $0xc64] sm:$0xf]  ;;  %5815 = vst [vmem:[#allocation3 + $0xc4c] sm:$0xf] %v5814_v60  ;;  %5817 = vst [vmem:[#allocation3 + $0xc50] sm:$0xf] %v5816_v61 }
 0x310   :  { %5819 = vst [vmem:[#allocation3 + $0xc54] sm:$0xf] %v5818_v62  ;;  %v5820_v63 = vld [vmem:[%s19878_s12 + $0xc4c] sm:$0xf]  ;;  %v5822_v0 = vld [vmem:[%s19878_s12 + $0xc68] sm:$0xf] }
 0x311   :  { %v5824_v1 = vld [vmem:[%s19878_s12 + $0xc50] sm:$0xf]  ;;  %5821 = vst [vmem:[#allocation3 + $0xc58] sm:$0xf] %v5820_v63  ;;  %5823 = vst [vmem:[#allocation3 + $0xc5c] sm:$0xf] %v5822_v0 }
 0x312   :  { %5825 = vst [vmem:[#allocation3 + $0xc60] sm:$0xf] %v5824_v1  ;;  %v5826_v2 = vld [vmem:[%s19878_s12 + $0xc6c] sm:$0xf]  ;;  %v5828_v3 = vld [vmem:[%s19878_s12 + $0xc54] sm:$0xf] }
 0x313   :  { %v5830_v4 = vld [vmem:[%s19878_s12 + $0xc70] sm:$0xf]  ;;  %5827 = vst [vmem:[#allocation3 + $0xc64] sm:$0xf] %v5826_v2  ;;  %5829 = vst [vmem:[#allocation3 + $0xc68] sm:$0xf] %v5828_v3 }
 0x314   :  { %5831 = vst [vmem:[#allocation3 + $0xc6c] sm:$0xf] %v5830_v4  ;;  %v5832_v5 = vld [vmem:[%s19878_s12 + $0xc58] sm:$0xf]  ;;  %v5838_v7 = vld [vmem:[%s19878_s12 + $0xc94] sm:$0xf] }
 0x315   :  { %5833 = vst [vmem:[#allocation3 + $0xc70] sm:$0xf] %v5832_v5  ;;  %5835 = vst [vmem:[#allocation3 + $0xc74] sm:$0xff] %v5834_v6   ;;  %v5840_v8 = vld [vmem:[%s19878_s12 + $0xc7c] sm:$0xf]  ;;  %v5890_v32 = vld [vmem:[%s19878_s12 + $0xce4] sm:$0xff]  }
 0x316   :  { %5839 = vst [vmem:[#allocation3 + $0xc7c] sm:$0xf] %v5838_v7  ;;  %v5842_v9 = vld [vmem:[%s19878_s12 + $0xc98] sm:$0xf]  ;;  %v5844_v10 = vld [vmem:[%s19878_s12 + $0xc80] sm:$0xf] }
 0x317   :  { %5841 = vst [vmem:[#allocation3 + $0xc80] sm:$0xf] %v5840_v8  ;;  %5843 = vst [vmem:[#allocation3 + $0xc84] sm:$0xf] %v5842_v9  ;;  %v5846_v11 = vld [vmem:[%s19878_s12 + $0xc9c] sm:$0xf] }
 0x318   :  { %5845 = vst [vmem:[#allocation3 + $0xc88] sm:$0xf] %v5844_v10  ;;  %v5848_v12 = vld [vmem:[%s19878_s12 + $0xc84] sm:$0xf]  ;;  %v5850_v13 = vld [vmem:[%s19878_s12 + $0xca0] sm:$0xf] }
 0x319   :  { %5847 = vst [vmem:[#allocation3 + $0xc8c] sm:$0xf] %v5846_v11  ;;  %5849 = vst [vmem:[#allocation3 + $0xc90] sm:$0xf] %v5848_v12  ;;  %v5852_v14 = vld [vmem:[%s19878_s12 + $0xc88] sm:$0xf] }
 0x31a   :  { %5851 = vst [vmem:[#allocation3 + $0xc94] sm:$0xf] %v5850_v13  ;;  %v5854_v15 = vld [vmem:[%s19878_s12 + $0xca4] sm:$0xf]  ;;  %v5856_v16 = vld [vmem:[%s19878_s12 + $0xc8c] sm:$0xf] }
 0x31b   :  { %5853 = vst [vmem:[#allocation3 + $0xc98] sm:$0xf] %v5852_v14  ;;  %5855 = vst [vmem:[#allocation3 + $0xc9c] sm:$0xf] %v5854_v15  ;;  %v5858_v17 = vld [vmem:[%s19878_s12 + $0xca8] sm:$0xf] }
 0x31c   :  { %5857 = vst [vmem:[#allocation3 + $0xca0] sm:$0xf] %v5856_v16  ;;  %v5860_v18 = vld [vmem:[%s19878_s12 + $0xc90] sm:$0xf]  ;;  %5859 = vst [vmem:[#allocation3 + $0xca4] sm:$0xf] %v5858_v17 }
 0x31d   :  { %5861 = vst [vmem:[#allocation3 + $0xca8] sm:$0xf] %v5860_v18  ;;  %5863 = vst [vmem:[#allocation3 + $0xcac] sm:$0xff] %v5862_v19   ;;  %v5866_v20 = vld [vmem:[%s19878_s12 + $0xccc] sm:$0xf]  ;;  %v5918_v45 = vld [vmem:[%s19878_s12 + $0xd1c] sm:$0xff]  }
 0x31e   :  { %v5868_v21 = vld [vmem:[%s19878_s12 + $0xcb4] sm:$0xf]  ;;  %v5870_v22 = vld [vmem:[%s19878_s12 + $0xcd0] sm:$0xf]  ;;  %5867 = vst [vmem:[#allocation3 + $0xcb4] sm:$0xf] %v5866_v20 }
 0x31f   :  { %5869 = vst [vmem:[#allocation3 + $0xcb8] sm:$0xf] %v5868_v21  ;;  %5871 = vst [vmem:[#allocation3 + $0xcbc] sm:$0xf] %v5870_v22  ;;  %v5872_v23 = vld [vmem:[%s19878_s12 + $0xcb8] sm:$0xf] }
 0x320   :  { %v5874_v24 = vld [vmem:[%s19878_s12 + $0xcd4] sm:$0xf]  ;;  %v5876_v25 = vld [vmem:[%s19878_s12 + $0xcbc] sm:$0xf]  ;;  %5873 = vst [vmem:[#allocation3 + $0xcc0] sm:$0xf] %v5872_v23 }
 0x321   :  { %5875 = vst [vmem:[#allocation3 + $0xcc4] sm:$0xf] %v5874_v24  ;;  %5877 = vst [vmem:[#allocation3 + $0xcc8] sm:$0xf] %v5876_v25  ;;  %v5878_v26 = vld [vmem:[%s19878_s12 + $0xcd8] sm:$0xf] }
 0x322   :  { %v5880_v27 = vld [vmem:[%s19878_s12 + $0xcc0] sm:$0xf]  ;;  %v5882_v28 = vld [vmem:[%s19878_s12 + $0xcdc] sm:$0xf]  ;;  %5879 = vst [vmem:[#allocation3 + $0xccc] sm:$0xf] %v5878_v26 }
 0x323   :  { %5881 = vst [vmem:[#allocation3 + $0xcd0] sm:$0xf] %v5880_v27  ;;  %5883 = vst [vmem:[#allocation3 + $0xcd4] sm:$0xf] %v5882_v28  ;;  %v5884_v29 = vld [vmem:[%s19878_s12 + $0xcc4] sm:$0xf] }
 0x324   :  { %v5886_v30 = vld [vmem:[%s19878_s12 + $0xce0] sm:$0xf]  ;;  %v5888_v31 = vld [vmem:[%s19878_s12 + $0xcc8] sm:$0xf]  ;;  %5885 = vst [vmem:[#allocation3 + $0xcd8] sm:$0xf] %v5884_v29 }
 0x325   :  { %5887 = vst [vmem:[#allocation3 + $0xcdc] sm:$0xf] %v5886_v30  ;;  %5889 = vst [vmem:[#allocation3 + $0xce0] sm:$0xf] %v5888_v31  ;;  %v5894_v33 = vld [vmem:[%s19878_s12 + $0xd04] sm:$0xf] }
 0x326   :  { %v5896_v34 = vld [vmem:[%s19878_s12 + $0xcec] sm:$0xf]  ;;  %5891 = vst [vmem:[#allocation3 + $0xce4] sm:$0xff] %v5890_v32   ;;  %5895 = vst [vmem:[#allocation3 + $0xcec] sm:$0xf] %v5894_v33  ;;  %v5946_v58 = vld [vmem:[%s19878_s12 + $0xd54] sm:$0xff]  }
 0x327   :  { %5897 = vst [vmem:[#allocation3 + $0xcf0] sm:$0xf] %v5896_v34  ;;  %v5898_v35 = vld [vmem:[%s19878_s12 + $0xd08] sm:$0xf]  ;;  %v5900_v36 = vld [vmem:[%s19878_s12 + $0xcf0] sm:$0xf] }
 0x328   :  { %v5902_v37 = vld [vmem:[%s19878_s12 + $0xd0c] sm:$0xf]  ;;  %5899 = vst [vmem:[#allocation3 + $0xcf4] sm:$0xf] %v5898_v35  ;;  %5901 = vst [vmem:[#allocation3 + $0xcf8] sm:$0xf] %v5900_v36 }
 0x329   :  { %5903 = vst [vmem:[#allocation3 + $0xcfc] sm:$0xf] %v5902_v37  ;;  %v5904_v38 = vld [vmem:[%s19878_s12 + $0xcf4] sm:$0xf]  ;;  %v5906_v39 = vld [vmem:[%s19878_s12 + $0xd10] sm:$0xf] }
 0x32a   :  { %v5908_v40 = vld [vmem:[%s19878_s12 + $0xcf8] sm:$0xf]  ;;  %5905 = vst [vmem:[#allocation3 + $0xd00] sm:$0xf] %v5904_v38  ;;  %5907 = vst [vmem:[#allocation3 + $0xd04] sm:$0xf] %v5906_v39 }
 0x32b   :  { %5909 = vst [vmem:[#allocation3 + $0xd08] sm:$0xf] %v5908_v40  ;;  %v5910_v41 = vld [vmem:[%s19878_s12 + $0xd14] sm:$0xf]  ;;  %v5912_v42 = vld [vmem:[%s19878_s12 + $0xcfc] sm:$0xf] }
 0x32c   :  { %v5914_v43 = vld [vmem:[%s19878_s12 + $0xd18] sm:$0xf]  ;;  %5911 = vst [vmem:[#allocation3 + $0xd0c] sm:$0xf] %v5910_v41  ;;  %5913 = vst [vmem:[#allocation3 + $0xd10] sm:$0xf] %v5912_v42 }
 0x32d   :  { %5915 = vst [vmem:[#allocation3 + $0xd14] sm:$0xf] %v5914_v43  ;;  %v5916_v44 = vld [vmem:[%s19878_s12 + $0xd00] sm:$0xf]  ;;  %v5922_v46 = vld [vmem:[%s19878_s12 + $0xd3c] sm:$0xf] }
 0x32e   :  { %5917 = vst [vmem:[#allocation3 + $0xd18] sm:$0xf] %v5916_v44  ;;  %5919 = vst [vmem:[#allocation3 + $0xd1c] sm:$0xff] %v5918_v45   ;;  %v5924_v47 = vld [vmem:[%s19878_s12 + $0xd24] sm:$0xf]  ;;  %v5974_v7 = vld [vmem:[%s19878_s12 + $0xd8c] sm:$0xff]  }
 0x32f   :  { %5923 = vst [vmem:[#allocation3 + $0xd24] sm:$0xf] %v5922_v46  ;;  %v5926_v48 = vld [vmem:[%s19878_s12 + $0xd40] sm:$0xf]  ;;  %v5928_v49 = vld [vmem:[%s19878_s12 + $0xd28] sm:$0xf] }
 0x330   :  { %5925 = vst [vmem:[#allocation3 + $0xd28] sm:$0xf] %v5924_v47  ;;  %5927 = vst [vmem:[#allocation3 + $0xd2c] sm:$0xf] %v5926_v48  ;;  %v5930_v50 = vld [vmem:[%s19878_s12 + $0xd44] sm:$0xf] }
 0x331   :  { %5929 = vst [vmem:[#allocation3 + $0xd30] sm:$0xf] %v5928_v49  ;;  %v5932_v51 = vld [vmem:[%s19878_s12 + $0xd2c] sm:$0xf]  ;;  %v5934_v52 = vld [vmem:[%s19878_s12 + $0xd48] sm:$0xf] }
 0x332   :  { %5931 = vst [vmem:[#allocation3 + $0xd34] sm:$0xf] %v5930_v50  ;;  %5933 = vst [vmem:[#allocation3 + $0xd38] sm:$0xf] %v5932_v51  ;;  %v5936_v53 = vld [vmem:[%s19878_s12 + $0xd30] sm:$0xf] }
 0x333   :  { %5935 = vst [vmem:[#allocation3 + $0xd3c] sm:$0xf] %v5934_v52  ;;  %v5938_v54 = vld [vmem:[%s19878_s12 + $0xd4c] sm:$0xf]  ;;  %v5940_v55 = vld [vmem:[%s19878_s12 + $0xd34] sm:$0xf] }
 0x334   :  { %5937 = vst [vmem:[#allocation3 + $0xd40] sm:$0xf] %v5936_v53  ;;  %5939 = vst [vmem:[#allocation3 + $0xd44] sm:$0xf] %v5938_v54  ;;  %v5942_v56 = vld [vmem:[%s19878_s12 + $0xd50] sm:$0xf] }
 0x335   :  { %5941 = vst [vmem:[#allocation3 + $0xd48] sm:$0xf] %v5940_v55  ;;  %v5944_v57 = vld [vmem:[%s19878_s12 + $0xd38] sm:$0xf]  ;;  %5943 = vst [vmem:[#allocation3 + $0xd4c] sm:$0xf] %v5942_v56 }
 0x336   :  { %5945 = vst [vmem:[#allocation3 + $0xd50] sm:$0xf] %v5944_v57  ;;  %5947 = vst [vmem:[#allocation3 + $0xd54] sm:$0xff] %v5946_v58   ;;  %v5950_v59 = vld [vmem:[%s19878_s12 + $0xd74] sm:$0xf]  ;;  %v6002_v20 = vld [vmem:[%s19878_s12 + $0xdc4] sm:$0xff]  }
 0x337   :  { %v5952_v60 = vld [vmem:[%s19878_s12 + $0xd5c] sm:$0xf]  ;;  %v5954_v61 = vld [vmem:[%s19878_s12 + $0xd78] sm:$0xf]  ;;  %5951 = vst [vmem:[#allocation3 + $0xd5c] sm:$0xf] %v5950_v59 }
 0x338   :  { %5953 = vst [vmem:[#allocation3 + $0xd60] sm:$0xf] %v5952_v60  ;;  %5955 = vst [vmem:[#allocation3 + $0xd64] sm:$0xf] %v5954_v61  ;;  %v5956_v62 = vld [vmem:[%s19878_s12 + $0xd60] sm:$0xf] }
 0x339   :  { %v5958_v63 = vld [vmem:[%s19878_s12 + $0xd7c] sm:$0xf]  ;;  %v5960_v0 = vld [vmem:[%s19878_s12 + $0xd64] sm:$0xf]  ;;  %5957 = vst [vmem:[#allocation3 + $0xd68] sm:$0xf] %v5956_v62 }
 0x33a   :  { %5959 = vst [vmem:[#allocation3 + $0xd6c] sm:$0xf] %v5958_v63  ;;  %5961 = vst [vmem:[#allocation3 + $0xd70] sm:$0xf] %v5960_v0  ;;  %v5962_v1 = vld [vmem:[%s19878_s12 + $0xd80] sm:$0xf] }
 0x33b   :  { %v5964_v2 = vld [vmem:[%s19878_s12 + $0xd68] sm:$0xf]  ;;  %v5966_v3 = vld [vmem:[%s19878_s12 + $0xd84] sm:$0xf]  ;;  %5963 = vst [vmem:[#allocation3 + $0xd74] sm:$0xf] %v5962_v1 }
 0x33c   :  { %5965 = vst [vmem:[#allocation3 + $0xd78] sm:$0xf] %v5964_v2  ;;  %5967 = vst [vmem:[#allocation3 + $0xd7c] sm:$0xf] %v5966_v3  ;;  %v5968_v4 = vld [vmem:[%s19878_s12 + $0xd6c] sm:$0xf] }
 0x33d   :  { %v5970_v5 = vld [vmem:[%s19878_s12 + $0xd88] sm:$0xf]  ;;  %v5972_v6 = vld [vmem:[%s19878_s12 + $0xd70] sm:$0xf]  ;;  %5969 = vst [vmem:[#allocation3 + $0xd80] sm:$0xf] %v5968_v4 }
 0x33e   :  { %5971 = vst [vmem:[#allocation3 + $0xd84] sm:$0xf] %v5970_v5  ;;  %5973 = vst [vmem:[#allocation3 + $0xd88] sm:$0xf] %v5972_v6  ;;  %v5978_v8 = vld [vmem:[%s19878_s12 + $0xdac] sm:$0xf] }
 0x33f   :  { %v5980_v9 = vld [vmem:[%s19878_s12 + $0xd94] sm:$0xf]  ;;  %5975 = vst [vmem:[#allocation3 + $0xd8c] sm:$0xff] %v5974_v7   ;;  %5979 = vst [vmem:[#allocation3 + $0xd94] sm:$0xf] %v5978_v8 }
 0x340   :  { %5981 = vst [vmem:[#allocation3 + $0xd98] sm:$0xf] %v5980_v9  ;;  %v5982_v10 = vld [vmem:[%s19878_s12 + $0xdb0] sm:$0xf]  ;;  %v5984_v11 = vld [vmem:[%s19878_s12 + $0xd98] sm:$0xf] }
 0x341   :  { %v5986_v12 = vld [vmem:[%s19878_s12 + $0xdb4] sm:$0xf]  ;;  %5983 = vst [vmem:[#allocation3 + $0xd9c] sm:$0xf] %v5982_v10  ;;  %5985 = vst [vmem:[#allocation3 + $0xda0] sm:$0xf] %v5984_v11 }
 0x342   :  { %5987 = vst [vmem:[#allocation3 + $0xda4] sm:$0xf] %v5986_v12  ;;  %v5988_v13 = vld [vmem:[%s19878_s12 + $0xd9c] sm:$0xf]  ;;  %v5990_v14 = vld [vmem:[%s19878_s12 + $0xdb8] sm:$0xf] }
 0x343   :  { %v5992_v15 = vld [vmem:[%s19878_s12 + $0xda0] sm:$0xf]  ;;  %5989 = vst [vmem:[#allocation3 + $0xda8] sm:$0xf] %v5988_v13  ;;  %5991 = vst [vmem:[#allocation3 + $0xdac] sm:$0xf] %v5990_v14 }
 0x344   :  { %5993 = vst [vmem:[#allocation3 + $0xdb0] sm:$0xf] %v5992_v15  ;;  %v5994_v16 = vld [vmem:[%s19878_s12 + $0xdbc] sm:$0xf]  ;;  %v5996_v17 = vld [vmem:[%s19878_s12 + $0xda4] sm:$0xf] }
 0x345   :  { %v5998_v18 = vld [vmem:[%s19878_s12 + $0xdc0] sm:$0xf]  ;;  %5995 = vst [vmem:[#allocation3 + $0xdb4] sm:$0xf] %v5994_v16  ;;  %5997 = vst [vmem:[#allocation3 + $0xdb8] sm:$0xf] %v5996_v17 }
 0x346   :  { %5999 = vst [vmem:[#allocation3 + $0xdbc] sm:$0xf] %v5998_v18  ;;  %v6000_v19 = vld [vmem:[%s19878_s12 + $0xda8] sm:$0xf]  ;;  %v6006_v21 = vld [vmem:[%s19878_s12 + $0xde4] sm:$0xf] }
 0x347   :  { %6001 = vst [vmem:[#allocation3 + $0xdc0] sm:$0xf] %v6000_v19  ;;  %6003 = vst [vmem:[#allocation3 + $0xdc4] sm:$0xff] %v6002_v20   ;;  %v6008_v22 = vld [vmem:[%s19878_s12 + $0xdcc] sm:$0xf] }
 0x348   :  { %6007 = vst [vmem:[#allocation3 + $0xdcc] sm:$0xf] %v6006_v21  ;;  %v6010_v23 = vld [vmem:[%s19878_s12 + $0xde8] sm:$0xf]  ;;  %v6012_v24 = vld [vmem:[%s19878_s12 + $0xdd0] sm:$0xf] }
 0x349   :  { %6009 = vst [vmem:[#allocation3 + $0xdd0] sm:$0xf] %v6008_v22  ;;  %6011 = vst [vmem:[#allocation3 + $0xdd4] sm:$0xf] %v6010_v23  ;;  %v6014_v25 = vld [vmem:[%s19878_s12 + $0xdec] sm:$0xf] }
 0x34a   :  { %6013 = vst [vmem:[#allocation3 + $0xdd8] sm:$0xf] %v6012_v24  ;;  %v6016_v26 = vld [vmem:[%s19878_s12 + $0xdd4] sm:$0xf]  ;;  %v6018_v27 = vld [vmem:[%s19878_s12 + $0xdf0] sm:$0xf] }
 0x34b   :  { %6015 = vst [vmem:[#allocation3 + $0xddc] sm:$0xf] %v6014_v25  ;;  %6017 = vst [vmem:[#allocation3 + $0xde0] sm:$0xf] %v6016_v26  ;;  %v6020_v28 = vld [vmem:[%s19878_s12 + $0xdd8] sm:$0xf] }
 0x34c   :  { %6019 = vst [vmem:[#allocation3 + $0xde4] sm:$0xf] %v6018_v27  ;;  %v6022_v29 = vld [vmem:[%s19878_s12 + $0xdf4] sm:$0xf]  ;;  %v6024_v30 = vld [vmem:[%s19878_s12 + $0xddc] sm:$0xf] }
 0x34d   :  { %6021 = vst [vmem:[#allocation3 + $0xde8] sm:$0xf] %v6020_v28  ;;  %6023 = vst [vmem:[#allocation3 + $0xdec] sm:$0xf] %v6022_v29  ;;  %v6026_v31 = vld [vmem:[%s19878_s12 + $0xdf8] sm:$0xf] }
 0x34e   :  { %6025 = vst [vmem:[#allocation3 + $0xdf0] sm:$0xf] %v6024_v30  ;;  %v6028_v32 = vld [vmem:[%s19878_s12 + $0xde0] sm:$0xf]  ;;  %v6030_v33 = vld [vmem:[%s19878_s12 + $0xdfc] sm:$0xf] }
 0x34f   :  { %6027 = vst [vmem:[#allocation3 + $0xdf4] sm:$0xf] %v6026_v31  ;;  %6029 = vst [vmem:[#allocation3 + $0xdf8] sm:$0xf] %v6028_v32 }
 0x350   :  { %6031 = vst [vmem:[#allocation3 + $0xdfc] sm:$0xf] %v6030_v33 }
 0x351   :  { %11471 = vsyncadd [#allocation4 + $0x1], 57344  ;;  %v15031_v34 = vld [vmem:[%s19867_s1] sm:$0xff]   ;;  %v15228_v35 = vmov 0.0   ;;  %v15032_v36 = vld [vmem:[%s19867_s1 + $0x8] sm:$0xff]   ;;  %vm15229_vm0 = vmmov 0  }
 0x352   :  { %14950 = vmatprep.subr.bf16.mxu0 %v15228_v35  ;;  %14964 = vmatprep.mubr.msk.bf16.mxu0 %vm15229_vm0, %v15228_v35  ;;  %v15033_v37 = vld [vmem:[%s19867_s1 + $0x10] sm:$0xff]   ;;  %v15038_v38 = vld [vmem:[%s19869_s3 + $0x4] ss:$8 sps:$4 sm:$0xff]   ;;  %v15040_v39 = vld [vmem:[%s19869_s3] ss:$8 sps:$4 sm:$0xff]   ;;  %vm11537_vm1 = vcmask 1041408  }
 0x353   :  { %14951 = vmatpush3.bf16.msra.mxu0 %v15031_v34  ;;  %v15041_v40 = vld [vmem:[%s19869_s3 + $0x14] ss:$8 sps:$4 sm:$0xff]   ;;  %11680 = vmatprep.subr.bf16.mxu1 %v15038_v38  ;;  %v15043_v42 = vld [vmem:[%s19869_s3 + $0x10] ss:$8 sps:$4 sm:$0xff]   ;;  %v15044_v43 = vld [vmem:[%s19869_s3 + $0x24] ss:$8 sps:$4 sm:$0xff]  }
 0x354   :  { %14952 = vmatprep.subr.bf16.mxu0 %v15228_v35  ;;  %v15034_v41 = vld [vmem:[%s19867_s1 + $0x18] sm:$0xff]   ;;  %11681 = vmatpush1.bf16.msra.mxu1 %v15040_v39  ;;  %v15035_v44 = vld [vmem:[%s19867_s1 + $0x20] sm:$0xff]   ;;  %v15036_v47 = vld [vmem:[%s19867_s1 + $0x28] sm:$0xff]   ;;  %vm11533_vm2 = vcmask 818176   ;;  %v15230_v61 = vmov 0  }
 0x355   :  { %11682 = vmatprep.subr.bf16.mxu1 %v15041_v40  ;;  %v15046_v45 = vld [vmem:[%s19869_s3 + $0x20] ss:$8 sps:$4 sm:$0xff]   ;;  %v15047_v46 = vld [vmem:[%s19869_s3 + $0x34] ss:$8 sps:$4 sm:$0xff]   ;;  %v15049_v49 = vld [vmem:[%s19869_s3 + $0x30] ss:$8 sps:$4 sm:$0xff]   ;;  %11712 = vmatprep.mubr.bf16.mxu1 %v15230_v61 }
 0x356   :  { %v15037_v48 = vld [vmem:[%s19867_s1 + $0x30] ss:$0 sps:$4 sm:$0x33]   ;;  %v15050_v50 = vld [vmem:[%s19869_s3 + $0x44] ss:$8 sps:$4 sm:$0xff]  }
 0x357   :  { %14953 = vmatpush3.bf16.msra.mxu0 %v15032_v36  ;;  %v11472_v51 = vld [vmem:[%s19866_s0] sm:$0xff]  ;;  %v15053_v53 = vld [vmem:[%s19869_s3 + $0x54] ss:$8 sps:$4 sm:$0xff]   ;;  %v11539_v54 = vsel %vm11537_vm1, %v15037_v48, 0  ;;  %v15055_v56 = vld [vmem:[%s19869_s3 + $0x50] ss:$8 sps:$4 sm:$0xff]  }
 0x358   :  { %14954 = vmatprep.subr.bf16.mxu0 %v15228_v35  ;;  %11683 = vmatpush1.bf16.msra.mxu1 %v15043_v42  ;;  %v15052_v52 = vld [vmem:[%s19869_s3 + $0x40] ss:$8 sps:$4 sm:$0xff]   ;;  %v11486_v55 = vpack.c.bf16 %v11472_v51, %v11472_v51  ;;  %v15056_v57 = vld [vmem:[%s19869_s3 + $0x64] ss:$8 sps:$4 sm:$0xff]   ;;  %v15059_v59 = vld [vmem:[%s19869_s3 + $0x74] ss:$8 sps:$4 sm:$0xff]  }
 0x359   :  { %11684 = vmatprep.subr.bf16.mxu1 %v15044_v43  ;;  %v15058_v58 = vld [vmem:[%s19869_s3 + $0x60] ss:$8 sps:$4 sm:$0xff]   ;;  %v15061_v60 = vld [vmem:[%s19869_s3 + $0x70] ss:$8 sps:$4 sm:$0xff]   ;;  %v15064_v7 = vld [vmem:[%s19872_s6 + $0x4] ss:$16 sps:$4 sm:$0xff]  }
 0x35a   :  { %v14763_v62 = vld [vmem:[%s19868_s2] ss:$0 sm:$0xff]  ;;  %v15067_v9 = vld [vmem:[%s19872_s6 + $0x24] ss:$16 sps:$4 sm:$0xff]   ;;  %v15112_v39 = vld [vmem:[%s19872_s6 + $0xc] ss:$16 sps:$4 sm:$0xff]  }
 0x35b   :  { %14955 = vmatpush3.bf16.msra.mxu0 %v15033_v37  ;;  %v15062_v8 = vld [vmem:[%s19872_s6] ss:$16 sps:$4 sm:$0xff]   ;;  %v15070_v11 = vld [vmem:[%s19872_s6 + $0x44] ss:$16 sps:$4 sm:$0xff]  }
 0x35c   :  { %14956 = vmatprep.subr.bf16.mxu0 %v15228_v35  ;;  %11685 = vmatpush1.bf16.msra.mxu1 %v15046_v45  ;;  %v15065_v10 = vld [vmem:[%s19872_s6 + $0x20] ss:$16 sps:$4 sm:$0xff]   ;;  %v15073_v13 = vld [vmem:[%s19872_s6 + $0x64] ss:$16 sps:$4 sm:$0xff]  }
 0x35d   :  { %11686 = vmatprep.subr.bf16.mxu1 %v15047_v46  ;;  %v15068_v12 = vld [vmem:[%s19872_s6 + $0x40] ss:$16 sps:$4 sm:$0xff]   ;;  %v15076_v15 = vld [vmem:[%s19872_s6 + $0x84] ss:$16 sps:$4 sm:$0xff]  }
 0x35e   :  { %v15071_v14 = vld [vmem:[%s19872_s6 + $0x60] ss:$16 sps:$4 sm:$0xff]   ;;  %v15079_v17 = vld [vmem:[%s19872_s6 + $0xa4] ss:$16 sps:$4 sm:$0xff]  }
 0x35f   :  { %14957 = vmatpush3.bf16.msra.mxu0 %v15034_v41  ;;  %v15074_v16 = vld [vmem:[%s19872_s6 + $0x80] ss:$16 sps:$4 sm:$0xff]   ;;  %v15082_v19 = vld [vmem:[%s19872_s6 + $0xc4] ss:$16 sps:$4 sm:$0xff]  }
 0x360   :  { %14958 = vmatprep.subr.bf16.mxu0 %v15228_v35  ;;  %11687 = vmatpush1.bf16.msra.mxu1 %v15049_v49  ;;  %v15077_v18 = vld [vmem:[%s19872_s6 + $0xa0] ss:$16 sps:$4 sm:$0xff]   ;;  %v15085_v21 = vld [vmem:[%s19872_s6 + $0xe4] ss:$16 sps:$4 sm:$0xff]  }
 0x361   :  { %11688 = vmatprep.subr.bf16.mxu1 %v15050_v50  ;;  %v15080_v20 = vld [vmem:[%s19872_s6 + $0xc0] ss:$16 sps:$4 sm:$0xff]   ;;  %v15088_v23 = vld [vmem:[%s19872_s6 + $0x104] ss:$16 sps:$4 sm:$0xff]  }
 0x362   :  { %v15083_v22 = vld [vmem:[%s19872_s6 + $0xe0] ss:$16 sps:$4 sm:$0xff]   ;;  %v15091_v25 = vld [vmem:[%s19872_s6 + $0x124] ss:$16 sps:$4 sm:$0xff]  }
 0x363   :  { %14959 = vmatpush3.bf16.msra.mxu0 %v15035_v44  ;;  %v15086_v24 = vld [vmem:[%s19872_s6 + $0x100] ss:$16 sps:$4 sm:$0xff]   ;;  %v15094_v27 = vld [vmem:[%s19872_s6 + $0x144] ss:$16 sps:$4 sm:$0xff]  }
 0x364   :  { %14960 = vmatprep.subr.bf16.mxu0 %v15228_v35  ;;  %11689 = vmatpush1.bf16.msra.mxu1 %v15052_v52  ;;  %v15089_v26 = vld [vmem:[%s19872_s6 + $0x120] ss:$16 sps:$4 sm:$0xff]   ;;  %v15097_v29 = vld [vmem:[%s19872_s6 + $0x164] ss:$16 sps:$4 sm:$0xff]  }
 0x365   :  { %11690 = vmatprep.subr.bf16.mxu1 %v15053_v53  ;;  %v15092_v28 = vld [vmem:[%s19872_s6 + $0x140] ss:$16 sps:$4 sm:$0xff]   ;;  %v15100_v31 = vld [vmem:[%s19872_s6 + $0x184] ss:$16 sps:$4 sm:$0xff]  }
 0x366   :  { %v15095_v30 = vld [vmem:[%s19872_s6 + $0x160] ss:$16 sps:$4 sm:$0xff]   ;;  %v15103_v33 = vld [vmem:[%s19872_s6 + $0x1a4] ss:$16 sps:$4 sm:$0xff]  }
 0x367   :  { %14961 = vmatpush3.bf16.msra.mxu0 %v15036_v47  ;;  %v15098_v32 = vld [vmem:[%s19872_s6 + $0x180] ss:$16 sps:$4 sm:$0xff]   ;;  %v15109_v37 = vld [vmem:[%s19872_s6 + $0x1e4] ss:$16 sps:$4 sm:$0xff]  }
 0x368   :  { %14962 = vmatprep.subr.bf16.mxu0 %v15228_v35  ;;  %11691 = vmatpush1.bf16.msra.mxu1 %v15055_v56  ;;  %v15101_v34 = vld [vmem:[%s19872_s6 + $0x1a0] ss:$16 sps:$4 sm:$0xff]   ;;  %v15106_v35 = vld [vmem:[%s19872_s6 + $0x1c4] ss:$16 sps:$4 sm:$0xff]  }
 0x369   :  { %11692 = vmatprep.subr.bf16.mxu1 %v15056_v57  ;;  %v15104_v36 = vld [vmem:[%s19872_s6 + $0x1c0] ss:$16 sps:$4 sm:$0xff]  }
 0x36a   :  { %v15107_v38 = vld [vmem:[%s19872_s6 + $0x1e0] ss:$16 sps:$4 sm:$0xff]  }
 0x36b   :  { %14963 = vmatpush3.bf16.msra.mxu0 %v11539_v54 }
 0x36c   :  { %11693 = vmatpush1.bf16.msra.mxu1 %v15058_v58 }
 0x36d   :  { %11694 = vmatprep.subr.bf16.mxu1 %v15059_v59 }
 0x36e   :  { %14965 = vmatmul.mubr.msk.bf16.vlgmr.msra.gmra.mrb[0].mxu0 %vm11533_vm2, %v11486_v55 }
 0x370   :  { %11695 = vmatpush1.bf16.msra.mxu1 %v15061_v60 }
 0x371   :  { %12216 = vmatprep.subr.bf16.mxu1 %v15064_v7 }
 0x441   :  { %v11575_v63 = vpop.f32.mrb[0].mxu0 }
 0x442   :  { %v11576_v0 = vadd.f32 %v14763_v62, %v11575_v63  ;;  %v14966_v1 = vpop.f32.mrb[1].mxu0 }
 0x443   :  { %v11578_v2 = vpop.f32.mrb[2].mxu0 }
 0x444   :  { %v11581_v3 = vmul.f32 0.2, %v11576_v0  ;;  %v14967_v4 = vpop.f32.mrb[3].mxu0 }
 0x446   :  { %v11582_v5 = vmax.f32 %v11576_v0, %v11581_v3 }
 0x448   :  { %v11599_v6 = vpack.c.bf16 %v11582_v5, %v11582_v5 }
 0x44a   :  { %11713 = vmatmul.mubr.bf16.vlgmr.msra.gmra.mrb[0].mxu1 %v11599_v6 }
 0x44b   :  { %12217 = vmatpush1.bf16.msra.mxu1 %v15062_v8 }
 0x44c   :  { %12218 = vmatprep.subr.bf16.mxu1 %v15067_v9 }
 0x44f   :  { %12219 = vmatpush1.bf16.msra.mxu1 %v15065_v10 }
 0x450   :  { %12220 = vmatprep.subr.bf16.mxu1 %v15070_v11 }
 0x453   :  { %12221 = vmatpush1.bf16.msra.mxu1 %v15068_v12 }
 0x454   :  { %12222 = vmatprep.subr.bf16.mxu1 %v15073_v13 }
 0x457   :  { %12223 = vmatpush1.bf16.msra.mxu1 %v15071_v14  ;;  %v15231_v14 = vmov 1966171168  }
 0x458   :  { %12224 = vmatprep.subr.bf16.mxu1 %v15076_v15  ;;  %v11764_v15 = vunpack.c.l.s4 %v15231_v14  ;;  %v15152_v14 = vld [vmem:[%s19872_s6 + $0x1c8] ss:$16 sps:$4 sm:$0xff]  }
 0x45b   :  { %12225 = vmatpush1.bf16.msra.mxu1 %v15074_v16  ;;  %v11766_v16 = vlaneseq }
 0x45c   :  { %12226 = vmatprep.subr.bf16.mxu1 %v15079_v17  ;;  %v11765_v17 = vunpack.c.0.s8 %v11764_v15  ;;  %v15157_v15 = vld [vmem:[%s19872_s6 + $0x1ec] ss:$16 sps:$4 sm:$0xff]  }
 0x45f   :  { %12227 = vmatpush1.bf16.msra.mxu1 %v15077_v18  ;;  %v19424_v18 = vshrl.u32 %v11766_v16, 7  ;;  %v15155_v16 = vld [vmem:[%s19872_s6 + $0x1e8] ss:$16 sps:$4 sm:$0xff]  }
 0x460   :  { %12228 = vmatprep.subr.bf16.mxu1 %v15082_v19 }
 0x463   :  { %12229 = vmatpush1.bf16.msra.mxu1 %v15080_v20  ;;  %v19427_v20 = vsub.s32 %v11765_v17, %v19424_v18 }
 0x464   :  { %12230 = vmatprep.subr.bf16.mxu1 %v15085_v21 }
 0x467   :  { %12231 = vmatpush1.bf16.msra.mxu1 %v15083_v22 }
 0x468   :  { %12232 = vmatprep.subr.bf16.mxu1 %v15088_v23 }
 0x46b   :  { %12233 = vmatpush1.bf16.msra.mxu1 %v15086_v24  ;;  %v11721_v24 = vld [vmem:[%s19870_s4] sm:$0x3] }
 0x46c   :  { %12234 = vmatprep.subr.bf16.mxu1 %v15091_v25 }
 0x46f   :  { %12235 = vmatpush1.bf16.msra.mxu1 %v15089_v26  ;;  %v19435_v26 = vsub.s32 0, %v19424_v18 }
 0x470   :  { %12236 = vmatprep.subr.bf16.mxu1 %v15094_v27  ;;  %v19438_v27 = vsub.s32 1, %v19424_v18 }
 0x473   :  { %12237 = vmatpush1.bf16.msra.mxu1 %v15092_v28 }
 0x474   :  { %12238 = vmatprep.subr.bf16.mxu1 %v15097_v29 }
 0x477   :  { %12239 = vmatpush1.bf16.msra.mxu1 %v15095_v30 }
 0x478   :  { %12240 = vmatprep.subr.bf16.mxu1 %v15100_v31 }
 0x47b   :  { %12241 = vmatpush1.bf16.msra.mxu1 %v15098_v32 }
 0x47c   :  { %12242 = vmatprep.subr.bf16.mxu1 %v15103_v33 }
 0x47f   :  { %12243 = vmatpush1.bf16.msra.mxu1 %v15101_v34 }
 0x480   :  { %12244 = vmatprep.subr.bf16.mxu1 %v15106_v35 }
 0x483   :  { %12245 = vmatpush1.bf16.msra.mxu1 %v15104_v36 }
 0x484   :  { %12246 = vmatprep.subr.bf16.mxu1 %v15109_v37  ;;  %v11722_v37 = vld [vmem:[%s19871_s5] sm:$0x3] }
 0x487   :  { %12247 = vmatpush1.bf16.msra.mxu1 %v15107_v38 }
 0x488   :  { %12257 = vmatprep.subr.bf16.mxu1 %v15112_v39 }
 0x51d   :  { %v11714_v40 = vpop.f32.mrb[0].mxu1 }
 0x51e   :  { %v11723_v41 = vrot.slane %v11714_v40, 4  ;;  %v11716_v42 = vpop.f32.mrb[1].mxu1 }
 0x51f   :  { %v11729_v43 = vrot.slane %v11716_v42, 4  ;;  %v11718_v44 = vpop.f32.mrb[2].mxu1 }
 0x520   :  { %v11724_v45 = vadd.f32 %v11723_v41, %v11714_v40  ;;  %v11719_v46 = vpop.f32.mrb[3].mxu1 }
 0x521   :  { %v11730_v47 = vadd.f32 %v11729_v43, %v11716_v42 }
 0x522   :  { %v11725_v48 = vrot.slane %v11724_v45, 2 }
 0x523   :  { %v11731_v49 = vrot.slane %v11730_v47, 2 }
 0x524   :  { %v11726_v50 = vadd.f32 %v11725_v48, %v11724_v45 }
 0x525   :  { %v11732_v51 = vadd.f32 %v11731_v49, %v11730_v47  ;;  %v15110_v49 = vld [vmem:[%s19872_s6 + $0x8] ss:$16 sps:$4 sm:$0xff]  }
 0x526   :  { %v11727_v52 = vrot.slane %v11726_v50, 1 }
 0x527   :  { %v11733_v53 = vrot.slane %v11732_v51, 1 }
 0x528   :  { %v11728_v54 = vadd.f32 %v11727_v52, %v11726_v50  ;;  %v15113_v52 = vld [vmem:[%s19872_s6 + $0x28] ss:$16 sps:$4 sm:$0xff]  }
 0x529   :  { %v11734_v55 = vadd.f32 %v11733_v53, %v11732_v51  ;;  %v15115_v51 = vld [vmem:[%s19872_s6 + $0x2c] ss:$16 sps:$4 sm:$0xff]  }
 0x52a   :  { %v11736_v56 = vmul.f32 0.125, %v11728_v54  ;;  %v15118_v53 = vld [vmem:[%s19872_s6 + $0x4c] ss:$16 sps:$4 sm:$0xff]   ;;  %v15116_v54 = vld [vmem:[%s19872_s6 + $0x48] ss:$16 sps:$4 sm:$0xff]  }
 0x52b   :  { %v11737_v57 = vmul.f32 0.125, %v11734_v55  ;;  %v15121_v55 = vld [vmem:[%s19872_s6 + $0x6c] ss:$16 sps:$4 sm:$0xff]  }
 0x52c   :  { %v11738_v58 = vsub.f32 %v11714_v40, %v11736_v56 }
 0x52d   :  { %v11739_v59 = vsub.f32 %v11716_v42, %v11737_v57 }
 0x52e   :  { %v11740_v60 = vmul.f32 %v11738_v58, %v11738_v58  ;;  %v15122_v58 = vld [vmem:[%s19872_s6 + $0x88] ss:$16 sps:$4 sm:$0xff]  }
 0x52f   :  { %v11741_v61 = vmul.f32 %v11739_v59, %v11739_v59  ;;  %v15127_v59 = vld [vmem:[%s19872_s6 + $0xac] ss:$16 sps:$4 sm:$0xff]  }
 0x530   :  { %v11742_v62 = vrot.slane %v11740_v60, 4 }
 0x531   :  { %v11748_v63 = vrot.slane %v11741_v61, 4 }
 0x532   :  { %v11743_v0 = vadd.f32 %v11742_v62, %v11740_v60  ;;  %v15125_v60 = vld [vmem:[%s19872_s6 + $0xa8] ss:$16 sps:$4 sm:$0xff]  }
 0x533   :  { %v11749_v1 = vadd.f32 %v11748_v63, %v11741_v61  ;;  %v15130_v61 = vld [vmem:[%s19872_s6 + $0xcc] ss:$16 sps:$4 sm:$0xff]   ;;  %v15128_v62 = vld [vmem:[%s19872_s6 + $0xc8] ss:$16 sps:$4 sm:$0xff]  }
 0x534   :  { %v11744_v2 = vrot.slane %v11743_v0, 2  ;;  %v15133_v63 = vld [vmem:[%s19872_s6 + $0xec] ss:$16 sps:$4 sm:$0xff]  }
 0x535   :  { %v11750_v3 = vrot.slane %v11749_v1, 2 }
 0x536   :  { %v11745_v4 = vadd.f32 %v11744_v2, %v11743_v0  ;;  %v15131_v0 = vld [vmem:[%s19872_s6 + $0xe8] ss:$16 sps:$4 sm:$0xff]  }
 0x537   :  { %v11751_v5 = vadd.f32 %v11750_v3, %v11749_v1  ;;  %v15136_v1 = vld [vmem:[%s19872_s6 + $0x10c] ss:$16 sps:$4 sm:$0xff]   ;;  %v15134_v2 = vld [vmem:[%s19872_s6 + $0x108] ss:$16 sps:$4 sm:$0xff]  }
 0x538   :  { %v11746_v6 = vrot.slane %v11745_v4, 1  ;;  %v15139_v3 = vld [vmem:[%s19872_s6 + $0x12c] ss:$16 sps:$4 sm:$0xff]  }
 0x539   :  { %v11752_v7 = vrot.slane %v11751_v5, 1 }
 0x53a   :  { %v11747_v8 = vadd.f32 %v11746_v6, %v11745_v4  ;;  %v15137_v4 = vld [vmem:[%s19872_s6 + $0x128] ss:$16 sps:$4 sm:$0xff]  }
 0x53b   :  { %v11753_v9 = vadd.f32 %v11752_v7, %v11751_v5  ;;  %v15142_v5 = vld [vmem:[%s19872_s6 + $0x14c] ss:$16 sps:$4 sm:$0xff]   ;;  %v15140_v6 = vld [vmem:[%s19872_s6 + $0x148] ss:$16 sps:$4 sm:$0xff]  }
 0x53c   :  { %v11754_v10 = vmul.f32 0.125, %v11747_v8  ;;  %v15145_v7 = vld [vmem:[%s19872_s6 + $0x16c] ss:$16 sps:$4 sm:$0xff]   ;;  %v15143_v8 = vld [vmem:[%s19872_s6 + $0x168] ss:$16 sps:$4 sm:$0xff]  }
 0x53d   :  { %v11755_v11 = vmul.f32 0.125, %v11753_v9  ;;  %v15148_v9 = vld [vmem:[%s19872_s6 + $0x18c] ss:$16 sps:$4 sm:$0xff]  }
 0x53e   :  { %v11756_v12 = vadd.f32 1e-05, %v11754_v10  ;;  %v15146_v10 = vld [vmem:[%s19872_s6 + $0x188] ss:$16 sps:$4 sm:$0xff]  }
 0x53f   :  { %v11757_v13 = vadd.f32 1e-05, %v11755_v11  ;;  %v15151_v11 = vld [vmem:[%s19872_s6 + $0x1ac] ss:$16 sps:$4 sm:$0xff]  }
 0x540   :  { %15158 = vrsqrt.f32 %v11756_v12  ;;  %v15149_v12 = vld [vmem:[%s19872_s6 + $0x1a8] ss:$16 sps:$4 sm:$0xff]  }
 0x541   :  { %15160 = vrsqrt.f32 %v11757_v13  ;;  %v15154_v13 = vld [vmem:[%s19872_s6 + $0x1cc] ss:$16 sps:$4 sm:$0xff]  }
 0x54a   :  { %v15159_v19 = vpop.eup %15158 }
 0x54b   :  { %v15161_v21 = vpop.eup %15160 }
 0x54c   :  { %v11762_v22 = vcombine.low %v15159_v19, %v15161_v21 }
 0x54e   :  { %v11769_v23 = vrot.slane %v11762_v22, %v19427_v20 }
 0x550   :  { %v11776_v25 = vrot.slane %v11769_v23, %v19427_v20 }
 0x552   :  { %v11778_v28 = vmul.f32 %v11776_v25, %v11721_v24 }
 0x554   :  { %v11783_v29 = vrot.slane %v11778_v28, %v19435_v26  ;;  %v11787_v30 = vrot.slane %v11778_v28, %v19438_v27 }
 0x556   :  { %v11790_v31 = vmul.f32 %v11783_v29, %v11736_v56  ;;  %v11791_v32 = vmul.f32 %v11787_v30, %v11737_v57  ;;  %v11812_v33 = vmul.f32 %v11787_v30, %v11716_v42  ;;  %v11811_v34 = vmul.f32 %v11783_v29, %v11714_v40  ;;  %v15119_v56 = vld [vmem:[%s19872_s6 + $0x68] ss:$16 sps:$4 sm:$0xff]   ;;  %v15124_v57 = vld [vmem:[%s19872_s6 + $0x8c] ss:$16 sps:$4 sm:$0xff]  }
 0x558   :  { %v11794_v35 = vcombine.low %v11790_v31, %v11791_v32 }
 0x55a   :  { %v11801_v36 = vrot.slane %v11794_v35, %v19427_v20 }
 0x55c   :  { %v11808_v38 = vrot.slane %v11801_v36, %v19427_v20 }
 0x55e   :  { %v11810_v39 = vsub.f32 %v11722_v37, %v11808_v38 }
 0x560   :  { %v11821_v41 = vrot.slane %v11810_v39, %v19438_v27  ;;  %v11817_v43 = vrot.slane %v11810_v39, %v19435_v26 }
 0x562   :  { %v11825_v44 = vadd.f32 %v11821_v41, %v11812_v33  ;;  %v11824_v45 = vadd.f32 %v11817_v43, %v11811_v34 }
 0x564   :  { %v11827_v46 = vmul.f32 0.2, %v11825_v44  ;;  %v11826_v47 = vmul.f32 0.2, %v11824_v45 }
 0x566   :  { %v11829_v42 = vmax.f32 %v11825_v44, %v11827_v46  ;;  %v11828_v40 = vmax.f32 %v11824_v45, %v11826_v47 }
 0x568   :  { %v11895_v48 = vpack.c.bf16 %v11829_v42, %v11829_v42  ;;  %v19452_v50 = vpack.c.bf16 %v11828_v40, %v11828_v40 }
 0x56a   :  { %12248 = vmatprep.mubr.bf16.mxu1 %v11895_v48 }
 0x56b   :  { %12249 = vmatmul.mubr.bf16.vlgmr.msra.gmra.mrb[4].mxu1 %v19452_v50 }
 0x56c   :  { %12258 = vmatpush1.bf16.msra.mxu1 %v15110_v49  ;;  %12289 = vmatprep.mubr.bf16.mxu1 %v11895_v48 }
 0x56d   :  { %12259 = vmatprep.subr.bf16.mxu1 %v15115_v51 }
 0x570   :  { %12260 = vmatpush1.bf16.msra.mxu1 %v15113_v52 }
 0x571   :  { %12261 = vmatprep.subr.bf16.mxu1 %v15118_v53 }
 0x574   :  { %12262 = vmatpush1.bf16.msra.mxu1 %v15116_v54 }
 0x575   :  { %12263 = vmatprep.subr.bf16.mxu1 %v15121_v55 }
 0x578   :  { %12264 = vmatpush1.bf16.msra.mxu1 %v15119_v56 }
 0x579   :  { %12265 = vmatprep.subr.bf16.mxu1 %v15124_v57 }
 0x57c   :  { %12266 = vmatpush1.bf16.msra.mxu1 %v15122_v58 }
 0x57d   :  { %12267 = vmatprep.subr.bf16.mxu1 %v15127_v59 }
 0x580   :  { %12268 = vmatpush1.bf16.msra.mxu1 %v15125_v60 }
 0x581   :  { %12269 = vmatprep.subr.bf16.mxu1 %v15130_v61 }
 0x584   :  { %12270 = vmatpush1.bf16.msra.mxu1 %v15128_v62 }
 0x585   :  { %12271 = vmatprep.subr.bf16.mxu1 %v15133_v63 }
 0x588   :  { %12272 = vmatpush1.bf16.msra.mxu1 %v15131_v0 }
 0x589   :  { %12273 = vmatprep.subr.bf16.mxu1 %v15136_v1 }
 0x58c   :  { %12274 = vmatpush1.bf16.msra.mxu1 %v15134_v2 }
 0x58d   :  { %12275 = vmatprep.subr.bf16.mxu1 %v15139_v3 }
 0x590   :  { %12276 = vmatpush1.bf16.msra.mxu1 %v15137_v4 }
 0x591   :  { %12277 = vmatprep.subr.bf16.mxu1 %v15142_v5 }
 0x594   :  { %12278 = vmatpush1.bf16.msra.mxu1 %v15140_v6 }
 0x595   :  { %12279 = vmatprep.subr.bf16.mxu1 %v15145_v7 }
 0x598   :  { %12280 = vmatpush1.bf16.msra.mxu1 %v15143_v8 }
 0x599   :  { %12281 = vmatprep.subr.bf16.mxu1 %v15148_v9 }
 0x59c   :  { %12282 = vmatpush1.bf16.msra.mxu1 %v15146_v10 }
 0x59d   :  { %12283 = vmatprep.subr.bf16.mxu1 %v15151_v11 }
 0x5a0   :  { %12284 = vmatpush1.bf16.msra.mxu1 %v15149_v12 }
 0x5a1   :  { %12285 = vmatprep.subr.bf16.mxu1 %v15154_v13 }
 0x5a4   :  { %12286 = vmatpush1.bf16.msra.mxu1 %v15152_v14 }
 0x5a5   :  { %12287 = vmatprep.subr.bf16.mxu1 %v15157_v15 }
 0x5a8   :  { %12288 = vmatpush1.bf16.msra.mxu1 %v15155_v16 }
 0x5ab   :  { %12290 = vmatmul.mubr.bf16.vlgmr.msra.gmra.mrb[8].mxu1 %v19452_v50 }
 0x63e   :  { %v19546_v17 = vpop.f32.mrb[4].mxu1 }
 0x63f   :  { %v12300_v19 = vrot.slane %v19546_v17, 4  ;;  %v19549_v21 = vpop.f32.mrb[5].mxu1 }
 0x640   :  { %v12306_v22 = vrot.slane %v19549_v21, 4  ;;  %v12254_v23 = vpop.f32.mrb[6].mxu1 }
 0x641   :  { %v12301_v24 = vadd.f32 %v12300_v19, %v19546_v17  ;;  %v12255_v25 = vpop.f32.mrb[7].mxu1 }
 0x642   :  { %v12307_v28 = vadd.f32 %v12306_v22, %v19549_v21 }
 0x643   :  { %v12302_v29 = vrot.slane %v12301_v24, 2 }
 0x644   :  { %v12308_v30 = vrot.slane %v12307_v28, 2 }
 0x645   :  { %v12303_v31 = vadd.f32 %v12302_v29, %v12301_v24 }
 0x646   :  { %v12309_v32 = vadd.f32 %v12308_v30, %v12307_v28 }
 0x647   :  { %v12304_v33 = vrot.slane %v12303_v31, 1 }
 0x648   :  { %v12310_v34 = vrot.slane %v12309_v32, 1 }
 0x649   :  { %v12305_v35 = vadd.f32 %v12304_v33, %v12303_v31 }
 0x64a   :  { %v12311_v36 = vadd.f32 %v12310_v34, %v12309_v32 }
 0x64b   :  { %v19554_v37 = vmul.f32 0.125, %v12305_v35 }
 0x64c   :  { %v19556_v38 = vmul.f32 0.125, %v12311_v36 }
 0x64d   :  { %v12328_v39 = vsub.f32 %v19546_v17, %v19554_v37 }
 0x64e   :  { %v12329_v41 = vsub.f32 %v19549_v21, %v19556_v38 }
 0x64f   :  { %v12332_v43 = vmul.f32 %v12328_v39, %v12328_v39 }
 0x650   :  { %v12333_v44 = vmul.f32 %v12329_v41, %v12329_v41 }
 0x651   :  { %v12336_v45 = vrot.slane %v12332_v43, 4 }
 0x652   :  { %v12342_v46 = vrot.slane %v12333_v44, 4 }
 0x653   :  { %v12337_v47 = vadd.f32 %v12336_v45, %v12332_v43 }
 0x654   :  { %v12343_v42 = vadd.f32 %v12342_v46, %v12333_v44 }
 0x655   :  { %v12338_v40 = vrot.slane %v12337_v47, 2 }
 0x656   :  { %v12344_v48 = vrot.slane %v12343_v42, 2 }
 0x657   :  { %v12339_v49 = vadd.f32 %v12338_v40, %v12337_v47 }
 0x658   :  { %v12345_v50 = vadd.f32 %v12344_v48, %v12343_v42 }
 0x659   :  { %v12340_v51 = vrot.slane %v12339_v49, 1 }
 0x65a   :  { %v12346_v52 = vrot.slane %v12345_v50, 1 }
 0x65b   :  { %v12341_v53 = vadd.f32 %v12340_v51, %v12339_v49 }
 0x65c   :  { %v12347_v54 = vadd.f32 %v12346_v52, %v12345_v50  ;;  %v12298_v50 = vld [vmem:[%s19873_s7] sm:$0xf]  ;;  %v19569_v52 = vsub.s32 2, %v19424_v18 }
 0x65d   :  { %v12360_v55 = vmul.f32 0.125, %v12341_v53  ;;  %v19572_v53 = vsub.s32 3, %v19424_v18 }
 0x65e   :  { %v12361_v56 = vmul.f32 0.125, %v12347_v54 }
 0x65f   :  { %v12364_v57 = vadd.f32 1e-05, %v12360_v55 }
 0x660   :  { %v12365_v58 = vadd.f32 1e-05, %v12361_v56 }
 0x661   :  { %15162 = vrsqrt.f32 %v12364_v57 }
 0x662   :  { %15164 = vrsqrt.f32 %v12365_v58 }
 0x66b   :  { %v15163_v59 = vpop.eup %15162 }
 0x66c   :  { %v15165_v60 = vpop.eup %15164 }
 0x66d   :  { %v12376_v61 = vcombine.low %v15163_v59, %v15165_v60 }
 0x66f   :  { %v12384_v40 = vrot.slane %v12376_v61, %v19427_v20 }
 0x67e   :  { %v12291_v62 = vpop.f32.mrb[8].mxu1 }
 0x67f   :  { %v12312_v63 = vrot.slane %v12291_v62, 4  ;;  %v12293_v0 = vpop.f32.mrb[9].mxu1 }
 0x680   :  { %v12318_v1 = vrot.slane %v12293_v0, 4  ;;  %v12295_v2 = vpop.f32.mrb[10].mxu1 }
 0x681   :  { %v12313_v3 = vadd.f32 %v12312_v63, %v12291_v62  ;;  %v12296_v4 = vpop.f32.mrb[11].mxu1 }
 0x682   :  { %v12319_v5 = vadd.f32 %v12318_v1, %v12293_v0 }
 0x683   :  { %v12314_v6 = vrot.slane %v12313_v3, 2 }
 0x684   :  { %v12320_v7 = vrot.slane %v12319_v5, 2 }
 0x685   :  { %v12315_v8 = vadd.f32 %v12314_v6, %v12313_v3 }
 0x686   :  { %v12321_v9 = vadd.f32 %v12320_v7, %v12319_v5 }
 0x687   :  { %v12316_v10 = vrot.slane %v12315_v8, 1 }
 0x688   :  { %v12322_v11 = vrot.slane %v12321_v9, 1 }
 0x689   :  { %v12317_v12 = vadd.f32 %v12316_v10, %v12315_v8 }
 0x68a   :  { %v12323_v13 = vadd.f32 %v12322_v11, %v12321_v9 }
 0x68b   :  { %v12326_v14 = vmul.f32 0.125, %v12317_v12 }
 0x68c   :  { %v12327_v15 = vmul.f32 0.125, %v12323_v13 }
 0x68d   :  { %v12330_v16 = vsub.f32 %v12291_v62, %v12326_v14 }
 0x68e   :  { %v12331_v19 = vsub.f32 %v12293_v0, %v12327_v15 }
 0x68f   :  { %v12334_v22 = vmul.f32 %v12330_v16, %v12330_v16 }
 0x690   :  { %v12335_v23 = vmul.f32 %v12331_v19, %v12331_v19 }
 0x691   :  { %v12348_v24 = vrot.slane %v12334_v22, 4 }
 0x692   :  { %v12354_v25 = vrot.slane %v12335_v23, 4 }
 0x693   :  { %v12349_v28 = vadd.f32 %v12348_v24, %v12334_v22 }
 0x694   :  { %v12355_v29 = vadd.f32 %v12354_v25, %v12335_v23 }
 0x695   :  { %v12350_v30 = vrot.slane %v12349_v28, 2 }
 0x696   :  { %v12356_v31 = vrot.slane %v12355_v29, 2 }
 0x697   :  { %v12351_v32 = vadd.f32 %v12350_v30, %v12349_v28 }
 0x698   :  { %v12357_v33 = vadd.f32 %v12356_v31, %v12355_v29 }
 0x699   :  { %v12352_v34 = vrot.slane %v12351_v32, 1 }
 0x69a   :  { %v12358_v35 = vrot.slane %v12357_v33, 1 }
 0x69b   :  { %v12353_v36 = vadd.f32 %v12352_v34, %v12351_v32 }
 0x69c   :  { %v12359_v39 = vadd.f32 %v12358_v35, %v12357_v33 }
 0x69d   :  { %v12362_v41 = vmul.f32 0.125, %v12353_v36 }
 0x69e   :  { %v12363_v43 = vmul.f32 0.125, %v12359_v39 }
 0x69f   :  { %v12366_v44 = vadd.f32 1e-05, %v12362_v41 }
 0x6a0   :  { %v12367_v45 = vadd.f32 1e-05, %v12363_v43 }
 0x6a1   :  { %15166 = vrsqrt.f32 %v12366_v44 }
 0x6a2   :  { %15168 = vrsqrt.f32 %v12367_v45 }
 0x6ab   :  { %v15167_v46 = vpop.eup %15166 }
 0x6ac   :  { %v15169_v47 = vpop.eup %15168 }
 0x6ad   :  { %v12377_v42 = vcombine.low %v15167_v46, %v15169_v47 }
 0x6af   :  { %v12391_v48 = vrot.slane %v12377_v42, %v19427_v20 }
 0x6b1   :  { %v12392_v49 = vcombine.low %v12384_v40, %v12391_v48 }
 0x6b3   :  { %v12399_v51 = vrot.slane %v12392_v49, %v19427_v20 }
 0x6b5   :  { %v12401_v54 = vmul.f32 %v12399_v51, %v12298_v50 }
 0x6b7   :  { %v12406_v55 = vrot.slane %v12401_v54, %v19435_v26  ;;  %v12410_v56 = vrot.slane %v12401_v54, %v19438_v27  ;;  %v12414_v57 = vrot.slane %v12401_v54, %v19569_v52  ;;  %v12418_v58 = vrot.slane %v12401_v54, %v19572_v53 }
 0x6b9   :  { %v12423_v59 = vmul.f32 %v12406_v55, %v19554_v37  ;;  %v12424_v60 = vmul.f32 %v12410_v56, %v19556_v38  ;;  %v12425_v61 = vmul.f32 %v12414_v57, %v12326_v14  ;;  %v12426_v63 = vmul.f32 %v12418_v58, %v12327_v15  ;;  %v12299_v37 = vld [vmem:[%s19874_s8] sm:$0xf] }
 0x6ba   :  { %v12457_v1 = vmul.f32 %v12406_v55, %v19546_v17  ;;  %v12458_v2 = vmul.f32 %v12410_v56, %v19549_v21  ;;  %v12459_v3 = vmul.f32 %v12414_v57, %v12291_v62  ;;  %v12460_v4 = vmul.f32 %v12418_v58, %v12293_v0 }
 0x6bb   :  { %v12431_v5 = vcombine.low %v12423_v59, %v12424_v60  ;;  %v12432_v6 = vcombine.low %v12425_v61, %v12426_v63 }
 0x6bd   :  { %v12439_v7 = vrot.slane %v12431_v5, %v19427_v20  ;;  %v12446_v8 = vrot.slane %v12432_v6, %v19427_v20 }
 0x6bf   :  { %v12447_v9 = vcombine.low %v12439_v7, %v12446_v8 }
 0x6c1   :  { %v12454_v38 = vrot.slane %v12447_v9, %v19427_v20 }
 0x6c3   :  { %v12456_v10 = vsub.f32 %v12299_v37, %v12454_v38 }
 0x6c5   :  { %v12465_v17 = vrot.slane %v12456_v10, %v19435_v26  ;;  %v12469_v21 = vrot.slane %v12456_v10, %v19438_v27  ;;  %v12473_v62 = vrot.slane %v12456_v10, %v19569_v52  ;;  %v12477_v0 = vrot.slane %v12456_v10, %v19572_v53 }
 0x6c7   :  { %v12482_v11 = vadd.f32 %v12465_v17, %v12457_v1  ;;  %v12483_v12 = vadd.f32 %v12469_v21, %v12458_v2  ;;  %v12484_v13 = vadd.f32 %v12473_v62, %v12459_v3  ;;  %v12485_v14 = vadd.f32 %v12477_v0, %v12460_v4 }
 0x6c9   :  { %v12486_v15 = vmul.f32 0.2, %v12482_v11  ;;  %v12487_v16 = vmul.f32 0.2, %v12483_v12  ;;  %v12488_v19 = vmul.f32 0.2, %v12484_v13 }
 0x6ca   :  { %v12489_v22 = vmul.f32 0.2, %v12485_v14 }
 0x6cb   :  { %v19592_v23 = vmax.f32 %v12482_v11, %v12486_v15  ;;  %v12491_v24 = vmax.f32 %v12483_v12, %v12487_v16  ;;  %v19594_v25 = vmax.f32 %v12484_v13, %v12488_v19 }
 0x6cc   :  { %v19596_v28 = vmax.f32 %v12485_v14, %v12489_v22 }
 0x6cd   :  { %15222 = dma.done.wait [#allocation4], 32768 }
 0x6ce   :  { %15223 = vsyncadd [#allocation4], 4294934528  ;;  %v19598_v29 = vpack.c.bf16 %v12491_v24, %v12491_v24  ;;  %v12499_v30 = vld [vmem:[#allocation2 + $0x8] sm:$0xff]  ;;  %v12501_v31 = vld [vmem:[#allocation2 + $0x18] sm:$0xff] }
 0x6cf   :  { %v12498_v32 = vld [vmem:[#allocation2] sm:$0xff]  ;;  %12758 = vmatprep.subr.bf16.mxu0 %v12499_v30  ;;  %12840 = vmatprep.subr.bf16.mxu1 %v12501_v31  ;;  %v12500_v33 = vld [vmem:[#allocation2 + $0x10] sm:$0xff]  ;;  %v12507_v34 = vld [vmem:[#allocation2 + $0x48] sm:$0xff] }
 0x6d0   :  { %12790 = vmatprep.mubr.bf16.mxu0 %v19598_v29  ;;  %12872 = vmatprep.mubr.bf16.mxu1 %v19598_v29  ;;  %v12509_v35 = vld [vmem:[#allocation2 + $0x58] sm:$0xff]  ;;  %v12506_v36 = vld [vmem:[#allocation2 + $0x40] sm:$0xff]  ;;  %v12508_v39 = vld [vmem:[#allocation2 + $0x50] sm:$0xff] }
 0x6d1   :  { %12759 = vmatpush1.bf16.msra.mxu0 %v12498_v32  ;;  %12841 = vmatpush1.bf16.msra.mxu1 %v12500_v33  ;;  %v12515_v41 = vld [vmem:[#allocation2 + $0x88] sm:$0xff]  ;;  %v12517_v43 = vld [vmem:[#allocation2 + $0x98] sm:$0xff]  ;;  %v12514_v44 = vld [vmem:[#allocation2 + $0x80] sm:$0xff] }
 0x6d2   :  { %12760 = vmatprep.subr.bf16.mxu0 %v12507_v34  ;;  %12842 = vmatprep.subr.bf16.mxu1 %v12509_v35  ;;  %v12516_v45 = vld [vmem:[#allocation2 + $0x90] sm:$0xff]  ;;  %v12523_v46 = vld [vmem:[#allocation2 + $0xc8] sm:$0xff]  ;;  %v12525_v47 = vld [vmem:[#allocation2 + $0xd8] sm:$0xff] }
 0x6d3   :  { %v12522_v42 = vld [vmem:[#allocation2 + $0xc0] sm:$0xff]  ;;  %v12524_v40 = vld [vmem:[#allocation2 + $0xd0] sm:$0xff]  ;;  %v12531_v48 = vld [vmem:[#allocation2 + $0x108] sm:$0xff] }
 0x6d4   :  { %v12533_v49 = vld [vmem:[#allocation2 + $0x118] sm:$0xff]  ;;  %v12530_v50 = vld [vmem:[#allocation2 + $0x100] sm:$0xff]  ;;  %v12532_v51 = vld [vmem:[#allocation2 + $0x110] sm:$0xff] }
 0x6d5   :  { %12761 = vmatpush1.bf16.msra.mxu0 %v12506_v36  ;;  %12843 = vmatpush1.bf16.msra.mxu1 %v12508_v39  ;;  %v12539_v54 = vld [vmem:[#allocation2 + $0x148] sm:$0xff]  ;;  %v12541_v55 = vld [vmem:[#allocation2 + $0x158] sm:$0xff]  ;;  %v12538_v56 = vld [vmem:[#allocation2 + $0x140] sm:$0xff] }
 0x6d6   :  { %12762 = vmatprep.subr.bf16.mxu0 %v12515_v41  ;;  %12844 = vmatprep.subr.bf16.mxu1 %v12517_v43  ;;  %v12540_v57 = vld [vmem:[#allocation2 + $0x150] sm:$0xff]  ;;  %v12547_v58 = vld [vmem:[#allocation2 + $0x188] sm:$0xff]  ;;  %v12549_v59 = vld [vmem:[#allocation2 + $0x198] sm:$0xff] }
 0x6d7   :  { %v12546_v60 = vld [vmem:[#allocation2 + $0x180] sm:$0xff]  ;;  %v12548_v61 = vld [vmem:[#allocation2 + $0x190] sm:$0xff]  ;;  %v12555_v63 = vld [vmem:[#allocation2 + $0x1c8] sm:$0xff] }
 0x6d8   :  { %v12557_v1 = vld [vmem:[#allocation2 + $0x1d8] sm:$0xff]  ;;  %v12554_v2 = vld [vmem:[#allocation2 + $0x1c0] sm:$0xff]  ;;  %v12556_v3 = vld [vmem:[#allocation2 + $0x1d0] sm:$0xff] }
 0x6d9   :  { %12763 = vmatpush1.bf16.msra.mxu0 %v12514_v44  ;;  %12845 = vmatpush1.bf16.msra.mxu1 %v12516_v45  ;;  %v12563_v4 = vld [vmem:[#allocation2 + $0x208] sm:$0xff]  ;;  %v12565_v5 = vld [vmem:[#allocation2 + $0x218] sm:$0xff]  ;;  %v12562_v6 = vld [vmem:[#allocation2 + $0x200] sm:$0xff] }
 0x6da   :  { %12764 = vmatprep.subr.bf16.mxu0 %v12523_v46  ;;  %12846 = vmatprep.subr.bf16.mxu1 %v12525_v47  ;;  %v12564_v7 = vld [vmem:[#allocation2 + $0x210] sm:$0xff]  ;;  %v12571_v8 = vld [vmem:[#allocation2 + $0x248] sm:$0xff]  ;;  %v12573_v9 = vld [vmem:[#allocation2 + $0x258] sm:$0xff]  ;;  %v19604_v46 = vpack.c.bf16 %v19592_v23, %v19592_v23 }
 0x6db   :  { %v12570_v37 = vld [vmem:[#allocation2 + $0x240] sm:$0xff]  ;;  %v12572_v38 = vld [vmem:[#allocation2 + $0x250] sm:$0xff]  ;;  %v12579_v10 = vld [vmem:[#allocation2 + $0x288] sm:$0xff] }
 0x6dc   :  { %v12581_v17 = vld [vmem:[#allocation2 + $0x298] sm:$0xff]  ;;  %v12578_v21 = vld [vmem:[#allocation2 + $0x280] sm:$0xff]  ;;  %v12580_v62 = vld [vmem:[#allocation2 + $0x290] sm:$0xff] }
 0x6dd   :  { %12765 = vmatpush1.bf16.msra.mxu0 %v12522_v42  ;;  %12847 = vmatpush1.bf16.msra.mxu1 %v12524_v40  ;;  %v12587_v0 = vld [vmem:[#allocation2 + $0x2c8] sm:$0xff]  ;;  %v12589_v11 = vld [vmem:[#allocation2 + $0x2d8] sm:$0xff]  ;;  %v12586_v12 = vld [vmem:[#allocation2 + $0x2c0] sm:$0xff] }
 0x6de   :  { %12766 = vmatprep.subr.bf16.mxu0 %v12531_v48  ;;  %12848 = vmatprep.subr.bf16.mxu1 %v12533_v49  ;;  %v12588_v13 = vld [vmem:[#allocation2 + $0x2d0] sm:$0xff]  ;;  %v12595_v14 = vld [vmem:[#allocation2 + $0x308] sm:$0xff]  ;;  %v12597_v15 = vld [vmem:[#allocation2 + $0x318] sm:$0xff]  ;;  %v19608_v49 = vpack.c.bf16 %v19596_v28, %v19596_v28 }
 0x6df   :  { %v12594_v16 = vld [vmem:[#allocation2 + $0x300] sm:$0xff]  ;;  %v12596_v19 = vld [vmem:[#allocation2 + $0x310] sm:$0xff]  ;;  %v12603_v22 = vld [vmem:[#allocation2 + $0x348] sm:$0xff] }
 0x6e0   :  { %v12605_v24 = vld [vmem:[#allocation2 + $0x358] sm:$0xff]  ;;  %v12602_v30 = vld [vmem:[#allocation2 + $0x340] sm:$0xff]  ;;  %v12604_v31 = vld [vmem:[#allocation2 + $0x350] sm:$0xff] }
 0x6e1   :  { %12767 = vmatpush1.bf16.msra.mxu0 %v12530_v50  ;;  %12849 = vmatpush1.bf16.msra.mxu1 %v12532_v51  ;;  %v12611_v32 = vld [vmem:[#allocation2 + $0x388] sm:$0xff]  ;;  %v12613_v33 = vld [vmem:[#allocation2 + $0x398] sm:$0xff]  ;;  %v12610_v34 = vld [vmem:[#allocation2 + $0x380] sm:$0xff] }
 0x6e2   :  { %12768 = vmatprep.subr.bf16.mxu0 %v12539_v54  ;;  %12850 = vmatprep.subr.bf16.mxu1 %v12541_v55  ;;  %v12612_v35 = vld [vmem:[#allocation2 + $0x390] sm:$0xff]  ;;  %v12619_v36 = vld [vmem:[#allocation2 + $0x3c8] sm:$0xff]  ;;  %v12621_v39 = vld [vmem:[#allocation2 + $0x3d8] sm:$0xff] }
 0x6e3   :  { %v12618_v41 = vld [vmem:[#allocation2 + $0x3c0] sm:$0xff]  ;;  %v12620_v43 = vld [vmem:[#allocation2 + $0x3d0] sm:$0xff]  ;;  %v12627_v44 = vld [vmem:[#allocation2 + $0x408] sm:$0xff] }
 0x6e4   :  { %v12629_v45 = vld [vmem:[#allocation2 + $0x418] sm:$0xff]  ;;  %v12626_v47 = vld [vmem:[#allocation2 + $0x400] sm:$0xff]  ;;  %v12628_v42 = vld [vmem:[#allocation2 + $0x410] sm:$0xff] }
 0x6e5   :  { %12769 = vmatpush1.bf16.msra.mxu0 %v12538_v56  ;;  %12851 = vmatpush1.bf16.msra.mxu1 %v12540_v57  ;;  %v12635_v40 = vld [vmem:[#allocation2 + $0x448] sm:$0xff]  ;;  %v12637_v48 = vld [vmem:[#allocation2 + $0x458] sm:$0xff]  ;;  %v12634_v23 = vld [vmem:[#allocation2 + $0x440] sm:$0xff] }
 0x6e6   :  { %12770 = vmatprep.subr.bf16.mxu0 %v12547_v58  ;;  %12852 = vmatprep.subr.bf16.mxu1 %v12549_v59  ;;  %v12636_v50 = vld [vmem:[#allocation2 + $0x450] sm:$0xff]  ;;  %v12643_v51 = vld [vmem:[#allocation2 + $0x488] sm:$0xff]  ;;  %v12645_v54 = vld [vmem:[#allocation2 + $0x498] sm:$0xff] }
 0x6e7   :  { %v12642_v28 = vld [vmem:[#allocation2 + $0x480] sm:$0xff]  ;;  %v12644_v55 = vld [vmem:[#allocation2 + $0x490] sm:$0xff]  ;;  %v12651_v56 = vld [vmem:[#allocation2 + $0x4c8] sm:$0xff] }
 0x6e8   :  { %v12653_v57 = vld [vmem:[#allocation2 + $0x4d8] sm:$0xff]  ;;  %v12650_v58 = vld [vmem:[#allocation2 + $0x4c0] sm:$0xff]  ;;  %v12652_v59 = vld [vmem:[#allocation2 + $0x4d0] sm:$0xff] }
 0x6e9   :  { %12771 = vmatpush1.bf16.msra.mxu0 %v12546_v60  ;;  %12853 = vmatpush1.bf16.msra.mxu1 %v12548_v61  ;;  %v12659_v60 = vld [vmem:[#allocation2 + $0x508] sm:$0xff]  ;;  %v12661_v61 = vld [vmem:[#allocation2 + $0x518] sm:$0xff] }
 0x6ea   :  { %12772 = vmatprep.subr.bf16.mxu0 %v12555_v63  ;;  %12854 = vmatprep.subr.bf16.mxu1 %v12557_v1  ;;  %v12658_v63 = vld [vmem:[#allocation2 + $0x500] sm:$0xff]  ;;  %v12660_v1 = vld [vmem:[#allocation2 + $0x510] sm:$0xff] }
 0x6ed   :  { %12773 = vmatpush1.bf16.msra.mxu0 %v12554_v2  ;;  %12855 = vmatpush1.bf16.msra.mxu1 %v12556_v3  ;;  %v12667_v2 = vld [vmem:[#allocation2 + $0x548] sm:$0xff]  ;;  %v12669_v3 = vld [vmem:[#allocation2 + $0x558] sm:$0xff] }
 0x6ee   :  { %12774 = vmatprep.subr.bf16.mxu0 %v12563_v4  ;;  %12856 = vmatprep.subr.bf16.mxu1 %v12565_v5  ;;  %v12666_v4 = vld [vmem:[#allocation2 + $0x540] sm:$0xff]  ;;  %v12668_v5 = vld [vmem:[#allocation2 + $0x550] sm:$0xff] }
 0x6f1   :  { %12775 = vmatpush1.bf16.msra.mxu0 %v12562_v6  ;;  %12857 = vmatpush1.bf16.msra.mxu1 %v12564_v7  ;;  %v12675_v6 = vld [vmem:[#allocation2 + $0x588] sm:$0xff]  ;;  %v12677_v7 = vld [vmem:[#allocation2 + $0x598] sm:$0xff] }
 0x6f2   :  { %12776 = vmatprep.subr.bf16.mxu0 %v12571_v8  ;;  %12858 = vmatprep.subr.bf16.mxu1 %v12573_v9  ;;  %v12674_v8 = vld [vmem:[#allocation2 + $0x580] sm:$0xff]  ;;  %v12676_v9 = vld [vmem:[#allocation2 + $0x590] sm:$0xff] }
 0x6f5   :  { %12777 = vmatpush1.bf16.msra.mxu0 %v12570_v37  ;;  %12859 = vmatpush1.bf16.msra.mxu1 %v12572_v38  ;;  %v12683_v37 = vld [vmem:[#allocation2 + $0x5c8] sm:$0xff]  ;;  %v12685_v38 = vld [vmem:[#allocation2 + $0x5d8] sm:$0xff] }
 0x6f6   :  { %12778 = vmatprep.subr.bf16.mxu0 %v12579_v10  ;;  %12860 = vmatprep.subr.bf16.mxu1 %v12581_v17  ;;  %v12682_v10 = vld [vmem:[#allocation2 + $0x5c0] sm:$0xff]  ;;  %v12684_v17 = vld [vmem:[#allocation2 + $0x5d0] sm:$0xff] }
 0x6f9   :  { %12779 = vmatpush1.bf16.msra.mxu0 %v12578_v21  ;;  %12861 = vmatpush1.bf16.msra.mxu1 %v12580_v62  ;;  %v12691_v21 = vld [vmem:[#allocation2 + $0x608] sm:$0xff]  ;;  %v12693_v62 = vld [vmem:[#allocation2 + $0x618] sm:$0xff] }
 0x6fa   :  { %12780 = vmatprep.subr.bf16.mxu0 %v12587_v0  ;;  %12862 = vmatprep.subr.bf16.mxu1 %v12589_v11  ;;  %v12690_v0 = vld [vmem:[#allocation2 + $0x600] sm:$0xff]  ;;  %v12692_v11 = vld [vmem:[#allocation2 + $0x610] sm:$0xff] }
 0x6fd   :  { %12781 = vmatpush1.bf16.msra.mxu0 %v12586_v12  ;;  %12863 = vmatpush1.bf16.msra.mxu1 %v12588_v13  ;;  %v12699_v12 = vld [vmem:[#allocation2 + $0x648] sm:$0xff]  ;;  %v12701_v13 = vld [vmem:[#allocation2 + $0x658] sm:$0xff] }
 0x6fe   :  { %12782 = vmatprep.subr.bf16.mxu0 %v12595_v14  ;;  %12864 = vmatprep.subr.bf16.mxu1 %v12597_v15  ;;  %v12698_v14 = vld [vmem:[#allocation2 + $0x640] sm:$0xff]  ;;  %v12700_v15 = vld [vmem:[#allocation2 + $0x650] sm:$0xff] }
 0x701   :  { %12783 = vmatpush1.bf16.msra.mxu0 %v12594_v16  ;;  %12865 = vmatpush1.bf16.msra.mxu1 %v12596_v19  ;;  %v12707_v16 = vld [vmem:[#allocation2 + $0x688] sm:$0xff]  ;;  %v12709_v19 = vld [vmem:[#allocation2 + $0x698] sm:$0xff] }
 0x702   :  { %12784 = vmatprep.subr.bf16.mxu0 %v12603_v22  ;;  %12866 = vmatprep.subr.bf16.mxu1 %v12605_v24  ;;  %v12706_v22 = vld [vmem:[#allocation2 + $0x680] sm:$0xff]  ;;  %v12708_v24 = vld [vmem:[#allocation2 + $0x690] sm:$0xff] }
 0x705   :  { %12785 = vmatpush1.bf16.msra.mxu0 %v12602_v30  ;;  %12867 = vmatpush1.bf16.msra.mxu1 %v12604_v31  ;;  %v12715_v30 = vld [vmem:[#allocation2 + $0x6c8] sm:$0xff]  ;;  %v12717_v31 = vld [vmem:[#allocation2 + $0x6d8] sm:$0xff] }
 0x706   :  { %12786 = vmatprep.subr.bf16.mxu0 %v12611_v32  ;;  %12868 = vmatprep.subr.bf16.mxu1 %v12613_v33  ;;  %v12714_v32 = vld [vmem:[#allocation2 + $0x6c0] sm:$0xff]  ;;  %v12716_v33 = vld [vmem:[#allocation2 + $0x6d0] sm:$0xff] }
 0x709   :  { %12787 = vmatpush1.bf16.msra.mxu0 %v12610_v34  ;;  %12869 = vmatpush1.bf16.msra.mxu1 %v12612_v35  ;;  %v12723_v34 = vld [vmem:[#allocation2 + $0x708] sm:$0xff]  ;;  %v12725_v35 = vld [vmem:[#allocation2 + $0x718] sm:$0xff] }
 0x70a   :  { %12788 = vmatprep.subr.bf16.mxu0 %v12619_v36  ;;  %12870 = vmatprep.subr.bf16.mxu1 %v12621_v39  ;;  %v12722_v36 = vld [vmem:[#allocation2 + $0x700] sm:$0xff]  ;;  %v12724_v39 = vld [vmem:[#allocation2 + $0x710] sm:$0xff] }
 0x70d   :  { %12789 = vmatpush1.bf16.msra.mxu0 %v12618_v41  ;;  %12871 = vmatpush1.bf16.msra.mxu1 %v12620_v43  ;;  %v12731_v41 = vld [vmem:[#allocation2 + $0x748] sm:$0xff]  ;;  %v12733_v43 = vld [vmem:[#allocation2 + $0x758] sm:$0xff] }
 0x70e   :  { %12799 = vmatprep.subr.bf16.mxu0 %v12627_v44  ;;  %12881 = vmatprep.subr.bf16.mxu1 %v12629_v45  ;;  %v12730_v44 = vld [vmem:[#allocation2 + $0x740] sm:$0xff]  ;;  %v12732_v45 = vld [vmem:[#allocation2 + $0x750] sm:$0xff] }
 0x710   :  { %12791 = vmatmul.mubr.bf16.vlgmr.msra.gmra.mrb[4].mxu0 %v19604_v46  ;;  %12873 = vmatmul.mubr.bf16.vlgmr.msra.gmra.mrb[12].mxu1 %v19604_v46 }
 0x711   :  { %12800 = vmatpush1.bf16.msra.mxu0 %v12626_v47  ;;  %12882 = vmatpush1.bf16.msra.mxu1 %v12628_v42  ;;  %v12739_v47 = vld [vmem:[#allocation2 + $0x788] sm:$0xff]  ;;  %v12741_v42 = vld [vmem:[#allocation2 + $0x798] sm:$0xff] }
 0x712   :  { %12801 = vmatprep.subr.bf16.mxu0 %v12635_v40  ;;  %12883 = vmatprep.subr.bf16.mxu1 %v12637_v48  ;;  %v12738_v40 = vld [vmem:[#allocation2 + $0x780] sm:$0xff]  ;;  %v12740_v48 = vld [vmem:[#allocation2 + $0x790] sm:$0xff] }
 0x713   :  { %12831 = vmatprep.mubr.bf16.mxu0 %v19608_v49  ;;  %12913 = vmatprep.mubr.bf16.mxu1 %v19608_v49 }
 0x715   :  { %12802 = vmatpush1.bf16.msra.mxu0 %v12634_v23  ;;  %12884 = vmatpush1.bf16.msra.mxu1 %v12636_v50  ;;  %v12747_v23 = vld [vmem:[#allocation2 + $0x7c8] sm:$0xff]  ;;  %v12749_v50 = vld [vmem:[#allocation2 + $0x7d8] sm:$0xff] }
 0x716   :  { %12803 = vmatprep.subr.bf16.mxu0 %v12643_v51  ;;  %12885 = vmatprep.subr.bf16.mxu1 %v12645_v54  ;;  %v12746_v51 = vld [vmem:[#allocation2 + $0x7c0] sm:$0xff]  ;;  %v12748_v54 = vld [vmem:[#allocation2 + $0x7d0] sm:$0xff] }
 0x719   :  { %12804 = vmatpush1.bf16.msra.mxu0 %v12642_v28  ;;  %12886 = vmatpush1.bf16.msra.mxu1 %v12644_v55  ;;  %v12503_v28 = vld [vmem:[#allocation2 + $0x28] sm:$0xff]  ;;  %v12505_v55 = vld [vmem:[#allocation2 + $0x38] sm:$0xff] }
 0x71a   :  { %12805 = vmatprep.subr.bf16.mxu0 %v12651_v56  ;;  %12887 = vmatprep.subr.bf16.mxu1 %v12653_v57  ;;  %v19616_v56 = vpack.c.bf16 %v19594_v25, %v19594_v25  ;;  %v12502_v57 = vld [vmem:[#allocation2 + $0x20] sm:$0xff]  ;;  %v12519_v25 = vld [vmem:[#allocation2 + $0xa8] sm:$0xff] }
 0x71d   :  { %12806 = vmatpush1.bf16.msra.mxu0 %v12650_v58  ;;  %12888 = vmatpush1.bf16.msra.mxu1 %v12652_v59  ;;  %v12504_v58 = vld [vmem:[#allocation2 + $0x30] sm:$0xff]  ;;  %v12511_v59 = vld [vmem:[#allocation2 + $0x68] sm:$0xff] }
 0x71e   :  { %12807 = vmatprep.subr.bf16.mxu0 %v12659_v60  ;;  %12889 = vmatprep.subr.bf16.mxu1 %v12661_v61  ;;  %v12513_v60 = vld [vmem:[#allocation2 + $0x78] sm:$0xff]  ;;  %v12510_v61 = vld [vmem:[#allocation2 + $0x60] sm:$0xff] }
 0x721   :  { %12808 = vmatpush1.bf16.msra.mxu0 %v12658_v63  ;;  %12890 = vmatpush1.bf16.msra.mxu1 %v12660_v1  ;;  %v12512_v63 = vld [vmem:[#allocation2 + $0x70] sm:$0xff]  ;;  %v12521_v1 = vld [vmem:[#allocation2 + $0xb8] sm:$0xff] }
 0x722   :  { %12809 = vmatprep.subr.bf16.mxu0 %v12667_v2  ;;  %12891 = vmatprep.subr.bf16.mxu1 %v12669_v3  ;;  %v12518_v2 = vld [vmem:[#allocation2 + $0xa0] sm:$0xff]  ;;  %v12520_v3 = vld [vmem:[#allocation2 + $0xb0] sm:$0xff] }
 0x725   :  { %12810 = vmatpush1.bf16.msra.mxu0 %v12666_v4  ;;  %12892 = vmatpush1.bf16.msra.mxu1 %v12668_v5  ;;  %v12527_v4 = vld [vmem:[#allocation2 + $0xe8] sm:$0xff]  ;;  %v12529_v5 = vld [vmem:[#allocation2 + $0xf8] sm:$0xff] }
 0x726   :  { %12811 = vmatprep.subr.bf16.mxu0 %v12675_v6  ;;  %12893 = vmatprep.subr.bf16.mxu1 %v12677_v7  ;;  %v12526_v6 = vld [vmem:[#allocation2 + $0xe0] sm:$0xff]  ;;  %v12528_v7 = vld [vmem:[#allocation2 + $0xf0] sm:$0xff] }
 0x729   :  { %12812 = vmatpush1.bf16.msra.mxu0 %v12674_v8  ;;  %12894 = vmatpush1.bf16.msra.mxu1 %v12676_v9  ;;  %v12535_v8 = vld [vmem:[#allocation2 + $0x128] sm:$0xff]  ;;  %v12537_v9 = vld [vmem:[#allocation2 + $0x138] sm:$0xff] }
 0x72a   :  { %12813 = vmatprep.subr.bf16.mxu0 %v12683_v37  ;;  %12895 = vmatprep.subr.bf16.mxu1 %v12685_v38  ;;  %v12536_v37 = vld [vmem:[#allocation2 + $0x130] sm:$0xff]  ;;  %v12543_v38 = vld [vmem:[#allocation2 + $0x168] sm:$0xff] }
 0x72d   :  { %12814 = vmatpush1.bf16.msra.mxu0 %v12682_v10  ;;  %12896 = vmatpush1.bf16.msra.mxu1 %v12684_v17  ;;  %v12545_v10 = vld [vmem:[#allocation2 + $0x178] sm:$0xff]  ;;  %v12542_v17 = vld [vmem:[#allocation2 + $0x160] sm:$0xff] }
 0x72e   :  { %12815 = vmatprep.subr.bf16.mxu0 %v12691_v21  ;;  %12897 = vmatprep.subr.bf16.mxu1 %v12693_v62  ;;  %v12544_v21 = vld [vmem:[#allocation2 + $0x170] sm:$0xff]  ;;  %v12551_v62 = vld [vmem:[#allocation2 + $0x1a8] sm:$0xff] }
 0x731   :  { %12816 = vmatpush1.bf16.msra.mxu0 %v12690_v0  ;;  %12898 = vmatpush1.bf16.msra.mxu1 %v12692_v11  ;;  %v12553_v0 = vld [vmem:[#allocation2 + $0x1b8] sm:$0xff]  ;;  %v12550_v11 = vld [vmem:[#allocation2 + $0x1a0] sm:$0xff] }
 0x732   :  { %12817 = vmatprep.subr.bf16.mxu0 %v12699_v12  ;;  %12899 = vmatprep.subr.bf16.mxu1 %v12701_v13  ;;  %v12552_v12 = vld [vmem:[#allocation2 + $0x1b0] sm:$0xff]  ;;  %v12559_v13 = vld [vmem:[#allocation2 + $0x1e8] sm:$0xff] }
 0x735   :  { %12818 = vmatpush1.bf16.msra.mxu0 %v12698_v14  ;;  %12900 = vmatpush1.bf16.msra.mxu1 %v12700_v15  ;;  %v12561_v14 = vld [vmem:[#allocation2 + $0x1f8] sm:$0xff]  ;;  %v12558_v15 = vld [vmem:[#allocation2 + $0x1e0] sm:$0xff] }
 0x736   :  { %12819 = vmatprep.subr.bf16.mxu0 %v12707_v16  ;;  %12901 = vmatprep.subr.bf16.mxu1 %v12709_v19  ;;  %v12560_v16 = vld [vmem:[#allocation2 + $0x1f0] sm:$0xff]  ;;  %v12567_v19 = vld [vmem:[#allocation2 + $0x228] sm:$0xff] }
 0x739   :  { %12820 = vmatpush1.bf16.msra.mxu0 %v12706_v22  ;;  %12902 = vmatpush1.bf16.msra.mxu1 %v12708_v24  ;;  %v12569_v22 = vld [vmem:[#allocation2 + $0x238] sm:$0xff]  ;;  %v12566_v24 = vld [vmem:[#allocation2 + $0x220] sm:$0xff] }
 0x73a   :  { %12821 = vmatprep.subr.bf16.mxu0 %v12715_v30  ;;  %12903 = vmatprep.subr.bf16.mxu1 %v12717_v31  ;;  %v12568_v30 = vld [vmem:[#allocation2 + $0x230] sm:$0xff]  ;;  %v12575_v31 = vld [vmem:[#allocation2 + $0x268] sm:$0xff] }
 0x73d   :  { %12822 = vmatpush1.bf16.msra.mxu0 %v12714_v32  ;;  %12904 = vmatpush1.bf16.msra.mxu1 %v12716_v33  ;;  %v12577_v32 = vld [vmem:[#allocation2 + $0x278] sm:$0xff]  ;;  %v12574_v33 = vld [vmem:[#allocation2 + $0x260] sm:$0xff] }
 0x73e   :  { %12823 = vmatprep.subr.bf16.mxu0 %v12723_v34  ;;  %12905 = vmatprep.subr.bf16.mxu1 %v12725_v35  ;;  %v12576_v34 = vld [vmem:[#allocation2 + $0x270] sm:$0xff]  ;;  %v12583_v35 = vld [vmem:[#allocation2 + $0x2a8] sm:$0xff] }
 0x741   :  { %12824 = vmatpush1.bf16.msra.mxu0 %v12722_v36  ;;  %12906 = vmatpush1.bf16.msra.mxu1 %v12724_v39  ;;  %v12585_v36 = vld [vmem:[#allocation2 + $0x2b8] sm:$0xff]  ;;  %v12582_v39 = vld [vmem:[#allocation2 + $0x2a0] sm:$0xff] }
 0x742   :  { %12825 = vmatprep.subr.bf16.mxu0 %v12731_v41  ;;  %12907 = vmatprep.subr.bf16.mxu1 %v12733_v43  ;;  %v12584_v41 = vld [vmem:[#allocation2 + $0x2b0] sm:$0xff]  ;;  %v12591_v43 = vld [vmem:[#allocation2 + $0x2e8] sm:$0xff] }
 0x745   :  { %12826 = vmatpush1.bf16.msra.mxu0 %v12730_v44  ;;  %12908 = vmatpush1.bf16.msra.mxu1 %v12732_v45  ;;  %v12593_v44 = vld [vmem:[#allocation2 + $0x2f8] sm:$0xff]  ;;  %v12590_v45 = vld [vmem:[#allocation2 + $0x2e0] sm:$0xff] }
 0x746   :  { %12827 = vmatprep.subr.bf16.mxu0 %v12739_v47  ;;  %12909 = vmatprep.subr.bf16.mxu1 %v12741_v42  ;;  %v12592_v47 = vld [vmem:[#allocation2 + $0x2f0] sm:$0xff]  ;;  %v12599_v42 = vld [vmem:[#allocation2 + $0x328] sm:$0xff] }
 0x749   :  { %12828 = vmatpush1.bf16.msra.mxu0 %v12738_v40  ;;  %12910 = vmatpush1.bf16.msra.mxu1 %v12740_v48  ;;  %v12601_v40 = vld [vmem:[#allocation2 + $0x338] sm:$0xff]  ;;  %v12598_v48 = vld [vmem:[#allocation2 + $0x320] sm:$0xff] }
 0x74a   :  { %12829 = vmatprep.subr.bf16.mxu0 %v12747_v23  ;;  %12911 = vmatprep.subr.bf16.mxu1 %v12749_v50  ;;  %v12600_v23 = vld [vmem:[#allocation2 + $0x330] sm:$0xff]  ;;  %v12607_v50 = vld [vmem:[#allocation2 + $0x368] sm:$0xff] }
 0x74d   :  { %12830 = vmatpush1.bf16.msra.mxu0 %v12746_v51  ;;  %12912 = vmatpush1.bf16.msra.mxu1 %v12748_v54  ;;  %v12609_v51 = vld [vmem:[#allocation2 + $0x378] sm:$0xff]  ;;  %v12606_v54 = vld [vmem:[#allocation2 + $0x360] sm:$0xff] }
 0x74e   :  { %12922 = vmatprep.subr.bf16.mxu0 %v12503_v28  ;;  %13004 = vmatprep.subr.bf16.mxu1 %v12505_v55  ;;  %v12608_v28 = vld [vmem:[#allocation2 + $0x370] sm:$0xff]  ;;  %v12615_v55 = vld [vmem:[#allocation2 + $0x3a8] sm:$0xff] }
 0x750   :  { %12832 = vmatmul.mubr.bf16.vlgmr.msra.gmra.mrb[4].mxu0 %v19616_v56  ;;  %12914 = vmatmul.mubr.bf16.vlgmr.msra.gmra.mrb[12].mxu1 %v19616_v56 }
 0x751   :  { %12923 = vmatpush1.bf16.msra.mxu0 %v12502_v57  ;;  %13005 = vmatpush1.bf16.msra.mxu1 %v12504_v58  ;;  %v12617_v57 = vld [vmem:[#allocation2 + $0x3b8] sm:$0xff]  ;;  %v12614_v58 = vld [vmem:[#allocation2 + $0x3a0] sm:$0xff] }
 0x752   :  { %12924 = vmatprep.subr.bf16.mxu0 %v12511_v59  ;;  %13006 = vmatprep.subr.bf16.mxu1 %v12513_v60  ;;  %v12616_v59 = vld [vmem:[#allocation2 + $0x3b0] sm:$0xff]  ;;  %v12623_v60 = vld [vmem:[#allocation2 + $0x3e8] sm:$0xff] }
 0x753   :  { %12954 = vmatprep.mubr.bf16.mxu0 %v19598_v29  ;;  %13036 = vmatprep.mubr.bf16.mxu1 %v19598_v29  ;;  %v12534_v29 = vld [vmem:[#allocation2 + $0x120] sm:$0xff] }
 0x755   :  { %12925 = vmatpush1.bf16.msra.mxu0 %v12510_v61  ;;  %13007 = vmatpush1.bf16.msra.mxu1 %v12512_v63  ;;  %v12625_v61 = vld [vmem:[#allocation2 + $0x3f8] sm:$0xff]  ;;  %v12622_v63 = vld [vmem:[#allocation2 + $0x3e0] sm:$0xff] }
 0x756   :  { %12926 = vmatprep.subr.bf16.mxu0 %v12519_v25  ;;  %13008 = vmatprep.subr.bf16.mxu1 %v12521_v1  ;;  %v12624_v25 = vld [vmem:[#allocation2 + $0x3f0] sm:$0xff]  ;;  %v12631_v1 = vld [vmem:[#allocation2 + $0x428] sm:$0xff] }
 0x759   :  { %12927 = vmatpush1.bf16.msra.mxu0 %v12518_v2  ;;  %13009 = vmatpush1.bf16.msra.mxu1 %v12520_v3  ;;  %v12633_v2 = vld [vmem:[#allocation2 + $0x438] sm:$0xff]  ;;  %v12630_v3 = vld [vmem:[#allocation2 + $0x420] sm:$0xff] }
 0x75a   :  { %12928 = vmatprep.subr.bf16.mxu0 %v12527_v4  ;;  %13010 = vmatprep.subr.bf16.mxu1 %v12529_v5  ;;  %v12632_v4 = vld [vmem:[#allocation2 + $0x430] sm:$0xff]  ;;  %v12639_v5 = vld [vmem:[#allocation2 + $0x468] sm:$0xff] }
 0x75d   :  { %12929 = vmatpush1.bf16.msra.mxu0 %v12526_v6  ;;  %13011 = vmatpush1.bf16.msra.mxu1 %v12528_v7  ;;  %v12641_v6 = vld [vmem:[#allocation2 + $0x478] sm:$0xff]  ;;  %v12638_v7 = vld [vmem:[#allocation2 + $0x460] sm:$0xff] }
 0x75e   :  { %12930 = vmatprep.subr.bf16.mxu0 %v12535_v8  ;;  %13012 = vmatprep.subr.bf16.mxu1 %v12537_v9  ;;  %v12640_v8 = vld [vmem:[#allocation2 + $0x470] sm:$0xff]  ;;  %v12647_v9 = vld [vmem:[#allocation2 + $0x4a8] sm:$0xff] }
 0x761   :  { %12931 = vmatpush1.bf16.msra.mxu0 %v12534_v29  ;;  %13013 = vmatpush1.bf16.msra.mxu1 %v12536_v37  ;;  %v12649_v29 = vld [vmem:[#allocation2 + $0x4b8] sm:$0xff]  ;;  %v12646_v37 = vld [vmem:[#allocation2 + $0x4a0] sm:$0xff] }
 0x762   :  { %12932 = vmatprep.subr.bf16.mxu0 %v12543_v38  ;;  %13014 = vmatprep.subr.bf16.mxu1 %v12545_v10  ;;  %v12648_v38 = vld [vmem:[#allocation2 + $0x4b0] sm:$0xff]  ;;  %v12655_v10 = vld [vmem:[#allocation2 + $0x4e8] sm:$0xff] }
 0x765   :  { %12933 = vmatpush1.bf16.msra.mxu0 %v12542_v17  ;;  %13015 = vmatpush1.bf16.msra.mxu1 %v12544_v21  ;;  %v12654_v17 = vld [vmem:[#allocation2 + $0x4e0] sm:$0xff]  ;;  %v12656_v21 = vld [vmem:[#allocation2 + $0x4f0] sm:$0xff] }
 0x766   :  { %12934 = vmatprep.subr.bf16.mxu0 %v12551_v62  ;;  %13016 = vmatprep.subr.bf16.mxu1 %v12553_v0  ;;  %v12663_v62 = vld [vmem:[#allocation2 + $0x528] sm:$0xff]  ;;  %v12665_v0 = vld [vmem:[#allocation2 + $0x538] sm:$0xff] }
 0x769   :  { %12935 = vmatpush1.bf16.msra.mxu0 %v12550_v11  ;;  %13017 = vmatpush1.bf16.msra.mxu1 %v12552_v12  ;;  %v12664_v11 = vld [vmem:[#allocation2 + $0x530] sm:$0xff]  ;;  %v12671_v12 = vld [vmem:[#allocation2 + $0x568] sm:$0xff] }
 0x76a   :  { %12936 = vmatprep.subr.bf16.mxu0 %v12559_v13  ;;  %13018 = vmatprep.subr.bf16.mxu1 %v12561_v14  ;;  %v12673_v13 = vld [vmem:[#allocation2 + $0x578] sm:$0xff]  ;;  %v12670_v14 = vld [vmem:[#allocation2 + $0x560] sm:$0xff] }
 0x76d   :  { %12937 = vmatpush1.bf16.msra.mxu0 %v12558_v15  ;;  %13019 = vmatpush1.bf16.msra.mxu1 %v12560_v16  ;;  %v12672_v15 = vld [vmem:[#allocation2 + $0x570] sm:$0xff]  ;;  %v12679_v16 = vld [vmem:[#allocation2 + $0x5a8] sm:$0xff] }
 0x76e   :  { %12938 = vmatprep.subr.bf16.mxu0 %v12567_v19  ;;  %13020 = vmatprep.subr.bf16.mxu1 %v12569_v22  ;;  %v12681_v19 = vld [vmem:[#allocation2 + $0x5b8] sm:$0xff]  ;;  %v12678_v22 = vld [vmem:[#allocation2 + $0x5a0] sm:$0xff] }
 0x771   :  { %12939 = vmatpush1.bf16.msra.mxu0 %v12566_v24  ;;  %13021 = vmatpush1.bf16.msra.mxu1 %v12568_v30  ;;  %v12680_v24 = vld [vmem:[#allocation2 + $0x5b0] sm:$0xff]  ;;  %v12687_v30 = vld [vmem:[#allocation2 + $0x5e8] sm:$0xff] }
 0x772   :  { %12940 = vmatprep.subr.bf16.mxu0 %v12575_v31  ;;  %13022 = vmatprep.subr.bf16.mxu1 %v12577_v32  ;;  %v12689_v31 = vld [vmem:[#allocation2 + $0x5f8] sm:$0xff]  ;;  %v12686_v32 = vld [vmem:[#allocation2 + $0x5e0] sm:$0xff] }
 0x775   :  { %12941 = vmatpush1.bf16.msra.mxu0 %v12574_v33  ;;  %13023 = vmatpush1.bf16.msra.mxu1 %v12576_v34  ;;  %v12688_v33 = vld [vmem:[#allocation2 + $0x5f0] sm:$0xff]  ;;  %v12695_v34 = vld [vmem:[#allocation2 + $0x628] sm:$0xff] }
 0x776   :  { %12942 = vmatprep.subr.bf16.mxu0 %v12583_v35  ;;  %13024 = vmatprep.subr.bf16.mxu1 %v12585_v36  ;;  %v12697_v35 = vld [vmem:[#allocation2 + $0x638] sm:$0xff]  ;;  %v12694_v36 = vld [vmem:[#allocation2 + $0x620] sm:$0xff] }
 0x779   :  { %12943 = vmatpush1.bf16.msra.mxu0 %v12582_v39  ;;  %13025 = vmatpush1.bf16.msra.mxu1 %v12584_v41  ;;  %v12696_v39 = vld [vmem:[#allocation2 + $0x630] sm:$0xff]  ;;  %v12703_v41 = vld [vmem:[#allocation2 + $0x668] sm:$0xff] }
 0x77a   :  { %12944 = vmatprep.subr.bf16.mxu0 %v12591_v43  ;;  %13026 = vmatprep.subr.bf16.mxu1 %v12593_v44  ;;  %v12705_v43 = vld [vmem:[#allocation2 + $0x678] sm:$0xff]  ;;  %v12702_v44 = vld [vmem:[#allocation2 + $0x660] sm:$0xff] }
 0x77d   :  { %12945 = vmatpush1.bf16.msra.mxu0 %v12590_v45  ;;  %13027 = vmatpush1.bf16.msra.mxu1 %v12592_v47  ;;  %v12704_v45 = vld [vmem:[#allocation2 + $0x670] sm:$0xff]  ;;  %v12711_v47 = vld [vmem:[#allocation2 + $0x6a8] sm:$0xff] }
 0x77e   :  { %12946 = vmatprep.subr.bf16.mxu0 %v12599_v42  ;;  %13028 = vmatprep.subr.bf16.mxu1 %v12601_v40  ;;  %v12713_v42 = vld [vmem:[#allocation2 + $0x6b8] sm:$0xff]  ;;  %v12710_v40 = vld [vmem:[#allocation2 + $0x6a0] sm:$0xff] }
 0x781   :  { %12947 = vmatpush1.bf16.msra.mxu0 %v12598_v48  ;;  %13029 = vmatpush1.bf16.msra.mxu1 %v12600_v23  ;;  %v12712_v48 = vld [vmem:[#allocation2 + $0x6b0] sm:$0xff]  ;;  %v12719_v23 = vld [vmem:[#allocation2 + $0x6e8] sm:$0xff] }
 0x782   :  { %12948 = vmatprep.subr.bf16.mxu0 %v12607_v50  ;;  %13030 = vmatprep.subr.bf16.mxu1 %v12609_v51  ;;  %v12721_v50 = vld [vmem:[#allocation2 + $0x6f8] sm:$0xff]  ;;  %v12718_v51 = vld [vmem:[#allocation2 + $0x6e0] sm:$0xff] }
 0x785   :  { %12949 = vmatpush1.bf16.msra.mxu0 %v12606_v54  ;;  %13031 = vmatpush1.bf16.msra.mxu1 %v12608_v28  ;;  %v12720_v54 = vld [vmem:[#allocation2 + $0x6f0] sm:$0xff]  ;;  %v12727_v28 = vld [vmem:[#allocation2 + $0x728] sm:$0xff] }
 0x786   :  { %12950 = vmatprep.subr.bf16.mxu0 %v12615_v55  ;;  %13032 = vmatprep.subr.bf16.mxu1 %v12617_v57  ;;  %v12729_v55 = vld [vmem:[#allocation2 + $0x738] sm:$0xff]  ;;  %v12726_v57 = vld [vmem:[#allocation2 + $0x720] sm:$0xff] }
 0x789   :  { %12951 = vmatpush1.bf16.msra.mxu0 %v12614_v58  ;;  %13033 = vmatpush1.bf16.msra.mxu1 %v12616_v59  ;;  %v12728_v58 = vld [vmem:[#allocation2 + $0x730] sm:$0xff]  ;;  %v12735_v59 = vld [vmem:[#allocation2 + $0x768] sm:$0xff] }
 0x78a   :  { %12952 = vmatprep.subr.bf16.mxu0 %v12623_v60  ;;  %13034 = vmatprep.subr.bf16.mxu1 %v12625_v61  ;;  %v12737_v60 = vld [vmem:[#allocation2 + $0x778] sm:$0xff]  ;;  %v12734_v61 = vld [vmem:[#allocation2 + $0x760] sm:$0xff] }
 0x78d   :  { %12953 = vmatpush1.bf16.msra.mxu0 %v12622_v63  ;;  %13035 = vmatpush1.bf16.msra.mxu1 %v12624_v25  ;;  %v12736_v63 = vld [vmem:[#allocation2 + $0x770] sm:$0xff]  ;;  %v12743_v25 = vld [vmem:[#allocation2 + $0x7a8] sm:$0xff] }
 0x78e   :  { %12963 = vmatprep.subr.bf16.mxu0 %v12631_v1  ;;  %13045 = vmatprep.subr.bf16.mxu1 %v12633_v2  ;;  %v12745_v1 = vld [vmem:[#allocation2 + $0x7b8] sm:$0xff]  ;;  %v12742_v2 = vld [vmem:[#allocation2 + $0x7a0] sm:$0xff] }
 0x790   :  { %12955 = vmatmul.mubr.bf16.vlgmr.msra.gmra.mrb[8].mxu0 %v19604_v46  ;;  %13037 = vmatmul.mubr.bf16.vlgmr.msra.gmra.mrb[16].mxu1 %v19604_v46  ;;  %v12657_v46 = vld [vmem:[#allocation2 + $0x4f8] sm:$0xff] }
 0x791   :  { %12964 = vmatpush1.bf16.msra.mxu0 %v12630_v3  ;;  %13046 = vmatpush1.bf16.msra.mxu1 %v12632_v4  ;;  %v12744_v3 = vld [vmem:[#allocation2 + $0x7b0] sm:$0xff]  ;;  %v12751_v4 = vld [vmem:[#allocation2 + $0x7e8] sm:$0xff] }
 0x792   :  { %12965 = vmatprep.subr.bf16.mxu0 %v12639_v5  ;;  %13047 = vmatprep.subr.bf16.mxu1 %v12641_v6  ;;  %v12753_v5 = vld [vmem:[#allocation2 + $0x7f8] sm:$0xff]  ;;  %v12750_v6 = vld [vmem:[#allocation2 + $0x7e0] sm:$0xff] }
 0x793   :  { %12995 = vmatprep.mubr.bf16.mxu0 %v19608_v49  ;;  %13077 = vmatprep.mubr.bf16.mxu1 %v19608_v49  ;;  %v12662_v49 = vld [vmem:[#allocation2 + $0x520] sm:$0xff] }
 0x795   :  { %12966 = vmatpush1.bf16.msra.mxu0 %v12638_v7  ;;  %13048 = vmatpush1.bf16.msra.mxu1 %v12640_v8  ;;  %v12752_v7 = vld [vmem:[#allocation2 + $0x7f0] sm:$0xff] }
 0x796   :  { %12967 = vmatprep.subr.bf16.mxu0 %v12647_v9  ;;  %13049 = vmatprep.subr.bf16.mxu1 %v12649_v29 }
 0x799   :  { %12968 = vmatpush1.bf16.msra.mxu0 %v12646_v37  ;;  %13050 = vmatpush1.bf16.msra.mxu1 %v12648_v38 }
 0x79a   :  { %12969 = vmatprep.subr.bf16.mxu0 %v12655_v10  ;;  %13051 = vmatprep.subr.bf16.mxu1 %v12657_v46 }
 0x79d   :  { %12970 = vmatpush1.bf16.msra.mxu0 %v12654_v17  ;;  %13052 = vmatpush1.bf16.msra.mxu1 %v12656_v21 }
 0x79e   :  { %12971 = vmatprep.subr.bf16.mxu0 %v12663_v62  ;;  %13053 = vmatprep.subr.bf16.mxu1 %v12665_v0 }
 0x7a1   :  { %12972 = vmatpush1.bf16.msra.mxu0 %v12662_v49  ;;  %13054 = vmatpush1.bf16.msra.mxu1 %v12664_v11 }
 0x7a2   :  { %12973 = vmatprep.subr.bf16.mxu0 %v12671_v12  ;;  %13055 = vmatprep.subr.bf16.mxu1 %v12673_v13 }
 0x7a5   :  { %12974 = vmatpush1.bf16.msra.mxu0 %v12670_v14  ;;  %13056 = vmatpush1.bf16.msra.mxu1 %v12672_v15 }
 0x7a6   :  { %12975 = vmatprep.subr.bf16.mxu0 %v12679_v16  ;;  %13057 = vmatprep.subr.bf16.mxu1 %v12681_v19 }
 0x7a9   :  { %12976 = vmatpush1.bf16.msra.mxu0 %v12678_v22  ;;  %13058 = vmatpush1.bf16.msra.mxu1 %v12680_v24 }
 0x7aa   :  { %12977 = vmatprep.subr.bf16.mxu0 %v12687_v30  ;;  %13059 = vmatprep.subr.bf16.mxu1 %v12689_v31 }
 0x7ad   :  { %12978 = vmatpush1.bf16.msra.mxu0 %v12686_v32  ;;  %13060 = vmatpush1.bf16.msra.mxu1 %v12688_v33 }
 0x7ae   :  { %12979 = vmatprep.subr.bf16.mxu0 %v12695_v34  ;;  %13061 = vmatprep.subr.bf16.mxu1 %v12697_v35 }
 0x7b1   :  { %12980 = vmatpush1.bf16.msra.mxu0 %v12694_v36  ;;  %13062 = vmatpush1.bf16.msra.mxu1 %v12696_v39 }
 0x7b2   :  { %12981 = vmatprep.subr.bf16.mxu0 %v12703_v41  ;;  %13063 = vmatprep.subr.bf16.mxu1 %v12705_v43 }
 0x7b5   :  { %12982 = vmatpush1.bf16.msra.mxu0 %v12702_v44  ;;  %13064 = vmatpush1.bf16.msra.mxu1 %v12704_v45 }
 0x7b6   :  { %12983 = vmatprep.subr.bf16.mxu0 %v12711_v47  ;;  %13065 = vmatprep.subr.bf16.mxu1 %v12713_v42 }
 0x7b9   :  { %12984 = vmatpush1.bf16.msra.mxu0 %v12710_v40  ;;  %13066 = vmatpush1.bf16.msra.mxu1 %v12712_v48 }
 0x7ba   :  { %12985 = vmatprep.subr.bf16.mxu0 %v12719_v23  ;;  %13067 = vmatprep.subr.bf16.mxu1 %v12721_v50 }
 0x7bd   :  { %12986 = vmatpush1.bf16.msra.mxu0 %v12718_v51  ;;  %13068 = vmatpush1.bf16.msra.mxu1 %v12720_v54 }
 0x7be   :  { %12987 = vmatprep.subr.bf16.mxu0 %v12727_v28  ;;  %13069 = vmatprep.subr.bf16.mxu1 %v12729_v55 }
 0x7c1   :  { %12988 = vmatpush1.bf16.msra.mxu0 %v12726_v57  ;;  %13070 = vmatpush1.bf16.msra.mxu1 %v12728_v58 }
 0x7c2   :  { %12989 = vmatprep.subr.bf16.mxu0 %v12735_v59  ;;  %13071 = vmatprep.subr.bf16.mxu1 %v12737_v60 }
 0x7c5   :  { %12990 = vmatpush1.bf16.msra.mxu0 %v12734_v61  ;;  %13072 = vmatpush1.bf16.msra.mxu1 %v12736_v63 }
 0x7c6   :  { %12991 = vmatprep.subr.bf16.mxu0 %v12743_v25  ;;  %13073 = vmatprep.subr.bf16.mxu1 %v12745_v1 }
 0x7c9   :  { %12992 = vmatpush1.bf16.msra.mxu0 %v12742_v2  ;;  %13074 = vmatpush1.bf16.msra.mxu1 %v12744_v3 }
 0x7ca   :  { %12993 = vmatprep.subr.bf16.mxu0 %v12751_v4  ;;  %13075 = vmatprep.subr.bf16.mxu1 %v12753_v5 }
 0x7cd   :  { %12994 = vmatpush1.bf16.msra.mxu0 %v12750_v6  ;;  %13076 = vmatpush1.bf16.msra.mxu1 %v12752_v7 }
 0x7d0   :  { %12996 = vmatmul.mubr.bf16.vlgmr.msra.gmra.mrb[8].mxu0 %v19616_v56  ;;  %13078 = vmatmul.mubr.bf16.vlgmr.msra.gmra.mrb[16].mxu1 %v19616_v56 }
 0x823   :  { %v19628_v8 = vpop.f32.mrb[4].mxu0  ;;  %v19630_v9 = vpop.f32.mrb[12].mxu1 }
 0x824   :  { %v13088_v29 = vrot.slane %v19628_v8, 4  ;;  %v13100_v37 = vrot.slane %v19630_v9, 4  ;;  %v19634_v38 = vpop.f32.mrb[5].mxu0  ;;  %v19636_v10 = vpop.f32.mrb[13].mxu1 }
 0x825   :  { %v13094_v46 = vrot.slane %v19634_v38, 4  ;;  %v13106_v17 = vrot.slane %v19636_v10, 4  ;;  %v12837_v21 = vpop.f32.mrb[6].mxu0  ;;  %v12919_v62 = vpop.f32.mrb[14].mxu1 }
 0x826   :  { %v13089_v56 = vadd.f32 %v13088_v29, %v19628_v8  ;;  %v13101_v0 = vadd.f32 %v13100_v37, %v19630_v9  ;;  %v12838_v49 = vpop.f32.mrb[7].mxu0  ;;  %v12920_v11 = vpop.f32.mrb[15].mxu1 }
 0x827   :  { %v13095_v12 = vadd.f32 %v13094_v46, %v19634_v38  ;;  %v13107_v13 = vadd.f32 %v13106_v17, %v19636_v10 }
 0x828   :  { %v13090_v14 = vrot.slane %v13089_v56, 2  ;;  %v13102_v15 = vrot.slane %v13101_v0, 2 }
 0x829   :  { %v13096_v16 = vrot.slane %v13095_v12, 2  ;;  %v13108_v19 = vrot.slane %v13107_v13, 2 }
 0x82a   :  { %v13091_v22 = vadd.f32 %v13090_v14, %v13089_v56  ;;  %v13103_v24 = vadd.f32 %v13102_v15, %v13101_v0 }
 0x82b   :  { %v13097_v30 = vadd.f32 %v13096_v16, %v13095_v12  ;;  %v13109_v31 = vadd.f32 %v13108_v19, %v13107_v13 }
 0x82c   :  { %v13092_v32 = vrot.slane %v13091_v22, 1  ;;  %v13104_v33 = vrot.slane %v13103_v24, 1 }
 0x82d   :  { %v13098_v34 = vrot.slane %v13097_v30, 1  ;;  %v13110_v35 = vrot.slane %v13109_v31, 1 }
 0x82e   :  { %v13093_v36 = vadd.f32 %v13092_v32, %v13091_v22  ;;  %v13105_v39 = vadd.f32 %v13104_v33, %v13103_v24 }
 0x82f   :  { %v13099_v41 = vadd.f32 %v13098_v34, %v13097_v30  ;;  %v13111_v43 = vadd.f32 %v13110_v35, %v13109_v31 }
 0x830   :  { %v19644_v44 = vmul.f32 0.125, %v13093_v36  ;;  %v19646_v45 = vmul.f32 0.125, %v13105_v39 }
 0x831   :  { %v19648_v47 = vmul.f32 0.125, %v13099_v41  ;;  %v19650_v42 = vmul.f32 0.125, %v13111_v43 }
 0x832   :  { %v13144_v40 = vsub.f32 %v19628_v8, %v19644_v44  ;;  %v13146_v48 = vsub.f32 %v19630_v9, %v19646_v45 }
 0x833   :  { %v13145_v23 = vsub.f32 %v19634_v38, %v19648_v47  ;;  %v13147_v50 = vsub.f32 %v19636_v10, %v19650_v42 }
 0x834   :  { %v13152_v51 = vmul.f32 %v13144_v40, %v13144_v40  ;;  %v13154_v54 = vmul.f32 %v13146_v48, %v13146_v48 }
 0x835   :  { %v13153_v28 = vmul.f32 %v13145_v23, %v13145_v23  ;;  %v13155_v55 = vmul.f32 %v13147_v50, %v13147_v50 }
 0x836   :  { %v13160_v57 = vrot.slane %v13152_v51, 4  ;;  %v13172_v58 = vrot.slane %v13154_v54, 4 }
 0x837   :  { %v13166_v59 = vrot.slane %v13153_v28, 4  ;;  %v13178_v60 = vrot.slane %v13155_v55, 4 }
 0x838   :  { %v13161_v61 = vadd.f32 %v13160_v57, %v13152_v51  ;;  %v13173_v63 = vadd.f32 %v13172_v58, %v13154_v54 }
 0x839   :  { %v13167_v25 = vadd.f32 %v13166_v59, %v13153_v28  ;;  %v13179_v1 = vadd.f32 %v13178_v60, %v13155_v55 }
 0x83a   :  { %v13162_v2 = vrot.slane %v13161_v61, 2  ;;  %v13174_v3 = vrot.slane %v13173_v63, 2 }
 0x83b   :  { %v13168_v4 = vrot.slane %v13167_v25, 2  ;;  %v13180_v5 = vrot.slane %v13179_v1, 2 }
 0x83c   :  { %v13163_v6 = vadd.f32 %v13162_v2, %v13161_v61  ;;  %v13175_v7 = vadd.f32 %v13174_v3, %v13173_v63 }
 0x83d   :  { %v13169_v29 = vadd.f32 %v13168_v4, %v13167_v25  ;;  %v13181_v37 = vadd.f32 %v13180_v5, %v13179_v1 }
 0x83e   :  { %v13164_v46 = vrot.slane %v13163_v6, 1  ;;  %v13176_v17 = vrot.slane %v13175_v7, 1 }
 0x83f   :  { %v13170_v21 = vrot.slane %v13169_v29, 1  ;;  %v13182_v62 = vrot.slane %v13181_v37, 1 }
 0x840   :  { %v13165_v56 = vadd.f32 %v13164_v46, %v13163_v6  ;;  %v13177_v0 = vadd.f32 %v13176_v17, %v13175_v7 }
 0x841   :  { %v13171_v49 = vadd.f32 %v13170_v21, %v13169_v29  ;;  %v13183_v11 = vadd.f32 %v13182_v62, %v13181_v37 }
 0x842   :  { %v13208_v12 = vmul.f32 0.125, %v13165_v56  ;;  %v13210_v13 = vmul.f32 0.125, %v13177_v0 }
 0x843   :  { %v13209_v14 = vmul.f32 0.125, %v13171_v49  ;;  %v13211_v15 = vmul.f32 0.125, %v13183_v11 }
 0x844   :  { %v13216_v16 = vadd.f32 1e-05, %v13208_v12  ;;  %v13218_v19 = vadd.f32 1e-05, %v13210_v13 }
 0x845   :  { %v13217_v22 = vadd.f32 1e-05, %v13209_v14  ;;  %v13219_v24 = vadd.f32 1e-05, %v13211_v15 }
 0x846   :  { %15170 = vrsqrt.f32 %v13216_v16 }
 0x847   :  { %15172 = vrsqrt.f32 %v13218_v19 }
 0x848   :  { %15174 = vrsqrt.f32 %v13217_v22 }
 0x849   :  { %15176 = vrsqrt.f32 %v13219_v24 }
 0x850   :  { %v15171_v30 = vpop.eup %15170 }
 0x851   :  { %v15173_v31 = vpop.eup %15172 }
 0x852   :  { %v15175_v32 = vpop.eup %15174 }
 0x853   :  { %v15177_v33 = vpop.eup %15176  ;;  %v13240_v34 = vcombine.low %v15171_v30, %v15175_v32 }
 0x854   :  { %v13241_v35 = vcombine.low %v15173_v31, %v15177_v33 }
 0x855   :  { %v19661_v36 = vrot.slane %v13240_v34, %v19427_v20 }
 0x856   :  { %v19664_v39 = vrot.slane %v13241_v35, %v19427_v20 }
 0x858   :  { %v13272_v41 = vcombine.low %v19661_v36, %v19664_v39 }
 0x8a3   :  { %v19668_v43 = vpop.f32.mrb[8].mxu0  ;;  %v19670_v40 = vpop.f32.mrb[16].mxu1 }
 0x8a4   :  { %v13112_v48 = vrot.slane %v19668_v43, 4  ;;  %v13124_v23 = vrot.slane %v19670_v40, 4  ;;  %v19674_v50 = vpop.f32.mrb[9].mxu0  ;;  %v19676_v51 = vpop.f32.mrb[17].mxu1 }
 0x8a5   :  { %v13118_v54 = vrot.slane %v19674_v50, 4  ;;  %v13130_v28 = vrot.slane %v19676_v51, 4  ;;  %v13001_v55 = vpop.f32.mrb[10].mxu0  ;;  %v13083_v57 = vpop.f32.mrb[18].mxu1 }
 0x8a6   :  { %v13113_v58 = vadd.f32 %v13112_v48, %v19668_v43  ;;  %v13125_v59 = vadd.f32 %v13124_v23, %v19670_v40  ;;  %v13002_v60 = vpop.f32.mrb[11].mxu0  ;;  %v13084_v61 = vpop.f32.mrb[19].mxu1 }
 0x8a7   :  { %v13119_v63 = vadd.f32 %v13118_v54, %v19674_v50  ;;  %v13131_v25 = vadd.f32 %v13130_v28, %v19676_v51 }
 0x8a8   :  { %v13114_v1 = vrot.slane %v13113_v58, 2  ;;  %v13126_v2 = vrot.slane %v13125_v59, 2 }
 0x8a9   :  { %v13120_v3 = vrot.slane %v13119_v63, 2  ;;  %v13132_v4 = vrot.slane %v13131_v25, 2 }
 0x8aa   :  { %v13115_v5 = vadd.f32 %v13114_v1, %v13113_v58  ;;  %v13127_v6 = vadd.f32 %v13126_v2, %v13125_v59 }
 0x8ab   :  { %v13121_v7 = vadd.f32 %v13120_v3, %v13119_v63  ;;  %v13133_v29 = vadd.f32 %v13132_v4, %v13131_v25 }
 0x8ac   :  { %v13116_v37 = vrot.slane %v13115_v5, 1  ;;  %v13128_v46 = vrot.slane %v13127_v6, 1 }
 0x8ad   :  { %v13122_v17 = vrot.slane %v13121_v7, 1  ;;  %v13134_v21 = vrot.slane %v13133_v29, 1 }
 0x8ae   :  { %v13117_v62 = vadd.f32 %v13116_v37, %v13115_v5  ;;  %v13129_v56 = vadd.f32 %v13128_v46, %v13127_v6 }
 0x8af   :  { %v13123_v0 = vadd.f32 %v13122_v17, %v13121_v7  ;;  %v13135_v49 = vadd.f32 %v13134_v21, %v13133_v29 }
 0x8b0   :  { %v19684_v11 = vmul.f32 0.125, %v13117_v62  ;;  %v19686_v12 = vmul.f32 0.125, %v13129_v56 }
 0x8b1   :  { %v19688_v13 = vmul.f32 0.125, %v13123_v0  ;;  %v19690_v14 = vmul.f32 0.125, %v13135_v49 }
 0x8b2   :  { %v13148_v15 = vsub.f32 %v19668_v43, %v19684_v11  ;;  %v13150_v16 = vsub.f32 %v19670_v40, %v19686_v12 }
 0x8b3   :  { %v13149_v19 = vsub.f32 %v19674_v50, %v19688_v13  ;;  %v13151_v22 = vsub.f32 %v19676_v51, %v19690_v14 }
 0x8b4   :  { %v13156_v24 = vmul.f32 %v13148_v15, %v13148_v15  ;;  %v13158_v30 = vmul.f32 %v13150_v16, %v13150_v16 }
 0x8b5   :  { %v13157_v31 = vmul.f32 %v13149_v19, %v13149_v19  ;;  %v13159_v32 = vmul.f32 %v13151_v22, %v13151_v22 }
 0x8b6   :  { %v13184_v33 = vrot.slane %v13156_v24, 4  ;;  %v13196_v34 = vrot.slane %v13158_v30, 4 }
 0x8b7   :  { %v13190_v35 = vrot.slane %v13157_v31, 4  ;;  %v13202_v48 = vrot.slane %v13159_v32, 4 }
 0x8b8   :  { %v13185_v23 = vadd.f32 %v13184_v33, %v13156_v24  ;;  %v13197_v54 = vadd.f32 %v13196_v34, %v13158_v30 }
 0x8b9   :  { %v13191_v28 = vadd.f32 %v13190_v35, %v13157_v31  ;;  %v13203_v55 = vadd.f32 %v13202_v48, %v13159_v32  ;;  %v13280_v35 = vrot.slane %v13272_v41, %v19427_v20 }
 0x8ba   :  { %v13186_v57 = vrot.slane %v13185_v23, 2  ;;  %v13198_v58 = vrot.slane %v13197_v54, 2 }
 0x8bb   :  { %v13192_v59 = vrot.slane %v13191_v28, 2  ;;  %v13204_v60 = vrot.slane %v13203_v55, 2 }
 0x8bc   :  { %v13187_v61 = vadd.f32 %v13186_v57, %v13185_v23  ;;  %v13199_v63 = vadd.f32 %v13198_v58, %v13197_v54  ;;  %v13086_v23 = vld [vmem:[%s19876_s10] sm:$0xff]  ;;  %v19717_v57 = vsub.s32 6, %v19424_v18  ;;  %v13322_v58 = vsub.s32 7, %v19424_v18 }
 0x8bd   :  { %v13193_v25 = vadd.f32 %v13192_v59, %v13191_v28  ;;  %v13205_v1 = vadd.f32 %v13204_v60, %v13203_v55  ;;  %v19711_v28 = vsub.s32 4, %v19424_v18  ;;  %v19714_v55 = vsub.s32 5, %v19424_v18 }
 0x8be   :  { %v13188_v2 = vrot.slane %v13187_v61, 1  ;;  %v13200_v3 = vrot.slane %v13199_v63, 1 }
 0x8bf   :  { %v13194_v4 = vrot.slane %v13193_v25, 1  ;;  %v13206_v5 = vrot.slane %v13205_v1, 1 }
 0x8c0   :  { %v13189_v6 = vadd.f32 %v13188_v2, %v13187_v61  ;;  %v13201_v7 = vadd.f32 %v13200_v3, %v13199_v63 }
 0x8c1   :  { %v13195_v29 = vadd.f32 %v13194_v4, %v13193_v25  ;;  %v13207_v37 = vadd.f32 %v13206_v5, %v13205_v1 }
 0x8c2   :  { %v13212_v46 = vmul.f32 0.125, %v13189_v6  ;;  %v13214_v17 = vmul.f32 0.125, %v13201_v7 }
 0x8c3   :  { %v13213_v21 = vmul.f32 0.125, %v13195_v29  ;;  %v13215_v62 = vmul.f32 0.125, %v13207_v37 }
 0x8c4   :  { %v13220_v56 = vadd.f32 1e-05, %v13212_v46  ;;  %v13222_v0 = vadd.f32 1e-05, %v13214_v17 }
 0x8c5   :  { %v13221_v49 = vadd.f32 1e-05, %v13213_v21  ;;  %v13223_v15 = vadd.f32 1e-05, %v13215_v62 }
 0x8c6   :  { %15178 = vrsqrt.f32 %v13220_v56 }
 0x8c7   :  { %15180 = vrsqrt.f32 %v13222_v0 }
 0x8c8   :  { %15182 = vrsqrt.f32 %v13221_v49 }
 0x8c9   :  { %15184 = vrsqrt.f32 %v13223_v15 }
 0x8d0   :  { %v15179_v16 = vpop.eup %15178 }
 0x8d1   :  { %v15181_v19 = vpop.eup %15180 }
 0x8d2   :  { %v15183_v22 = vpop.eup %15182 }
 0x8d3   :  { %v15185_v24 = vpop.eup %15184  ;;  %v13242_v30 = vcombine.low %v15179_v16, %v15183_v22 }
 0x8d4   :  { %v13243_v31 = vcombine.low %v15181_v19, %v15185_v24 }
 0x8d5   :  { %v13264_v32 = vrot.slane %v13242_v30, %v19427_v20 }
 0x8d6   :  { %v13271_v33 = vrot.slane %v13243_v31, %v19427_v20 }
 0x8d8   :  { %v13273_v34 = vcombine.low %v13264_v32, %v13271_v33 }
 0x8da   :  { %v13287_v48 = vrot.slane %v13273_v34, %v19427_v20 }
 0x8dc   :  { %v13288_v54 = vcombine.low %v13280_v35, %v13287_v48 }
 0x8de   :  { %v13290_v36 = vmul.f32 %v13288_v54, %v13086_v23 }
 0x8e0   :  { %v13295_v39 = vrot.slane %v13290_v36, %v19435_v26  ;;  %v13299_v41 = vrot.slane %v13290_v36, %v19438_v27  ;;  %v13303_v59 = vrot.slane %v13290_v36, %v19569_v52  ;;  %v13307_v60 = vrot.slane %v13290_v36, %v19572_v53 }
 0x8e1   :  { %v13311_v61 = vrot.slane %v13290_v36, %v19711_v28  ;;  %v13315_v63 = vrot.slane %v13290_v36, %v19714_v55  ;;  %v13319_v25 = vrot.slane %v13290_v36, %v19717_v57  ;;  %v13323_v1 = vrot.slane %v13290_v36, %v13322_v58 }
 0x8e2   :  { %v13332_v2 = vmul.f32 %v13295_v39, %v19644_v44  ;;  %v13333_v18 = vmul.f32 %v13299_v41, %v19648_v47  ;;  %v13334_v3 = vmul.f32 %v13303_v59, %v19646_v45  ;;  %v13335_v4 = vmul.f32 %v13307_v60, %v19650_v42 }
 0x8e3   :  { %v13336_v5 = vmul.f32 %v13311_v61, %v19684_v11  ;;  %v13337_v6 = vmul.f32 %v13315_v63, %v19688_v13  ;;  %v13338_v7 = vmul.f32 %v13319_v25, %v19686_v12  ;;  %v13339_v29 = vmul.f32 %v13323_v1, %v19690_v14 }
 0x8e4   :  { %v13348_v37 = vcombine.low %v13332_v2, %v13333_v18  ;;  %v13349_v46 = vcombine.low %v13334_v3, %v13335_v4  ;;  %v13399_v17 = vmul.f32 %v13295_v39, %v19628_v8  ;;  %v13400_v44 = vmul.f32 %v13299_v41, %v19634_v38 }
 0x8e5   :  { %v13350_v21 = vcombine.low %v13336_v5, %v13337_v6  ;;  %v13351_v47 = vcombine.low %v13338_v7, %v13339_v29  ;;  %v13401_v45 = vmul.f32 %v13303_v59, %v19630_v9  ;;  %v13402_v42 = vmul.f32 %v13307_v60, %v19636_v10 }
 0x8e6   :  { %v13358_v11 = vrot.slane %v13348_v37, %v19427_v20  ;;  %v13365_v13 = vrot.slane %v13349_v46, %v19427_v20  ;;  %v13403_v12 = vmul.f32 %v13311_v61, %v19668_v43  ;;  %v13404_v14 = vmul.f32 %v13315_v63, %v19674_v50  ;;  %v13087_v43 = vld [vmem:[%s19877_s11] sm:$0xff] }
 0x8e7   :  { %v13372_v62 = vrot.slane %v13350_v21, %v19427_v20  ;;  %v13379_v8 = vrot.slane %v13351_v47, %v19427_v20  ;;  %v13405_v38 = vmul.f32 %v13319_v25, %v19670_v40  ;;  %v13406_v56 = vmul.f32 %v13323_v1, %v19676_v51 }
 0x8e8   :  { %v13380_v0 = vcombine.low %v13358_v11, %v13365_v13 }
 0x8e9   :  { %v13381_v9 = vcombine.low %v13372_v62, %v13379_v8 }
 0x8ea   :  { %v13388_v10 = vrot.slane %v13380_v0, %v19427_v20 }
 0x8eb   :  { %v13395_v49 = vrot.slane %v13381_v9, %v19427_v20 }
 0x8ed   :  { %v13396_v15 = vcombine.low %v13388_v10, %v13395_v49 }
 0x8ef   :  { %v13398_v50 = vsub.f32 %v13087_v43, %v13396_v15 }
 0x8f1   :  { %v13411_v16 = vrot.slane %v13398_v50, %v19435_v26  ;;  %v13415_v19 = vrot.slane %v13398_v50, %v19438_v27  ;;  %v13419_v40 = vrot.slane %v13398_v50, %v19569_v52  ;;  %v13423_v51 = vrot.slane %v13398_v50, %v19572_v53 }
 0x8f2   :  { %v13427_v22 = vrot.slane %v13398_v50, %v19711_v28  ;;  %v13431_v24 = vrot.slane %v13398_v50, %v19714_v55  ;;  %v13435_v20 = vrot.slane %v13398_v50, %v19717_v57  ;;  %v13439_v30 = vrot.slane %v13398_v50, %v13322_v58 }
 0x8f3   :  { %v13448_v31 = vadd.f32 %v13411_v16, %v13399_v17  ;;  %v13449_v32 = vadd.f32 %v13415_v19, %v13400_v44  ;;  %v13450_v33 = vadd.f32 %v13419_v40, %v13401_v45  ;;  %v13451_v34 = vadd.f32 %v13423_v51, %v13402_v42 }
 0x8f4   :  { %v13452_v35 = vadd.f32 %v13427_v22, %v13403_v12  ;;  %v13453_v48 = vadd.f32 %v13431_v24, %v13404_v14  ;;  %v13454_v23 = vadd.f32 %v13435_v20, %v13405_v38  ;;  %v13455_v54 = vadd.f32 %v13439_v30, %v13406_v56 }
 0x8f5   :  { %v13456_v36 = vmul.f32 0.2, %v13448_v31  ;;  %v13457_v39 = vmul.f32 0.2, %v13449_v32  ;;  %v13458_v41 = vmul.f32 0.2, %v13450_v33 }
 0x8f6   :  { %v13459_v59 = vmul.f32 0.2, %v13451_v34  ;;  %v13460_v60 = vmul.f32 0.2, %v13452_v35  ;;  %v13461_v61 = vmul.f32 0.2, %v13453_v48 }
 0x8f7   :  { %v13462_v63 = vmul.f32 0.2, %v13454_v23  ;;  %v13463_v25 = vmul.f32 0.2, %v13455_v54  ;;  %v19759_v1 = vmax.f32 %v13448_v31, %v13456_v36  ;;  %v13465_v2 = vmax.f32 %v13449_v32, %v13457_v39 }
 0x8f8   :  { %v19761_v58 = vmax.f32 %v13450_v33, %v13458_v41  ;;  %v19763_v18 = vmax.f32 %v13451_v34, %v13459_v59  ;;  %v19765_v3 = vmax.f32 %v13452_v35, %v13460_v60  ;;  %v19767_v4 = vmax.f32 %v13453_v48, %v13461_v61 }
 0x8f9   :  { %v19769_v5 = vmax.f32 %v13454_v23, %v13462_v63  ;;  %v19771_v6 = vmax.f32 %v13455_v54, %v13463_v25 }
 0x8fa   :  { %15224 = dma.done.wait [#allocation4 + $0x1], 57344 }
 0x8fb   :  { %15225 = vsyncadd [#allocation4 + $0x1], 4294909952  ;;  %v19773_v7 = vpack.c.bf16 %v13465_v2, %v13465_v2  ;;  %v13477_v29 = vld [vmem:[#allocation3 + $0x8] sm:$0xff]  ;;  %v13479_v37 = vld [vmem:[#allocation3 + $0x18] sm:$0xff]  ;;  %vm14634_vm3 = vcmask 130048  }
 0x8fc   :  { %v13476_v46 = vld [vmem:[#allocation3] sm:$0xff]  ;;  %13969 = vmatprep.subr.bf16.mxu0 %v13477_v29  ;;  %14133 = vmatprep.subr.bf16.mxu1 %v13479_v37  ;;  %v13478_v17 = vld [vmem:[#allocation3 + $0x10] sm:$0xff]  ;;  %v13483_v47 = vld [vmem:[#allocation3 + $0x38] sm:$0xff] }
 0x8fd   :  { %14001 = vmatprep.mubr.bf16.mxu0 %v19773_v7  ;;  %14165 = vmatprep.mubr.bf16.mxu1 %v19773_v7  ;;  %v13484_v44 = vld [vmem:[#allocation3 + $0x40] sm:$0xff]  ;;  %v13486_v21 = vld [vmem:[#allocation3 + $0x50] sm:$0xff]  ;;  %v13485_v45 = vld [vmem:[#allocation3 + $0x48] sm:$0xff] }
 0x8fe   :  { %13970 = vmatpush1.bf16.msra.mxu0 %v13476_v46  ;;  %14134 = vmatpush1.bf16.msra.mxu1 %v13478_v17  ;;  %v13491_v42 = vld [vmem:[#allocation3 + $0x78] sm:$0xff]  ;;  %v13493_v11 = vld [vmem:[#allocation3 + $0x88] sm:$0xff]  ;;  %v13490_v13 = vld [vmem:[#allocation3 + $0x70] sm:$0xff] }
 0x8ff   :  { %13971 = vmatprep.subr.bf16.mxu0 %v13484_v44  ;;  %14135 = vmatprep.subr.bf16.mxu1 %v13486_v21  ;;  %v13492_v12 = vld [vmem:[#allocation3 + $0x80] sm:$0xff]  ;;  %v13498_v14 = vld [vmem:[#allocation3 + $0xb0] sm:$0xff]  ;;  %v13497_v8 = vld [vmem:[#allocation3 + $0xa8] sm:$0xff] }
 0x900   :  { %v13500_v62 = vld [vmem:[#allocation3 + $0xc0] sm:$0xff]  ;;  %v13499_v38 = vld [vmem:[#allocation3 + $0xb8] sm:$0xff]  ;;  %v13505_v56 = vld [vmem:[#allocation3 + $0xe8] sm:$0xff] }
 0x901   :  { %v13507_v0 = vld [vmem:[#allocation3 + $0xf8] sm:$0xff]  ;;  %v13504_v9 = vld [vmem:[#allocation3 + $0xe0] sm:$0xff]  ;;  %v13506_v10 = vld [vmem:[#allocation3 + $0xf0] sm:$0xff] }
 0x902   :  { %13972 = vmatpush1.bf16.msra.mxu0 %v13483_v47  ;;  %14136 = vmatpush1.bf16.msra.mxu1 %v13485_v45  ;;  %v13512_v49 = vld [vmem:[#allocation3 + $0x120] sm:$0xff]  ;;  %v13514_v43 = vld [vmem:[#allocation3 + $0x130] sm:$0xff]  ;;  %v13511_v15 = vld [vmem:[#allocation3 + $0x118] sm:$0xff] }
 0x903   :  { %13973 = vmatprep.subr.bf16.mxu0 %v13491_v42  ;;  %14137 = vmatprep.subr.bf16.mxu1 %v13493_v11  ;;  %v13513_v50 = vld [vmem:[#allocation3 + $0x128] sm:$0xff]  ;;  %v13519_v16 = vld [vmem:[#allocation3 + $0x158] sm:$0xff]  ;;  %v13518_v40 = vld [vmem:[#allocation3 + $0x150] sm:$0xff] }
 0x904   :  { %v13521_v19 = vld [vmem:[#allocation3 + $0x168] sm:$0xff]  ;;  %v13520_v51 = vld [vmem:[#allocation3 + $0x160] sm:$0xff]  ;;  %v13526_v22 = vld [vmem:[#allocation3 + $0x190] sm:$0xff] }
 0x905   :  { %v13528_v24 = vld [vmem:[#allocation3 + $0x1a0] sm:$0xff]  ;;  %v13525_v20 = vld [vmem:[#allocation3 + $0x188] sm:$0xff]  ;;  %v13527_v30 = vld [vmem:[#allocation3 + $0x198] sm:$0xff] }
 0x906   :  { %13974 = vmatpush1.bf16.msra.mxu0 %v13490_v13  ;;  %14138 = vmatpush1.bf16.msra.mxu1 %v13492_v12  ;;  %v13533_v31 = vld [vmem:[#allocation3 + $0x1c8] sm:$0xff]  ;;  %v13535_v32 = vld [vmem:[#allocation3 + $0x1d8] sm:$0xff]  ;;  %v13532_v33 = vld [vmem:[#allocation3 + $0x1c0] sm:$0xff] }
 0x907   :  { %13975 = vmatprep.subr.bf16.mxu0 %v13498_v14  ;;  %14139 = vmatprep.subr.bf16.mxu1 %v13500_v62  ;;  %v13534_v34 = vld [vmem:[#allocation3 + $0x1d0] sm:$0xff]  ;;  %v13540_v35 = vld [vmem:[#allocation3 + $0x200] sm:$0xff]  ;;  %v13539_v23 = vld [vmem:[#allocation3 + $0x1f8] sm:$0xff] }
 0x908   :  { %v13542_v48 = vld [vmem:[#allocation3 + $0x210] sm:$0xff]  ;;  %v13541_v54 = vld [vmem:[#allocation3 + $0x208] sm:$0xff]  ;;  %v13547_v36 = vld [vmem:[#allocation3 + $0x238] sm:$0xff] }
 0x909   :  { %v13549_v39 = vld [vmem:[#allocation3 + $0x248] sm:$0xff]  ;;  %v13546_v41 = vld [vmem:[#allocation3 + $0x230] sm:$0xff]  ;;  %v13548_v59 = vld [vmem:[#allocation3 + $0x240] sm:$0xff] }
 0x90a   :  { %13976 = vmatpush1.bf16.msra.mxu0 %v13497_v8  ;;  %14140 = vmatpush1.bf16.msra.mxu1 %v13499_v38  ;;  %v13554_v60 = vld [vmem:[#allocation3 + $0x270] sm:$0xff]  ;;  %v13556_v61 = vld [vmem:[#allocation3 + $0x280] sm:$0xff]  ;;  %v13553_v63 = vld [vmem:[#allocation3 + $0x268] sm:$0xff] }
 0x90b   :  { %13977 = vmatprep.subr.bf16.mxu0 %v13505_v56  ;;  %14141 = vmatprep.subr.bf16.mxu1 %v13507_v0  ;;  %v13555_v25 = vld [vmem:[#allocation3 + $0x278] sm:$0xff]  ;;  %v13561_v2 = vld [vmem:[#allocation3 + $0x2a8] sm:$0xff]  ;;  %v13560_v37 = vld [vmem:[#allocation3 + $0x2a0] sm:$0xff]  ;;  %v19779_v0 = vpack.c.bf16 %v19759_v1, %v19759_v1 }
 0x90c   :  { %v13563_v29 = vld [vmem:[#allocation3 + $0x2b8] sm:$0xff]  ;;  %v13562_v46 = vld [vmem:[#allocation3 + $0x2b0] sm:$0xff]  ;;  %v13568_v17 = vld [vmem:[#allocation3 + $0x2e0] sm:$0xff] }
 0x90d   :  { %v13570_v44 = vld [vmem:[#allocation3 + $0x2f0] sm:$0xff]  ;;  %v13567_v21 = vld [vmem:[#allocation3 + $0x2d8] sm:$0xff]  ;;  %v13569_v47 = vld [vmem:[#allocation3 + $0x2e8] sm:$0xff] }
 0x90e   :  { %13978 = vmatpush1.bf16.msra.mxu0 %v13504_v9  ;;  %14142 = vmatpush1.bf16.msra.mxu1 %v13506_v10  ;;  %v13575_v45 = vld [vmem:[#allocation3 + $0x318] sm:$0xff]  ;;  %v13577_v42 = vld [vmem:[#allocation3 + $0x328] sm:$0xff]  ;;  %v13574_v11 = vld [vmem:[#allocation3 + $0x310] sm:$0xff] }
 0x90f   :  { %13979 = vmatprep.subr.bf16.mxu0 %v13512_v49  ;;  %14143 = vmatprep.subr.bf16.mxu1 %v13514_v43  ;;  %v13576_v13 = vld [vmem:[#allocation3 + $0x320] sm:$0xff]  ;;  %v13582_v12 = vld [vmem:[#allocation3 + $0x350] sm:$0xff]  ;;  %v13581_v62 = vld [vmem:[#allocation3 + $0x348] sm:$0xff] }
 0x910   :  { %v13584_v14 = vld [vmem:[#allocation3 + $0x360] sm:$0xff]  ;;  %v13583_v8 = vld [vmem:[#allocation3 + $0x358] sm:$0xff]  ;;  %v13589_v38 = vld [vmem:[#allocation3 + $0x388] sm:$0xff] }
 0x911   :  { %v13591_v56 = vld [vmem:[#allocation3 + $0x398] sm:$0xff]  ;;  %v13588_v9 = vld [vmem:[#allocation3 + $0x380] sm:$0xff]  ;;  %v13590_v10 = vld [vmem:[#allocation3 + $0x390] sm:$0xff] }
 0x912   :  { %13980 = vmatpush1.bf16.msra.mxu0 %v13511_v15  ;;  %14144 = vmatpush1.bf16.msra.mxu1 %v13513_v50  ;;  %v13596_v49 = vld [vmem:[#allocation3 + $0x3c0] sm:$0xff]  ;;  %v13598_v43 = vld [vmem:[#allocation3 + $0x3d0] sm:$0xff]  ;;  %v19783_v15 = vpack.c.bf16 %v19763_v18, %v19763_v18  ;;  %v13595_v1 = vld [vmem:[#allocation3 + $0x3b8] sm:$0xff] }
 0x913   :  { %13981 = vmatprep.subr.bf16.mxu0 %v13519_v16  ;;  %14145 = vmatprep.subr.bf16.mxu1 %v13521_v19  ;;  %v13597_v50 = vld [vmem:[#allocation3 + $0x3c8] sm:$0xff]  ;;  %v13603_v16 = vld [vmem:[#allocation3 + $0x3f8] sm:$0xff]  ;;  %v13602_v18 = vld [vmem:[#allocation3 + $0x3f0] sm:$0xff] }
 0x914   :  { %v13605_v19 = vld [vmem:[#allocation3 + $0x408] sm:$0xff] }
 0x916   :  { %13982 = vmatpush1.bf16.msra.mxu0 %v13518_v40  ;;  %14146 = vmatpush1.bf16.msra.mxu1 %v13520_v51  ;;  %v13604_v40 = vld [vmem:[#allocation3 + $0x400] sm:$0xff]  ;;  %v13610_v51 = vld [vmem:[#allocation3 + $0x430] sm:$0xff] }
 0x917   :  { %13983 = vmatprep.subr.bf16.mxu0 %v13526_v22  ;;  %14147 = vmatprep.subr.bf16.mxu1 %v13528_v24  ;;  %v13612_v22 = vld [vmem:[#allocation3 + $0x440] sm:$0xff]  ;;  %v13609_v24 = vld [vmem:[#allocation3 + $0x428] sm:$0xff] }
 0x91a   :  { %13984 = vmatpush1.bf16.msra.mxu0 %v13525_v20  ;;  %14148 = vmatpush1.bf16.msra.mxu1 %v13527_v30  ;;  %v13611_v20 = vld [vmem:[#allocation3 + $0x438] sm:$0xff]  ;;  %v13617_v30 = vld [vmem:[#allocation3 + $0x468] sm:$0xff] }
 0x91b   :  { %13985 = vmatprep.subr.bf16.mxu0 %v13533_v31  ;;  %14149 = vmatprep.subr.bf16.mxu1 %v13535_v32  ;;  %v13619_v31 = vld [vmem:[#allocation3 + $0x478] sm:$0xff]  ;;  %v13616_v32 = vld [vmem:[#allocation3 + $0x460] sm:$0xff] }
 0x91e   :  { %13986 = vmatpush1.bf16.msra.mxu0 %v13532_v33  ;;  %14150 = vmatpush1.bf16.msra.mxu1 %v13534_v34  ;;  %v13618_v33 = vld [vmem:[#allocation3 + $0x470] sm:$0xff]  ;;  %v13624_v34 = vld [vmem:[#allocation3 + $0x4a0] sm:$0xff] }
 0x91f   :  { %13987 = vmatprep.subr.bf16.mxu0 %v13540_v35  ;;  %14151 = vmatprep.subr.bf16.mxu1 %v13542_v48  ;;  %v13626_v35 = vld [vmem:[#allocation3 + $0x4b0] sm:$0xff]  ;;  %v13623_v48 = vld [vmem:[#allocation3 + $0x498] sm:$0xff] }
 0x922   :  { %13988 = vmatpush1.bf16.msra.mxu0 %v13539_v23  ;;  %14152 = vmatpush1.bf16.msra.mxu1 %v13541_v54  ;;  %v13625_v23 = vld [vmem:[#allocation3 + $0x4a8] sm:$0xff]  ;;  %v13631_v54 = vld [vmem:[#allocation3 + $0x4d8] sm:$0xff] }
 0x923   :  { %13989 = vmatprep.subr.bf16.mxu0 %v13547_v36  ;;  %14153 = vmatprep.subr.bf16.mxu1 %v13549_v39  ;;  %v13633_v36 = vld [vmem:[#allocation3 + $0x4e8] sm:$0xff]  ;;  %v13630_v39 = vld [vmem:[#allocation3 + $0x4d0] sm:$0xff] }
 0x926   :  { %13990 = vmatpush1.bf16.msra.mxu0 %v13546_v41  ;;  %14154 = vmatpush1.bf16.msra.mxu1 %v13548_v59  ;;  %v13632_v41 = vld [vmem:[#allocation3 + $0x4e0] sm:$0xff]  ;;  %v13638_v59 = vld [vmem:[#allocation3 + $0x510] sm:$0xff] }
 0x927   :  { %13991 = vmatprep.subr.bf16.mxu0 %v13554_v60  ;;  %14155 = vmatprep.subr.bf16.mxu1 %v13556_v61  ;;  %v13640_v60 = vld [vmem:[#allocation3 + $0x520] sm:$0xff]  ;;  %v13637_v61 = vld [vmem:[#allocation3 + $0x508] sm:$0xff] }
 0x92a   :  { %13992 = vmatpush1.bf16.msra.mxu0 %v13553_v63  ;;  %14156 = vmatpush1.bf16.msra.mxu1 %v13555_v25  ;;  %v13639_v63 = vld [vmem:[#allocation3 + $0x518] sm:$0xff]  ;;  %v13645_v25 = vld [vmem:[#allocation3 + $0x548] sm:$0xff] }
 0x92b   :  { %13993 = vmatprep.subr.bf16.mxu0 %v13561_v2  ;;  %14157 = vmatprep.subr.bf16.mxu1 %v13563_v29  ;;  %v13647_v2 = vld [vmem:[#allocation3 + $0x558] sm:$0xff]  ;;  %v13644_v29 = vld [vmem:[#allocation3 + $0x540] sm:$0xff] }
 0x92e   :  { %13994 = vmatpush1.bf16.msra.mxu0 %v13560_v37  ;;  %14158 = vmatpush1.bf16.msra.mxu1 %v13562_v46  ;;  %v13646_v37 = vld [vmem:[#allocation3 + $0x550] sm:$0xff]  ;;  %v13652_v46 = vld [vmem:[#allocation3 + $0x580] sm:$0xff] }
 0x92f   :  { %13995 = vmatprep.subr.bf16.mxu0 %v13568_v17  ;;  %14159 = vmatprep.subr.bf16.mxu1 %v13570_v44  ;;  %v13654_v17 = vld [vmem:[#allocation3 + $0x590] sm:$0xff]  ;;  %v13651_v44 = vld [vmem:[#allocation3 + $0x578] sm:$0xff] }
 0x932   :  { %13996 = vmatpush1.bf16.msra.mxu0 %v13567_v21  ;;  %14160 = vmatpush1.bf16.msra.mxu1 %v13569_v47  ;;  %v13653_v21 = vld [vmem:[#allocation3 + $0x588] sm:$0xff]  ;;  %v13659_v47 = vld [vmem:[#allocation3 + $0x5b8] sm:$0xff] }
 0x933   :  { %13997 = vmatprep.subr.bf16.mxu0 %v13575_v45  ;;  %14161 = vmatprep.subr.bf16.mxu1 %v13577_v42  ;;  %v13661_v45 = vld [vmem:[#allocation3 + $0x5c8] sm:$0xff]  ;;  %v13658_v42 = vld [vmem:[#allocation3 + $0x5b0] sm:$0xff] }
 0x936   :  { %13998 = vmatpush1.bf16.msra.mxu0 %v13574_v11  ;;  %14162 = vmatpush1.bf16.msra.mxu1 %v13576_v13  ;;  %v13660_v11 = vld [vmem:[#allocation3 + $0x5c0] sm:$0xff]  ;;  %v13666_v13 = vld [vmem:[#allocation3 + $0x5f0] sm:$0xff] }
 0x937   :  { %13999 = vmatprep.subr.bf16.mxu0 %v13582_v12  ;;  %14163 = vmatprep.subr.bf16.mxu1 %v13584_v14  ;;  %v13668_v12 = vld [vmem:[#allocation3 + $0x600] sm:$0xff]  ;;  %v13665_v14 = vld [vmem:[#allocation3 + $0x5e8] sm:$0xff] }
 0x93a   :  { %14000 = vmatpush1.bf16.msra.mxu0 %v13581_v62  ;;  %14164 = vmatpush1.bf16.msra.mxu1 %v13583_v8  ;;  %v13667_v62 = vld [vmem:[#allocation3 + $0x5f8] sm:$0xff]  ;;  %v13673_v8 = vld [vmem:[#allocation3 + $0x628] sm:$0xff] }
 0x93b   :  { %14010 = vmatprep.subr.bf16.mxu0 %v13589_v38  ;;  %14174 = vmatprep.subr.bf16.mxu1 %v13591_v56  ;;  %v13675_v38 = vld [vmem:[#allocation3 + $0x638] sm:$0xff]  ;;  %v13672_v56 = vld [vmem:[#allocation3 + $0x620] sm:$0xff] }
 0x93d   :  { %14002 = vmatmul.mubr.bf16.vlgmr.msra.gmra.mrb[12].mxu0 %v19779_v0  ;;  %14166 = vmatmul.mubr.bf16.vlgmr.msra.gmra.mrb[20].mxu1 %v19779_v0 }
 0x93e   :  { %14011 = vmatpush1.bf16.msra.mxu0 %v13588_v9  ;;  %14175 = vmatpush1.bf16.msra.mxu1 %v13590_v10  ;;  %v13674_v9 = vld [vmem:[#allocation3 + $0x630] sm:$0xff]  ;;  %v13680_v10 = vld [vmem:[#allocation3 + $0x660] sm:$0xff] }
 0x93f   :  { %14012 = vmatprep.subr.bf16.mxu0 %v13596_v49  ;;  %14176 = vmatprep.subr.bf16.mxu1 %v13598_v43  ;;  %v13682_v49 = vld [vmem:[#allocation3 + $0x670] sm:$0xff]  ;;  %v13679_v43 = vld [vmem:[#allocation3 + $0x658] sm:$0xff] }
 0x940   :  { %14042 = vmatprep.mubr.bf16.mxu0 %v19783_v15  ;;  %14206 = vmatprep.mubr.bf16.mxu1 %v19783_v15 }
 0x942   :  { %14013 = vmatpush1.bf16.msra.mxu0 %v13595_v1  ;;  %14177 = vmatpush1.bf16.msra.mxu1 %v13597_v50  ;;  %v13681_v1 = vld [vmem:[#allocation3 + $0x668] sm:$0xff]  ;;  %v13687_v50 = vld [vmem:[#allocation3 + $0x698] sm:$0xff] }
 0x943   :  { %14014 = vmatprep.subr.bf16.mxu0 %v13603_v16  ;;  %14178 = vmatprep.subr.bf16.mxu1 %v13605_v19  ;;  %v13689_v16 = vld [vmem:[#allocation3 + $0x6a8] sm:$0xff]  ;;  %v13686_v19 = vld [vmem:[#allocation3 + $0x690] sm:$0xff] }
 0x946   :  { %14015 = vmatpush1.bf16.msra.mxu0 %v13602_v18  ;;  %14179 = vmatpush1.bf16.msra.mxu1 %v13604_v40  ;;  %v13688_v18 = vld [vmem:[#allocation3 + $0x6a0] sm:$0xff]  ;;  %v13694_v40 = vld [vmem:[#allocation3 + $0x6d0] sm:$0xff] }
 0x947   :  { %14016 = vmatprep.subr.bf16.mxu0 %v13610_v51  ;;  %14180 = vmatprep.subr.bf16.mxu1 %v13612_v22  ;;  %v13696_v51 = vld [vmem:[#allocation3 + $0x6e0] sm:$0xff]  ;;  %v13693_v22 = vld [vmem:[#allocation3 + $0x6c8] sm:$0xff] }
 0x94a   :  { %14017 = vmatpush1.bf16.msra.mxu0 %v13609_v24  ;;  %14181 = vmatpush1.bf16.msra.mxu1 %v13611_v20  ;;  %v13695_v24 = vld [vmem:[#allocation3 + $0x6d8] sm:$0xff]  ;;  %v13701_v20 = vld [vmem:[#allocation3 + $0x708] sm:$0xff] }
 0x94b   :  { %14018 = vmatprep.subr.bf16.mxu0 %v13617_v30  ;;  %14182 = vmatprep.subr.bf16.mxu1 %v13619_v31  ;;  %v13703_v30 = vld [vmem:[#allocation3 + $0x718] sm:$0xff]  ;;  %v19791_v31 = vpack.c.bf16 %v19761_v58, %v19761_v58 }
 0x94c   :  { %v13707_v58 = vld [vmem:[#allocation3 + $0x738] sm:$0xff] }
 0x94e   :  { %14019 = vmatpush1.bf16.msra.mxu0 %v13616_v32  ;;  %14183 = vmatpush1.bf16.msra.mxu1 %v13618_v33  ;;  %v13700_v32 = vld [vmem:[#allocation3 + $0x700] sm:$0xff]  ;;  %v13702_v33 = vld [vmem:[#allocation3 + $0x710] sm:$0xff] }
 0x94f   :  { %14020 = vmatprep.subr.bf16.mxu0 %v13624_v34  ;;  %14184 = vmatprep.subr.bf16.mxu1 %v13626_v35  ;;  %v13708_v34 = vld [vmem:[#allocation3 + $0x740] sm:$0xff]  ;;  %v13710_v35 = vld [vmem:[#allocation3 + $0x750] sm:$0xff] }
 0x952   :  { %14021 = vmatpush1.bf16.msra.mxu0 %v13623_v48  ;;  %14185 = vmatpush1.bf16.msra.mxu1 %v13625_v23  ;;  %v19795_v48 = vpack.c.bf16 %v19767_v4, %v19767_v4  ;;  %v13709_v23 = vld [vmem:[#allocation3 + $0x748] sm:$0xff]  ;;  %v13714_v4 = vld [vmem:[#allocation3 + $0x770] sm:$0xff] }
 0x953   :  { %14022 = vmatprep.subr.bf16.mxu0 %v13631_v54  ;;  %14186 = vmatprep.subr.bf16.mxu1 %v13633_v36  ;;  %v13715_v54 = vld [vmem:[#allocation3 + $0x778] sm:$0xff]  ;;  %v13717_v36 = vld [vmem:[#allocation3 + $0x788] sm:$0xff] }
 0x956   :  { %14023 = vmatpush1.bf16.msra.mxu0 %v13630_v39  ;;  %14187 = vmatpush1.bf16.msra.mxu1 %v13632_v41  ;;  %v13716_v39 = vld [vmem:[#allocation3 + $0x780] sm:$0xff]  ;;  %v13722_v41 = vld [vmem:[#allocation3 + $0x7b0] sm:$0xff] }
 0x957   :  { %14024 = vmatprep.subr.bf16.mxu0 %v13638_v59  ;;  %14188 = vmatprep.subr.bf16.mxu1 %v13640_v60  ;;  %v13724_v59 = vld [vmem:[#allocation3 + $0x7c0] sm:$0xff]  ;;  %v13721_v60 = vld [vmem:[#allocation3 + $0x7a8] sm:$0xff] }
 0x95a   :  { %14025 = vmatpush1.bf16.msra.mxu0 %v13637_v61  ;;  %14189 = vmatpush1.bf16.msra.mxu1 %v13639_v63  ;;  %v13723_v61 = vld [vmem:[#allocation3 + $0x7b8] sm:$0xff]  ;;  %v13729_v63 = vld [vmem:[#allocation3 + $0x7e8] sm:$0xff] }
 0x95b   :  { %14026 = vmatprep.subr.bf16.mxu0 %v13645_v25  ;;  %14190 = vmatprep.subr.bf16.mxu1 %v13647_v2  ;;  %v13731_v25 = vld [vmem:[#allocation3 + $0x7f8] sm:$0xff]  ;;  %v13728_v2 = vld [vmem:[#allocation3 + $0x7e0] sm:$0xff] }
 0x95e   :  { %14027 = vmatpush1.bf16.msra.mxu0 %v13644_v29  ;;  %14191 = vmatpush1.bf16.msra.mxu1 %v13646_v37  ;;  %v13730_v29 = vld [vmem:[#allocation3 + $0x7f0] sm:$0xff]  ;;  %v13736_v37 = vld [vmem:[#allocation3 + $0x820] sm:$0xff] }
 0x95f   :  { %14028 = vmatprep.subr.bf16.mxu0 %v13652_v46  ;;  %14192 = vmatprep.subr.bf16.mxu1 %v13654_v17  ;;  %v13738_v46 = vld [vmem:[#allocation3 + $0x830] sm:$0xff]  ;;  %v13735_v17 = vld [vmem:[#allocation3 + $0x818] sm:$0xff] }
 0x962   :  { %14029 = vmatpush1.bf16.msra.mxu0 %v13651_v44  ;;  %14193 = vmatpush1.bf16.msra.mxu1 %v13653_v21  ;;  %v13737_v44 = vld [vmem:[#allocation3 + $0x828] sm:$0xff]  ;;  %v13743_v21 = vld [vmem:[#allocation3 + $0x858] sm:$0xff] }
 0x963   :  { %14030 = vmatprep.subr.bf16.mxu0 %v13659_v47  ;;  %14194 = vmatprep.subr.bf16.mxu1 %v13661_v45  ;;  %v13745_v47 = vld [vmem:[#allocation3 + $0x868] sm:$0xff]  ;;  %v13742_v45 = vld [vmem:[#allocation3 + $0x850] sm:$0xff] }
 0x966   :  { %14031 = vmatpush1.bf16.msra.mxu0 %v13658_v42  ;;  %14195 = vmatpush1.bf16.msra.mxu1 %v13660_v11  ;;  %v13744_v42 = vld [vmem:[#allocation3 + $0x860] sm:$0xff]  ;;  %v13750_v11 = vld [vmem:[#allocation3 + $0x890] sm:$0xff] }
 0x967   :  { %14032 = vmatprep.subr.bf16.mxu0 %v13666_v13  ;;  %14196 = vmatprep.subr.bf16.mxu1 %v13668_v12  ;;  %v13752_v13 = vld [vmem:[#allocation3 + $0x8a0] sm:$0xff]  ;;  %v13749_v12 = vld [vmem:[#allocation3 + $0x888] sm:$0xff] }
 0x96a   :  { %14033 = vmatpush1.bf16.msra.mxu0 %v13665_v14  ;;  %14197 = vmatpush1.bf16.msra.mxu1 %v13667_v62  ;;  %v13751_v14 = vld [vmem:[#allocation3 + $0x898] sm:$0xff]  ;;  %v13757_v62 = vld [vmem:[#allocation3 + $0x8c8] sm:$0xff] }
 0x96b   :  { %14034 = vmatprep.subr.bf16.mxu0 %v13673_v8  ;;  %14198 = vmatprep.subr.bf16.mxu1 %v13675_v38  ;;  %v13759_v8 = vld [vmem:[#allocation3 + $0x8d8] sm:$0xff]  ;;  %v13756_v38 = vld [vmem:[#allocation3 + $0x8c0] sm:$0xff] }
 0x96e   :  { %14035 = vmatpush1.bf16.msra.mxu0 %v13672_v56  ;;  %14199 = vmatpush1.bf16.msra.mxu1 %v13674_v9  ;;  %v13758_v56 = vld [vmem:[#allocation3 + $0x8d0] sm:$0xff]  ;;  %v13764_v9 = vld [vmem:[#allocation3 + $0x900] sm:$0xff] }
 0x96f   :  { %14036 = vmatprep.subr.bf16.mxu0 %v13680_v10  ;;  %14200 = vmatprep.subr.bf16.mxu1 %v13682_v49  ;;  %v13766_v10 = vld [vmem:[#allocation3 + $0x910] sm:$0xff]  ;;  %v13763_v49 = vld [vmem:[#allocation3 + $0x8f8] sm:$0xff] }
 0x972   :  { %14037 = vmatpush1.bf16.msra.mxu0 %v13679_v43  ;;  %14201 = vmatpush1.bf16.msra.mxu1 %v13681_v1  ;;  %v13765_v43 = vld [vmem:[#allocation3 + $0x908] sm:$0xff]  ;;  %v13771_v1 = vld [vmem:[#allocation3 + $0x938] sm:$0xff] }
 0x973   :  { %14038 = vmatprep.subr.bf16.mxu0 %v13687_v50  ;;  %14202 = vmatprep.subr.bf16.mxu1 %v13689_v16  ;;  %v13773_v50 = vld [vmem:[#allocation3 + $0x948] sm:$0xff]  ;;  %v13770_v16 = vld [vmem:[#allocation3 + $0x930] sm:$0xff] }
 0x976   :  { %14039 = vmatpush1.bf16.msra.mxu0 %v13686_v19  ;;  %14203 = vmatpush1.bf16.msra.mxu1 %v13688_v18  ;;  %v13772_v19 = vld [vmem:[#allocation3 + $0x940] sm:$0xff]  ;;  %v13778_v18 = vld [vmem:[#allocation3 + $0x970] sm:$0xff] }
 0x977   :  { %14040 = vmatprep.subr.bf16.mxu0 %v13694_v40  ;;  %14204 = vmatprep.subr.bf16.mxu1 %v13696_v51  ;;  %v13780_v40 = vld [vmem:[#allocation3 + $0x980] sm:$0xff]  ;;  %v13777_v51 = vld [vmem:[#allocation3 + $0x968] sm:$0xff] }
 0x97a   :  { %14041 = vmatpush1.bf16.msra.mxu0 %v13693_v22  ;;  %14205 = vmatpush1.bf16.msra.mxu1 %v13695_v24  ;;  %v13779_v22 = vld [vmem:[#allocation3 + $0x978] sm:$0xff]  ;;  %v13785_v24 = vld [vmem:[#allocation3 + $0x9a8] sm:$0xff] }
 0x97b   :  { %14051 = vmatprep.subr.bf16.mxu0 %v13701_v20  ;;  %14215 = vmatprep.subr.bf16.mxu1 %v13703_v30  ;;  %v13787_v20 = vld [vmem:[#allocation3 + $0x9b8] sm:$0xff]  ;;  %v13784_v30 = vld [vmem:[#allocation3 + $0x9a0] sm:$0xff] }
 0x97d   :  { %14043 = vmatmul.mubr.bf16.vlgmr.msra.gmra.mrb[12].mxu0 %v19791_v31  ;;  %14207 = vmatmul.mubr.bf16.vlgmr.msra.gmra.mrb[20].mxu1 %v19791_v31 }
 0x97e   :  { %14052 = vmatpush1.bf16.msra.mxu0 %v13700_v32  ;;  %14216 = vmatpush1.bf16.msra.mxu1 %v13702_v33  ;;  %v13786_v32 = vld [vmem:[#allocation3 + $0x9b0] sm:$0xff]  ;;  %v13792_v33 = vld [vmem:[#allocation3 + $0x9e0] sm:$0xff] }
 0x97f   :  { %14053 = vmatprep.subr.bf16.mxu0 %v13708_v34  ;;  %14217 = vmatprep.subr.bf16.mxu1 %v13710_v35  ;;  %v13794_v34 = vld [vmem:[#allocation3 + $0x9f0] sm:$0xff]  ;;  %v13791_v35 = vld [vmem:[#allocation3 + $0x9d8] sm:$0xff] }
 0x980   :  { %14083 = vmatprep.mubr.bf16.mxu0 %v19795_v48  ;;  %14247 = vmatprep.mubr.bf16.mxu1 %v19795_v48 }
 0x982   :  { %14054 = vmatpush1.bf16.msra.mxu0 %v13707_v58  ;;  %14218 = vmatpush1.bf16.msra.mxu1 %v13709_v23  ;;  %v13793_v58 = vld [vmem:[#allocation3 + $0x9e8] sm:$0xff]  ;;  %v13799_v23 = vld [vmem:[#allocation3 + $0xa18] sm:$0xff] }
 0x983   :  { %14055 = vmatprep.subr.bf16.mxu0 %v13715_v54  ;;  %14219 = vmatprep.subr.bf16.mxu1 %v13717_v36  ;;  %v13801_v54 = vld [vmem:[#allocation3 + $0xa28] sm:$0xff]  ;;  %v13798_v36 = vld [vmem:[#allocation3 + $0xa10] sm:$0xff] }
 0x986   :  { %14056 = vmatpush1.bf16.msra.mxu0 %v13714_v4  ;;  %14220 = vmatpush1.bf16.msra.mxu1 %v13716_v39  ;;  %v13800_v4 = vld [vmem:[#allocation3 + $0xa20] sm:$0xff]  ;;  %v13806_v39 = vld [vmem:[#allocation3 + $0xa50] sm:$0xff] }
 0x987   :  { %14057 = vmatprep.subr.bf16.mxu0 %v13722_v41  ;;  %14221 = vmatprep.subr.bf16.mxu1 %v13724_v59  ;;  %v13808_v41 = vld [vmem:[#allocation3 + $0xa60] sm:$0xff]  ;;  %v13805_v59 = vld [vmem:[#allocation3 + $0xa48] sm:$0xff] }
 0x98a   :  { %14058 = vmatpush1.bf16.msra.mxu0 %v13721_v60  ;;  %14222 = vmatpush1.bf16.msra.mxu1 %v13723_v61  ;;  %v13807_v60 = vld [vmem:[#allocation3 + $0xa58] sm:$0xff]  ;;  %v13813_v61 = vld [vmem:[#allocation3 + $0xa88] sm:$0xff] }
 0x98b   :  { %14059 = vmatprep.subr.bf16.mxu0 %v13729_v63  ;;  %14223 = vmatprep.subr.bf16.mxu1 %v13731_v25  ;;  %v13815_v63 = vld [vmem:[#allocation3 + $0xa98] sm:$0xff]  ;;  %v19803_v25 = vpack.c.bf16 %v19765_v3, %v19765_v3 }
 0x98c   :  { %v13819_v3 = vld [vmem:[#allocation3 + $0xab8] sm:$0xff] }
 0x98e   :  { %14060 = vmatpush1.bf16.msra.mxu0 %v13728_v2  ;;  %14224 = vmatpush1.bf16.msra.mxu1 %v13730_v29  ;;  %v13812_v2 = vld [vmem:[#allocation3 + $0xa80] sm:$0xff]  ;;  %v13814_v29 = vld [vmem:[#allocation3 + $0xa90] sm:$0xff] }
 0x98f   :  { %14061 = vmatprep.subr.bf16.mxu0 %v13736_v37  ;;  %14225 = vmatprep.subr.bf16.mxu1 %v13738_v46  ;;  %v13820_v37 = vld [vmem:[#allocation3 + $0xac0] sm:$0xff]  ;;  %v13822_v46 = vld [vmem:[#allocation3 + $0xad0] sm:$0xff] }
 0x992   :  { %14062 = vmatpush1.bf16.msra.mxu0 %v13735_v17  ;;  %14226 = vmatpush1.bf16.msra.mxu1 %v13737_v44  ;;  %v19807_v17 = vpack.c.bf16 %v19771_v6, %v19771_v6  ;;  %v13821_v44 = vld [vmem:[#allocation3 + $0xac8] sm:$0xff]  ;;  %v13826_v6 = vld [vmem:[#allocation3 + $0xaf0] sm:$0xff] }
 0x993   :  { %14063 = vmatprep.subr.bf16.mxu0 %v13743_v21  ;;  %14227 = vmatprep.subr.bf16.mxu1 %v13745_v47  ;;  %v13827_v21 = vld [vmem:[#allocation3 + $0xaf8] sm:$0xff]  ;;  %v13829_v47 = vld [vmem:[#allocation3 + $0xb08] sm:$0xff] }
 0x996   :  { %14064 = vmatpush1.bf16.msra.mxu0 %v13742_v45  ;;  %14228 = vmatpush1.bf16.msra.mxu1 %v13744_v42  ;;  %v13828_v45 = vld [vmem:[#allocation3 + $0xb00] sm:$0xff]  ;;  %v13834_v42 = vld [vmem:[#allocation3 + $0xb30] sm:$0xff] }
 0x997   :  { %14065 = vmatprep.subr.bf16.mxu0 %v13750_v11  ;;  %14229 = vmatprep.subr.bf16.mxu1 %v13752_v13  ;;  %v13836_v11 = vld [vmem:[#allocation3 + $0xb40] sm:$0xff]  ;;  %v13833_v13 = vld [vmem:[#allocation3 + $0xb28] sm:$0xff] }
 0x99a   :  { %14066 = vmatpush1.bf16.msra.mxu0 %v13749_v12  ;;  %14230 = vmatpush1.bf16.msra.mxu1 %v13751_v14  ;;  %v13835_v12 = vld [vmem:[#allocation3 + $0xb38] sm:$0xff]  ;;  %v13841_v14 = vld [vmem:[#allocation3 + $0xb68] sm:$0xff] }
 0x99b   :  { %14067 = vmatprep.subr.bf16.mxu0 %v13757_v62  ;;  %14231 = vmatprep.subr.bf16.mxu1 %v13759_v8  ;;  %v13843_v62 = vld [vmem:[#allocation3 + $0xb78] sm:$0xff]  ;;  %v13840_v8 = vld [vmem:[#allocation3 + $0xb60] sm:$0xff] }
 0x99e   :  { %14068 = vmatpush1.bf16.msra.mxu0 %v13756_v38  ;;  %14232 = vmatpush1.bf16.msra.mxu1 %v13758_v56  ;;  %v13842_v38 = vld [vmem:[#allocation3 + $0xb70] sm:$0xff]  ;;  %v13848_v56 = vld [vmem:[#allocation3 + $0xba0] sm:$0xff] }
 0x99f   :  { %14069 = vmatprep.subr.bf16.mxu0 %v13764_v9  ;;  %14233 = vmatprep.subr.bf16.mxu1 %v13766_v10  ;;  %v13850_v9 = vld [vmem:[#allocation3 + $0xbb0] sm:$0xff]  ;;  %v13847_v10 = vld [vmem:[#allocation3 + $0xb98] sm:$0xff] }
 0x9a2   :  { %14070 = vmatpush1.bf16.msra.mxu0 %v13763_v49  ;;  %14234 = vmatpush1.bf16.msra.mxu1 %v13765_v43  ;;  %v13849_v49 = vld [vmem:[#allocation3 + $0xba8] sm:$0xff]  ;;  %v13855_v43 = vld [vmem:[#allocation3 + $0xbd8] sm:$0xff] }
 0x9a3   :  { %14071 = vmatprep.subr.bf16.mxu0 %v13771_v1  ;;  %14235 = vmatprep.subr.bf16.mxu1 %v13773_v50  ;;  %v13857_v1 = vld [vmem:[#allocation3 + $0xbe8] sm:$0xff]  ;;  %v13854_v50 = vld [vmem:[#allocation3 + $0xbd0] sm:$0xff] }
 0x9a6   :  { %14072 = vmatpush1.bf16.msra.mxu0 %v13770_v16  ;;  %14236 = vmatpush1.bf16.msra.mxu1 %v13772_v19  ;;  %v13856_v16 = vld [vmem:[#allocation3 + $0xbe0] sm:$0xff]  ;;  %v13862_v19 = vld [vmem:[#allocation3 + $0xc10] sm:$0xff] }
 0x9a7   :  { %14073 = vmatprep.subr.bf16.mxu0 %v13778_v18  ;;  %14237 = vmatprep.subr.bf16.mxu1 %v13780_v40  ;;  %v13864_v18 = vld [vmem:[#allocation3 + $0xc20] sm:$0xff]  ;;  %v13861_v40 = vld [vmem:[#allocation3 + $0xc08] sm:$0xff] }
 0x9aa   :  { %14074 = vmatpush1.bf16.msra.mxu0 %v13777_v51  ;;  %14238 = vmatpush1.bf16.msra.mxu1 %v13779_v22  ;;  %v13863_v51 = vld [vmem:[#allocation3 + $0xc18] sm:$0xff]  ;;  %v13869_v22 = vld [vmem:[#allocation3 + $0xc48] sm:$0xff] }
 0x9ab   :  { %14075 = vmatprep.subr.bf16.mxu0 %v13785_v24  ;;  %14239 = vmatprep.subr.bf16.mxu1 %v13787_v20  ;;  %v13871_v24 = vld [vmem:[#allocation3 + $0xc58] sm:$0xff]  ;;  %v13868_v20 = vld [vmem:[#allocation3 + $0xc40] sm:$0xff] }
 0x9ae   :  { %14076 = vmatpush1.bf16.msra.mxu0 %v13784_v30  ;;  %14240 = vmatpush1.bf16.msra.mxu1 %v13786_v32  ;;  %v13870_v30 = vld [vmem:[#allocation3 + $0xc50] sm:$0xff]  ;;  %v13876_v32 = vld [vmem:[#allocation3 + $0xc80] sm:$0xff] }
 0x9af   :  { %14077 = vmatprep.subr.bf16.mxu0 %v13792_v33  ;;  %14241 = vmatprep.subr.bf16.mxu1 %v13794_v34  ;;  %v13878_v33 = vld [vmem:[#allocation3 + $0xc90] sm:$0xff]  ;;  %v13875_v34 = vld [vmem:[#allocation3 + $0xc78] sm:$0xff] }
 0x9b2   :  { %14078 = vmatpush1.bf16.msra.mxu0 %v13791_v35  ;;  %14242 = vmatpush1.bf16.msra.mxu1 %v13793_v58  ;;  %v13877_v35 = vld [vmem:[#allocation3 + $0xc88] sm:$0xff]  ;;  %v13883_v58 = vld [vmem:[#allocation3 + $0xcb8] sm:$0xff] }
 0x9b3   :  { %14079 = vmatprep.subr.bf16.mxu0 %v13799_v23  ;;  %14243 = vmatprep.subr.bf16.mxu1 %v13801_v54  ;;  %v13885_v23 = vld [vmem:[#allocation3 + $0xcc8] sm:$0xff]  ;;  %v13882_v54 = vld [vmem:[#allocation3 + $0xcb0] sm:$0xff] }
 0x9b6   :  { %14080 = vmatpush1.bf16.msra.mxu0 %v13798_v36  ;;  %14244 = vmatpush1.bf16.msra.mxu1 %v13800_v4  ;;  %v13884_v36 = vld [vmem:[#allocation3 + $0xcc0] sm:$0xff]  ;;  %v13890_v4 = vld [vmem:[#allocation3 + $0xcf0] sm:$0xff] }
 0x9b7   :  { %14081 = vmatprep.subr.bf16.mxu0 %v13806_v39  ;;  %14245 = vmatprep.subr.bf16.mxu1 %v13808_v41  ;;  %v13892_v39 = vld [vmem:[#allocation3 + $0xd00] sm:$0xff]  ;;  %v13889_v41 = vld [vmem:[#allocation3 + $0xce8] sm:$0xff] }
 0x9ba   :  { %14082 = vmatpush1.bf16.msra.mxu0 %v13805_v59  ;;  %14246 = vmatpush1.bf16.msra.mxu1 %v13807_v60  ;;  %v13891_v59 = vld [vmem:[#allocation3 + $0xcf8] sm:$0xff]  ;;  %v13897_v60 = vld [vmem:[#allocation3 + $0xd28] sm:$0xff] }
 0x9bb   :  { %14092 = vmatprep.subr.bf16.mxu0 %v13813_v61  ;;  %14256 = vmatprep.subr.bf16.mxu1 %v13815_v63  ;;  %v13899_v61 = vld [vmem:[#allocation3 + $0xd38] sm:$0xff]  ;;  %v13896_v63 = vld [vmem:[#allocation3 + $0xd20] sm:$0xff] }
 0x9bd   :  { %14084 = vmatmul.mubr.bf16.vlgmr.msra.gmra.mrb[12].mxu0 %v19803_v25  ;;  %14248 = vmatmul.mubr.bf16.vlgmr.msra.gmra.mrb[20].mxu1 %v19803_v25 }
 0x9be   :  { %14093 = vmatpush1.bf16.msra.mxu0 %v13812_v2  ;;  %14257 = vmatpush1.bf16.msra.mxu1 %v13814_v29  ;;  %v13898_v2 = vld [vmem:[#allocation3 + $0xd30] sm:$0xff]  ;;  %v13904_v29 = vld [vmem:[#allocation3 + $0xd60] sm:$0xff] }
 0x9bf   :  { %14094 = vmatprep.subr.bf16.mxu0 %v13820_v37  ;;  %14258 = vmatprep.subr.bf16.mxu1 %v13822_v46  ;;  %v13906_v37 = vld [vmem:[#allocation3 + $0xd70] sm:$0xff]  ;;  %v13903_v46 = vld [vmem:[#allocation3 + $0xd58] sm:$0xff] }
 0x9c0   :  { %14124 = vmatprep.mubr.bf16.mxu0 %v19807_v17  ;;  %14288 = vmatprep.mubr.bf16.mxu1 %v19807_v17 }
 0x9c2   :  { %14095 = vmatpush1.bf16.msra.mxu0 %v13819_v3  ;;  %14259 = vmatpush1.bf16.msra.mxu1 %v13821_v44  ;;  %v13905_v3 = vld [vmem:[#allocation3 + $0xd68] sm:$0xff]  ;;  %v13911_v44 = vld [vmem:[#allocation3 + $0xd98] sm:$0xff] }
 0x9c3   :  { %14096 = vmatprep.subr.bf16.mxu0 %v13827_v21  ;;  %14260 = vmatprep.subr.bf16.mxu1 %v13829_v47  ;;  %v13913_v21 = vld [vmem:[#allocation3 + $0xda8] sm:$0xff]  ;;  %v13910_v47 = vld [vmem:[#allocation3 + $0xd90] sm:$0xff] }
 0x9c6   :  { %14097 = vmatpush1.bf16.msra.mxu0 %v13826_v6  ;;  %14261 = vmatpush1.bf16.msra.mxu1 %v13828_v45  ;;  %v13912_v6 = vld [vmem:[#allocation3 + $0xda0] sm:$0xff]  ;;  %v13918_v45 = vld [vmem:[#allocation3 + $0xdd0] sm:$0xff] }
 0x9c7   :  { %14098 = vmatprep.subr.bf16.mxu0 %v13834_v42  ;;  %14262 = vmatprep.subr.bf16.mxu1 %v13836_v11  ;;  %v13920_v42 = vld [vmem:[#allocation3 + $0xde0] sm:$0xff]  ;;  %v13917_v11 = vld [vmem:[#allocation3 + $0xdc8] sm:$0xff] }
 0x9ca   :  { %14099 = vmatpush1.bf16.msra.mxu0 %v13833_v13  ;;  %14263 = vmatpush1.bf16.msra.mxu1 %v13835_v12  ;;  %v13919_v13 = vld [vmem:[#allocation3 + $0xdd8] sm:$0xff]  ;;  %v13481_v12 = vld [vmem:[#allocation3 + $0x28] sm:$0xff] }
 0x9cb   :  { %14100 = vmatprep.subr.bf16.mxu0 %v13841_v14  ;;  %14264 = vmatprep.subr.bf16.mxu1 %v13843_v62  ;;  %v13538_v14 = vld [vmem:[#allocation3 + $0x1f0] sm:$0xff]  ;;  %v19815_v62 = vpack.c.bf16 %v19769_v5, %v19769_v5  ;;  %v13495_v5 = vld [vmem:[#allocation3 + $0x98] sm:$0xff] }
 0x9ce   :  { %14101 = vmatpush1.bf16.msra.mxu0 %v13840_v8  ;;  %14265 = vmatpush1.bf16.msra.mxu1 %v13842_v38  ;;  %v13480_v8 = vld [vmem:[#allocation3 + $0x20] sm:$0xff]  ;;  %v13482_v38 = vld [vmem:[#allocation3 + $0x30] sm:$0xff] }
 0x9cf   :  { %14102 = vmatprep.subr.bf16.mxu0 %v13848_v56  ;;  %14266 = vmatprep.subr.bf16.mxu1 %v13850_v9  ;;  %v13488_v56 = vld [vmem:[#allocation3 + $0x60] sm:$0xff]  ;;  %v13545_v9 = vld [vmem:[#allocation3 + $0x228] sm:$0xff] }
 0x9d2   :  { %14103 = vmatpush1.bf16.msra.mxu0 %v13847_v10  ;;  %14267 = vmatpush1.bf16.msra.mxu1 %v13849_v49  ;;  %v13487_v10 = vld [vmem:[#allocation3 + $0x58] sm:$0xff]  ;;  %v13489_v49 = vld [vmem:[#allocation3 + $0x68] sm:$0xff] }
 0x9d3   :  { %14104 = vmatprep.subr.bf16.mxu0 %v13855_v43  ;;  %14268 = vmatprep.subr.bf16.mxu1 %v13857_v1  ;;  %v13552_v43 = vld [vmem:[#allocation3 + $0x260] sm:$0xff]  ;;  %v13494_v1 = vld [vmem:[#allocation3 + $0x90] sm:$0xff] }
 0x9d6   :  { %14105 = vmatpush1.bf16.msra.mxu0 %v13854_v50  ;;  %14269 = vmatpush1.bf16.msra.mxu1 %v13856_v16  ;;  %v13496_v50 = vld [vmem:[#allocation3 + $0xa0] sm:$0xff]  ;;  %v13502_v16 = vld [vmem:[#allocation3 + $0xd0] sm:$0xff] }
 0x9d7   :  { %14106 = vmatprep.subr.bf16.mxu0 %v13862_v19  ;;  %14270 = vmatprep.subr.bf16.mxu1 %v13864_v18  ;;  %v13559_v19 = vld [vmem:[#allocation3 + $0x298] sm:$0xff]  ;;  %v13501_v18 = vld [vmem:[#allocation3 + $0xc8] sm:$0xff] }
 0x9da   :  { %14107 = vmatpush1.bf16.msra.mxu0 %v13861_v40  ;;  %14271 = vmatpush1.bf16.msra.mxu1 %v13863_v51  ;;  %v13503_v40 = vld [vmem:[#allocation3 + $0xd8] sm:$0xff]  ;;  %v13509_v51 = vld [vmem:[#allocation3 + $0x108] sm:$0xff] }
 0x9db   :  { %14108 = vmatprep.subr.bf16.mxu0 %v13869_v22  ;;  %14272 = vmatprep.subr.bf16.mxu1 %v13871_v24  ;;  %v13566_v22 = vld [vmem:[#allocation3 + $0x2d0] sm:$0xff] }
 0x9dc   :  { %v13510_v24 = vld [vmem:[#allocation3 + $0x110] sm:$0xff] }
 0x9de   :  { %14109 = vmatpush1.bf16.msra.mxu0 %v13868_v20  ;;  %14273 = vmatpush1.bf16.msra.mxu1 %v13870_v30  ;;  %v13516_v20 = vld [vmem:[#allocation3 + $0x140] sm:$0xff]  ;;  %v13573_v30 = vld [vmem:[#allocation3 + $0x308] sm:$0xff] }
 0x9df   :  { %14110 = vmatprep.subr.bf16.mxu0 %v13876_v32  ;;  %14274 = vmatprep.subr.bf16.mxu1 %v13878_v33  ;;  %v13515_v32 = vld [vmem:[#allocation3 + $0x138] sm:$0xff]  ;;  %v13517_v33 = vld [vmem:[#allocation3 + $0x148] sm:$0xff] }
 0x9e2   :  { %14111 = vmatpush1.bf16.msra.mxu0 %v13875_v34  ;;  %14275 = vmatpush1.bf16.msra.mxu1 %v13877_v35  ;;  %v13523_v34 = vld [vmem:[#allocation3 + $0x178] sm:$0xff]  ;;  %v13580_v35 = vld [vmem:[#allocation3 + $0x340] sm:$0xff] }
 0x9e3   :  { %14112 = vmatprep.subr.bf16.mxu0 %v13883_v58  ;;  %14276 = vmatprep.subr.bf16.mxu1 %v13885_v23  ;;  %v13522_v58 = vld [vmem:[#allocation3 + $0x170] sm:$0xff]  ;;  %v13524_v23 = vld [vmem:[#allocation3 + $0x180] sm:$0xff] }
 0x9e6   :  { %14113 = vmatpush1.bf16.msra.mxu0 %v13882_v54  ;;  %14277 = vmatpush1.bf16.msra.mxu1 %v13884_v36  ;;  %v13530_v54 = vld [vmem:[#allocation3 + $0x1b0] sm:$0xff]  ;;  %v13587_v36 = vld [vmem:[#allocation3 + $0x378] sm:$0xff] }
 0x9e7   :  { %14114 = vmatprep.subr.bf16.mxu0 %v13890_v4  ;;  %14278 = vmatprep.subr.bf16.mxu1 %v13892_v39  ;;  %v13529_v4 = vld [vmem:[#allocation3 + $0x1a8] sm:$0xff]  ;;  %v13531_v39 = vld [vmem:[#allocation3 + $0x1b8] sm:$0xff] }
 0x9ea   :  { %14115 = vmatpush1.bf16.msra.mxu0 %v13889_v41  ;;  %14279 = vmatpush1.bf16.msra.mxu1 %v13891_v59  ;;  %v13537_v41 = vld [vmem:[#allocation3 + $0x1e8] sm:$0xff]  ;;  %v13650_v59 = vld [vmem:[#allocation3 + $0x570] sm:$0xff] }
 0x9eb   :  { %14116 = vmatprep.subr.bf16.mxu0 %v13897_v60  ;;  %14280 = vmatprep.subr.bf16.mxu1 %v13899_v61  ;;  %v13536_v60 = vld [vmem:[#allocation3 + $0x1e0] sm:$0xff]  ;;  %v13594_v61 = vld [vmem:[#allocation3 + $0x3b0] sm:$0xff] }
 0x9ee   :  { %14117 = vmatpush1.bf16.msra.mxu0 %v13896_v63  ;;  %14281 = vmatpush1.bf16.msra.mxu1 %v13898_v2  ;;  %v13544_v63 = vld [vmem:[#allocation3 + $0x220] sm:$0xff]  ;;  %v13657_v2 = vld [vmem:[#allocation3 + $0x5a8] sm:$0xff] }
 0x9ef   :  { %14118 = vmatprep.subr.bf16.mxu0 %v13904_v29  ;;  %14282 = vmatprep.subr.bf16.mxu1 %v13906_v37  ;;  %v13543_v29 = vld [vmem:[#allocation3 + $0x218] sm:$0xff]  ;;  %v13601_v37 = vld [vmem:[#allocation3 + $0x3e8] sm:$0xff] }
 0x9f2   :  { %14119 = vmatpush1.bf16.msra.mxu0 %v13903_v46  ;;  %14283 = vmatpush1.bf16.msra.mxu1 %v13905_v3  ;;  %v13551_v46 = vld [vmem:[#allocation3 + $0x258] sm:$0xff]  ;;  %v13664_v3 = vld [vmem:[#allocation3 + $0x5e0] sm:$0xff] }
 0x9f3   :  { %14120 = vmatprep.subr.bf16.mxu0 %v13911_v44  ;;  %14284 = vmatprep.subr.bf16.mxu1 %v13913_v21  ;;  %v13550_v44 = vld [vmem:[#allocation3 + $0x250] sm:$0xff]  ;;  %v13608_v21 = vld [vmem:[#allocation3 + $0x420] sm:$0xff] }
 0x9f6   :  { %14121 = vmatpush1.bf16.msra.mxu0 %v13910_v47  ;;  %14285 = vmatpush1.bf16.msra.mxu1 %v13912_v6  ;;  %v13558_v47 = vld [vmem:[#allocation3 + $0x290] sm:$0xff]  ;;  %v13671_v6 = vld [vmem:[#allocation3 + $0x618] sm:$0xff] }
 0x9f7   :  { %14122 = vmatprep.subr.bf16.mxu0 %v13918_v45  ;;  %14286 = vmatprep.subr.bf16.mxu1 %v13920_v42  ;;  %v13557_v45 = vld [vmem:[#allocation3 + $0x288] sm:$0xff]  ;;  %v13615_v42 = vld [vmem:[#allocation3 + $0x458] sm:$0xff] }
 0x9fa   :  { %14123 = vmatpush1.bf16.msra.mxu0 %v13917_v11  ;;  %14287 = vmatpush1.bf16.msra.mxu1 %v13919_v13  ;;  %v13565_v11 = vld [vmem:[#allocation3 + $0x2c8] sm:$0xff]  ;;  %v13678_v13 = vld [vmem:[#allocation3 + $0x650] sm:$0xff] }
 0x9fb   :  { %14297 = vmatprep.subr.bf16.mxu0 %v13481_v12  ;;  %14862 = vmatprep.subr.bf16.mxu1 %v13538_v14  ;;  %v13564_v12 = vld [vmem:[#allocation3 + $0x2c0] sm:$0xff]  ;;  %v13622_v14 = vld [vmem:[#allocation3 + $0x490] sm:$0xff] }
 0x9fd   :  { %14125 = vmatmul.mubr.bf16.vlgmr.msra.gmra.mrb[12].mxu0 %v19815_v62  ;;  %14289 = vmatmul.mubr.bf16.vlgmr.msra.gmra.mrb[20].mxu1 %v19815_v62 }
 0x9fe   :  { %14298 = vmatpush1.bf16.msra.mxu0 %v13480_v8  ;;  %14863 = vmatpush3.bf16.msra.mxu1 %v13482_v38  ;;  %v13572_v8 = vld [vmem:[#allocation3 + $0x300] sm:$0xff]  ;;  %v13685_v38 = vld [vmem:[#allocation3 + $0x688] sm:$0xff] }
 0x9ff   :  { %14299 = vmatprep.subr.bf16.mxu0 %v13488_v56  ;;  %14864 = vmatprep.subr.bf16.mxu1 %v13545_v9  ;;  %v13571_v56 = vld [vmem:[#allocation3 + $0x2f8] sm:$0xff]  ;;  %v13629_v9 = vld [vmem:[#allocation3 + $0x4c8] sm:$0xff] }
 0xa00   :  { %14329 = vmatprep.mubr.bf16.mxu0 %v19773_v7  ;;  %14493 = vmatprep.mubr.bf16.mxu1 %v19773_v7  ;;  %v13508_v7 = vld [vmem:[#allocation3 + $0x100] sm:$0xff] }
 0xa02   :  { %14300 = vmatpush1.bf16.msra.mxu0 %v13487_v10  ;;  %14865 = vmatpush3.bf16.msra.mxu1 %v13489_v49  ;;  %v13579_v10 = vld [vmem:[#allocation3 + $0x338] sm:$0xff]  ;;  %v13692_v49 = vld [vmem:[#allocation3 + $0x6c0] sm:$0xff] }
 0xa03   :  { %14301 = vmatprep.subr.bf16.mxu0 %v13495_v5  ;;  %14866 = vmatprep.subr.bf16.mxu1 %v13552_v43  ;;  %v13578_v5 = vld [vmem:[#allocation3 + $0x330] sm:$0xff]  ;;  %v13636_v43 = vld [vmem:[#allocation3 + $0x500] sm:$0xff] }
 0xa06   :  { %14302 = vmatpush1.bf16.msra.mxu0 %v13494_v1  ;;  %14867 = vmatpush3.bf16.msra.mxu1 %v13496_v50  ;;  %v13586_v1 = vld [vmem:[#allocation3 + $0x370] sm:$0xff]  ;;  %v13699_v50 = vld [vmem:[#allocation3 + $0x6f8] sm:$0xff] }
 0xa07   :  { %14303 = vmatprep.subr.bf16.mxu0 %v13502_v16  ;;  %14868 = vmatprep.subr.bf16.mxu1 %v13559_v19  ;;  %v13585_v16 = vld [vmem:[#allocation3 + $0x368] sm:$0xff]  ;;  %v13643_v19 = vld [vmem:[#allocation3 + $0x538] sm:$0xff] }
 0xa0a   :  { %14304 = vmatpush1.bf16.msra.mxu0 %v13501_v18  ;;  %14869 = vmatpush3.bf16.msra.mxu1 %v13503_v40  ;;  %v13593_v18 = vld [vmem:[#allocation3 + $0x3a8] sm:$0xff]  ;;  %v13762_v40 = vld [vmem:[#allocation3 + $0x8f0] sm:$0xff] }
 0xa0b   :  { %14305 = vmatprep.subr.bf16.mxu0 %v13509_v51  ;;  %14870 = vmatprep.subr.bf16.mxu1 %v13566_v22  ;;  %v13592_v51 = vld [vmem:[#allocation3 + $0x3a0] sm:$0xff]  ;;  %v13706_v22 = vld [vmem:[#allocation3 + $0x730] sm:$0xff] }
 0xa0e   :  { %14306 = vmatpush1.bf16.msra.mxu0 %v13508_v7  ;;  %14871 = vmatpush3.bf16.msra.mxu1 %v13510_v24  ;;  %v13600_v7 = vld [vmem:[#allocation3 + $0x3e0] sm:$0xff]  ;;  %v13769_v24 = vld [vmem:[#allocation3 + $0x928] sm:$0xff] }
 0xa0f   :  { %14307 = vmatprep.subr.bf16.mxu0 %v13516_v20  ;;  %14872 = vmatprep.subr.bf16.mxu1 %v13573_v30  ;;  %v13599_v20 = vld [vmem:[#allocation3 + $0x3d8] sm:$0xff]  ;;  %v13713_v30 = vld [vmem:[#allocation3 + $0x768] sm:$0xff] }
 0xa12   :  { %14308 = vmatpush1.bf16.msra.mxu0 %v13515_v32  ;;  %14873 = vmatpush3.bf16.msra.mxu1 %v13517_v33  ;;  %v13607_v32 = vld [vmem:[#allocation3 + $0x418] sm:$0xff]  ;;  %v13776_v33 = vld [vmem:[#allocation3 + $0x960] sm:$0xff] }
 0xa13   :  { %14309 = vmatprep.subr.bf16.mxu0 %v13523_v34  ;;  %14874 = vmatprep.subr.bf16.mxu1 %v13580_v35  ;;  %v13606_v34 = vld [vmem:[#allocation3 + $0x410] sm:$0xff] }
 0xa14   :  { %v13614_v35 = vld [vmem:[#allocation3 + $0x450] sm:$0xff] }
 0xa16   :  { %14310 = vmatpush1.bf16.msra.mxu0 %v13522_v58  ;;  %14875 = vmatpush3.bf16.msra.mxu1 %v13524_v23  ;;  %v13783_v58 = vld [vmem:[#allocation3 + $0x998] sm:$0xff]  ;;  %v13613_v23 = vld [vmem:[#allocation3 + $0x448] sm:$0xff] }
 0xa17   :  { %14311 = vmatprep.subr.bf16.mxu0 %v13530_v54  ;;  %14876 = vmatprep.subr.bf16.mxu1 %v13587_v36  ;;  %v13727_v54 = vld [vmem:[#allocation3 + $0x7d8] sm:$0xff]  ;;  %v13621_v36 = vld [vmem:[#allocation3 + $0x488] sm:$0xff] }
 0xa1a   :  { %14312 = vmatpush1.bf16.msra.mxu0 %v13529_v4  ;;  %14877 = vmatpush3.bf16.msra.mxu1 %v13531_v39  ;;  %v13790_v4 = vld [vmem:[#allocation3 + $0x9d0] sm:$0xff] }
 0xa1b   :  { %14313 = vmatprep.subr.bf16.mxu0 %v13537_v41  ;;  %14884 = vmatprep.subr.bf16.mxu1 %v13650_v59  ;;  %v13734_v39 = vld [vmem:[#allocation3 + $0x810] sm:$0xff]  ;;  %v13628_v41 = vld [vmem:[#allocation3 + $0x4c0] sm:$0xff]  ;;  %v13797_v59 = vld [vmem:[#allocation3 + $0xa08] sm:$0xff] }
 0xa1d   :  { %14494 = vmatmul.mubr.bf16.vlgmr.msra.gmra.mrb[24].mxu1 %v19779_v0 }
 0xa1e   :  { %14314 = vmatpush1.bf16.msra.mxu0 %v13536_v60  ;;  %14885 = vmatpush3.bf16.msra.mxu1 %v13594_v61  ;;  %v13627_v60 = vld [vmem:[#allocation3 + $0x4b8] sm:$0xff]  ;;  %v13741_v61 = vld [vmem:[#allocation3 + $0x848] sm:$0xff] }
 0xa1f   :  { %14315 = vmatprep.subr.bf16.mxu0 %v13544_v63  ;;  %14886 = vmatprep.subr.bf16.mxu1 %v13657_v2  ;;  %v13635_v63 = vld [vmem:[#allocation3 + $0x4f8] sm:$0xff]  ;;  %v13804_v2 = vld [vmem:[#allocation3 + $0xa40] sm:$0xff] }
 0xa20   :  { %14533 = vmatprep.mubr.bf16.mxu1 %v19783_v15 }
 0xa22   :  { %14316 = vmatpush1.bf16.msra.mxu0 %v13543_v29  ;;  %14887 = vmatpush3.bf16.msra.mxu1 %v13601_v37  ;;  %v13634_v29 = vld [vmem:[#allocation3 + $0x4f0] sm:$0xff]  ;;  %v13748_v37 = vld [vmem:[#allocation3 + $0x880] sm:$0xff] }
 0xa23   :  { %14317 = vmatprep.subr.bf16.mxu0 %v13551_v46  ;;  %14888 = vmatprep.subr.bf16.mxu1 %v13664_v3  ;;  %v13642_v46 = vld [vmem:[#allocation3 + $0x530] sm:$0xff]  ;;  %v13811_v3 = vld [vmem:[#allocation3 + $0xa78] sm:$0xff] }
 0xa26   :  { %14318 = vmatpush1.bf16.msra.mxu0 %v13550_v44  ;;  %14889 = vmatpush3.bf16.msra.mxu1 %v13608_v21  ;;  %v13641_v44 = vld [vmem:[#allocation3 + $0x528] sm:$0xff]  ;;  %v13755_v21 = vld [vmem:[#allocation3 + $0x8b8] sm:$0xff] }
 0xa27   :  { %14319 = vmatprep.subr.bf16.mxu0 %v13558_v47  ;;  %14890 = vmatprep.subr.bf16.mxu1 %v13671_v6  ;;  %v13649_v47 = vld [vmem:[#allocation3 + $0x568] sm:$0xff]  ;;  %v13874_v6 = vld [vmem:[#allocation3 + $0xc70] sm:$0xff] }
 0xa2a   :  { %14320 = vmatpush1.bf16.msra.mxu0 %v13557_v45  ;;  %14891 = vmatpush3.bf16.msra.mxu1 %v13615_v42  ;;  %v13648_v45 = vld [vmem:[#allocation3 + $0x560] sm:$0xff]  ;;  %v13818_v42 = vld [vmem:[#allocation3 + $0xab0] sm:$0xff] }
 0xa2b   :  { %14321 = vmatprep.subr.bf16.mxu0 %v13565_v11  ;;  %14892 = vmatprep.subr.bf16.mxu1 %v13678_v13  ;;  %v13656_v11 = vld [vmem:[#allocation3 + $0x5a0] sm:$0xff]  ;;  %v13881_v13 = vld [vmem:[#allocation3 + $0xca8] sm:$0xff] }
 0xa2e   :  { %14322 = vmatpush1.bf16.msra.mxu0 %v13564_v12  ;;  %14893 = vmatpush3.bf16.msra.mxu1 %v13622_v14  ;;  %v13655_v12 = vld [vmem:[#allocation3 + $0x598] sm:$0xff]  ;;  %v13825_v14 = vld [vmem:[#allocation3 + $0xae8] sm:$0xff] }
 0xa2f   :  { %14323 = vmatprep.subr.bf16.mxu0 %v13572_v8  ;;  %14894 = vmatprep.subr.bf16.mxu1 %v13685_v38  ;;  %v13663_v8 = vld [vmem:[#allocation3 + $0x5d8] sm:$0xff]  ;;  %v13888_v38 = vld [vmem:[#allocation3 + $0xce0] sm:$0xff] }
 0xa32   :  { %14324 = vmatpush1.bf16.msra.mxu0 %v13571_v56  ;;  %14895 = vmatpush3.bf16.msra.mxu1 %v13629_v9  ;;  %v13662_v56 = vld [vmem:[#allocation3 + $0x5d0] sm:$0xff]  ;;  %v13832_v9 = vld [vmem:[#allocation3 + $0xb20] sm:$0xff] }
 0xa33   :  { %14325 = vmatprep.subr.bf16.mxu0 %v13579_v10  ;;  %14896 = vmatprep.subr.bf16.mxu1 %v13692_v49  ;;  %v13670_v10 = vld [vmem:[#allocation3 + $0x610] sm:$0xff]  ;;  %v13895_v49 = vld [vmem:[#allocation3 + $0xd18] sm:$0xff] }
 0xa36   :  { %14326 = vmatpush1.bf16.msra.mxu0 %v13578_v5  ;;  %14897 = vmatpush3.bf16.msra.mxu1 %v13636_v43  ;;  %v13669_v5 = vld [vmem:[#allocation3 + $0x608] sm:$0xff]  ;;  %v13839_v43 = vld [vmem:[#allocation3 + $0xb58] sm:$0xff] }
 0xa37   :  { %14327 = vmatprep.subr.bf16.mxu0 %v13586_v1  ;;  %14898 = vmatprep.subr.bf16.mxu1 %v13699_v50  ;;  %v13677_v1 = vld [vmem:[#allocation3 + $0x648] sm:$0xff]  ;;  %v13902_v50 = vld [vmem:[#allocation3 + $0xd50] sm:$0xff] }
 0xa3a   :  { %14328 = vmatpush1.bf16.msra.mxu0 %v13585_v16  ;;  %14899 = vmatpush3.bf16.msra.mxu1 %v13643_v19  ;;  %v13676_v16 = vld [vmem:[#allocation3 + $0x640] sm:$0xff]  ;;  %v13846_v19 = vld [vmem:[#allocation3 + $0xb90] sm:$0xff] }
 0xa3b   :  { %14338 = vmatprep.subr.bf16.mxu0 %v13593_v18  ;;  %14906 = vmatprep.subr.bf16.mxu1 %v13762_v40  ;;  %v13684_v18 = vld [vmem:[#allocation3 + $0x680] sm:$0xff]  ;;  %v13909_v40 = vld [vmem:[#allocation3 + $0xd88] sm:$0xff] }
 0xa3d   :  { %14330 = vmatmul.mubr.bf16.vlgmr.msra.gmra.mrb[16].mxu0 %v19779_v0  ;;  %14534 = vmatmul.mubr.bf16.vlgmr.msra.gmra.mrb[28].mxu1 %v19791_v31  ;;  %v13720_v0 = vld [vmem:[#allocation3 + $0x7a0] sm:$0xff] }
 0xa3e   :  { %14339 = vmatpush1.bf16.msra.mxu0 %v13592_v51  ;;  %14907 = vmatpush3.bf16.msra.mxu1 %v13706_v22  ;;  %v13683_v51 = vld [vmem:[#allocation3 + $0x678] sm:$0xff]  ;;  %v13853_v22 = vld [vmem:[#allocation3 + $0xbc8] sm:$0xff] }
 0xa3f   :  { %14340 = vmatprep.subr.bf16.mxu0 %v13600_v7  ;;  %14908 = vmatprep.subr.bf16.mxu1 %v13769_v24  ;;  %v13691_v7 = vld [vmem:[#allocation3 + $0x6b8] sm:$0xff]  ;;  %v13916_v24 = vld [vmem:[#allocation3 + $0xdc0] sm:$0xff] }
 0xa40   :  { %14370 = vmatprep.mubr.bf16.mxu0 %v19783_v15  ;;  %14573 = vmatprep.mubr.bf16.mxu1 %v19795_v48  ;;  %v13620_v15 = vld [vmem:[#allocation3 + $0x480] sm:$0xff] }
 0xa42   :  { %14341 = vmatpush1.bf16.msra.mxu0 %v13599_v20  ;;  %14909 = vmatpush3.bf16.msra.mxu1 %v13713_v30  ;;  %v13690_v20 = vld [vmem:[#allocation3 + $0x6b0] sm:$0xff]  ;;  %v13860_v30 = vld [vmem:[#allocation3 + $0xc00] sm:$0xff] }
 0xa43   :  { %14342 = vmatprep.subr.bf16.mxu0 %v13607_v32  ;;  %14910 = vmatprep.subr.bf16.mxu1 %v13776_v33  ;;  %v13698_v32 = vld [vmem:[#allocation3 + $0x6f0] sm:$0xff]  ;;  %v13923_v33 = vld [vmem:[#allocation3 + $0xdf8] sm:$0xff] }
 0xa46   :  { %14343 = vmatpush1.bf16.msra.mxu0 %v13606_v34  ;;  %14911 = vmatpush3.bf16.msra.mxu1 %v13720_v0  ;;  %v13697_v34 = vld [vmem:[#allocation3 + $0x6e8] sm:$0xff]  ;;  %v13867_v0 = vld [vmem:[#allocation3 + $0xc38] sm:$0xff] }
 0xa47   :  { %14344 = vmatprep.subr.bf16.mxu0 %v13614_v35  ;;  %14912 = vmatprep.subr.bf16.mxu1 %v13783_v58  ;;  %v13705_v35 = vld [vmem:[#allocation3 + $0x728] sm:$0xff]  ;;  %v13704_v58 = vld [vmem:[#allocation3 + $0x720] sm:$0xff] }
 0xa4a   :  { %14345 = vmatpush1.bf16.msra.mxu0 %v13613_v23  ;;  %14913 = vmatpush3.bf16.msra.mxu1 %v13727_v54  ;;  %v13712_v23 = vld [vmem:[#allocation3 + $0x760] sm:$0xff]  ;;  %v13711_v54 = vld [vmem:[#allocation3 + $0x758] sm:$0xff] }
 0xa4b   :  { %14346 = vmatprep.subr.bf16.mxu0 %v13621_v36  ;;  %14914 = vmatprep.subr.bf16.mxu1 %v13790_v4  ;;  %v13719_v36 = vld [vmem:[#allocation3 + $0x798] sm:$0xff]  ;;  %v13718_v4 = vld [vmem:[#allocation3 + $0x790] sm:$0xff] }
 0xa4e   :  { %14347 = vmatpush1.bf16.msra.mxu0 %v13620_v15  ;;  %14915 = vmatpush3.bf16.msra.mxu1 %v13734_v39  ;;  %v13726_v15 = vld [vmem:[#allocation3 + $0x7d0] sm:$0xff]  ;;  %v13725_v39 = vld [vmem:[#allocation3 + $0x7c8] sm:$0xff] }
 0xa4f   :  { %14348 = vmatprep.subr.bf16.mxu0 %v13628_v41  ;;  %14916 = vmatprep.subr.bf16.mxu1 %v13797_v59  ;;  %v13733_v41 = vld [vmem:[#allocation3 + $0x808] sm:$0xff]  ;;  %v13732_v59 = vld [vmem:[#allocation3 + $0x800] sm:$0xff] }
 0xa52   :  { %14349 = vmatpush1.bf16.msra.mxu0 %v13627_v60  ;;  %14917 = vmatpush3.bf16.msra.mxu1 %v13741_v61  ;;  %v13739_v60 = vld [vmem:[#allocation3 + $0x838] sm:$0xff] }
 0xa53   :  { %14350 = vmatprep.subr.bf16.mxu0 %v13635_v63  ;;  %14918 = vmatprep.subr.bf16.mxu1 %v13804_v2  ;;  %v13747_v61 = vld [vmem:[#allocation3 + $0x878] sm:$0xff]  ;;  %v13754_v63 = vld [vmem:[#allocation3 + $0x8b0] sm:$0xff]  ;;  %v13753_v2 = vld [vmem:[#allocation3 + $0x8a8] sm:$0xff] }
 0xa56   :  { %14351 = vmatpush1.bf16.msra.mxu0 %v13634_v29  ;;  %14919 = vmatpush3.bf16.msra.mxu1 %v13748_v37  ;;  %v13761_v29 = vld [vmem:[#allocation3 + $0x8e8] sm:$0xff]  ;;  %v13760_v37 = vld [vmem:[#allocation3 + $0x8e0] sm:$0xff] }
 0xa57   :  { %14352 = vmatprep.subr.bf16.mxu0 %v13642_v46  ;;  %14920 = vmatprep.subr.bf16.mxu1 %v13811_v3  ;;  %v13768_v46 = vld [vmem:[#allocation3 + $0x920] sm:$0xff]  ;;  %v13767_v3 = vld [vmem:[#allocation3 + $0x918] sm:$0xff] }
 0xa5a   :  { %14353 = vmatpush1.bf16.msra.mxu0 %v13641_v44  ;;  %14921 = vmatpush3.bf16.msra.mxu1 %v13755_v21  ;;  %v13775_v44 = vld [vmem:[#allocation3 + $0x958] sm:$0xff]  ;;  %v13774_v21 = vld [vmem:[#allocation3 + $0x950] sm:$0xff] }
 0xa5b   :  { %14354 = vmatprep.subr.bf16.mxu0 %v13649_v47  ;;  %14928 = vmatprep.subr.bf16.mxu1 %v13874_v6  ;;  %v13782_v47 = vld [vmem:[#allocation3 + $0x990] sm:$0xff]  ;;  %v13781_v6 = vld [vmem:[#allocation3 + $0x988] sm:$0xff] }
 0xa5d   :  { %14574 = vmatmul.mubr.bf16.vlgmr.msra.gmra.mrb[32].mxu1 %v19803_v25 }
 0xa5e   :  { %14355 = vmatpush1.bf16.msra.mxu0 %v13648_v45  ;;  %14929 = vmatpush3.bf16.msra.mxu1 %v13818_v42  ;;  %v13789_v45 = vld [vmem:[#allocation3 + $0x9c8] sm:$0xff]  ;;  %v13788_v42 = vld [vmem:[#allocation3 + $0x9c0] sm:$0xff] }
 0xa5f   :  { %14356 = vmatprep.subr.bf16.mxu0 %v13656_v11  ;;  %14930 = vmatprep.subr.bf16.mxu1 %v13881_v13  ;;  %v13796_v11 = vld [vmem:[#allocation3 + $0xa00] sm:$0xff]  ;;  %v13795_v13 = vld [vmem:[#allocation3 + $0x9f8] sm:$0xff] }
 0xa60   :  { %14613 = vmatprep.mubr.bf16.mxu1 %v19807_v17 }
 0xa62   :  { %14357 = vmatpush1.bf16.msra.mxu0 %v13655_v12  ;;  %14931 = vmatpush3.bf16.msra.mxu1 %v13825_v14  ;;  %v13803_v12 = vld [vmem:[#allocation3 + $0xa38] sm:$0xff]  ;;  %v13802_v14 = vld [vmem:[#allocation3 + $0xa30] sm:$0xff] }
 0xa63   :  { %14358 = vmatprep.subr.bf16.mxu0 %v13663_v8  ;;  %14932 = vmatprep.subr.bf16.mxu1 %v13888_v38  ;;  %v13810_v8 = vld [vmem:[#allocation3 + $0xa70] sm:$0xff]  ;;  %v13809_v38 = vld [vmem:[#allocation3 + $0xa68] sm:$0xff] }
 0xa66   :  { %14359 = vmatpush1.bf16.msra.mxu0 %v13662_v56  ;;  %14933 = vmatpush3.bf16.msra.mxu1 %v13832_v9  ;;  %v13817_v56 = vld [vmem:[#allocation3 + $0xaa8] sm:$0xff]  ;;  %v13816_v9 = vld [vmem:[#allocation3 + $0xaa0] sm:$0xff] }
 0xa67   :  { %14360 = vmatprep.subr.bf16.mxu0 %v13670_v10  ;;  %14934 = vmatprep.subr.bf16.mxu1 %v13895_v49  ;;  %v13824_v10 = vld [vmem:[#allocation3 + $0xae0] sm:$0xff]  ;;  %v13823_v49 = vld [vmem:[#allocation3 + $0xad8] sm:$0xff] }
 0xa6a   :  { %14361 = vmatpush1.bf16.msra.mxu0 %v13669_v5  ;;  %14935 = vmatpush3.bf16.msra.mxu1 %v13839_v43  ;;  %v13831_v5 = vld [vmem:[#allocation3 + $0xb18] sm:$0xff]  ;;  %v13830_v43 = vld [vmem:[#allocation3 + $0xb10] sm:$0xff] }
 0xa6b   :  { %14362 = vmatprep.subr.bf16.mxu0 %v13677_v1  ;;  %14936 = vmatprep.subr.bf16.mxu1 %v13902_v50  ;;  %v13838_v1 = vld [vmem:[#allocation3 + $0xb50] sm:$0xff]  ;;  %v13837_v50 = vld [vmem:[#allocation3 + $0xb48] sm:$0xff] }
 0xa6e   :  { %14363 = vmatpush1.bf16.msra.mxu0 %v13676_v16  ;;  %14937 = vmatpush3.bf16.msra.mxu1 %v13846_v19  ;;  %v13845_v16 = vld [vmem:[#allocation3 + $0xb88] sm:$0xff]  ;;  %v19837_v19 = vld [vmem:[%s19879_s13] sm:$0x7f]  ;;  %s15232_s13 = smov [#allocation5]  }
 0xa6f   :  { %14364 = vmatprep.subr.bf16.mxu0 %v13684_v18  ;;  %14938 = vmatprep.subr.bf16.mxu1 %v13909_v40  ;;  %v13937_v18 = vrot.slane %v19837_v19, %v19435_v26  ;;  %v13945_v40 = vrot.slane %v19837_v19, %v19569_v52  ;;  %s14642_s24 = sshll.u32 %s15232_s13, 4  ;;  %s14643_s24 = int_to_ptr.vmem [resolvable:$true] %s14642_s24 }
 0xa70   :  { %s15200_s25 = scalar_lea.vmem %s14643_s24, 896  ;;  %p15205_p1 = scmp.lt.s32.totalorder %s14643_s24, %s14643_s24 }
 0xa71   :  { %p15201_p0 = scmp.ne.s32.totalorder %s14643_s24, %s15200_s25  ;;  %p15206_p2 = scmp.lt.s32.totalorder %s15200_s25, %s15200_s25 }
 0xa72   :  { %14365 = vmatpush1.bf16.msra.mxu0 %v13683_v51  ;;  %14939 = vmatpush3.bf16.msra.mxu1 %v13853_v22  ;;  %v13941_v51 = vrot.slane %v19837_v19, %v19438_v27  ;;  %v13949_v22 = vrot.slane %v19837_v19, %v19572_v53  ;;  %v13866_v53 = vld [vmem:[#allocation3 + $0xc30] sm:$0xff] }
 0xa73   :  { %14366 = vmatprep.subr.bf16.mxu0 %v13691_v7  ;;  %14940 = vmatprep.subr.bf16.mxu1 %v13916_v24  ;;  %v13851_v7 = vld [vmem:[#allocation3 + $0xbb8] sm:$0xff]  ;;  %p15207_p3 = por %p15206_p2, %p15205_p1 }
 0xa75   :  { %p15208_p4 = pnand %p15207_p3, %p15201_p0 }
 0xa76   :  { %14367 = vmatpush1.bf16.msra.mxu0 %v13690_v20  ;;  %14941 = vmatpush3.bf16.msra.mxu1 %v13860_v30  ;;  %v13859_v30 = vld [vmem:[#allocation3 + $0xbf8] sm:$0xff] }
 0xa77   :  { %14368 = vmatprep.subr.bf16.mxu0 %v13698_v32  ;;  %14942 = vmatprep.subr.bf16.mxu1 %v13923_v33 }
 0xa7a   :  { %14369 = vmatpush1.bf16.msra.mxu0 %v13697_v34  ;;  %14943 = vmatpush3.bf16.msra.mxu1 %v13867_v0 }
 0xa7b   :  { %14379 = vmatprep.subr.bf16.mxu0 %v13705_v35 }
 0xa7d   :  { %14371 = vmatmul.mubr.bf16.vlgmr.msra.gmra.mrb[16].mxu0 %v19791_v31  ;;  %14614 = vmatmul.mubr.bf16.vlgmr.msra.gmra.mrb[36].mxu1 %v19815_v62  ;;  %v13740_v31 = vld [vmem:[#allocation3 + $0x840] sm:$0xff] }
 0xa7e   :  { %14380 = vmatpush1.bf16.msra.mxu0 %v13704_v58  ;;  %14411 = vmatprep.mubr.bf16.mxu0 %v19795_v48  ;;  %v13746_v48 = vld [vmem:[#allocation3 + $0x870] sm:$0xff] }
 0xa7f   :  { %14381 = vmatprep.subr.bf16.mxu0 %v13712_v23 }
 0xa82   :  { %14382 = vmatpush1.bf16.msra.mxu0 %v13711_v54  ;;  %v13858_v54 = vld [vmem:[#allocation3 + $0xbf0] sm:$0xff] }
 0xa83   :  { %14383 = vmatprep.subr.bf16.mxu0 %v13719_v36  ;;  %v13865_v36 = vld [vmem:[#allocation3 + $0xc28] sm:$0xff] }
 0xa86   :  { %14384 = vmatpush1.bf16.msra.mxu0 %v13718_v4  ;;  %v13873_v4 = vld [vmem:[#allocation3 + $0xc68] sm:$0xff] }
 0xa87   :  { %14385 = vmatprep.subr.bf16.mxu0 %v13726_v15  ;;  %v13872_v15 = vld [vmem:[#allocation3 + $0xc60] sm:$0xff] }
 0xa8a   :  { %14386 = vmatpush1.bf16.msra.mxu0 %v13725_v39  ;;  %v13880_v39 = vld [vmem:[#allocation3 + $0xca0] sm:$0xff] }
 0xa8b   :  { %14387 = vmatprep.subr.bf16.mxu0 %v13733_v41 }
 0xa8e   :  { %14388 = vmatpush1.bf16.msra.mxu0 %v13732_v59 }
 0xa8f   :  { %14389 = vmatprep.subr.bf16.mxu0 %v13740_v31 }
 0xa92   :  { %14390 = vmatpush1.bf16.msra.mxu0 %v13739_v60  ;;  %v13879_v60 = vld [vmem:[#allocation3 + $0xc98] sm:$0xff] }
 0xa93   :  { %14391 = vmatprep.subr.bf16.mxu0 %v13747_v61 }
 0xa96   :  { %14392 = vmatpush1.bf16.msra.mxu0 %v13746_v48  ;;  %v13887_v48 = vld [vmem:[#allocation3 + $0xcd8] sm:$0xff] }
 0xa97   :  { %14393 = vmatprep.subr.bf16.mxu0 %v13754_v63  ;;  %v13886_v63 = vld [vmem:[#allocation3 + $0xcd0] sm:$0xff] }
 0xa9a   :  { %14394 = vmatpush1.bf16.msra.mxu0 %v13753_v2  ;;  %v13894_v2 = vld [vmem:[#allocation3 + $0xd10] sm:$0xff] }
 0xa9b   :  { %14395 = vmatprep.subr.bf16.mxu0 %v13761_v29  ;;  %v13893_v29 = vld [vmem:[#allocation3 + $0xd08] sm:$0xff] }
 0xa9e   :  { %14396 = vmatpush1.bf16.msra.mxu0 %v13760_v37  ;;  %v13901_v37 = vld [vmem:[#allocation3 + $0xd48] sm:$0xff] }
 0xa9f   :  { %14397 = vmatprep.subr.bf16.mxu0 %v13768_v46  ;;  %v13900_v46 = vld [vmem:[#allocation3 + $0xd40] sm:$0xff] }
 0xaa2   :  { %14398 = vmatpush1.bf16.msra.mxu0 %v13767_v3  ;;  %v13908_v3 = vld [vmem:[#allocation3 + $0xd80] sm:$0xff] }
 0xaa3   :  { %14399 = vmatprep.subr.bf16.mxu0 %v13775_v44  ;;  %v13907_v44 = vld [vmem:[#allocation3 + $0xd78] sm:$0xff] }
 0xaa6   :  { %14400 = vmatpush1.bf16.msra.mxu0 %v13774_v21  ;;  %v13915_v21 = vld [vmem:[#allocation3 + $0xdb8] sm:$0xff] }
 0xaa7   :  { %14401 = vmatprep.subr.bf16.mxu0 %v13782_v47 }
 0xaaa   :  { %14402 = vmatpush1.bf16.msra.mxu0 %v13781_v6 }
 0xaab   :  { %14403 = vmatprep.subr.bf16.mxu0 %v13789_v45 }
 0xaae   :  { %14404 = vmatpush1.bf16.msra.mxu0 %v13788_v42 }
 0xaaf   :  { %14405 = vmatprep.subr.bf16.mxu0 %v13796_v11  ;;  %v13914_v11 = vld [vmem:[#allocation3 + $0xdb0] sm:$0xff] }
 0xab2   :  { %14406 = vmatpush1.bf16.msra.mxu0 %v13795_v13 }
 0xab3   :  { %14407 = vmatprep.subr.bf16.mxu0 %v13803_v12  ;;  %v13922_v12 = vld [vmem:[#allocation3 + $0xdf0] sm:$0xff] }
 0xab6   :  { %14408 = vmatpush1.bf16.msra.mxu0 %v13802_v14  ;;  %v13921_v14 = vld [vmem:[#allocation3 + $0xde8] sm:$0xff] }
 0xab7   :  { %14409 = vmatprep.subr.bf16.mxu0 %v13810_v8  ;;  %v13961_v8 = vrot.slane %v19837_v19, %v19717_v57 }
 0xaba   :  { %14410 = vmatpush1.bf16.msra.mxu0 %v13809_v38 }
 0xabb   :  { %14420 = vmatprep.subr.bf16.mxu0 %v13817_v56 }
 0xabd   :  { %14412 = vmatmul.mubr.bf16.vlgmr.msra.gmra.mrb[16].mxu0 %v19803_v25  ;;  %v13844_v25 = vld [vmem:[#allocation3 + $0xb80] sm:$0xff] }
 0xabe   :  { %14421 = vmatpush1.bf16.msra.mxu0 %v13816_v9  ;;  %14452 = vmatprep.mubr.bf16.mxu0 %v19807_v17  ;;  %v13852_v17 = vld [vmem:[#allocation3 + $0xbc0] sm:$0xff] }
 0xabf   :  { %14422 = vmatprep.subr.bf16.mxu0 %v13824_v10 }
 0xac2   :  { %14423 = vmatpush1.bf16.msra.mxu0 %v13823_v49 }
 0xac3   :  { %14424 = vmatprep.subr.bf16.mxu0 %v13831_v5 }
 0xac6   :  { %14425 = vmatpush1.bf16.msra.mxu0 %v13830_v43 }
 0xac7   :  { %14426 = vmatprep.subr.bf16.mxu0 %v13838_v1 }
 0xaca   :  { %14427 = vmatpush1.bf16.msra.mxu0 %v13837_v50 }
 0xacb   :  { %14428 = vmatprep.subr.bf16.mxu0 %v13845_v16 }
 0xace   :  { %14429 = vmatpush1.bf16.msra.mxu0 %v13844_v25 }
 0xacf   :  { %14430 = vmatprep.subr.bf16.mxu0 %v13852_v17 }
 0xad0   :  { %v14126_v24 = vpop.f32.mrb[12].mxu0  ;;  %v14290_v20 = vpop.f32.mrb[20].mxu1 }
 0xad1   :  { %v14968_v32 = vadd.f32 %v14126_v24, %v13937_v18  ;;  %v14970_v33 = vadd.f32 %v14290_v20, %v13945_v40  ;;  %v14128_v34 = vpop.f32.mrb[13].mxu0  ;;  %v14292_v0 = vpop.f32.mrb[21].mxu1  ;;  %v13953_v20 = vrot.slane %v19837_v19, %v19711_v28 }
 0xad2   :  { %v14969_v26 = vadd.f32 %v14128_v34, %v13941_v51  ;;  %v14971_v35 = vadd.f32 %v14292_v0, %v13949_v22  ;;  %v14130_v58 = vpop.f32.mrb[14].mxu0  ;;  %v14294_v52 = vpop.f32.mrb[22].mxu1  ;;  %14431 = vmatpush1.bf16.msra.mxu0 %v13851_v7 }
 0xad3   :  { %15186 = vtanh.f32 %v14968_v32  ;;  %v14131_v23 = vpop.f32.mrb[15].mxu0  ;;  %v14295_v27 = vpop.f32.mrb[23].mxu1  ;;  %14432 = vmatprep.subr.bf16.mxu0 %v13859_v30  ;;  %v13957_v30 = vrot.slane %v19837_v19, %v19714_v55 }
 0xad4   :  { %15188 = vtanh.f32 %v14970_v33 }
 0xad5   :  { %15190 = vtanh.f32 %v14969_v26 }
 0xad6   :  { %15192 = vtanh.f32 %v14971_v35  ;;  %14433 = vmatpush1.bf16.msra.mxu0 %v13858_v54 }
 0xad7   :  { %14434 = vmatprep.subr.bf16.mxu0 %v13866_v53 }
 0xada   :  { %14435 = vmatpush1.bf16.msra.mxu0 %v13865_v36 }
 0xadb   :  { %14436 = vmatprep.subr.bf16.mxu0 %v13873_v4 }
 0xadd   :  { %v15187_v41 = vpop.eup %15186 }
 0xade   :  { %v15189_v59 = vpop.eup %15188  ;;  %14628 = vst [vmem:[#allocation5] sm:$0xff] %v15187_v41  ;;  %14437 = vmatpush1.bf16.msra.mxu0 %v13872_v15 }
 0xadf   :  { %v15191_v31 = vpop.eup %15190  ;;  %14630 = vst [vmem:[#allocation5 + $0x10] sm:$0xff] %v15189_v59  ;;  %14438 = vmatprep.subr.bf16.mxu0 %v13880_v39 }
 0xae0   :  { %v15193_v61 = vpop.eup %15192  ;;  %14629 = vst [vmem:[#allocation5 + $0x8] sm:$0xff] %v15191_v31 }
 0xae1   :  { %14631 = vst [vmem:[#allocation5 + $0x18] sm:$0xff] %v15193_v61 }
 0xae2   :  { %14439 = vmatpush1.bf16.msra.mxu0 %v13879_v60 }
 0xae3   :  { %14440 = vmatprep.subr.bf16.mxu0 %v13887_v48 }
 0xae6   :  { %14441 = vmatpush1.bf16.msra.mxu0 %v13886_v63 }
 0xae7   :  { %14442 = vmatprep.subr.bf16.mxu0 %v13894_v2 }
 0xaea   :  { %14443 = vmatpush1.bf16.msra.mxu0 %v13893_v29 }
 0xaeb   :  { %14444 = vmatprep.subr.bf16.mxu0 %v13901_v37 }
 0xaee   :  { %14445 = vmatpush1.bf16.msra.mxu0 %v13900_v46 }
 0xaef   :  { %14446 = vmatprep.subr.bf16.mxu0 %v13908_v3 }
 0xaf0   :  { %v14878_v47 = vpop.f32.mrb[24].mxu1 }
 0xaf1   :  { %v14879_v6 = vpop.f32.mrb[25].mxu1 }
 0xaf2   :  { %14447 = vmatpush1.bf16.msra.mxu0 %v13907_v44  ;;  %v14880_v45 = vadd.f32 %v14879_v6, %v14878_v47  ;;  %v14881_v42 = vpop.f32.mrb[26].mxu1 }
 0xaf3   :  { %14448 = vmatprep.subr.bf16.mxu0 %v13915_v21  ;;  %v14882_v13 = vpop.f32.mrb[27].mxu1 }
 0xaf4   :  { %v14496_v38 = vadd.f32 %v14880_v45, %v13961_v8 }
 0xaf6   :  { %14449 = vmatpush1.bf16.msra.mxu0 %v13914_v11 }
 0xaf7   :  { %14450 = vmatprep.subr.bf16.mxu0 %v13922_v12 }
 0xafa   :  { %14451 = vmatpush1.bf16.msra.mxu0 %v13921_v14 }
 0xafd   :  { %14453 = vmatmul.mubr.bf16.vlgmr.msra.gmra.mrb[16].mxu0 %v19815_v62 }
 0xb10   :  { %v14900_v56 = vpop.f32.mrb[28].mxu1 }
 0xb11   :  { %v14901_v9 = vpop.f32.mrb[29].mxu1 }
 0xb12   :  { %v14902_v10 = vadd.f32 %v14901_v9, %v14900_v56  ;;  %v14903_v49 = vpop.f32.mrb[30].mxu1 }
 0xb13   :  { %v14904_v5 = vpop.f32.mrb[31].mxu1 }
 0xb14   :  { %v14536_v43 = vadd.f32 %v14902_v10, %v14496_v38 }
 0xb30   :  { %v14922_v1 = vpop.f32.mrb[32].mxu1 }
 0xb31   :  { %v14923_v50 = vpop.f32.mrb[33].mxu1 }
 0xb32   :  { %v14924_v16 = vadd.f32 %v14923_v50, %v14922_v1  ;;  %v14925_v25 = vpop.f32.mrb[34].mxu1 }
 0xb33   :  { %v14926_v17 = vpop.f32.mrb[35].mxu1 }
 0xb34   :  { %v14576_v18 = vadd.f32 %v14924_v16, %v14536_v43 }
 0xb50   :  { %v14944_v40 = vpop.f32.mrb[36].mxu1 }
 0xb51   :  { %v14945_v51 = vpop.f32.mrb[37].mxu1 }
 0xb52   :  { %v14946_v22 = vadd.f32 %v14945_v51, %v14944_v40  ;;  %v14947_v62 = vpop.f32.mrb[38].mxu1 }
 0xb53   :  { %v14948_v7 = vpop.f32.mrb[39].mxu1 }
 0xb54   :  { %v14616_v24 = vadd.f32 %v14946_v22, %v14576_v18 }
 0xb56   :  { %15194 = vtanh.f32 %v14616_v24 }
 0xb60   :  { %v15195_v57 = vpop.eup %15194 }
 0xb61   :  { %14635 = vst.msk [vmem:[#allocation5 + $0x30] sm:$0xff] %vm14634_vm3, %v15195_v57 }
 0xbd0   :  { %v14454_v32 = vpop.f32.mrb[16].mxu0 }
 0xbd1   :  { %v14972_v33 = vadd.f32 %v14454_v32, %v13953_v20  ;;  %v14456_v34 = vpop.f32.mrb[17].mxu0 }
 0xbd2   :  { %v14973_v0 = vadd.f32 %v14456_v34, %v13957_v30  ;;  %v14458_v26 = vpop.f32.mrb[18].mxu0 }
 0xbd3   :  { %15196 = vtanh.f32 %v14972_v33  ;;  %v14459_v35 = vpop.f32.mrb[19].mxu0 }
 0xbd4   :  { %15198 = vtanh.f32 %v14973_v0 }
 0xbdd   :  { %v15197_v58 = vpop.eup %15196 }
 0xbde   :  { %v15199_v52 = vpop.eup %15198  ;;  %14632 = vst [vmem:[#allocation5 + $0x20] sm:$0xff] %v15197_v58 }
 0xbdf   :  { %14633 = vst [vmem:[#allocation5 + $0x28] sm:$0xff] %v15199_v52 }
 0xbe0   :  { %15211 = shalt.err (!%p15208_p4)
}
 0xbe1   :  { %s15212_s3 = scalar_lea.hbm %s19880_s14, 896 }
 0xbe2   :  { %p15213_p5 = scmp.ne.s32.totalorder %s19880_s14, %s15212_s3  ;;  %p15216_p6 = scmp.lt.u32.totalorder %s15212_s3, %s19880_s14 }
 0xbe4   :  { %p15218_p7 = pnand %p15216_p6, %p15213_p5 }
 0xbe6   :  { %15221 = shalt.err (!%p15218_p7)
}
 0xbe7   :  { %14645 = dma.vmem_to_hbm [thread:$0]  %s14643_s24, 896, %s19880_s14, [#allocation6]  }
 0xbe8   :  { %15226 = dma.done.wait [#allocation6], 896  }
 0xbe9   :  { %15227 = vsyncadd [#allocation6], 4294966400 }
 0xbea   :  { %14649 = vsyncpa [#allocation6], 1 }
 0xbeb   :  { %14650 = vsyncmov [#allocation4] }
 0xbee   :  { %s14651_s1 = vpop.sfrf %14650 }
 0xbef   :  { %p14852_p8 = scmp.ne.s32.totalorder %s14651_s1, 0 }
 0xbf1   :  { %14655 = shalt.err (%p14852_p8)  }
 0xbf2   :  { %14657 = vsyncmov [#allocation4 + $0x1] }
 0xbf5   :  { %s14658_s15 = vpop.sfrf %14657 }
 0xbf6   :  { %p14853_p9 = scmp.ne.s32.totalorder %s14658_s15, 0 }
 0xbf8   :  { %14662 = shalt.err (%p14853_p9)  }

</bundles_post_ra>
